<compile_context>
chip_gen: v7x
topology: tpu7x:2x2x1
jax: 0.10.0
libtpu: 0.0.40
codegen_flags: <defaults>
</compile_context>

<pallas_src>
import functools
import math

import jax
import jax.numpy as jnp
from jax import lax
from jax.experimental import pallas as pl
from jax.experimental.pallas import tpu as pltpu

EPS = 1e-5  # nn.BatchNorm2d default eps


def _bn(x, gamma, beta, *, relu):
    """Training-mode BatchNorm over rows of (M, C); two-pass (mean-subtracted)
    variance in f32, folded into one FMA."""
    inv_m = 1.0 / x.shape[0]
    mean = jnp.sum(x, axis=0, keepdims=True) * inv_m
    d = x - mean
    var = jnp.sum(d * d, axis=0, keepdims=True) * inv_m   # biased variance
    scale = gamma * lax.rsqrt(var + EPS)
    y = d * scale + beta
    return jnp.maximum(y, 0.0) if relu else y


def _conv_s1_taps(pad_ref, h_f32, w_ref, *, n, oh, ow, c, k, p):
    """Stride-1 KxK conv as K*K accumulating tap matmuls from the padded
    bf16 VMEM scratch (no im2col patch matrix).

    pad_ref : (N, OH+2p, OW+2p, C) bf16 scratch; halo already zero.
    h_f32   : (M, C) f32 conv input values.
    w_ref   : (K*K*C, Cout) bf16 reshaped HWIO weights (tap t = rows t*C:(t+1)*C).
    """
    m = n * oh * ow
    pad_ref[:, p:p + oh, p:p + ow, :] = (
        h_f32.astype(pad_ref.dtype).reshape(n, oh, ow, c))
    acc = jnp.zeros((m, c), jnp.float32)
    for kh in range(k):
        for kw in range(k):
            t = kh * k + kw
            tap = pad_ref[:, kh:kh + oh, kw:kw + ow, :].reshape(m, c)
            acc = acc + jnp.dot(tap, w_ref[t * c:(t + 1) * c, :],
                                preferred_element_type=jnp.float32)
    return acc


def _encoder_kernel(p1_ref, xd_ref, w11_ref, wd_ref, w21_ref, w12_ref, w22_ref,
                    bn_ref, o_ref, pad_ref,
                    *, n, oh, ow, c, k, p, has_downsample):
    def bn_p(i):                       # (1, C) gamma/beta row (f32)
        return bn_ref[i:i + 1, :]

    # Zero only the 1-px halo of the shared padded scratch (once); the interior
    # is fully overwritten before every stride-1 conv, so the halo stays valid.
    if p > 0:
        zh = jnp.zeros((n, p, ow + 2 * p, c), pad_ref.dtype)
        zw = jnp.zeros((n, oh + 2 * p, p, c), pad_ref.dtype)
        pad_ref[:, :p, :, :] = zh
        pad_ref[:, p + oh:, :, :] = zh
        pad_ref[:, :, :p, :] = zw
        pad_ref[:, :, p + ow:, :] = zw

    conv_s1 = functools.partial(_conv_s1_taps, pad_ref,
                                n=n, oh=oh, ow=ow, c=c, k=k, p=p)

    # ---------------- block 1 ----------------
    # conv1 (stride s; bf16 im2col patches from the wrapper, one MXU matmul)
    h = jnp.dot(p1_ref[...], w11_ref[...], preferred_element_type=jnp.float32)
    h = _bn(h, bn_p(0), bn_p(1), relu=True)
    # conv2 (stride 1, tap-accumulate matmuls from the padded VMEM scratch)
    h = conv_s1(h, w21_ref)
    h = _bn(h, bn_p(2), bn_p(3), relu=False)
    # downsample branch: 1x1 conv (stride handled by wrapper subsample) + bn
    if has_downsample:
        res = jnp.dot(xd_ref[...], wd_ref[...], preferred_element_type=jnp.float32)
        res = _bn(res, bn_p(4), bn_p(5), relu=False)
    else:
        res = xd_ref[...].astype(jnp.float32)
    x2 = jnp.maximum(h + res, 0.0)                       # (M, C) block1 output

    # ---------------- block 2 (stride 1, residual is its own input) ----------
    h = conv_s1(x2, w12_ref)
    h = _bn(h, bn_p(6), bn_p(7), relu=True)
    h = conv_s1(h, w22_ref)
    h = _bn(h, bn_p(8), bn_p(9), relu=False)
    out = jnp.maximum(h + x2, 0.0)                       # (M, C)

    # NHWC output; the permute to NCHW happens in the wrapper (XLA-fused).
    o_ref[...] = out.reshape(n, oh, ow, c).astype(o_ref.dtype)


def encoder_forward(x_nchw, params, *, kernel_size, stride, padding):
    """Fused Encoder forward. x_nchw: (N, Cin, H, W) float32 (PyTorch layout)."""
    (w11, w21, wd, g1, b1, g2, b2, gd, bd, w12, w22, g3, b3, g4, b4) = params
    n, cin, h, w = x_nchw.shape
    k, s, p = kernel_size, stride, padding
    c = w11.shape[3]
    assert 2 * p == k - 1, "residual adds require 'same' padding: p == (k-1)//2"
    oh = (h + 2 * p - k) // s + 1
    ow = (w + 2 * p - k) // s + 1
    has_downsample = s > 1
    if has_downsample:
        # 1x1 stride-s downsample output must line up with conv1's output
        assert (h - 1) // s + 1 == oh and (w - 1) // s + 1 == ow
    else:
        assert cin == c, "stride=1 BasicBlock needs in_planes == out_planes"
    m = n * oh * ow

    x_nhwc = jnp.transpose(x_nchw, (0, 2, 3, 1)).astype(jnp.float32)
    x_pad = jnp.pad(x_nhwc, ((0, 0), (p, p), (p, p), (0, 0)))

    # im2col for block1/conv1 only (the strided conv); all stride-1 convs read
    # their taps inside the kernel from the VMEM-resident padded scratch.
    taps = [x_pad[:, kh:kh + (oh - 1) * s + 1:s, kw:kw + (ow - 1) * s + 1:s, :]
            for kh in range(k) for kw in range(k)]
    p1 = jnp.concatenate(taps, axis=-1).reshape(m, k * k * cin)

    if has_downsample:
        xd = x_nhwc[:, ::s, ::s, :].reshape(m, cin)
        wd_m = wd.reshape(cin, c).astype(jnp.bfloat16)
        gd_v, bd_v = gd, bd
    else:  # residual is x itself; pass dummies for the unused downsample refs
        xd = x_nhwc.reshape(m, cin)
        wd_m = jnp.zeros((cin, c), jnp.bfloat16)
        gd_v = jnp.ones((c,), jnp.float32)
        bd_v = jnp.zeros((c,), jnp.float32)

    bn = jnp.stack([g1, b1, g2, b2, gd_v, bd_v, g3, b3, g4, b4],
                   axis=0).astype(jnp.float32)                      # (10, C)

    inputs = (
        p1.astype(jnp.bfloat16),
        xd.astype(jnp.bfloat16),
        w11.reshape(k * k * cin, c).astype(jnp.bfloat16),
        wd_m,
        w21.reshape(k * k * c, c).astype(jnp.bfloat16),
        w12.reshape(k * k * c, c).astype(jnp.bfloat16),
        w22.reshape(k * k * c, c).astype(jnp.bfloat16),
        bn,
    )

    def full_spec(shape):
        nd = len(shape)
        return pl.BlockSpec(shape, lambda i, _nd=nd: (0,) * _nd)

    out_shape = (n, oh, ow, c)
    pad_scratch = (n, oh + 2 * p, ow + 2 * p, c)

    # VMEM budget: inputs + output (x2 default double buffering), bf16 scratch,
    # headroom for compiler temporaries; clamped to the chip's real capacity.
    in_bytes = sum(int(a.size) * a.dtype.itemsize for a in inputs)
    out_bytes = math.prod(out_shape) * 4
    scratch_bytes = math.prod(pad_scratch) * 2
    want = 2 * (in_bytes + out_bytes) + scratch_bytes + (8 << 20)
    try:
        cap = int(pltpu.get_tpu_info().vmem_capacity_bytes)
    except Exception:
        cap = 64 << 20
    vmem_limit = int(min(want, cap))

    kern = functools.partial(_encoder_kernel, n=n, oh=oh, ow=ow, c=c, k=k, p=p,
                             has_downsample=has_downsample)

    out = pl.pallas_call(
        kern,
        out_shape=jax.ShapeDtypeStruct(out_shape, jnp.float32),
        grid_spec=pltpu.PrefetchScalarGridSpec(
            num_scalar_prefetch=0,
            grid=(1,),
            in_specs=[full_spec(a.shape) for a in inputs],
            out_specs=full_spec(out_shape),
            scratch_shapes=[pltpu.VMEM(pad_scratch, jnp.bfloat16)]),
        compiler_params=pltpu.CompilerParams(
            dimension_semantics=("arbitrary",),
            vmem_limit_bytes=vmem_limit),
    )(*inputs)

    return jnp.transpose(out, (0, 3, 1, 2))              # NHWC -> NCHW


def encoder_ref(x_nchw, params, *, kernel_size, stride, padding):
    """Plain-JAX reference mirroring the PyTorch Encoder (training-mode BN)."""
    (w11, w21, wd, g1, b1, g2, b2, gd, bd, w12, w22, g3, b3, g4, b4) = params
    x = jnp.transpose(x_nchw, (0, 2, 3, 1)).astype(jnp.float32)

    def conv(hh, ww, s, p):
        return lax.conv_general_dilated(
            hh, ww, (s, s), [(p, p), (p, p)],
            dimension_numbers=("NHWC", "HWIO", "NHWC"))

    def bn(hh, g, b):
        mu = jnp.mean(hh, axis=(0, 1, 2), keepdims=True)
        vv = jnp.mean((hh - mu) ** 2, axis=(0, 1, 2), keepdims=True)
        return (hh - mu) * lax.rsqrt(vv + EPS) * g + b

    def block(hh, wa, wb, ga, ba, gb, bb, s, down):
        out = jax.nn.relu(bn(conv(hh, wa, s, padding), ga, ba))
        out = bn(conv(out, wb, 1, padding), gb, bb)
        if down is None:
            res = hh
        else:
            wdn, gdn, bdn = down
            res = bn(conv(hh, wdn[None, None], s, 0), gdn, bdn)
        return jax.nn.relu(out + res)

    hh = block(x, w11, w21, g1, b1, g2, b2, stride,
               (wd, gd, bd) if stride > 1 else None)
    hh = block(hh, w12, w22, g3, b3, g4, b4, 1, None)
    return jnp.transpose(hh, (0, 3, 1, 2))


if __name__ == "__main__":
    N, Cin, Cout, H, W = 2, 4, 8, 16, 16
    K, STRIDE, PAD = 3, 2, 1        # stride > 1 -> block1 downsample is active

    key = jax.random.PRNGKey(0)
    ks = jax.random.split(key, 16)
    x = jax.random.normal(ks[0], (N, Cin, H, W), jnp.float32)
    w11 = jax.random.normal(ks[1], (K, K, Cin, Cout), jnp.float32) * 0.2
    w21 = jax.random.normal(ks[2], (K, K, Cout, Cout), jnp.float32) * 0.2
    wd = jax.random.normal(ks[3], (Cin, Cout), jnp.float32) * 0.2
    w12 = jax.random.normal(ks[4], (K, K, Cout, Cout), jnp.float32) * 0.2
    w22 = jax.random.normal(ks[5], (K, K, Cout, Cout), jnp.float32) * 0.2

    def gb(i):
        return (1.0 + 0.1 * jax.random.normal(ks[6 + 2 * i], (Cout,), jnp.float32),
                0.1 * jax.random.normal(ks[7 + 2 * i], (Cout,), jnp.float32))

    g1, b1 = gb(0); g2, b2 = gb(1); gd, bd = gb(2); g3, b3 = gb(3); g4, b4 = gb(4)
    params = (w11, w21, wd, g1, b1, g2, b2, gd, bd, w12, w22, g3, b3, g4, b4)

    out = encoder_forward(x, params, kernel_size=K, stride=STRIDE, padding=PAD)
    out = jax.block_until_ready(out)

    ref = encoder_ref(x, params, kernel_size=K, stride=STRIDE, padding=PAD)
    assert out.shape == (N, Cout, H // STRIDE, W // STRIDE), out.shape
    max_err = float(jnp.max(jnp.abs(out - ref)))
    # Tolerance reflects bf16 storage of activations/weights (f32 accumulation,
    # f32 two-pass BN statistics) across 4 conv+BN stages, per perf feedback.
    assert jnp.allclose(out, ref, atol=5e-2, rtol=5e-2), f"max_err={max_err}"

    print("KERNEL_OK")
</pallas_src>

<mosaic_0001>
module attributes {stable_mosaic.version = 11 : i64} {
  func.func @_encoder_kernel(%arg0: i32, %arg1: memref<128x36xbf16, #tpu.memory_space<vmem>>, %arg2: memref<128x4xbf16, #tpu.memory_space<vmem>>, %arg3: memref<36x8xbf16, #tpu.memory_space<vmem>>, %arg4: memref<4x8xbf16, #tpu.memory_space<vmem>>, %arg5: memref<72x8xbf16, #tpu.memory_space<vmem>>, %arg6: memref<72x8xbf16, #tpu.memory_space<vmem>>, %arg7: memref<72x8xbf16, #tpu.memory_space<vmem>>, %arg8: memref<10x8xf32, #tpu.memory_space<vmem>>, %arg9: memref<2x8x8x8xf32, #tpu.memory_space<vmem>>, %arg10: memref<2x10x10x8xbf16, #tpu.memory_space<vmem>>) attributes {dimension_semantics = [#tpu.dimension_semantics<arbitrary>], iteration_bounds = array<i64: 1>, scalar_prefetch = 0 : i64, scratch_operands = 1 : i64, tpu.core_type = #tpu.core_type<tc>, window_params = [{pipeline_mode = #tpu.pipeline_mode<synchronous>, transform_indices = @transform_0, window_bounds = array<i64: 128, 36>}, {pipeline_mode = #tpu.pipeline_mode<synchronous>, transform_indices = @transform_1, window_bounds = array<i64: 128, 4>}, {pipeline_mode = #tpu.pipeline_mode<synchronous>, transform_indices = @transform_2, window_bounds = array<i64: 36, 8>}, {pipeline_mode = #tpu.pipeline_mode<synchronous>, transform_indices = @transform_3, window_bounds = array<i64: 4, 8>}, {pipeline_mode = #tpu.pipeline_mode<synchronous>, transform_indices = @transform_4, window_bounds = array<i64: 72, 8>}, {pipeline_mode = #tpu.pipeline_mode<synchronous>, transform_indices = @transform_5, window_bounds = array<i64: 72, 8>}, {pipeline_mode = #tpu.pipeline_mode<synchronous>, transform_indices = @transform_6, window_bounds = array<i64: 72, 8>}, {pipeline_mode = #tpu.pipeline_mode<synchronous>, transform_indices = @transform_7, window_bounds = array<i64: 10, 8>}, {pipeline_mode = #tpu.pipeline_mode<synchronous>, transform_indices = @transform_8, window_bounds = array<i64: 2, 8, 8, 8>}]} {
    %cst = arith.constant 0.000000e+00 : bf16
    %0 = vector.broadcast %cst : bf16 to vector<2x1x10x8xbf16>
    %cst_0 = arith.constant 0.000000e+00 : bf16
    %1 = vector.broadcast %cst_0 : bf16 to vector<2x10x1x8xbf16>
    %c0 = arith.constant 0 : index
    %c0_1 = arith.constant 0 : index
    %c0_2 = arith.constant 0 : index
    %c0_3 = arith.constant 0 : index
    %2 = vector.load %arg10[%c0, %c0_1, %c0_2, %c0_3] : memref<2x10x10x8xbf16, #tpu.memory_space<vmem>>, vector<2x1x10x8xbf16>
    tpu.vector_store %arg10[%c0, %c0_1, %c0_2, %c0_3], %0 {strides = array<i32>} : memref<2x10x10x8xbf16, #tpu.memory_space<vmem>>, vector<2x1x10x8xbf16>,
    %c0_4 = arith.constant 0 : index
    %c9 = arith.constant 9 : index
    %c0_5 = arith.constant 0 : index
    %c0_6 = arith.constant 0 : index
    %3 = vector.load %arg10[%c0_4, %c9, %c0_5, %c0_6] : memref<2x10x10x8xbf16, #tpu.memory_space<vmem>>, vector<2x1x10x8xbf16>
    tpu.vector_store %arg10[%c0_4, %c9, %c0_5, %c0_6], %0 {strides = array<i32>} : memref<2x10x10x8xbf16, #tpu.memory_space<vmem>>, vector<2x1x10x8xbf16>,
    %c0_7 = arith.constant 0 : index
    %c0_8 = arith.constant 0 : index
    %c0_9 = arith.constant 0 : index
    %c0_10 = arith.constant 0 : index
    %4 = vector.load %arg10[%c0_7, %c0_8, %c0_9, %c0_10] : memref<2x10x10x8xbf16, #tpu.memory_space<vmem>>, vector<2x10x1x8xbf16>
    tpu.vector_store %arg10[%c0_7, %c0_8, %c0_9, %c0_10], %1 {strides = array<i32>} : memref<2x10x10x8xbf16, #tpu.memory_space<vmem>>, vector<2x10x1x8xbf16>,
    %c0_11 = arith.constant 0 : index
    %c0_12 = arith.constant 0 : index
    %c9_13 = arith.constant 9 : index
    %c0_14 = arith.constant 0 : index
    %5 = vector.load %arg10[%c0_11, %c0_12, %c9_13, %c0_14] : memref<2x10x10x8xbf16, #tpu.memory_space<vmem>>, vector<2x10x1x8xbf16>
    tpu.vector_store %arg10[%c0_11, %c0_12, %c9_13, %c0_14], %1 {strides = array<i32>} : memref<2x10x10x8xbf16, #tpu.memory_space<vmem>>, vector<2x10x1x8xbf16>,
    %c0_15 = arith.constant 0 : index
    %c0_16 = arith.constant 0 : index
    %6 = vector.load %arg1[%c0_15, %c0_16] : memref<128x36xbf16, #tpu.memory_space<vmem>>, vector<128x36xbf16>
    %c0_17 = arith.constant 0 : index
    %c0_18 = arith.constant 0 : index
    %7 = vector.load %arg3[%c0_17, %c0_18] : memref<36x8xbf16, #tpu.memory_space<vmem>>, vector<36x8xbf16>
    %cst_19 = arith.constant dense<0.000000e+00> : vector<128x8xf32>
    %8 = tpu.matmul %6, %7, %cst_19 {dimension_numbers = #tpu.dot_dimension_numbers<[1], [0], [0], [1], [0, 0, 1, 1], [], []>} : vector<128x36xbf16>, vector<36x8xbf16>, vector<128x8xf32> -> vector<128x8xf32>
    %c0_20 = arith.constant 0 : index
    %c0_21 = arith.constant 0 : index
    %9 = vector.load %arg8[%c0_20, %c0_21] : memref<10x8xf32, #tpu.memory_space<vmem>>, vector<1x8xf32>
    %c1 = arith.constant 1 : index
    %c0_22 = arith.constant 0 : index
    %10 = vector.load %arg8[%c1, %c0_22] : memref<10x8xf32, #tpu.memory_space<vmem>>, vector<1x8xf32>
    %cst_23 = arith.constant dense<0.000000e+00> : vector<8xf32>
    %11 = vector.multi_reduction <add>, %8, %cst_23 [0] : vector<128x8xf32> to vector<8xf32>
    %12 = vector.shape_cast %11 : vector<8xf32> to vector<1x8xf32>
    %cst_24 = arith.constant 7.812500e-03 : f32
    %13 = vector.broadcast %cst_24 : f32 to vector<1x8xf32>
    %14 = arith.mulf %12, %13 : vector<1x8xf32>
    %15 = vector.broadcast %14 : vector<1x8xf32> to vector<128x8xf32>
    %16 = arith.subf %8, %15 : vector<128x8xf32>
    %17 = arith.mulf %16, %16 : vector<128x8xf32>
    %cst_25 = arith.constant dense<0.000000e+00> : vector<8xf32>
    %18 = vector.multi_reduction <add>, %17, %cst_25 [0] : vector<128x8xf32> to vector<8xf32>
    %19 = vector.shape_cast %18 : vector<8xf32> to vector<1x8xf32>
    %cst_26 = arith.constant 7.812500e-03 : f32
    %20 = vector.broadcast %cst_26 : f32 to vector<1x8xf32>
    %21 = arith.mulf %19, %20 : vector<1x8xf32>
    %cst_27 = arith.constant 9.99999974E-6 : f32
    %22 = vector.broadcast %cst_27 : f32 to vector<1x8xf32>
    %23 = arith.addf %21, %22 : vector<1x8xf32>
    %24 = math.rsqrt %23 : vector<1x8xf32>
    %25 = arith.mulf %9, %24 : vector<1x8xf32>
    %26 = vector.broadcast %25 : vector<1x8xf32> to vector<128x8xf32>
    %27 = arith.mulf %16, %26 : vector<128x8xf32>
    %28 = vector.broadcast %10 : vector<1x8xf32> to vector<128x8xf32>
    %29 = arith.addf %27, %28 : vector<128x8xf32>
    %cst_28 = arith.constant 0.000000e+00 : f32
    %30 = vector.broadcast %cst_28 : f32 to vector<128x8xf32>
    %31 = arith.maximumf %29, %30 : vector<128x8xf32>
    %32 = arith.truncf %31 : vector<128x8xf32> to vector<128x8xbf16>
    %33 = vector.shape_cast %32 : vector<128x8xbf16> to vector<2x8x8x8xbf16>
    %c0_29 = arith.constant 0 : index
    %c1_30 = arith.constant 1 : index
    %c1_31 = arith.constant 1 : index
    %c0_32 = arith.constant 0 : index
    %34 = vector.load %arg10[%c0_29, %c1_30, %c1_31, %c0_32] : memref<2x10x10x8xbf16, #tpu.memory_space<vmem>>, vector<2x8x8x8xbf16>
    tpu.vector_store %arg10[%c0_29, %c1_30, %c1_31, %c0_32], %33 {strides = array<i32>} : memref<2x10x10x8xbf16, #tpu.memory_space<vmem>>, vector<2x8x8x8xbf16>,
    %cst_33 = arith.constant 0.000000e+00 : f32
    %35 = vector.broadcast %cst_33 : f32 to vector<128x8xf32>
    %c0_34 = arith.constant 0 : index
    %c0_35 = arith.constant 0 : index
    %c0_36 = arith.constant 0 : index
    %c0_37 = arith.constant 0 : index
    %36 = vector.load %arg10[%c0_34, %c0_35, %c0_36, %c0_37] : memref<2x10x10x8xbf16, #tpu.memory_space<vmem>>, vector<2x8x8x8xbf16>
    %37 = vector.shape_cast %36 : vector<2x8x8x8xbf16> to vector<128x8xbf16>
    %c0_38 = arith.constant 0 : index
    %c0_39 = arith.constant 0 : index
    %38 = vector.load %arg5[%c0_38, %c0_39] : memref<72x8xbf16, #tpu.memory_space<vmem>>, vector<8x8xbf16>
    %cst_40 = arith.constant dense<0.000000e+00> : vector<128x8xf32>
    %39 = tpu.matmul %37, %38, %cst_40 {dimension_numbers = #tpu.dot_dimension_numbers<[1], [0], [0], [1], [0, 0, 1, 1], [], []>} : vector<128x8xbf16>, vector<8x8xbf16>, vector<128x8xf32> -> vector<128x8xf32>
    %40 = arith.addf %35, %39 : vector<128x8xf32>
    %c0_41 = arith.constant 0 : index
    %c0_42 = arith.constant 0 : index
    %c1_43 = arith.constant 1 : index
    %c0_44 = arith.constant 0 : index
    %41 = vector.load %arg10[%c0_41, %c0_42, %c1_43, %c0_44] : memref<2x10x10x8xbf16, #tpu.memory_space<vmem>>, vector<2x8x8x8xbf16>
    %42 = vector.shape_cast %41 : vector<2x8x8x8xbf16> to vector<128x8xbf16>
    %c8 = arith.constant 8 : index
    %c0_45 = arith.constant 0 : index
    %43 = vector.load %arg5[%c8, %c0_45] : memref<72x8xbf16, #tpu.memory_space<vmem>>, vector<8x8xbf16>
    %cst_46 = arith.constant dense<0.000000e+00> : vector<128x8xf32>
    %44 = tpu.matmul %42, %43, %cst_46 {dimension_numbers = #tpu.dot_dimension_numbers<[1], [0], [0], [1], [0, 0, 1, 1], [], []>} : vector<128x8xbf16>, vector<8x8xbf16>, vector<128x8xf32> -> vector<128x8xf32>
    %45 = arith.addf %40, %44 : vector<128x8xf32>
    %c0_47 = arith.constant 0 : index
    %c0_48 = arith.constant 0 : index
    %c2 = arith.constant 2 : index
    %c0_49 = arith.constant 0 : index
    %46 = vector.load %arg10[%c0_47, %c0_48, %c2, %c0_49] : memref<2x10x10x8xbf16, #tpu.memory_space<vmem>>, vector<2x8x8x8xbf16>
    %47 = vector.shape_cast %46 : vector<2x8x8x8xbf16> to vector<128x8xbf16>
    %c16 = arith.constant 16 : index
    %c0_50 = arith.constant 0 : index
    %48 = vector.load %arg5[%c16, %c0_50] : memref<72x8xbf16, #tpu.memory_space<vmem>>, vector<8x8xbf16>
    %cst_51 = arith.constant dense<0.000000e+00> : vector<128x8xf32>
    %49 = tpu.matmul %47, %48, %cst_51 {dimension_numbers = #tpu.dot_dimension_numbers<[1], [0], [0], [1], [0, 0, 1, 1], [], []>} : vector<128x8xbf16>, vector<8x8xbf16>, vector<128x8xf32> -> vector<128x8xf32>
    %50 = arith.addf %45, %49 : vector<128x8xf32>
    %c0_52 = arith.constant 0 : index
    %c1_53 = arith.constant 1 : index
    %c0_54 = arith.constant 0 : index
    %c0_55 = arith.constant 0 : index
    %51 = vector.load %arg10[%c0_52, %c1_53, %c0_54, %c0_55] : memref<2x10x10x8xbf16, #tpu.memory_space<vmem>>, vector<2x8x8x8xbf16>
    %52 = vector.shape_cast %51 : vector<2x8x8x8xbf16> to vector<128x8xbf16>
    %c24 = arith.constant 24 : index
    %c0_56 = arith.constant 0 : index
    %53 = vector.load %arg5[%c24, %c0_56] : memref<72x8xbf16, #tpu.memory_space<vmem>>, vector<8x8xbf16>
    %cst_57 = arith.constant dense<0.000000e+00> : vector<128x8xf32>
    %54 = tpu.matmul %52, %53, %cst_57 {dimension_numbers = #tpu.dot_dimension_numbers<[1], [0], [0], [1], [0, 0, 1, 1], [], []>} : vector<128x8xbf16>, vector<8x8xbf16>, vector<128x8xf32> -> vector<128x8xf32>
    %55 = arith.addf %50, %54 : vector<128x8xf32>
    %c0_58 = arith.constant 0 : index
    %c1_59 = arith.constant 1 : index
    %c1_60 = arith.constant 1 : index
    %c0_61 = arith.constant 0 : index
    %56 = vector.load %arg10[%c0_58, %c1_59, %c1_60, %c0_61] : memref<2x10x10x8xbf16, #tpu.memory_space<vmem>>, vector<2x8x8x8xbf16>
    %57 = vector.shape_cast %56 : vector<2x8x8x8xbf16> to vector<128x8xbf16>
    %c32 = arith.constant 32 : index
    %c0_62 = arith.constant 0 : index
    %58 = vector.load %arg5[%c32, %c0_62] : memref<72x8xbf16, #tpu.memory_space<vmem>>, vector<8x8xbf16>
    %cst_63 = arith.constant dense<0.000000e+00> : vector<128x8xf32>
    %59 = tpu.matmul %57, %58, %cst_63 {dimension_numbers = #tpu.dot_dimension_numbers<[1], [0], [0], [1], [0, 0, 1, 1], [], []>} : vector<128x8xbf16>, vector<8x8xbf16>, vector<128x8xf32> -> vector<128x8xf32>
    %60 = arith.addf %55, %59 : vector<128x8xf32>
    %c0_64 = arith.constant 0 : index
    %c1_65 = arith.constant 1 : index
    %c2_66 = arith.constant 2 : index
    %c0_67 = arith.constant 0 : index
    %61 = vector.load %arg10[%c0_64, %c1_65, %c2_66, %c0_67] : memref<2x10x10x8xbf16, #tpu.memory_space<vmem>>, vector<2x8x8x8xbf16>
    %62 = vector.shape_cast %61 : vector<2x8x8x8xbf16> to vector<128x8xbf16>
    %c40 = arith.constant 40 : index
    %c0_68 = arith.constant 0 : index
    %63 = vector.load %arg5[%c40, %c0_68] : memref<72x8xbf16, #tpu.memory_space<vmem>>, vector<8x8xbf16>
    %cst_69 = arith.constant dense<0.000000e+00> : vector<128x8xf32>
    %64 = tpu.matmul %62, %63, %cst_69 {dimension_numbers = #tpu.dot_dimension_numbers<[1], [0], [0], [1], [0, 0, 1, 1], [], []>} : vector<128x8xbf16>, vector<8x8xbf16>, vector<128x8xf32> -> vector<128x8xf32>
    %65 = arith.addf %60, %64 : vector<128x8xf32>
    %c0_70 = arith.constant 0 : index
    %c2_71 = arith.constant 2 : index
    %c0_72 = arith.constant 0 : index
    %c0_73 = arith.constant 0 : index
    %66 = vector.load %arg10[%c0_70, %c2_71, %c0_72, %c0_73] : memref<2x10x10x8xbf16, #tpu.memory_space<vmem>>, vector<2x8x8x8xbf16>
    %67 = vector.shape_cast %66 : vector<2x8x8x8xbf16> to vector<128x8xbf16>
    %c48 = arith.constant 48 : index
    %c0_74 = arith.constant 0 : index
    %68 = vector.load %arg5[%c48, %c0_74] : memref<72x8xbf16, #tpu.memory_space<vmem>>, vector<8x8xbf16>
    %cst_75 = arith.constant dense<0.000000e+00> : vector<128x8xf32>
    %69 = tpu.matmul %67, %68, %cst_75 {dimension_numbers = #tpu.dot_dimension_numbers<[1], [0], [0], [1], [0, 0, 1, 1], [], []>} : vector<128x8xbf16>, vector<8x8xbf16>, vector<128x8xf32> -> vector<128x8xf32>
    %70 = arith.addf %65, %69 : vector<128x8xf32>
    %c0_76 = arith.constant 0 : index
    %c2_77 = arith.constant 2 : index
    %c1_78 = arith.constant 1 : index
    %c0_79 = arith.constant 0 : index
    %71 = vector.load %arg10[%c0_76, %c2_77, %c1_78, %c0_79] : memref<2x10x10x8xbf16, #tpu.memory_space<vmem>>, vector<2x8x8x8xbf16>
    %72 = vector.shape_cast %71 : vector<2x8x8x8xbf16> to vector<128x8xbf16>
    %c56 = arith.constant 56 : index
    %c0_80 = arith.constant 0 : index
    %73 = vector.load %arg5[%c56, %c0_80] : memref<72x8xbf16, #tpu.memory_space<vmem>>, vector<8x8xbf16>
    %cst_81 = arith.constant dense<0.000000e+00> : vector<128x8xf32>
    %74 = tpu.matmul %72, %73, %cst_81 {dimension_numbers = #tpu.dot_dimension_numbers<[1], [0], [0], [1], [0, 0, 1, 1], [], []>} : vector<128x8xbf16>, vector<8x8xbf16>, vector<128x8xf32> -> vector<128x8xf32>
    %75 = arith.addf %70, %74 : vector<128x8xf32>
    %c0_82 = arith.constant 0 : index
    %c2_83 = arith.constant 2 : index
    %c2_84 = arith.constant 2 : index
    %c0_85 = arith.constant 0 : index
    %76 = vector.load %arg10[%c0_82, %c2_83, %c2_84, %c0_85] : memref<2x10x10x8xbf16, #tpu.memory_space<vmem>>, vector<2x8x8x8xbf16>
    %77 = vector.shape_cast %76 : vector<2x8x8x8xbf16> to vector<128x8xbf16>
    %c64 = arith.constant 64 : index
    %c0_86 = arith.constant 0 : index
    %78 = vector.load %arg5[%c64, %c0_86] : memref<72x8xbf16, #tpu.memory_space<vmem>>, vector<8x8xbf16>
    %cst_87 = arith.constant dense<0.000000e+00> : vector<128x8xf32>
    %79 = tpu.matmul %77, %78, %cst_87 {dimension_numbers = #tpu.dot_dimension_numbers<[1], [0], [0], [1], [0, 0, 1, 1], [], []>} : vector<128x8xbf16>, vector<8x8xbf16>, vector<128x8xf32> -> vector<128x8xf32>
    %80 = arith.addf %75, %79 : vector<128x8xf32>
    %c2_88 = arith.constant 2 : index
    %c0_89 = arith.constant 0 : index
    %81 = vector.load %arg8[%c2_88, %c0_89] : memref<10x8xf32, #tpu.memory_space<vmem>>, vector<1x8xf32>
    %c3 = arith.constant 3 : index
    %c0_90 = arith.constant 0 : index
    %82 = vector.load %arg8[%c3, %c0_90] : memref<10x8xf32, #tpu.memory_space<vmem>>, vector<1x8xf32>
    %cst_91 = arith.constant dense<0.000000e+00> : vector<8xf32>
    %83 = vector.multi_reduction <add>, %80, %cst_91 [0] : vector<128x8xf32> to vector<8xf32>
    %84 = vector.shape_cast %83 : vector<8xf32> to vector<1x8xf32>
    %cst_92 = arith.constant 7.812500e-03 : f32
    %85 = vector.broadcast %cst_92 : f32 to vector<1x8xf32>
    %86 = arith.mulf %84, %85 : vector<1x8xf32>
    %87 = vector.broadcast %86 : vector<1x8xf32> to vector<128x8xf32>
    %88 = arith.subf %80, %87 : vector<128x8xf32>
    %89 = arith.mulf %88, %88 : vector<128x8xf32>
    %cst_93 = arith.constant dense<0.000000e+00> : vector<8xf32>
    %90 = vector.multi_reduction <add>, %89, %cst_93 [0] : vector<128x8xf32> to vector<8xf32>
    %91 = vector.shape_cast %90 : vector<8xf32> to vector<1x8xf32>
    %cst_94 = arith.constant 7.812500e-03 : f32
    %92 = vector.broadcast %cst_94 : f32 to vector<1x8xf32>
    %93 = arith.mulf %91, %92 : vector<1x8xf32>
    %cst_95 = arith.constant 9.99999974E-6 : f32
    %94 = vector.broadcast %cst_95 : f32 to vector<1x8xf32>
    %95 = arith.addf %93, %94 : vector<1x8xf32>
    %96 = math.rsqrt %95 : vector<1x8xf32>
    %97 = arith.mulf %81, %96 : vector<1x8xf32>
    %98 = vector.broadcast %97 : vector<1x8xf32> to vector<128x8xf32>
    %99 = arith.mulf %88, %98 : vector<128x8xf32>
    %100 = vector.broadcast %82 : vector<1x8xf32> to vector<128x8xf32>
    %101 = arith.addf %99, %100 : vector<128x8xf32>
    %c0_96 = arith.constant 0 : index
    %c0_97 = arith.constant 0 : index
    %102 = vector.load %arg2[%c0_96, %c0_97] : memref<128x4xbf16, #tpu.memory_space<vmem>>, vector<128x4xbf16>
    %c0_98 = arith.constant 0 : index
    %c0_99 = arith.constant 0 : index
    %103 = vector.load %arg4[%c0_98, %c0_99] : memref<4x8xbf16, #tpu.memory_space<vmem>>, vector<4x8xbf16>
    %cst_100 = arith.constant dense<0.000000e+00> : vector<128x8xf32>
    %104 = tpu.matmul %102, %103, %cst_100 {dimension_numbers = #tpu.dot_dimension_numbers<[1], [0], [0], [1], [0, 0, 1, 1], [], []>} : vector<128x4xbf16>, vector<4x8xbf16>, vector<128x8xf32> -> vector<128x8xf32>
    %c4 = arith.constant 4 : index
    %c0_101 = arith.constant 0 : index
    %105 = vector.load %arg8[%c4, %c0_101] : memref<10x8xf32, #tpu.memory_space<vmem>>, vector<1x8xf32>
    %c5 = arith.constant 5 : index
    %c0_102 = arith.constant 0 : index
    %106 = vector.load %arg8[%c5, %c0_102] : memref<10x8xf32, #tpu.memory_space<vmem>>, vector<1x8xf32>
    %cst_103 = arith.constant dense<0.000000e+00> : vector<8xf32>
    %107 = vector.multi_reduction <add>, %104, %cst_103 [0] : vector<128x8xf32> to vector<8xf32>
    %108 = vector.shape_cast %107 : vector<8xf32> to vector<1x8xf32>
    %cst_104 = arith.constant 7.812500e-03 : f32
    %109 = vector.broadcast %cst_104 : f32 to vector<1x8xf32>
    %110 = arith.mulf %108, %109 : vector<1x8xf32>
    %111 = vector.broadcast %110 : vector<1x8xf32> to vector<128x8xf32>
    %112 = arith.subf %104, %111 : vector<128x8xf32>
    %113 = arith.mulf %112, %112 : vector<128x8xf32>
    %cst_105 = arith.constant dense<0.000000e+00> : vector<8xf32>
    %114 = vector.multi_reduction <add>, %113, %cst_105 [0] : vector<128x8xf32> to vector<8xf32>
    %115 = vector.shape_cast %114 : vector<8xf32> to vector<1x8xf32>
    %cst_106 = arith.constant 7.812500e-03 : f32
    %116 = vector.broadcast %cst_106 : f32 to vector<1x8xf32>
    %117 = arith.mulf %115, %116 : vector<1x8xf32>
    %cst_107 = arith.constant 9.99999974E-6 : f32
    %118 = vector.broadcast %cst_107 : f32 to vector<1x8xf32>
    %119 = arith.addf %117, %118 : vector<1x8xf32>
    %120 = math.rsqrt %119 : vector<1x8xf32>
    %121 = arith.mulf %105, %120 : vector<1x8xf32>
    %122 = vector.broadcast %121 : vector<1x8xf32> to vector<128x8xf32>
    %123 = arith.mulf %112, %122 : vector<128x8xf32>
    %124 = vector.broadcast %106 : vector<1x8xf32> to vector<128x8xf32>
    %125 = arith.addf %123, %124 : vector<128x8xf32>
    %126 = arith.addf %101, %125 : vector<128x8xf32>
    %cst_108 = arith.constant 0.000000e+00 : f32
    %127 = vector.broadcast %cst_108 : f32 to vector<128x8xf32>
    %128 = arith.maximumf %126, %127 : vector<128x8xf32>
    %129 = arith.truncf %128 : vector<128x8xf32> to vector<128x8xbf16>
    %130 = vector.shape_cast %129 : vector<128x8xbf16> to vector<2x8x8x8xbf16>
    %c0_109 = arith.constant 0 : index
    %c1_110 = arith.constant 1 : index
    %c1_111 = arith.constant 1 : index
    %c0_112 = arith.constant 0 : index
    %131 = vector.load %arg10[%c0_109, %c1_110, %c1_111, %c0_112] : memref<2x10x10x8xbf16, #tpu.memory_space<vmem>>, vector<2x8x8x8xbf16>
    tpu.vector_store %arg10[%c0_109, %c1_110, %c1_111, %c0_112], %130 {strides = array<i32>} : memref<2x10x10x8xbf16, #tpu.memory_space<vmem>>, vector<2x8x8x8xbf16>,
    %cst_113 = arith.constant 0.000000e+00 : f32
    %132 = vector.broadcast %cst_113 : f32 to vector<128x8xf32>
    %c0_114 = arith.constant 0 : index
    %c0_115 = arith.constant 0 : index
    %c0_116 = arith.constant 0 : index
    %c0_117 = arith.constant 0 : index
    %133 = vector.load %arg10[%c0_114, %c0_115, %c0_116, %c0_117] : memref<2x10x10x8xbf16, #tpu.memory_space<vmem>>, vector<2x8x8x8xbf16>
    %134 = vector.shape_cast %133 : vector<2x8x8x8xbf16> to vector<128x8xbf16>
    %c0_118 = arith.constant 0 : index
    %c0_119 = arith.constant 0 : index
    %135 = vector.load %arg6[%c0_118, %c0_119] : memref<72x8xbf16, #tpu.memory_space<vmem>>, vector<8x8xbf16>
    %cst_120 = arith.constant dense<0.000000e+00> : vector<128x8xf32>
    %136 = tpu.matmul %134, %135, %cst_120 {dimension_numbers = #tpu.dot_dimension_numbers<[1], [0], [0], [1], [0, 0, 1, 1], [], []>} : vector<128x8xbf16>, vector<8x8xbf16>, vector<128x8xf32> -> vector<128x8xf32>
    %137 = arith.addf %132, %136 : vector<128x8xf32>
    %c0_121 = arith.constant 0 : index
    %c0_122 = arith.constant 0 : index
    %c1_123 = arith.constant 1 : index
    %c0_124 = arith.constant 0 : index
    %138 = vector.load %arg10[%c0_121, %c0_122, %c1_123, %c0_124] : memref<2x10x10x8xbf16, #tpu.memory_space<vmem>>, vector<2x8x8x8xbf16>
    %139 = vector.shape_cast %138 : vector<2x8x8x8xbf16> to vector<128x8xbf16>
    %c8_125 = arith.constant 8 : index
    %c0_126 = arith.constant 0 : index
    %140 = vector.load %arg6[%c8_125, %c0_126] : memref<72x8xbf16, #tpu.memory_space<vmem>>, vector<8x8xbf16>
    %cst_127 = arith.constant dense<0.000000e+00> : vector<128x8xf32>
    %141 = tpu.matmul %139, %140, %cst_127 {dimension_numbers = #tpu.dot_dimension_numbers<[1], [0], [0], [1], [0, 0, 1, 1], [], []>} : vector<128x8xbf16>, vector<8x8xbf16>, vector<128x8xf32> -> vector<128x8xf32>
    %142 = arith.addf %137, %141 : vector<128x8xf32>
    %c0_128 = arith.constant 0 : index
    %c0_129 = arith.constant 0 : index
    %c2_130 = arith.constant 2 : index
    %c0_131 = arith.constant 0 : index
    %143 = vector.load %arg10[%c0_128, %c0_129, %c2_130, %c0_131] : memref<2x10x10x8xbf16, #tpu.memory_space<vmem>>, vector<2x8x8x8xbf16>
    %144 = vector.shape_cast %143 : vector<2x8x8x8xbf16> to vector<128x8xbf16>
    %c16_132 = arith.constant 16 : index
    %c0_133 = arith.constant 0 : index
    %145 = vector.load %arg6[%c16_132, %c0_133] : memref<72x8xbf16, #tpu.memory_space<vmem>>, vector<8x8xbf16>
    %cst_134 = arith.constant dense<0.000000e+00> : vector<128x8xf32>
    %146 = tpu.matmul %144, %145, %cst_134 {dimension_numbers = #tpu.dot_dimension_numbers<[1], [0], [0], [1], [0, 0, 1, 1], [], []>} : vector<128x8xbf16>, vector<8x8xbf16>, vector<128x8xf32> -> vector<128x8xf32>
    %147 = arith.addf %142, %146 : vector<128x8xf32>
    %c0_135 = arith.constant 0 : index
    %c1_136 = arith.constant 1 : index
    %c0_137 = arith.constant 0 : index
    %c0_138 = arith.constant 0 : index
    %148 = vector.load %arg10[%c0_135, %c1_136, %c0_137, %c0_138] : memref<2x10x10x8xbf16, #tpu.memory_space<vmem>>, vector<2x8x8x8xbf16>
    %149 = vector.shape_cast %148 : vector<2x8x8x8xbf16> to vector<128x8xbf16>
    %c24_139 = arith.constant 24 : index
    %c0_140 = arith.constant 0 : index
    %150 = vector.load %arg6[%c24_139, %c0_140] : memref<72x8xbf16, #tpu.memory_space<vmem>>, vector<8x8xbf16>
    %cst_141 = arith.constant dense<0.000000e+00> : vector<128x8xf32>
    %151 = tpu.matmul %149, %150, %cst_141 {dimension_numbers = #tpu.dot_dimension_numbers<[1], [0], [0], [1], [0, 0, 1, 1], [], []>} : vector<128x8xbf16>, vector<8x8xbf16>, vector<128x8xf32> -> vector<128x8xf32>
    %152 = arith.addf %147, %151 : vector<128x8xf32>
    %c0_142 = arith.constant 0 : index
    %c1_143 = arith.constant 1 : index
    %c1_144 = arith.constant 1 : index
    %c0_145 = arith.constant 0 : index
    %153 = vector.load %arg10[%c0_142, %c1_143, %c1_144, %c0_145] : memref<2x10x10x8xbf16, #tpu.memory_space<vmem>>, vector<2x8x8x8xbf16>
    %154 = vector.shape_cast %153 : vector<2x8x8x8xbf16> to vector<128x8xbf16>
    %c32_146 = arith.constant 32 : index
    %c0_147 = arith.constant 0 : index
    %155 = vector.load %arg6[%c32_146, %c0_147] : memref<72x8xbf16, #tpu.memory_space<vmem>>, vector<8x8xbf16>
    %cst_148 = arith.constant dense<0.000000e+00> : vector<128x8xf32>
    %156 = tpu.matmul %154, %155, %cst_148 {dimension_numbers = #tpu.dot_dimension_numbers<[1], [0], [0], [1], [0, 0, 1, 1], [], []>} : vector<128x8xbf16>, vector<8x8xbf16>, vector<128x8xf32> -> vector<128x8xf32>
    %157 = arith.addf %152, %156 : vector<128x8xf32>
    %c0_149 = arith.constant 0 : index
    %c1_150 = arith.constant 1 : index
    %c2_151 = arith.constant 2 : index
    %c0_152 = arith.constant 0 : index
    %158 = vector.load %arg10[%c0_149, %c1_150, %c2_151, %c0_152] : memref<2x10x10x8xbf16, #tpu.memory_space<vmem>>, vector<2x8x8x8xbf16>
    %159 = vector.shape_cast %158 : vector<2x8x8x8xbf16> to vector<128x8xbf16>
    %c40_153 = arith.constant 40 : index
    %c0_154 = arith.constant 0 : index
    %160 = vector.load %arg6[%c40_153, %c0_154] : memref<72x8xbf16, #tpu.memory_space<vmem>>, vector<8x8xbf16>
    %cst_155 = arith.constant dense<0.000000e+00> : vector<128x8xf32>
    %161 = tpu.matmul %159, %160, %cst_155 {dimension_numbers = #tpu.dot_dimension_numbers<[1], [0], [0], [1], [0, 0, 1, 1], [], []>} : vector<128x8xbf16>, vector<8x8xbf16>, vector<128x8xf32> -> vector<128x8xf32>
    %162 = arith.addf %157, %161 : vector<128x8xf32>
    %c0_156 = arith.constant 0 : index
    %c2_157 = arith.constant 2 : index
    %c0_158 = arith.constant 0 : index
    %c0_159 = arith.constant 0 : index
    %163 = vector.load %arg10[%c0_156, %c2_157, %c0_158, %c0_159] : memref<2x10x10x8xbf16, #tpu.memory_space<vmem>>, vector<2x8x8x8xbf16>
    %164 = vector.shape_cast %163 : vector<2x8x8x8xbf16> to vector<128x8xbf16>
    %c48_160 = arith.constant 48 : index
    %c0_161 = arith.constant 0 : index
    %165 = vector.load %arg6[%c48_160, %c0_161] : memref<72x8xbf16, #tpu.memory_space<vmem>>, vector<8x8xbf16>
    %cst_162 = arith.constant dense<0.000000e+00> : vector<128x8xf32>
    %166 = tpu.matmul %164, %165, %cst_162 {dimension_numbers = #tpu.dot_dimension_numbers<[1], [0], [0], [1], [0, 0, 1, 1], [], []>} : vector<128x8xbf16>, vector<8x8xbf16>, vector<128x8xf32> -> vector<128x8xf32>
    %167 = arith.addf %162, %166 : vector<128x8xf32>
    %c0_163 = arith.constant 0 : index
    %c2_164 = arith.constant 2 : index
    %c1_165 = arith.constant 1 : index
    %c0_166 = arith.constant 0 : index
    %168 = vector.load %arg10[%c0_163, %c2_164, %c1_165, %c0_166] : memref<2x10x10x8xbf16, #tpu.memory_space<vmem>>, vector<2x8x8x8xbf16>
    %169 = vector.shape_cast %168 : vector<2x8x8x8xbf16> to vector<128x8xbf16>
    %c56_167 = arith.constant 56 : index
    %c0_168 = arith.constant 0 : index
    %170 = vector.load %arg6[%c56_167, %c0_168] : memref<72x8xbf16, #tpu.memory_space<vmem>>, vector<8x8xbf16>
    %cst_169 = arith.constant dense<0.000000e+00> : vector<128x8xf32>
    %171 = tpu.matmul %169, %170, %cst_169 {dimension_numbers = #tpu.dot_dimension_numbers<[1], [0], [0], [1], [0, 0, 1, 1], [], []>} : vector<128x8xbf16>, vector<8x8xbf16>, vector<128x8xf32> -> vector<128x8xf32>
    %172 = arith.addf %167, %171 : vector<128x8xf32>
    %c0_170 = arith.constant 0 : index
    %c2_171 = arith.constant 2 : index
    %c2_172 = arith.constant 2 : index
    %c0_173 = arith.constant 0 : index
    %173 = vector.load %arg10[%c0_170, %c2_171, %c2_172, %c0_173] : memref<2x10x10x8xbf16, #tpu.memory_space<vmem>>, vector<2x8x8x8xbf16>
    %174 = vector.shape_cast %173 : vector<2x8x8x8xbf16> to vector<128x8xbf16>
    %c64_174 = arith.constant 64 : index
    %c0_175 = arith.constant 0 : index
    %175 = vector.load %arg6[%c64_174, %c0_175] : memref<72x8xbf16, #tpu.memory_space<vmem>>, vector<8x8xbf16>
    %cst_176 = arith.constant dense<0.000000e+00> : vector<128x8xf32>
    %176 = tpu.matmul %174, %175, %cst_176 {dimension_numbers = #tpu.dot_dimension_numbers<[1], [0], [0], [1], [0, 0, 1, 1], [], []>} : vector<128x8xbf16>, vector<8x8xbf16>, vector<128x8xf32> -> vector<128x8xf32>
    %177 = arith.addf %172, %176 : vector<128x8xf32>
    %c6 = arith.constant 6 : index
    %c0_177 = arith.constant 0 : index
    %178 = vector.load %arg8[%c6, %c0_177] : memref<10x8xf32, #tpu.memory_space<vmem>>, vector<1x8xf32>
    %c7 = arith.constant 7 : index
    %c0_178 = arith.constant 0 : index
    %179 = vector.load %arg8[%c7, %c0_178] : memref<10x8xf32, #tpu.memory_space<vmem>>, vector<1x8xf32>
    %cst_179 = arith.constant dense<0.000000e+00> : vector<8xf32>
    %180 = vector.multi_reduction <add>, %177, %cst_179 [0] : vector<128x8xf32> to vector<8xf32>
    %181 = vector.shape_cast %180 : vector<8xf32> to vector<1x8xf32>
    %cst_180 = arith.constant 7.812500e-03 : f32
    %182 = vector.broadcast %cst_180 : f32 to vector<1x8xf32>
    %183 = arith.mulf %181, %182 : vector<1x8xf32>
    %184 = vector.broadcast %183 : vector<1x8xf32> to vector<128x8xf32>
    %185 = arith.subf %177, %184 : vector<128x8xf32>
    %186 = arith.mulf %185, %185 : vector<128x8xf32>
    %cst_181 = arith.constant dense<0.000000e+00> : vector<8xf32>
    %187 = vector.multi_reduction <add>, %186, %cst_181 [0] : vector<128x8xf32> to vector<8xf32>
    %188 = vector.shape_cast %187 : vector<8xf32> to vector<1x8xf32>
    %cst_182 = arith.constant 7.812500e-03 : f32
    %189 = vector.broadcast %cst_182 : f32 to vector<1x8xf32>
    %190 = arith.mulf %188, %189 : vector<1x8xf32>
    %cst_183 = arith.constant 9.99999974E-6 : f32
    %191 = vector.broadcast %cst_183 : f32 to vector<1x8xf32>
    %192 = arith.addf %190, %191 : vector<1x8xf32>
    %193 = math.rsqrt %192 : vector<1x8xf32>
    %194 = arith.mulf %178, %193 : vector<1x8xf32>
    %195 = vector.broadcast %194 : vector<1x8xf32> to vector<128x8xf32>
    %196 = arith.mulf %185, %195 : vector<128x8xf32>
    %197 = vector.broadcast %179 : vector<1x8xf32> to vector<128x8xf32>
    %198 = arith.addf %196, %197 : vector<128x8xf32>
    %cst_184 = arith.constant 0.000000e+00 : f32
    %199 = vector.broadcast %cst_184 : f32 to vector<128x8xf32>
    %200 = arith.maximumf %198, %199 : vector<128x8xf32>
    %201 = arith.truncf %200 : vector<128x8xf32> to vector<128x8xbf16>
    %202 = vector.shape_cast %201 : vector<128x8xbf16> to vector<2x8x8x8xbf16>
    %c0_185 = arith.constant 0 : index
    %c1_186 = arith.constant 1 : index
    %c1_187 = arith.constant 1 : index
    %c0_188 = arith.constant 0 : index
    %203 = vector.load %arg10[%c0_185, %c1_186, %c1_187, %c0_188] : memref<2x10x10x8xbf16, #tpu.memory_space<vmem>>, vector<2x8x8x8xbf16>
    tpu.vector_store %arg10[%c0_185, %c1_186, %c1_187, %c0_188], %202 {strides = array<i32>} : memref<2x10x10x8xbf16, #tpu.memory_space<vmem>>, vector<2x8x8x8xbf16>,
    %cst_189 = arith.constant 0.000000e+00 : f32
    %204 = vector.broadcast %cst_189 : f32 to vector<128x8xf32>
    %c0_190 = arith.constant 0 : index
    %c0_191 = arith.constant 0 : index
    %c0_192 = arith.constant 0 : index
    %c0_193 = arith.constant 0 : index
    %205 = vector.load %arg10[%c0_190, %c0_191, %c0_192, %c0_193] : memref<2x10x10x8xbf16, #tpu.memory_space<vmem>>, vector<2x8x8x8xbf16>
    %206 = vector.shape_cast %205 : vector<2x8x8x8xbf16> to vector<128x8xbf16>
    %c0_194 = arith.constant 0 : index
    %c0_195 = arith.constant 0 : index
    %207 = vector.load %arg7[%c0_194, %c0_195] : memref<72x8xbf16, #tpu.memory_space<vmem>>, vector<8x8xbf16>
    %cst_196 = arith.constant dense<0.000000e+00> : vector<128x8xf32>
    %208 = tpu.matmul %206, %207, %cst_196 {dimension_numbers = #tpu.dot_dimension_numbers<[1], [0], [0], [1], [0, 0, 1, 1], [], []>} : vector<128x8xbf16>, vector<8x8xbf16>, vector<128x8xf32> -> vector<128x8xf32>
    %209 = arith.addf %204, %208 : vector<128x8xf32>
    %c0_197 = arith.constant 0 : index
    %c0_198 = arith.constant 0 : index
    %c1_199 = arith.constant 1 : index
    %c0_200 = arith.constant 0 : index
    %210 = vector.load %arg10[%c0_197, %c0_198, %c1_199, %c0_200] : memref<2x10x10x8xbf16, #tpu.memory_space<vmem>>, vector<2x8x8x8xbf16>
    %211 = vector.shape_cast %210 : vector<2x8x8x8xbf16> to vector<128x8xbf16>
    %c8_201 = arith.constant 8 : index
    %c0_202 = arith.constant 0 : index
    %212 = vector.load %arg7[%c8_201, %c0_202] : memref<72x8xbf16, #tpu.memory_space<vmem>>, vector<8x8xbf16>
    %cst_203 = arith.constant dense<0.000000e+00> : vector<128x8xf32>
    %213 = tpu.matmul %211, %212, %cst_203 {dimension_numbers = #tpu.dot_dimension_numbers<[1], [0], [0], [1], [0, 0, 1, 1], [], []>} : vector<128x8xbf16>, vector<8x8xbf16>, vector<128x8xf32> -> vector<128x8xf32>
    %214 = arith.addf %209, %213 : vector<128x8xf32>
    %c0_204 = arith.constant 0 : index
    %c0_205 = arith.constant 0 : index
    %c2_206 = arith.constant 2 : index
    %c0_207 = arith.constant 0 : index
    %215 = vector.load %arg10[%c0_204, %c0_205, %c2_206, %c0_207] : memref<2x10x10x8xbf16, #tpu.memory_space<vmem>>, vector<2x8x8x8xbf16>
    %216 = vector.shape_cast %215 : vector<2x8x8x8xbf16> to vector<128x8xbf16>
    %c16_208 = arith.constant 16 : index
    %c0_209 = arith.constant 0 : index
    %217 = vector.load %arg7[%c16_208, %c0_209] : memref<72x8xbf16, #tpu.memory_space<vmem>>, vector<8x8xbf16>
    %cst_210 = arith.constant dense<0.000000e+00> : vector<128x8xf32>
    %218 = tpu.matmul %216, %217, %cst_210 {dimension_numbers = #tpu.dot_dimension_numbers<[1], [0], [0], [1], [0, 0, 1, 1], [], []>} : vector<128x8xbf16>, vector<8x8xbf16>, vector<128x8xf32> -> vector<128x8xf32>
    %219 = arith.addf %214, %218 : vector<128x8xf32>
    %c0_211 = arith.constant 0 : index
    %c1_212 = arith.constant 1 : index
    %c0_213 = arith.constant 0 : index
    %c0_214 = arith.constant 0 : index
    %220 = vector.load %arg10[%c0_211, %c1_212, %c0_213, %c0_214] : memref<2x10x10x8xbf16, #tpu.memory_space<vmem>>, vector<2x8x8x8xbf16>
    %221 = vector.shape_cast %220 : vector<2x8x8x8xbf16> to vector<128x8xbf16>
    %c24_215 = arith.constant 24 : index
    %c0_216 = arith.constant 0 : index
    %222 = vector.load %arg7[%c24_215, %c0_216] : memref<72x8xbf16, #tpu.memory_space<vmem>>, vector<8x8xbf16>
    %cst_217 = arith.constant dense<0.000000e+00> : vector<128x8xf32>
    %223 = tpu.matmul %221, %222, %cst_217 {dimension_numbers = #tpu.dot_dimension_numbers<[1], [0], [0], [1], [0, 0, 1, 1], [], []>} : vector<128x8xbf16>, vector<8x8xbf16>, vector<128x8xf32> -> vector<128x8xf32>
    %224 = arith.addf %219, %223 : vector<128x8xf32>
    %c0_218 = arith.constant 0 : index
    %c1_219 = arith.constant 1 : index
    %c1_220 = arith.constant 1 : index
    %c0_221 = arith.constant 0 : index
    %225 = vector.load %arg10[%c0_218, %c1_219, %c1_220, %c0_221] : memref<2x10x10x8xbf16, #tpu.memory_space<vmem>>, vector<2x8x8x8xbf16>
    %226 = vector.shape_cast %225 : vector<2x8x8x8xbf16> to vector<128x8xbf16>
    %c32_222 = arith.constant 32 : index
    %c0_223 = arith.constant 0 : index
    %227 = vector.load %arg7[%c32_222, %c0_223] : memref<72x8xbf16, #tpu.memory_space<vmem>>, vector<8x8xbf16>
    %cst_224 = arith.constant dense<0.000000e+00> : vector<128x8xf32>
    %228 = tpu.matmul %226, %227, %cst_224 {dimension_numbers = #tpu.dot_dimension_numbers<[1], [0], [0], [1], [0, 0, 1, 1], [], []>} : vector<128x8xbf16>, vector<8x8xbf16>, vector<128x8xf32> -> vector<128x8xf32>
    %229 = arith.addf %224, %228 : vector<128x8xf32>
    %c0_225 = arith.constant 0 : index
    %c1_226 = arith.constant 1 : index
    %c2_227 = arith.constant 2 : index
    %c0_228 = arith.constant 0 : index
    %230 = vector.load %arg10[%c0_225, %c1_226, %c2_227, %c0_228] : memref<2x10x10x8xbf16, #tpu.memory_space<vmem>>, vector<2x8x8x8xbf16>
    %231 = vector.shape_cast %230 : vector<2x8x8x8xbf16> to vector<128x8xbf16>
    %c40_229 = arith.constant 40 : index
    %c0_230 = arith.constant 0 : index
    %232 = vector.load %arg7[%c40_229, %c0_230] : memref<72x8xbf16, #tpu.memory_space<vmem>>, vector<8x8xbf16>
    %cst_231 = arith.constant dense<0.000000e+00> : vector<128x8xf32>
    %233 = tpu.matmul %231, %232, %cst_231 {dimension_numbers = #tpu.dot_dimension_numbers<[1], [0], [0], [1], [0, 0, 1, 1], [], []>} : vector<128x8xbf16>, vector<8x8xbf16>, vector<128x8xf32> -> vector<128x8xf32>
    %234 = arith.addf %229, %233 : vector<128x8xf32>
    %c0_232 = arith.constant 0 : index
    %c2_233 = arith.constant 2 : index
    %c0_234 = arith.constant 0 : index
    %c0_235 = arith.constant 0 : index
    %235 = vector.load %arg10[%c0_232, %c2_233, %c0_234, %c0_235] : memref<2x10x10x8xbf16, #tpu.memory_space<vmem>>, vector<2x8x8x8xbf16>
    %236 = vector.shape_cast %235 : vector<2x8x8x8xbf16> to vector<128x8xbf16>
    %c48_236 = arith.constant 48 : index
    %c0_237 = arith.constant 0 : index
    %237 = vector.load %arg7[%c48_236, %c0_237] : memref<72x8xbf16, #tpu.memory_space<vmem>>, vector<8x8xbf16>
    %cst_238 = arith.constant dense<0.000000e+00> : vector<128x8xf32>
    %238 = tpu.matmul %236, %237, %cst_238 {dimension_numbers = #tpu.dot_dimension_numbers<[1], [0], [0], [1], [0, 0, 1, 1], [], []>} : vector<128x8xbf16>, vector<8x8xbf16>, vector<128x8xf32> -> vector<128x8xf32>
    %239 = arith.addf %234, %238 : vector<128x8xf32>
    %c0_239 = arith.constant 0 : index
    %c2_240 = arith.constant 2 : index
    %c1_241 = arith.constant 1 : index
    %c0_242 = arith.constant 0 : index
    %240 = vector.load %arg10[%c0_239, %c2_240, %c1_241, %c0_242] : memref<2x10x10x8xbf16, #tpu.memory_space<vmem>>, vector<2x8x8x8xbf16>
    %241 = vector.shape_cast %240 : vector<2x8x8x8xbf16> to vector<128x8xbf16>
    %c56_243 = arith.constant 56 : index
    %c0_244 = arith.constant 0 : index
    %242 = vector.load %arg7[%c56_243, %c0_244] : memref<72x8xbf16, #tpu.memory_space<vmem>>, vector<8x8xbf16>
    %cst_245 = arith.constant dense<0.000000e+00> : vector<128x8xf32>
    %243 = tpu.matmul %241, %242, %cst_245 {dimension_numbers = #tpu.dot_dimension_numbers<[1], [0], [0], [1], [0, 0, 1, 1], [], []>} : vector<128x8xbf16>, vector<8x8xbf16>, vector<128x8xf32> -> vector<128x8xf32>
    %244 = arith.addf %239, %243 : vector<128x8xf32>
    %c0_246 = arith.constant 0 : index
    %c2_247 = arith.constant 2 : index
    %c2_248 = arith.constant 2 : index
    %c0_249 = arith.constant 0 : index
    %245 = vector.load %arg10[%c0_246, %c2_247, %c2_248, %c0_249] : memref<2x10x10x8xbf16, #tpu.memory_space<vmem>>, vector<2x8x8x8xbf16>
    %246 = vector.shape_cast %245 : vector<2x8x8x8xbf16> to vector<128x8xbf16>
    %c64_250 = arith.constant 64 : index
    %c0_251 = arith.constant 0 : index
    %247 = vector.load %arg7[%c64_250, %c0_251] : memref<72x8xbf16, #tpu.memory_space<vmem>>, vector<8x8xbf16>
    %cst_252 = arith.constant dense<0.000000e+00> : vector<128x8xf32>
    %248 = tpu.matmul %246, %247, %cst_252 {dimension_numbers = #tpu.dot_dimension_numbers<[1], [0], [0], [1], [0, 0, 1, 1], [], []>} : vector<128x8xbf16>, vector<8x8xbf16>, vector<128x8xf32> -> vector<128x8xf32>
    %249 = arith.addf %244, %248 : vector<128x8xf32>
    %c8_253 = arith.constant 8 : index
    %c0_254 = arith.constant 0 : index
    %250 = vector.load %arg8[%c8_253, %c0_254] : memref<10x8xf32, #tpu.memory_space<vmem>>, vector<1x8xf32>
    %c9_255 = arith.constant 9 : index
    %c0_256 = arith.constant 0 : index
    %251 = vector.load %arg8[%c9_255, %c0_256] : memref<10x8xf32, #tpu.memory_space<vmem>>, vector<1x8xf32>
    %cst_257 = arith.constant dense<0.000000e+00> : vector<8xf32>
    %252 = vector.multi_reduction <add>, %249, %cst_257 [0] : vector<128x8xf32> to vector<8xf32>
    %253 = vector.shape_cast %252 : vector<8xf32> to vector<1x8xf32>
    %cst_258 = arith.constant 7.812500e-03 : f32
    %254 = vector.broadcast %cst_258 : f32 to vector<1x8xf32>
    %255 = arith.mulf %253, %254 : vector<1x8xf32>
    %256 = vector.broadcast %255 : vector<1x8xf32> to vector<128x8xf32>
    %257 = arith.subf %249, %256 : vector<128x8xf32>
    %258 = arith.mulf %257, %257 : vector<128x8xf32>
    %cst_259 = arith.constant dense<0.000000e+00> : vector<8xf32>
    %259 = vector.multi_reduction <add>, %258, %cst_259 [0] : vector<128x8xf32> to vector<8xf32>
    %260 = vector.shape_cast %259 : vector<8xf32> to vector<1x8xf32>
    %cst_260 = arith.constant 7.812500e-03 : f32
    %261 = vector.broadcast %cst_260 : f32 to vector<1x8xf32>
    %262 = arith.mulf %260, %261 : vector<1x8xf32>
    %cst_261 = arith.constant 9.99999974E-6 : f32
    %263 = vector.broadcast %cst_261 : f32 to vector<1x8xf32>
    %264 = arith.addf %262, %263 : vector<1x8xf32>
    %265 = math.rsqrt %264 : vector<1x8xf32>
    %266 = arith.mulf %250, %265 : vector<1x8xf32>
    %267 = vector.broadcast %266 : vector<1x8xf32> to vector<128x8xf32>
    %268 = arith.mulf %257, %267 : vector<128x8xf32>
    %269 = vector.broadcast %251 : vector<1x8xf32> to vector<128x8xf32>
    %270 = arith.addf %268, %269 : vector<128x8xf32>
    %271 = arith.addf %270, %128 : vector<128x8xf32>
    %cst_262 = arith.constant 0.000000e+00 : f32
    %272 = vector.broadcast %cst_262 : f32 to vector<128x8xf32>
    %273 = arith.maximumf %271, %272 : vector<128x8xf32>
    %274 = vector.shape_cast %273 : vector<128x8xf32> to vector<2x8x8x8xf32>
    %c0_263 = arith.constant 0 : index
    %c0_264 = arith.constant 0 : index
    %c0_265 = arith.constant 0 : index
    %c0_266 = arith.constant 0 : index
    %275 = vector.load %arg9[%c0_263, %c0_264, %c0_265, %c0_266] : memref<2x8x8x8xf32, #tpu.memory_space<vmem>>, vector<2x8x8x8xf32>
    tpu.vector_store %arg9[%c0_263, %c0_264, %c0_265, %c0_266], %274 {strides = array<i32>} : memref<2x8x8x8xf32, #tpu.memory_space<vmem>>, vector<2x8x8x8xf32>,
    return
  }
  func.func @transform_0(%arg0: i32) -> (i32, i32) {
    %c0_i32 = arith.constant 0 : i32
    %c0_i32_0 = arith.constant 0 : i32
    %c0_i32_1 = arith.constant 0 : i32
    return %c0_i32, %c0_i32_0 : i32, i32
  }
  func.func @transform_1(%arg0: i32) -> (i32, i32) {
    %c0_i32 = arith.constant 0 : i32
    %c0_i32_0 = arith.constant 0 : i32
    %c0_i32_1 = arith.constant 0 : i32
    return %c0_i32, %c0_i32_0 : i32, i32
  }
  func.func @transform_2(%arg0: i32) -> (i32, i32) {
    %c0_i32 = arith.constant 0 : i32
    %c0_i32_0 = arith.constant 0 : i32
    %c0_i32_1 = arith.constant 0 : i32
    return %c0_i32, %c0_i32_0 : i32, i32
  }
  func.func @transform_3(%arg0: i32) -> (i32, i32) {
    %c0_i32 = arith.constant 0 : i32
    %c0_i32_0 = arith.constant 0 : i32
    %c0_i32_1 = arith.constant 0 : i32
    return %c0_i32, %c0_i32_0 : i32, i32
  }
  func.func @transform_4(%arg0: i32) -> (i32, i32) {
    %c0_i32 = arith.constant 0 : i32
    %c0_i32_0 = arith.constant 0 : i32
    %c0_i32_1 = arith.constant 0 : i32
    return %c0_i32, %c0_i32_0 : i32, i32
  }
  func.func @transform_5(%arg0: i32) -> (i32, i32) {
    %c0_i32 = arith.constant 0 : i32
    %c0_i32_0 = arith.constant 0 : i32
    %c0_i32_1 = arith.constant 0 : i32
    return %c0_i32, %c0_i32_0 : i32, i32
  }
  func.func @transform_6(%arg0: i32) -> (i32, i32) {
    %c0_i32 = arith.constant 0 : i32
    %c0_i32_0 = arith.constant 0 : i32
    %c0_i32_1 = arith.constant 0 : i32
    return %c0_i32, %c0_i32_0 : i32, i32
  }
  func.func @transform_7(%arg0: i32) -> (i32, i32) {
    %c0_i32 = arith.constant 0 : i32
    %c0_i32_0 = arith.constant 0 : i32
    %c0_i32_1 = arith.constant 0 : i32
    return %c0_i32, %c0_i32_0 : i32, i32
  }
  func.func @transform_8(%arg0: i32) -> (i32, i32, i32, i32) {
    %c0_i32 = arith.constant 0 : i32
    %c0_i32_0 = arith.constant 0 : i32
    %c0_i32_1 = arith.constant 0 : i32
    %c0_i32_2 = arith.constant 0 : i32
    %c0_i32_3 = arith.constant 0 : i32
    return %c0_i32, %c0_i32_0, %c0_i32_1, %c0_i32_2 : i32, i32, i32, i32
  }
}

</mosaic_0001>

<bundles_post_ra>
// kernel: tpu_custom_call.1
= control target key start
LH: loop header
LB: loop body
LE: loop exit
PB: predicated region body
PF: predicated region fallthrough
CT: control target
= control target key end

     0   :  { %vm243_vm0 = vcmask 293888   ;;  %vm268_vm1 = vcmask 1041408   ;;  %s16129_s0 = inlined_call_operand.vmem [shape: bf16[128,36], index: 0, kind: input, shape index: {}]   ;;  %s16130_s1 = inlined_call_operand.vmem [shape: bf16[128,4], index: 1, kind: input, shape index: {}]   ;;  %s16131_s2 = inlined_call_operand.vmem [shape: bf16[36,8], index: 2, kind: input, shape index: {}]   ;;  %s16132_s3 = inlined_call_operand.vmem [shape: bf16[4,8], index: 3, kind: input, shape index: {}]   ;;  %s16133_s4 = inlined_call_operand.vmem [shape: bf16[72,8], index: 4, kind: input, shape index: {}]   ;;  %s16134_s5 = inlined_call_operand.vmem [shape: bf16[72,8], index: 5, kind: input, shape index: {}]   ;;  %s16135_s6 = inlined_call_operand.vmem [shape: bf16[72,8], index: 6, kind: input, shape index: {}]   ;;  %s16136_s7 = inlined_call_operand.vmem [shape: f32[10,8], index: 7, kind: input, shape index: {}]   ;;  %s16137_s8 = inlined_call_operand.hbm [shape: f32[2,8,8,8], index: 8, kind: output, shape index: {}]  }
   0x1   :  { %v12198_v0 = vld [vmem:[%s16131_s2] sm:$0xff]   ;;  %v12199_v1 = vld [vmem:[%s16131_s2 + $0x8] sm:$0xff]   ;;  %v12200_v2 = vld [vmem:[%s16131_s2 + $0x10] ss:$0 sps:$4 sm:$0x33]  }
   0x2   :  { %11252 = vmatprep.subr.bf16.mxu0 %v12198_v0  ;;  %v12201_v3 = vld [vmem:[%s16129_s0] sm:$0xff]   ;;  %v270_v4 = vsel %vm268_vm1, %v12200_v2, 0  ;;  %v12202_v5 = vld [vmem:[%s16129_s0 + $0x8] sm:$0xff]   ;;  %v12203_v6 = vld [vmem:[%s16129_s0 + $0x10] sm:$0xff]  }
   0x3   :  { %11253 = vmatpush3.bf16.msra.mxu0 %v12198_v0  ;;  %11258 = vmatprep.mubr.msk.bf16.mxu0 %vm243_vm0, %v12201_v3 }
   0x4   :  { %11254 = vmatprep.subr.bf16.mxu0 %v12199_v1 }
   0x7   :  { %11255 = vmatpush3.bf16.msra.mxu0 %v12199_v1 }
   0x8   :  { %12164 = vmatprep.subr.msk.bf16.mxu0 %vm268_vm1, %v12200_v2 }
   0xb   :  { %11257 = vmatpush3.bf16.msra.mxu0 %v270_v4 }
   0xe   :  { %11259 = vmatmul.mubr.msk.bf16.vlgmr.msra.gmra.mrb[0].mxu0 %vm243_vm0, %v12202_v5 }
   0xf   :  { %11262 = vmatprep.mubr.msk.bf16.mxu0 %vm243_vm0, %v12203_v6 }
  0x10   :  { %13 = vsyncpa [#allocation4], 0  ;;  %v12204_v7 = vld [vmem:[%s16129_s0 + $0x18] sm:$0xff]   ;;  %v12205_v8 = vld [vmem:[%s16129_s0 + $0x20] sm:$0xff]   ;;  %vm33_vm2 = vcmask 57344   ;;  %v16170_v35 = vmov 0 }
  0x11   :  { %v12206_v9 = vld [vmem:[%s16129_s0 + $0x28] sm:$0xff]   ;;  %v12207_v10 = vld [vmem:[%s16129_s0 + $0x30] sm:$0xff]   ;;  %v12208_v11 = vld [vmem:[%s16129_s0 + $0x38] sm:$0xff]   ;;  %vm43_vm3 = vsmask.f32 256  ;;  %vm371_vm7 = vcmask 64512  }
  0x12   :  { %v48_v12 = vld [vmem:[#allocation2 + $0x8] sm:$0x1]  ;;  %vm12425_vm4 = vmand %vm33_vm2, %vm43_vm3  ;;  %v51_v14 = vld [vmem:[#allocation2 + $0x10] sm:$0x1]  ;;  %vm105_vm5 = vsmask.f32 7938 }
  0x13   :  { %v54_v15 = vld [vmem:[#allocation2 + $0x18] sm:$0x1]  ;;  %v49_v16 = vsel %vm12425_vm4, 0, %v48_v12  ;;  %v52_v17 = vsel %vm12425_vm4, 0, %v51_v14  ;;  %v57_v19 = vld [vmem:[#allocation2 + $0x20] sm:$0x1]  ;;  %vm12451_vm6 = vmand %vm33_vm2, %vm105_vm5 }
  0x14   :  { %v55_v18 = vsel %vm12425_vm4, 0, %v54_v15  ;;  %50 = vst [vmem:[#allocation2 + $0x8] sm:$0x1] %v49_v16  ;;  %53 = vst [vmem:[#allocation2 + $0x10] sm:$0x1] %v52_v17  ;;  %v58_v20 = vsel %vm12425_vm4, 0, %v57_v19 }
  0x15   :  { %56 = vst [vmem:[#allocation2 + $0x18] sm:$0x1] %v55_v18  ;;  %v66_v21 = vld [vmem:[#allocation2 + $0x38] sm:$0x1]  ;;  %v69_v22 = vld [vmem:[#allocation2 + $0x40] sm:$0x1] }
  0x16   :  { %11263 = vmatmul.mubr.msk.bf16.gmra.mrb[4].mxu0 %vm243_vm0, %v12204_v7  ;;  %59 = vst [vmem:[#allocation2 + $0x20] sm:$0x1] %v58_v20  ;;  %v67_v23 = vsel %vm12425_vm4, 0, %v66_v21  ;;  %v70_v24 = vsel %vm12425_vm4, 0, %v69_v22  ;;  %v78_v25 = vld [vmem:[#allocation2 + $0x58] sm:$0x1] }
  0x17   :  { %11266 = vmatprep.mubr.msk.bf16.mxu0 %vm243_vm0, %v12205_v8  ;;  %v81_v26 = vld [vmem:[#allocation2 + $0x60] sm:$0x1]  ;;  %68 = vst [vmem:[#allocation2 + $0x38] sm:$0x1] %v67_v23  ;;  %71 = vst [vmem:[#allocation2 + $0x40] sm:$0x1] %v70_v24 }
  0x18   :  { %v79_v27 = vsel %vm12425_vm4, 0, %v78_v25  ;;  %v82_v28 = vsel %vm12425_vm4, 0, %v81_v26  ;;  %v84_v29 = vld [vmem:[#allocation2 + $0x68] sm:$0x1]  ;;  %v87_v30 = vld [vmem:[#allocation2 + $0x70] sm:$0x1] }
  0x19   :  { %80 = vst [vmem:[#allocation2 + $0x58] sm:$0x1] %v79_v27  ;;  %83 = vst [vmem:[#allocation2 + $0x60] sm:$0x1] %v82_v28  ;;  %v85_v31 = vsel %vm12425_vm4, 0, %v84_v29  ;;  %v88_v32 = vsel %vm12425_vm4, 0, %v87_v30 }
  0x1a   :  { %v90_v33 = vld [vmem:[#allocation2 + $0x78] sm:$0x1]  ;;  %v93_v34 = vld [vmem:[#allocation2 + $0x80] sm:$0x1]  ;;  %v16171_v35 = vsel %vm12451_vm6, 4294967295, %v16170_v35  ;;  %vm31_vm8 = vcmask 60416  }
  0x1b   :  { %16172 = vst [vmem:[#allocation6_spill] sm:$0xff] %v16171_v35  ;;  %86 = vst [vmem:[#allocation2 + $0x68] sm:$0x1] %v85_v31  ;;  %v91_v36 = vsel %vm12425_vm4, 0, %v90_v33  ;;  %v94_v37 = vsel %vm12425_vm4, 0, %v93_v34  ;;  %vm1155_vm9 = vcmask 1043456  }
  0x1c   :  { %89 = vst [vmem:[#allocation2 + $0x70] sm:$0x1] %v88_v32  ;;  %v96_v38 = vld [vmem:[#allocation2 + $0x88] sm:$0x1]  ;;  %v99_v39 = vld [vmem:[#allocation2 + $0x90] sm:$0x1]  ;;  %vm12842_vm10 = vmand %vm31_vm8, %vm105_vm5 }
  0x1d   :  { %92 = vst [vmem:[#allocation2 + $0x78] sm:$0x1] %v91_v36  ;;  %95 = vst [vmem:[#allocation2 + $0x80] sm:$0x1] %v94_v37  ;;  %v97_v40 = vsel %vm12425_vm4, 0, %v96_v38  ;;  %v100_v41 = vsel %vm12425_vm4, 0, %v99_v39 }
  0x1e   :  { %11267 = vmatmul.mubr.msk.bf16.gmra.mrb[8].mxu0 %vm243_vm0, %v12206_v9  ;;  %v110_v42 = vld [vmem:[#allocation2 + $0xc] sm:$0x1]  ;;  %v113_v43 = vld [vmem:[#allocation2 + $0x14] sm:$0x1]  ;;  %98 = vst [vmem:[#allocation2 + $0x88] sm:$0x1] %v97_v40 }
  0x1f   :  { %11270 = vmatprep.mubr.msk.bf16.mxu0 %vm243_vm0, %v12207_v10  ;;  %101 = vst [vmem:[#allocation2 + $0x90] sm:$0x1] %v100_v41  ;;  %v111_v44 = vsel %vm12451_vm6, 0, %v110_v42  ;;  %v114_v45 = vsel %vm12451_vm6, 0, %v113_v43  ;;  %v116_v46 = vld [vmem:[#allocation2 + $0x1c] sm:$0x1] }
  0x20   :  { %v119_v47 = vld [vmem:[#allocation2 + $0x24] sm:$0x1]  ;;  %112 = vst [vmem:[#allocation2 + $0xc] sm:$0x1] %v111_v44  ;;  %115 = vst [vmem:[#allocation2 + $0x14] sm:$0x1] %v114_v45 }
  0x21   :  { %v117_v48 = vsel %vm12451_vm6, 0, %v116_v46  ;;  %v120_v49 = vsel %vm12451_vm6, 0, %v119_v47  ;;  %v122_v50 = vld [vmem:[#allocation2 + $0x2c] sm:$0x1]  ;;  %v125_v51 = vld [vmem:[#allocation2 + $0x34] sm:$0x1] }
  0x22   :  { %118 = vst [vmem:[#allocation2 + $0x1c] sm:$0x1] %v117_v48  ;;  %121 = vst [vmem:[#allocation2 + $0x24] sm:$0x1] %v120_v49  ;;  %v123_v52 = vsel %vm12451_vm6, 0, %v122_v50  ;;  %v126_v53 = vsel %vm12451_vm6, 0, %v125_v51 }
  0x23   :  { %v128_v54 = vld [vmem:[#allocation2 + $0x3c] sm:$0x1]  ;;  %v131_v55 = vld [vmem:[#allocation2 + $0x44] sm:$0x1]  ;;  %124 = vst [vmem:[#allocation2 + $0x2c] sm:$0x1] %v123_v52 }
  0x24   :  { %127 = vst [vmem:[#allocation2 + $0x34] sm:$0x1] %v126_v53  ;;  %v129_v56 = vsel %vm12451_vm6, 0, %v128_v54  ;;  %v132_v57 = vsel %vm12451_vm6, 0, %v131_v55  ;;  %v140_v58 = vld [vmem:[#allocation2 + $0x5c] sm:$0x1] }
  0x25   :  { %v143_v59 = vld [vmem:[#allocation2 + $0x64] sm:$0x1]  ;;  %130 = vst [vmem:[#allocation2 + $0x3c] sm:$0x1] %v129_v56  ;;  %133 = vst [vmem:[#allocation2 + $0x44] sm:$0x1] %v132_v57 }
  0x26   :  { %11271 = vmatmul.mubr.msk.bf16.gmra.mrb[12].mxu0 %vm243_vm0, %v12208_v11  ;;  %v141_v60 = vsel %vm12451_vm6, 0, %v140_v58  ;;  %v144_v61 = vsel %vm12451_vm6, 0, %v143_v59  ;;  %v146_v62 = vld [vmem:[#allocation2 + $0x6c] sm:$0x1]  ;;  %v149_v63 = vld [vmem:[#allocation2 + $0x74] sm:$0x1] }
  0x27   :  { %142 = vst [vmem:[#allocation2 + $0x5c] sm:$0x1] %v141_v60  ;;  %145 = vst [vmem:[#allocation2 + $0x64] sm:$0x1] %v144_v61  ;;  %v147_v0 = vsel %vm12451_vm6, 0, %v146_v62  ;;  %v150_v1 = vsel %vm12451_vm6, 0, %v149_v63 }
  0x28   :  { %v152_v2 = vld [vmem:[#allocation2 + $0x7c] sm:$0x1]  ;;  %v155_v3 = vld [vmem:[#allocation2 + $0x84] sm:$0x1]  ;;  %148 = vst [vmem:[#allocation2 + $0x6c] sm:$0x1] %v147_v0 }
  0x29   :  { %151 = vst [vmem:[#allocation2 + $0x74] sm:$0x1] %v150_v1  ;;  %v153_v4 = vsel %vm12451_vm6, 0, %v152_v2  ;;  %v156_v5 = vsel %vm12451_vm6, 0, %v155_v3  ;;  %v158_v6 = vld [vmem:[#allocation2 + $0x8c] sm:$0x1] }
  0x2a   :  { %v161_v7 = vld [vmem:[#allocation2 + $0x94] sm:$0x1]  ;;  %154 = vst [vmem:[#allocation2 + $0x7c] sm:$0x1] %v153_v4  ;;  %157 = vst [vmem:[#allocation2 + $0x84] sm:$0x1] %v156_v5 }
  0x2b   :  { %v159_v8 = vsel %vm12451_vm6, 0, %v158_v6  ;;  %v162_v9 = vsel %vm12451_vm6, 0, %v161_v7  ;;  %v60_v47 = vld [vmem:[#allocation2 + $0x28] sm:$0x1]  ;;  %v63_v48 = vld [vmem:[#allocation2 + $0x30] sm:$0x1] }
  0x2c   :  { %160 = vst [vmem:[#allocation2 + $0x8c] sm:$0x1] %v159_v8  ;;  %163 = vst [vmem:[#allocation2 + $0x94] sm:$0x1] %v162_v9  ;;  %v61_v51 = vsel %vm12425_vm4, 0, %v60_v47  ;;  %v64_v52 = vsel %vm12425_vm4, 0, %v63_v48 }
  0x2d   :  { %62 = vst [vmem:[#allocation2 + $0x28] sm:$0x1] %v61_v51  ;;  %65 = vst [vmem:[#allocation2 + $0x30] sm:$0x1] %v64_v52  ;;  %v12332_v57 = vmov 0   ;;  %vm1468_vm14 = vcmask 1042432  }
  0x2e   :  { %32 = vst.msk [vmem:[#allocation2] sm:$0xf] %vm31_vm8, %v12332_v57  ;;  %35 = vst.msk [vmem:[#allocation2 + $0x50] sm:$0xf] %vm31_vm8, %v12332_v57  ;;  %v1716_v2 = vld [vmem:[%s16133_s4 + $0xc] sm:$0xf] }
  0x2f   :  { %34 = vst.msk [vmem:[#allocation2 + $0x4] sm:$0x1] %vm33_vm2, %v12332_v57  ;;  %36 = vst.msk [vmem:[#allocation2 + $0x54] sm:$0x1] %vm33_vm2, %v12332_v57  ;;  %12169 = vmatprep.subr.msk.bf16.mxu1 %vm1155_vm9, %v1716_v2  ;;  %v12573_v4 = vsel %vm1155_vm9, %v1716_v2, 0  ;;  %vm1469_vm15 = vcmask 1046532  }
  0x30   :  { %38 = vst.msk [vmem:[#allocation2 + $0x48] sm:$0xf] %vm31_vm8, %v12332_v57  ;;  %40 = vst.msk [vmem:[#allocation2 + $0x98] sm:$0xf] %vm31_vm8, %v12332_v57  ;;  %11779 = vmatpush3.bf16.msra.mxu1 %v12573_v4  ;;  %v801_v35 = vld [vmem:[#allocation2 + $0x5c] sm:$0x1] }
  0x31   :  { %39 = vst.msk [vmem:[#allocation2 + $0x4c] sm:$0x1] %vm33_vm2, %v12332_v57  ;;  %41 = vst.msk [vmem:[#allocation2 + $0x9c] sm:$0x1] %vm33_vm2, %v12332_v57  ;;  %vm879_vm11 = vsmask.f32 3328 }
  0x32   :  { %16173 = vst [vmem:[#allocation7_spill] sm:$0xff] %v12573_v4  ;;  %vm880_vm12 = vsmask.f32 7440  ;;  %vm13281_vm0 = vmor %vm1468_vm14, %vm1469_vm15  ;;  %vm3701_vm2 = vcmask 31744  }
  0x33   :  { %vm13010_vm13 = vmor %vm879_vm11, %vm880_vm12 }
  0x35   :  { %v45_v5 = vld [vmem:[#allocation2] sm:$0x1] }
  0x36   :  { %v107_v6 = vld [vmem:[#allocation2 + $0x4] sm:$0x1]  ;;  %v46_v7 = vsel %vm12425_vm4, 0, %v45_v5 }
  0x37   :  { %v108_v8 = vsel %vm12451_vm6, 0, %v107_v6  ;;  %47 = vst [vmem:[#allocation2] sm:$0x1] %v46_v7 }
  0x38   :  { %109 = vst [vmem:[#allocation2 + $0x4] sm:$0x1] %v108_v8 }
  0xe1   :  { %v12495_v10 = vpop.f32.mrb[0].mxu0 }
  0xe2   :  { %v12497_v11 = vpop.f32.mrb[1].mxu0  ;;  %v375_v18 = vsel %vm371_vm7, %v12495_v10, 0.0 }
  0xe3   :  { %v12499_v12 = vpop.f32.mrb[2].mxu0  ;;  %v372_v15 = vsel %vm371_vm7, %v12497_v11, 0.0 }
  0xe4   :  { %v12501_v14 = vpop.f32.mrb[3].mxu0  ;;  %v377_v20 = vsel %vm371_vm7, %v12499_v12, 0.0 }
  0xe5   :  { %v373_v16 = vsel %vm371_vm7, %v12501_v14, 0.0 }
  0xe6   :  { %v374_v17 = vadd.f32 %v373_v16, %v372_v15  ;;  %v12583_v16 = vld [vmem:[%s16133_s4 + $0x10] sm:$0xf] }
  0xe7   :  { %12170 = vmatprep.subr.msk.bf16.mxu1 %vm1155_vm9, %v12583_v16 }
  0xe8   :  { %v376_v19 = vadd.f32 %v375_v18, %v374_v17  ;;  %v1106_v18 = vld [vmem:[%s16133_s4 + $0x4] sm:$0xf] }
  0xe9   :  { %v12511_v21 = vpop.f32.mrb[4].mxu0  ;;  %12165 = vmatprep.subr.msk.bf16.mxu0 %vm1155_vm9, %v1106_v18 }
  0xea   :  { %v12513_v22 = vpop.f32.mrb[5].mxu0  ;;  %v378_v23 = vadd.f32 %v377_v20, %v376_v19  ;;  %v383_v30 = vsel %vm371_vm7, %v12511_v21, 0.0  ;;  %v1157_v20 = vsel %vm1155_vm9, %v1106_v18, 0 }
  0xeb   :  { %v379_v24 = vsel %vm371_vm7, %v12513_v22, 0.0  ;;  %v12517_v25 = vpop.f32.mrb[6].mxu0  ;;  %11275 = vmatpush3.bf16.msra.mxu0 %v1157_v20 }
  0xec   :  { %v380_v26 = vadd.f32 %v379_v24, %v378_v23  ;;  %v12519_v27 = vpop.f32.mrb[7].mxu0  ;;  %v385_v32 = vsel %vm371_vm7, %v12517_v25, 0.0  ;;  %v75_v23 = vld [vmem:[#allocation2 + $0x50] sm:$0x1]  ;;  %v137_v24 = vld [vmem:[#allocation2 + $0x54] sm:$0x1] }
  0xed   :  { %v381_v28 = vsel %vm371_vm7, %v12519_v27, 0.0 }
  0xee   :  { %v382_v29 = vadd.f32 %v381_v28, %v380_v26  ;;  %v76_v26 = vsel %vm12425_vm4, 0, %v75_v23  ;;  %v138_v28 = vsel %vm12451_vm6, 0, %v137_v24 }
  0xef   :  { %77 = vst [vmem:[#allocation2 + $0x50] sm:$0x1] %v76_v26  ;;  %139 = vst [vmem:[#allocation2 + $0x54] sm:$0x1] %v138_v28 }
  0xf0   :  { %v384_v31 = vadd.f32 %v383_v30, %v382_v29 }
  0xf1   :  { %v12527_v33 = vpop.f32.mrb[8].mxu0 }
  0xf2   :  { %v12529_v34 = vpop.f32.mrb[9].mxu0  ;;  %v386_v36 = vadd.f32 %v385_v32, %v384_v31  ;;  %v391_v43 = vsel %vm371_vm7, %v12527_v33, 0.0 }
  0xf3   :  { %v387_v37 = vsel %vm371_vm7, %v12529_v34, 0.0  ;;  %v12533_v38 = vpop.f32.mrb[10].mxu0 }
  0xf4   :  { %v388_v39 = vadd.f32 %v387_v37, %v386_v36  ;;  %v12535_v40 = vpop.f32.mrb[11].mxu0  ;;  %v393_v45 = vsel %vm371_vm7, %v12533_v38, 0.0 }
  0xf5   :  { %v389_v41 = vsel %vm371_vm7, %v12535_v40, 0.0 }
  0xf6   :  { %v390_v42 = vadd.f32 %v389_v41, %v388_v39 }
  0xf8   :  { %v392_v44 = vadd.f32 %v391_v43, %v390_v42 }
  0xf9   :  { %v12543_v46 = vpop.f32.mrb[12].mxu0 }
  0xfa   :  { %v12545_v49 = vpop.f32.mrb[13].mxu0  ;;  %v394_v50 = vadd.f32 %v393_v45, %v392_v44  ;;  %v399_v60 = vsel %vm371_vm7, %v12543_v46, 0.0 }
  0xfb   :  { %v395_v53 = vsel %vm371_vm7, %v12545_v49, 0.0  ;;  %v12553_v54 = vpop.f32.mrb[14].mxu0 }
  0xfc   :  { %v396_v55 = vadd.f32 %v395_v53, %v394_v50  ;;  %v357_v56 = vpop.f32.mrb[15].mxu0  ;;  %v401_v62 = vsel %vm371_vm7, %v12553_v54, 0.0 }
  0xfd   :  { %v397_v58 = vsel %vm371_vm7, %v357_v56, 0.0 }
  0xfe   :  { %v398_v59 = vadd.f32 %v397_v58, %v396_v55 }
 0x100   :  { %v400_v61 = vadd.f32 %v399_v60, %v398_v59 }
 0x102   :  { %v402_v63 = vadd.f32 %v401_v62, %v400_v61 }
 0x104   :  { %v403_v0 = vrot.slane %v402_v63, 4 }
 0x106   :  { %v404_v1 = vadd.f32 %v403_v0, %v402_v63 }
 0x108   :  { %v405_v3 = vrot.slane %v404_v1, 2 }
 0x10a   :  { %v406_v9 = vadd.f32 %v405_v3, %v404_v1 }
 0x10c   :  { %v407_v15 = vrot.slane %v406_v9, 1 }
 0x10e   :  { %v408_v17 = vadd.f32 %v407_v15, %v406_v9 }
 0x110   :  { %v409_v19 = vmul.f32 0.0078125, %v408_v17 }
 0x112   :  { %v12597_v29 = vsub.f32 %v12497_v11, %v409_v19  ;;  %v12600_v30 = vsub.f32 %v12501_v14, %v409_v19  ;;  %v12603_v31 = vsub.f32 %v12495_v10, %v409_v19  ;;  %v12606_v32 = vsub.f32 %v12499_v12, %v409_v19 }
 0x113   :  { %v12609_v36 = vsub.f32 %v12513_v22, %v409_v19  ;;  %v12612_v37 = vsub.f32 %v12519_v27, %v409_v19  ;;  %v12615_v11 = vsub.f32 %v12511_v21, %v409_v19  ;;  %v12618_v14 = vsub.f32 %v12517_v25, %v409_v19 }
 0x114   :  { %v12621_v10 = vsub.f32 %v12529_v34, %v409_v19  ;;  %v12624_v12 = vsub.f32 %v12535_v40, %v409_v19  ;;  %v12627_v39 = vsub.f32 %v12527_v33, %v409_v19  ;;  %v12630_v22 = vsub.f32 %v12533_v38, %v409_v19 }
 0x115   :  { %v12633_v27 = vsub.f32 %v12545_v49, %v409_v19  ;;  %v12635_v21 = vsub.f32 %v357_v56, %v409_v19  ;;  %v12638_v25 = vsub.f32 %v12543_v46, %v409_v19  ;;  %v12641_v34 = vsub.f32 %v12553_v54, %v409_v19 }
 0x116   :  { %v426_v40 = vmul.f32 %v12597_v29, %v12597_v29  ;;  %v427_v33 = vmul.f32 %v12600_v30, %v12600_v30  ;;  %v428_v38 = vmul.f32 %v12603_v31, %v12603_v31  ;;  %v429_v41 = vmul.f32 %v12606_v32, %v12606_v32 }
 0x117   :  { %v430_v45 = vmul.f32 %v12609_v36, %v12609_v36  ;;  %v431_v48 = vmul.f32 %v12612_v37, %v12612_v37  ;;  %v432_v51 = vmul.f32 %v12615_v11, %v12615_v11  ;;  %v433_v54 = vmul.f32 %v12618_v14, %v12618_v14 }
 0x118   :  { %v442_v42 = vsel %vm371_vm7, %v426_v40, 0.0  ;;  %v443_v43 = vsel %vm371_vm7, %v427_v33, 0.0  ;;  %v445_v46 = vsel %vm371_vm7, %v428_v38, 0.0  ;;  %v447_v49 = vsel %vm371_vm7, %v429_v41, 0.0 }
 0x119   :  { %v444_v44 = vadd.f32 %v443_v43, %v442_v42  ;;  %v449_v52 = vsel %vm371_vm7, %v430_v45, 0.0  ;;  %v451_v55 = vsel %vm371_vm7, %v431_v48, 0.0  ;;  %v434_v57 = vmul.f32 %v12621_v10, %v12621_v10 }
 0x11a   :  { %v453_v58 = vsel %vm371_vm7, %v432_v51, 0.0  ;;  %v435_v60 = vmul.f32 %v12624_v12, %v12624_v12  ;;  %v455_v61 = vsel %vm371_vm7, %v433_v54, 0.0  ;;  %v436_v63 = vmul.f32 %v12627_v39, %v12627_v39  ;;  %v854_v54 = vld [vmem:[#allocation2 + $0x50] sm:$0xf] }
 0x11b   :  { %v446_v47 = vadd.f32 %v445_v46, %v444_v44  ;;  %v457_v0 = vsel %vm371_vm7, %v434_v57, 0.0  ;;  %v437_v2 = vmul.f32 %v12630_v22, %v12630_v22  ;;  %v438_v6 = vmul.f32 %v12633_v27, %v12633_v27 }
 0x11c   :  { %v459_v3 = vsel %vm371_vm7, %v435_v60, 0.0  ;;  %v461_v7 = vsel %vm371_vm7, %v436_v63, 0.0  ;;  %v439_v9 = vmul.f32 %v12635_v21, %v12635_v21  ;;  %v440_v18 = vmul.f32 %v12638_v25, %v12638_v25  ;;  %v369_v60 = vld [vmem:[%s16136_s7] sm:$0x1] }
 0x11d   :  { %v448_v50 = vadd.f32 %v447_v49, %v446_v47  ;;  %v463_v15 = vsel %vm371_vm7, %v437_v2, 0.0  ;;  %v465_v19 = vsel %vm371_vm7, %v438_v6, 0.0  ;;  %v441_v23 = vmul.f32 %v12641_v34, %v12641_v34  ;;  %v12691_v49 = vld [vmem:[#allocation2] sm:$0xf] }
 0x11e   :  { %v467_v24 = vsel %vm371_vm7, %v439_v9, 0.0  ;;  %v469_v28 = vsel %vm371_vm7, %v440_v18, 0.0  ;;  %v483_v51 = vlaneseq  ;;  %v12714_v9 = vsel %vm1155_vm9, %v12583_v16, 0  ;;  %v10296_v16 = vld [vmem:[%s16136_s7 + $0x1] ss:$0 sm:$0xff] }
 0x11f   :  { %v450_v53 = vadd.f32 %v449_v52, %v448_v50  ;;  %v471_v33 = vsel %vm371_vm7, %v441_v23, 0.0  ;;  %v12696_v50 = vld [vmem:[%s16133_s4] sm:$0xf]  ;;  %v883_v52 = vshrl.u32 %v12691_v49, 16 }
 0x120   :  { %12166 = vmatprep.subr.msk.bf16.mxu0 %vm1155_vm9, %v12696_v50 }
 0x121   :  { %v452_v56 = vadd.f32 %v451_v55, %v450_v53  ;;  %v886_v53 = vshll.u32 %v12691_v49, 16  ;;  %v484_v55 = vshrl.u32 %v483_v51, 7 }
 0x123   :  { %v454_v59 = vadd.f32 %v453_v58, %v452_v56  ;;  %v885_v56 = vrot.slane %v883_v52, 4  ;;  %v888_v57 = vrot.slane %v886_v53, 5  ;;  %v995_v58 = vshrl.u32 %v854_v54, 16 }
 0x125   :  { %v456_v62 = vadd.f32 %v455_v61, %v454_v59  ;;  %v998_v59 = vshll.u32 %v854_v54, 16  ;;  %v863_v61 = vld [vmem:[#allocation2 + $0x4] sm:$0x1]  ;;  %v889_v2 = vor.u32 %v888_v57, %v885_v56 }
 0x126   :  { %v892_v63 = vshll.u32 %v863_v61, 16 }
 0x127   :  { %v458_v1 = vadd.f32 %v457_v0, %v456_v62  ;;  %v12705_v62 = vsub.s32 0, %v484_v55  ;;  %v871_v0 = vld [vmem:[#allocation2 + $0x54] sm:$0x1] }
 0x128   :  { %v1004_v6 = vshll.u32 %v871_v0, 16 }
 0x129   :  { %v460_v5 = vadd.f32 %v459_v3, %v458_v1  ;;  %16174 = vst [vmem:[#allocation8_spill] sm:$0xff] %v12705_v62  ;;  %v12707_v3 = vrot.slane %v995_v58, 4 }
 0x12b   :  { %v462_v8 = vadd.f32 %v461_v7, %v460_v5  ;;  %v12709_v5 = vrot.slane %v998_v59, 5 }
 0x12d   :  { %v464_v17 = vadd.f32 %v463_v15, %v462_v8  ;;  %v12716_v15 = vrot.slane %v889_v2, 4 }
 0x12f   :  { %v466_v20 = vadd.f32 %v465_v19, %v464_v17  ;;  %v12718_v17 = vrot.slane %v892_v63, 5  ;;  %v12722_v19 = vrot.slane %v1004_v6, 5 }
 0x131   :  { %v468_v26 = vadd.f32 %v467_v24, %v466_v20 }
 0x133   :  { %v470_v40 = vadd.f32 %v469_v28, %v468_v26 }
 0x135   :  { %v472_v38 = vadd.f32 %v471_v33, %v470_v40 }
 0x137   :  { %v473_v41 = vrot.slane %v472_v38, 4 }
 0x139   :  { %v474_v42 = vadd.f32 %v473_v41, %v472_v38 }
 0x13b   :  { %v475_v43 = vrot.slane %v474_v42, 2 }
 0x13d   :  { %v476_v44 = vadd.f32 %v475_v43, %v474_v42 }
 0x13f   :  { %v477_v45 = vrot.slane %v476_v44, 1 }
 0x141   :  { %v478_v46 = vadd.f32 %v477_v45, %v476_v44 }
 0x143   :  { %v479_v47 = vmul.f32 0.0078125, %v478_v46 }
 0x145   :  { %v480_v48 = vadd.f32 1e-05, %v479_v47 }
 0x147   :  { %12288 = vrsqrt.f32 %v480_v48 }
 0x151   :  { %v12289_v1 = vpop.eup %12288 }
 0x152   :  { %v482_v7 = vmul.f32 %v12289_v1, %v369_v60 }
 0x154   :  { %v486_v8 = vrot.slane %v482_v7, %v12705_v62  ;;  %v795_v62 = vld [vmem:[#allocation2 + $0x44] sm:$0x1] }
 0x156   :  { %v487_v20 = vmul.f32 %v486_v8, %v12597_v29  ;;  %v488_v23 = vmul.f32 %v486_v8, %v12600_v30  ;;  %v489_v24 = vmul.f32 %v486_v8, %v12603_v31  ;;  %v490_v26 = vmul.f32 %v486_v8, %v12606_v32 }
 0x157   :  { %v491_v28 = vmul.f32 %v486_v8, %v12609_v36  ;;  %v492_v40 = vmul.f32 %v486_v8, %v12612_v37  ;;  %v493_v33 = vmul.f32 %v486_v8, %v12615_v11  ;;  %v494_v38 = vmul.f32 %v486_v8, %v12618_v14 }
 0x158   :  { %v495_v29 = vmul.f32 %v486_v8, %v12621_v10  ;;  %v496_v30 = vmul.f32 %v486_v8, %v12624_v12  ;;  %v497_v31 = vmul.f32 %v486_v8, %v12627_v39  ;;  %v498_v32 = vmul.f32 %v486_v8, %v12630_v22 }
 0x159   :  { %v499_v41 = vmul.f32 %v486_v8, %v12633_v27  ;;  %v500_v42 = vmul.f32 %v486_v8, %v12635_v21  ;;  %v501_v36 = vmul.f32 %v486_v8, %v12638_v25  ;;  %v502_v37 = vmul.f32 %v486_v8, %v12641_v34 }
 0x15a   :  { %v507_v43 = vadd.f32 %v10296_v16, %v487_v20  ;;  %v508_v11 = vadd.f32 %v10296_v16, %v488_v23  ;;  %v509_v44 = vadd.f32 %v10296_v16, %v489_v24  ;;  %v510_v14 = vadd.f32 %v10296_v16, %v490_v26 }
 0x15b   :  { %v511_v45 = vadd.f32 %v10296_v16, %v491_v28  ;;  %v512_v10 = vadd.f32 %v10296_v16, %v492_v40  ;;  %v513_v46 = vadd.f32 %v10296_v16, %v493_v33  ;;  %v514_v12 = vadd.f32 %v10296_v16, %v494_v38 }
 0x15c   :  { %v515_v47 = vadd.f32 %v10296_v16, %v495_v29  ;;  %v516_v39 = vadd.f32 %v10296_v16, %v496_v30  ;;  %v517_v48 = vadd.f32 %v10296_v16, %v497_v31  ;;  %v518_v22 = vadd.f32 %v10296_v16, %v498_v32 }
 0x15d   :  { %v519_v51 = vadd.f32 %v10296_v16, %v499_v41  ;;  %v520_v27 = vadd.f32 %v10296_v16, %v500_v42  ;;  %v521_v52 = vadd.f32 %v10296_v16, %v501_v36  ;;  %v522_v21 = vadd.f32 %v10296_v16, %v502_v37 }
 0x15e   :  { %v523_v53 = vmax.f32 %v507_v43, 0.0  ;;  %v524_v25 = vmax.f32 %v508_v11, 0.0  ;;  %v525_v54 = vmax.f32 %v509_v44, 0.0  ;;  %v526_v34 = vmax.f32 %v510_v14, 0.0 }
 0x15f   :  { %v527_v55 = vmax.f32 %v511_v45, 0.0  ;;  %v528_v56 = vmax.f32 %v512_v10, 0.0  ;;  %v529_v57 = vmax.f32 %v513_v46, 0.0  ;;  %v530_v58 = vmax.f32 %v514_v12, 0.0 }
 0x160   :  { %v531_v59 = vmax.f32 %v515_v47, 0.0  ;;  %v532_v60 = vmax.f32 %v516_v39, 0.0  ;;  %v533_v61 = vmax.f32 %v517_v48, 0.0  ;;  %v534_v63 = vmax.f32 %v518_v22, 0.0 }
 0x161   :  { %v535_v0 = vmax.f32 %v519_v51, 0.0  ;;  %v536_v1 = vmax.f32 %v520_v27, 0.0  ;;  %v537_v2 = vmax.f32 %v521_v52, 0.0  ;;  %v538_v6 = vmax.f32 %v522_v21, 0.0 }
 0x162   :  { %v10941_v7 = vpack.c.bf16 %v523_v53, %v523_v53  ;;  %v10942_v8 = vpack.c.bf16 %v524_v25, %v524_v25  ;;  %v10943_v20 = vpack.c.bf16 %v525_v54, %v525_v54  ;;  %v10944_v23 = vpack.c.bf16 %v526_v34, %v526_v34  ;;  %v789_v54 = vld [vmem:[#allocation2 + $0x3c] sm:$0x1] }
 0x163   :  { %v10945_v24 = vpack.c.bf16 %v527_v55, %v527_v55  ;;  %v10946_v26 = vpack.c.bf16 %v528_v56, %v528_v56  ;;  %v10947_v16 = vpack.c.bf16 %v529_v57, %v529_v57  ;;  %v10948_v28 = vpack.c.bf16 %v530_v58, %v530_v58  ;;  %v786_v55 = vld [vmem:[#allocation2 + $0x38] sm:$0xf] }
 0x164   :  { %v10949_v40 = vpack.c.bf16 %v531_v59, %v531_v59  ;;  %v12743_v33 = vpack.c.bf16 %v532_v60, %v532_v60  ;;  %v12745_v38 = vpack.c.bf16 %v533_v61, %v533_v61  ;;  %v12747_v29 = vpack.c.bf16 %v534_v63, %v534_v63 }
 0x165   :  { %v12749_v30 = vpack.c.bf16 %v535_v0, %v535_v0  ;;  %v12751_v31 = vpack.c.bf16 %v536_v1, %v536_v1  ;;  %v12753_v32 = vpack.c.bf16 %v537_v2, %v537_v2  ;;  %v12755_v41 = vpack.c.bf16 %v538_v6, %v538_v6  ;;  %v783_v2 = vld [vmem:[#allocation2 + $0x34] sm:$0x1] }
 0x166   :  { %v588_v42 = vshrl.u32 %v10941_v7, 16  ;;  %v591_v36 = vshll.u32 %v10941_v7, 16  ;;  %v596_v37 = vshrl.u32 %v10942_v8, 16  ;;  %v599_v43 = vshll.u32 %v10942_v8, 16 }
 0x167   :  { %v604_v11 = vshrl.u32 %v10943_v20, 16  ;;  %v607_v44 = vshll.u32 %v10943_v20, 16  ;;  %v612_v14 = vshrl.u32 %v10944_v23, 16  ;;  %v615_v45 = vshll.u32 %v10944_v23, 16 }
 0x168   :  { %v12757_v10 = vrot.slane %v588_v42, 7  ;;  %v12759_v46 = vrot.slane %v596_v37, 7  ;;  %v620_v12 = vshrl.u32 %v10945_v24, 16  ;;  %v623_v47 = vshll.u32 %v10945_v24, 16 }
 0x169   :  { %v12761_v39 = vrot.slane %v604_v11, 7  ;;  %v12763_v48 = vrot.slane %v612_v14, 7  ;;  %v628_v22 = vshrl.u32 %v10946_v26, 16  ;;  %v631_v51 = vshll.u32 %v10946_v26, 16 }
 0x16a   :  { %v12766_v27 = vor.u32 %v591_v36, %v12757_v10  ;;  %v12770_v21 = vor.u32 %v599_v43, %v12759_v46  ;;  %v12781_v56 = vrot.slane %v620_v12, 7  ;;  %v636_v58 = vshrl.u32 %v10947_v16, 16  ;;  %v792_v43 = vld [vmem:[#allocation2 + $0x40] sm:$0xf] }
 0x16b   :  { %v12774_v25 = vor.u32 %v607_v44, %v12761_v39  ;;  %v12778_v34 = vor.u32 %v615_v45, %v12763_v48  ;;  %v12783_v57 = vrot.slane %v628_v22, 7  ;;  %v639_v59 = vshll.u32 %v10947_v16, 16  ;;  %v750_v22 = vld [vmem:[#allocation2 + $0x8] sm:$0xf] }
 0x16c   :  { %v644_v60 = vshrl.u32 %v10948_v28, 16  ;;  %v647_v61 = vshll.u32 %v10948_v28, 16  ;;  %v652_v63 = vshrl.u32 %v10949_v40, 16  ;;  %v655_v0 = vshll.u32 %v10949_v40, 16 }
 0x16d   :  { %v12786_v1 = vor.u32 %v623_v47, %v12781_v56  ;;  %v12790_v6 = vor.u32 %v631_v51, %v12783_v57  ;;  %v12793_v8 = vrot.slane %v636_v58, 7  ;;  %v660_v24 = vshrl.u32 %v12743_v33, 16  ;;  %v771_v58 = vld [vmem:[#allocation2 + $0x24] sm:$0x1] }
 0x16e   :  { %v12795_v20 = vrot.slane %v644_v60, 7  ;;  %v12797_v23 = vrot.slane %v652_v63, 7  ;;  %v663_v26 = vshll.u32 %v12743_v33, 16  ;;  %v668_v16 = vshrl.u32 %v12745_v38, 16  ;;  %v756_v63 = vld [vmem:[#allocation2 + $0x10] sm:$0xf] }
 0x16f   :  { %v671_v28 = vshll.u32 %v12745_v38, 16  ;;  %v676_v40 = vshrl.u32 %v12747_v29, 16  ;;  %v12805_v42 = vor.u32 %v639_v59, %v12793_v8  ;;  %v12816_v44 = vrot.slane %v660_v24, 7  ;;  %v768_v60 = vld [vmem:[#allocation2 + $0x20] sm:$0xf] }
 0x170   :  { %v12809_v37 = vor.u32 %v647_v61, %v12795_v20  ;;  %v12813_v11 = vor.u32 %v655_v0, %v12797_v23  ;;  %v12818_v38 = vrot.slane %v668_v16, 7  ;;  %v679_v45 = vshll.u32 %v12747_v29, 16  ;;  %v753_v61 = vld [vmem:[#allocation2 + $0xc] sm:$0x1]  ;;  %v759_v16 = vld [vmem:[#allocation2 + $0x14] sm:$0x1] }
 0x171   :  { %v12820_v14 = vrot.slane %v676_v40, 7  ;;  %v684_v12 = vshrl.u32 %v12749_v30, 16  ;;  %v687_v47 = vshll.u32 %v12749_v30, 16  ;;  %v12826_v51 = vor.u32 %v663_v26, %v12816_v44  ;;  %v762_v29 = vld [vmem:[#allocation2 + $0x18] sm:$0xf] }
 0x172   :  { %v12830_v59 = vor.u32 %v671_v28, %v12818_v38  ;;  %v692_v30 = vshrl.u32 %v12751_v31, 16  ;;  %v16175_v26 = vmov 0  ;;  %v695_v28 = vshll.u32 %v12751_v31, 16  ;;  %v777_v31 = vld [vmem:[#allocation2 + $0x2c] sm:$0x1] }
 0x173   :  { %v12834_v0 = vor.u32 %v679_v45, %v12820_v14  ;;  %v12837_v24 = vrot.slane %v684_v12, 7  ;;  %v16176_v26 = vsel %vm12842_vm10, 4294967295, %v16175_v26  ;;  %v700_v40 = vshrl.u32 %v12753_v32, 16  ;;  %v765_v12 = vld [vmem:[#allocation2 + $0x1c] sm:$0x1] }
 0x174   :  { %16177 = vst [vmem:[#allocation9_spill] sm:$0xff] %v16176_v26  ;;  %v703_v45 = vshll.u32 %v12753_v32, 16  ;;  %v708_v18 = vshrl.u32 %v12755_v41, 16  ;;  %v12854_v36 = vrot.slane %v692_v30, 7  ;;  %v711_v7 = vshll.u32 %v12755_v41, 16 }
 0x175   :  { %v12851_v33 = vor.u32 %v687_v47, %v12837_v24  ;;  %v12857_v32 = vrot.slane %v700_v40, 7  ;;  %v751_v52 = vsel %vm12842_vm10, %v12766_v27, %v750_v22  ;;  %v16178_v47 = vrot.slane %v12757_v10, 4  ;;  %v798_v41 = vld [vmem:[#allocation2 + $0x58] sm:$0xf]  ;;  %v804_v22 = vld [vmem:[#allocation2 + $0x60] sm:$0xf] }
 0x176   :  { %v12859_v53 = vrot.slane %v708_v18, 7  ;;  %v12869_v4 = vor.u32 %v695_v28, %v12854_v36  ;;  %v698_v40 = vrot.slane %v12854_v36, 4  ;;  %752 = vst [vmem:[#allocation2 + $0x8] sm:$0xf] %v751_v52  ;;  %v757_v18 = vsel %vm12842_vm10, %v12770_v21, %v756_v63  ;;  %v813_v63 = vld [vmem:[#allocation2 + $0x6c] sm:$0x1] }
 0x177   :  { %v754_v30 = vsel %vm12425_vm4, %v16178_v47, %v753_v61  ;;  %v16179_v27 = vrot.slane %v12759_v46, 4  ;;  %v807_v61 = vld [vmem:[#allocation2 + $0x64] sm:$0x1]  ;;  %v12880_v28 = vor.u32 %v703_v45, %v12857_v32  ;;  %758 = vst [vmem:[#allocation2 + $0x10] sm:$0xf] %v757_v18 }
 0x178   :  { %755 = vst [vmem:[#allocation2 + $0xc] sm:$0x1] %v754_v30  ;;  %v12884_v52 = vor.u32 %v711_v7, %v12859_v53  ;;  %v810_v46 = vld [vmem:[#allocation2 + $0x68] sm:$0xf]  ;;  %v16180_v30 = vrot.slane %v12761_v39, 4  ;;  %v769_v7 = vsel %vm12842_vm10, %v12778_v34, %v768_v60  ;;  %v16182_v39 = vrot.slane %v12781_v56, 4 }
 0x179   :  { %v760_v10 = vsel %vm12425_vm4, %v16179_v27, %v759_v16  ;;  %v763_v16 = vsel %vm12842_vm10, %v12774_v25, %v762_v29  ;;  %v16181_v27 = vrot.slane %v12763_v48, 4  ;;  %v819_v21 = vld [vmem:[#allocation2 + $0x74] sm:$0x1]  ;;  %v822_v47 = vld [vmem:[#allocation2 + $0x78] sm:$0xf]  ;;  %v16183_v29 = vrot.slane %v12783_v57, 4 }
 0x17a   :  { %761 = vst [vmem:[#allocation2 + $0x14] sm:$0x1] %v760_v10  ;;  %v766_v45 = vsel %vm12425_vm4, %v16180_v30, %v765_v12  ;;  %v816_v10 = vld [vmem:[#allocation2 + $0x70] sm:$0xf]  ;;  %764 = vst [vmem:[#allocation2 + $0x18] sm:$0xf] %v763_v16  ;;  %v778_v25 = vsel %vm12425_vm4, %v16182_v39, %v777_v31  ;;  %v787_v48 = vsel %vm12842_vm10, %v12805_v42, %v786_v55 }
 0x17b   :  { %v772_v18 = vsel %vm12425_vm4, %v16181_v27, %v771_v58  ;;  %767 = vst [vmem:[#allocation2 + $0x1c] sm:$0x1] %v766_v45  ;;  %770 = vst [vmem:[#allocation2 + $0x20] sm:$0xf] %v769_v7  ;;  %v784_v34 = vsel %vm12425_vm4, %v16183_v29, %v783_v2  ;;  %v16184_v58 = vrot.slane %v12793_v8, 4  ;;  %v793_v57 = vsel %vm12842_vm10, %v12809_v37, %v792_v43 }
 0x17c   :  { %v825_v12 = vld [vmem:[#allocation2 + $0x7c] sm:$0x1]  ;;  %v828_v16 = vld [vmem:[#allocation2 + $0x80] sm:$0xf]  ;;  %v831_v56 = vld [vmem:[#allocation2 + $0x84] sm:$0x1] }
 0x17d   :  { %v790_v60 = vsel %vm12425_vm4, %v16184_v58, %v789_v54  ;;  %773 = vst [vmem:[#allocation2 + $0x24] sm:$0x1] %v772_v18  ;;  %779 = vst [vmem:[#allocation2 + $0x2c] sm:$0x1] %v778_v25  ;;  %v16185_v2 = vrot.slane %v12795_v20, 4  ;;  %v799_v54 = vsel %vm12842_vm10, %v12813_v11, %v798_v41  ;;  %v16186_v8 = vrot.slane %v12797_v23, 4 }
 0x17e   :  { %785 = vst [vmem:[#allocation2 + $0x34] sm:$0x1] %v784_v34  ;;  %791 = vst [vmem:[#allocation2 + $0x3c] sm:$0x1] %v790_v60  ;;  %v834_v31 = vld [vmem:[#allocation2 + $0x88] sm:$0xf]  ;;  %v16193_v18 = vor.u32 %v12709_v5, %v12707_v3 }
 0x17f   :  { %v796_v55 = vsel %vm12425_vm4, %v16185_v2, %v795_v62  ;;  %v802_v42 = vsel %vm12425_vm4, %v16186_v8, %v801_v35  ;;  %v837_v30 = vld [vmem:[#allocation2 + $0x8c] sm:$0x1]  ;;  %v840_v45 = vld [vmem:[#allocation2 + $0x90] sm:$0xf]  ;;  %788 = vst [vmem:[#allocation2 + $0x38] sm:$0xf] %v787_v48  ;;  %v805_v62 = vsel %vm12842_vm10, %v12826_v51, %v804_v22  ;;  %v811_v35 = vsel %vm12842_vm10, %v12830_v59, %v810_v46 }
 0x180   :  { %794 = vst [vmem:[#allocation2 + $0x40] sm:$0xf] %v793_v57  ;;  %797 = vst [vmem:[#allocation2 + $0x44] sm:$0x1] %v796_v55  ;;  %v16187_v20 = vrot.slane %v12816_v44, 4  ;;  %v16188_v37 = vrot.slane %v12818_v38, 4  ;;  %v817_v44 = vsel %vm12842_vm10, %v12834_v0, %v816_v10  ;;  %v823_v38 = vsel %vm12842_vm10, %v12851_v33, %v822_v47 }
 0x181   :  { %800 = vst [vmem:[#allocation2 + $0x58] sm:$0xf] %v799_v54  ;;  %803 = vst [vmem:[#allocation2 + $0x5c] sm:$0x1] %v802_v42  ;;  %v843_v11 = vld [vmem:[#allocation2 + $0x94] sm:$0x1]  ;;  %v832_v0 = vsel %vm12425_vm4, %v698_v40, %v831_v56  ;;  %v835_v33 = vsel %vm12842_vm10, %v12880_v28, %v834_v31  ;;  %v895_v55 = vsel %vm13010_vm13, %v12716_v15, %v12718_v17 }
 0x182   :  { %v808_v23 = vsel %vm12425_vm4, %v16187_v20, %v807_v61  ;;  %v814_v43 = vsel %vm12425_vm4, %v16188_v37, %v813_v63  ;;  %v774_v41 = vld [vmem:[#allocation2 + $0x28] sm:$0xf]  ;;  %v780_v7 = vld [vmem:[#allocation2 + $0x30] sm:$0xf]  ;;  %806 = vst [vmem:[#allocation2 + $0x60] sm:$0xf] %v805_v62 }
 0x183   :  { %809 = vst [vmem:[#allocation2 + $0x64] sm:$0x1] %v808_v23  ;;  %812 = vst [vmem:[#allocation2 + $0x68] sm:$0xf] %v811_v35  ;;  %v16189_v51 = vrot.slane %v12820_v14, 4  ;;  %v16190_v22 = vrot.slane %v12837_v24, 4  ;;  %v829_v14 = vsel %vm12842_vm10, %v12869_v4, %v828_v16  ;;  %v841_v4 = vsel %vm12842_vm10, %v12884_v52, %v840_v45 }
 0x184   :  { %815 = vst [vmem:[#allocation2 + $0x6c] sm:$0x1] %v814_v43  ;;  %818 = vst [vmem:[#allocation2 + $0x70] sm:$0xf] %v817_v44  ;;  %v16191_v24 = vrot.slane %v12857_v32, 4  ;;  %v16192_v36 = vrot.slane %v12859_v53, 4  ;;  %v775_v40 = vsel %vm12842_vm10, %v12786_v1, %v774_v41  ;;  %v781_v28 = vsel %vm12842_vm10, %v12790_v6, %v780_v7 }
 0x185   :  { %v820_v59 = vsel %vm12425_vm4, %v16189_v51, %v819_v21  ;;  %v826_v61 = vsel %vm12425_vm4, %v16190_v22, %v825_v12  ;;  %824 = vst [vmem:[#allocation2 + $0x78] sm:$0xf] %v823_v38  ;;  %v12972_v21 = vld [vmem:[#allocation2 + $0x8] sm:$0xf]  ;;  %v12974_v46 = vld [vmem:[#allocation2 + $0xc] sm:$0x1] }
 0x186   :  { %821 = vst [vmem:[#allocation2 + $0x74] sm:$0x1] %v820_v59  ;;  %827 = vst [vmem:[#allocation2 + $0x7c] sm:$0x1] %v826_v61  ;;  %v838_v47 = vsel %vm12425_vm4, %v16191_v24, %v837_v30  ;;  %v844_v32 = vsel %vm12425_vm4, %v16192_v36, %v843_v11  ;;  %v12989_v63 = vld [vmem:[#allocation2 + $0x10] sm:$0xf] }
 0x187   :  { %830 = vst [vmem:[#allocation2 + $0x80] sm:$0xf] %v829_v14  ;;  %833 = vst [vmem:[#allocation2 + $0x84] sm:$0x1] %v832_v0  ;;  %v897_v52 = vshrl.u32 %v12972_v21, 16  ;;  %v900_v53 = vshll.u32 %v12972_v21, 16 }
 0x188   :  { %836 = vst [vmem:[#allocation2 + $0x88] sm:$0xf] %v835_v33  ;;  %839 = vst [vmem:[#allocation2 + $0x8c] sm:$0x1] %v838_v47  ;;  %v911_v27 = vshrl.u32 %v12989_v63, 16  ;;  %v12997_v1 = vrot.slane %v16193_v18, 4 }
 0x189   :  { %842 = vst [vmem:[#allocation2 + $0x90] sm:$0xf] %v841_v4  ;;  %845 = vst [vmem:[#allocation2 + $0x94] sm:$0x1] %v844_v32  ;;  %v2430_v6 = vld [vmem:[%s16133_s4 + $0x14] sm:$0xf] }
 0x18a   :  { %776 = vst [vmem:[#allocation2 + $0x28] sm:$0xf] %v775_v40  ;;  %782 = vst [vmem:[#allocation2 + $0x30] sm:$0xf] %v781_v28  ;;  %v906_v10 = vshll.u32 %v12974_v46, 16  ;;  %v914_v29 = vshll.u32 %v12989_v63, 16 }
 0x18b   :  { %v13003_v39 = vld [vmem:[#allocation2 + $0x18] sm:$0xf]  ;;  %v13005_v25 = vld [vmem:[#allocation2 + $0x14] sm:$0x1]  ;;  %v899_v3 = vrot.slane %v897_v52, 4  ;;  %v902_v5 = vrot.slane %v900_v53, 5 }
 0x18c   :  { %v13014_v48 = vld [vmem:[#allocation2 + $0x1c] sm:$0x1]  ;;  %v913_v58 = vrot.slane %v911_v27, 4  ;;  %v13017_v60 = vsel %vm1155_vm9, %v2430_v6, 0  ;;  %v920_v16 = vshll.u32 %v13005_v25, 16  ;;  %v13024_v57 = vsel %vm1155_vm9, %v12696_v50, 0 }
 0x18d   :  { %v903_v12 = vor.u32 %v902_v5, %v899_v3  ;;  %v13020_v56 = vld [vmem:[#allocation2 + $0x8] sm:$0xf]  ;;  %v12210_v2 = vld [vmem:[#allocation2 + $0x38] ss:$8 sps:$4 sm:$0xff]   ;;  %v908_v54 = vrot.slane %v906_v10, 5  ;;  %v916_v8 = vrot.slane %v914_v29, 5 }
 0x18e   :  { %v925_v31 = vshrl.u32 %v13003_v39, 16  ;;  %v928_v30 = vshll.u32 %v13003_v39, 16  ;;  %v934_v45 = vshll.u32 %v13014_v48, 16  ;;  %v12211_v23 = vld [vmem:[#allocation2 + $0x58] ss:$8 sps:$4 sm:$0xff]   ;;  %v922_v43 = vrot.slane %v920_v16, 5 }
 0x18f   :  { %v904_v42 = vrot.slane %v903_v12, 4  ;;  %v917_v20 = vor.u32 %v916_v8, %v913_v58  ;;  %v13036_v11 = vld [vmem:[#allocation2 + $0x20] sm:$0xf]  ;;  %v1930_v41 = vshrl.u32 %v13020_v56, 16  ;;  %v13042_v51 = vld [vmem:[#allocation2 + $0x24] sm:$0x1]  ;;  %v1007_v12 = vsel %vm13010_vm13, %v12997_v1, %v12722_v19 }
 0x190   :  { %v927_v35 = vrot.slane %v925_v31, 4  ;;  %v930_v37 = vrot.slane %v928_v30, 5  ;;  %v13044_v59 = vld [vmem:[#allocation2 + $0x2c] sm:$0x1]  ;;  %v936_v38 = vrot.slane %v934_v45, 5  ;;  %v939_v22 = vshrl.u32 %v13036_v11, 16 }
 0x191   :  { %v12209_v62 = vld [vmem:[#allocation2 + $0x28] ss:$8 sps:$4 sm:$0xff]   ;;  %v909_v50 = vsel %vm13010_vm13, %v904_v42, %v908_v54  ;;  %v918_v17 = vrot.slane %v917_v20, 4  ;;  %v942_v61 = vshll.u32 %v13036_v11, 16  ;;  %v948_v14 = vshll.u32 %v13042_v51, 16 }
 0x192   :  { %11334 = vmatprep.mubr.msk.bf16.mxu1 %vm371_vm7, %v12209_v62  ;;  %v10313_v15 = vcombine.low %v895_v55, %v909_v50  ;;  %v931_v7 = vor.u32 %v930_v37, %v927_v35  ;;  %v13040_v44 = vld [vmem:[#allocation2 + $0x28] sm:$0xf]  ;;  %v962_v32 = vshll.u32 %v13044_v59, 16  ;;  %v13060_v53 = vld [vmem:[#allocation2 + $0x30] sm:$0xf]  ;;  %v13062_v27 = vrot.slane %v1930_v41, 4 }
 0x193   :  { %11335 = vmatmul.mubr.msk.bf16.vlgmr.msra.gmra.mrb[0].mxu1 %vm371_vm7, %v12210_v2  ;;  %v923_v0 = vsel %vm13010_vm13, %v918_v17, %v922_v43  ;;  %v953_v24 = vshrl.u32 %v13040_v44, 16  ;;  %v956_v47 = vshll.u32 %v13040_v44, 16  ;;  %v944_v4 = vrot.slane %v942_v61, 5  ;;  %v13067_v18 = vld [vmem:[%s16133_s4 + $0x8] sm:$0xf] }
 0x194   :  { %11347 = vmatpush3.bf16.msra.mxu1 %v12714_v9  ;;  %11338 = vmatprep.mubr.msk.bf16.mxu1 %vm371_vm7, %v12211_v23  ;;  %v932_v33 = vrot.slane %v931_v7, 4  ;;  %v941_v9 = vrot.slane %v939_v22, 4  ;;  %v950_v36 = vrot.slane %v948_v14, 5  ;;  %v13069_v29 = vld [vmem:[#allocation2 + $0x38] sm:$0xf]  ;;  %v967_v54 = vshrl.u32 %v13060_v53, 16 }
 0x195   :  { %11276 = vmatprep.mubr.msk.bf16.mxu0 %vm371_vm7, %v10313_v15  ;;  %12171 = vmatprep.subr.msk.bf16.mxu1 %vm1155_vm9, %v2430_v6  ;;  %v955_v28 = vrot.slane %v953_v24, 4  ;;  %v958_v52 = vrot.slane %v956_v47, 5  ;;  %v13071_v3 = vld [vmem:[#allocation2 + $0x34] sm:$0x1]  ;;  %v13073_v5 = vld [vmem:[#allocation2 + $0x3c] sm:$0x1] }
 0x196   :  { %v937_v40 = vsel %vm13010_vm13, %v932_v33, %v936_v38  ;;  %v945_v10 = vor.u32 %v944_v4, %v941_v9  ;;  %16196 = vst [vmem:[#allocation10_spill] sm:$0xff] %v13071_v3  ;;  %16197 = vst [vmem:[#allocation11_spill] sm:$0xff] %v13073_v5  ;;  %v13075_v58 = vld [vmem:[#allocation2 + $0xc] sm:$0x1]  ;;  %v12212_v2 = vld [vmem:[#allocation2 + $0x68] ss:$8 sps:$4 sm:$0xff]  }
 0x197   :  { %v10314_v6 = vcombine.low %v923_v0, %v937_v40  ;;  %v959_v55 = vor.u32 %v958_v52, %v955_v28  ;;  %v970_v8 = vshll.u32 %v13060_v53, 16  ;;  %v976_v42 = vshll.u32 %v13071_v3, 16  ;;  %v12213_v31 = vld [vmem:[#allocation2 + $0x78] ss:$8 sps:$4 sm:$0xff]   ;;  %v1899_v15 = vld [vmem:[#allocation2 + $0x10] sm:$0xf] }
 0x198   :  { %v946_v30 = vrot.slane %v945_v10, 4  ;;  %v964_v45 = vrot.slane %v962_v32, 5  ;;  %v981_v62 = vshrl.u32 %v13069_v29, 16  ;;  %v984_v20 = vshll.u32 %v13069_v29, 16  ;;  %v13095_v38 = vld [vmem:[#allocation2 + $0x14] sm:$0x1] }
 0x199   :  { %11277 = vmatmul.mubr.msk.bf16.vlgmr.msra.gmra.mrb[16].mxu0 %vm371_vm7, %v10314_v6  ;;  %v960_v23 = vrot.slane %v959_v55, 4  ;;  %v969_v50 = vrot.slane %v967_v54, 4  ;;  %v972_v35 = vrot.slane %v970_v8, 5  ;;  %v990_v37 = vshll.u32 %v13073_v5, 16  ;;  %v13103_v0 = vld [vmem:[#allocation2 + $0x58] sm:$0xf] }
 0x19a   :  { %11293 = vmatpush3.bf16.msra.mxu0 %v13024_v57  ;;  %v951_v17 = vsel %vm13010_vm13, %v946_v30, %v950_v36  ;;  %v978_v43 = vrot.slane %v976_v42, 5  ;;  %v983_v41 = vrot.slane %v981_v62, 4  ;;  %v986_v7 = vrot.slane %v984_v20, 5  ;;  %v13106_v28 = vld [vmem:[#allocation2 + $0x5c] sm:$0x1] }
 0x19b   :  { %11339 = vmatmul.mubr.msk.bf16.gmra.mrb[4].mxu1 %vm371_vm7, %v12212_v2  ;;  %12167 = vmatprep.subr.msk.bf16.mxu0 %vm1155_vm9, %v13067_v18  ;;  %v965_v22 = vsel %vm13010_vm13, %v960_v23, %v964_v45  ;;  %v973_v61 = vor.u32 %v972_v35, %v969_v50  ;;  %v1933_v14 = vshll.u32 %v13020_v56, 16  ;;  %v1939_v57 = vshll.u32 %v13075_v58, 16  ;;  %16198 = vst [vmem:[#allocation12_spill] sm:$0xff] %v13106_v28  ;;  %v1901_v2 = vld [vmem:[#allocation2 + $0x18] sm:$0xf] }
 0x19c   :  { %11342 = vmatprep.mubr.msk.bf16.mxu1 %vm371_vm7, %v12213_v31  ;;  %v10315_v33 = vcombine.low %v951_v17, %v965_v22  ;;  %v987_v24 = vor.u32 %v986_v7, %v983_v41  ;;  %v1944_v47 = vshrl.u32 %v1899_v15, 16  ;;  %v1947_v9 = vshll.u32 %v1899_v15, 16  ;;  %v12214_v55 = vld [vmem:[#allocation2 + $0x88] ss:$8 sps:$4 sm:$0xff]   ;;  %v13114_v30 = vld [vmem:[#allocation2 + $0x1c] sm:$0x1] }
 0x19d   :  { %v974_v4 = vrot.slane %v973_v61, 4  ;;  %v992_v36 = vrot.slane %v990_v37, 5  ;;  %v1935_v32 = vrot.slane %v1933_v14, 5  ;;  %v1953_v40 = vshll.u32 %v13095_v38, 16  ;;  %v1903_v50 = vld [vmem:[#allocation2 + $0x20] sm:$0xf] }
 0x19e   :  { %11280 = vmatprep.mubr.msk.bf16.mxu0 %vm371_vm7, %v10315_v33  ;;  %v988_v52 = vrot.slane %v987_v24, 4  ;;  %v1946_v6 = vrot.slane %v1944_v47, 4  ;;  %v1949_v56 = vrot.slane %v1947_v9, 5  ;;  %v1009_v10 = vshrl.u32 %v13103_v0, 16  ;;  %v13120_v41 = vld [vmem:[#allocation2 + $0x24] sm:$0x1] }
 0x19f   :  { %v979_v54 = vsel %vm13010_vm13, %v974_v4, %v978_v43  ;;  %v1936_v8 = vor.u32 %v1935_v32, %v13062_v27  ;;  %v1941_v42 = vrot.slane %v1939_v57, 5  ;;  %v1012_v31 = vshll.u32 %v13103_v0, 16  ;;  %v13126_v24 = vld [vmem:[#allocation2 + $0x60] sm:$0xf]  ;;  %v13128_v47 = vld [vmem:[#allocation2 + $0x68] sm:$0xf] }
 0x1a0   :  { %v993_v45 = vsel %vm13010_vm13, %v988_v52, %v992_v36  ;;  %v1950_v62 = vor.u32 %v1949_v56, %v1946_v6  ;;  %v1011_v20 = vrot.slane %v1009_v10, 4  ;;  %v1018_v23 = vshll.u32 %v13106_v28, 16 }
 0x1a1   :  { %v10316_v35 = vcombine.low %v979_v54, %v993_v45  ;;  %v1937_v37 = vrot.slane %v1936_v8, 4  ;;  %v1014_v15 = vrot.slane %v1012_v31, 5  ;;  %v1958_v17 = vshrl.u32 %v1901_v2, 16  ;;  %v13135_v54 = vld [vmem:[#allocation2 + $0x6c] sm:$0x1] }
 0x1a2   :  { %v1951_v27 = vrot.slane %v1950_v62, 4  ;;  %v1955_v43 = vrot.slane %v1953_v40, 5  ;;  %v1961_v7 = vshll.u32 %v1901_v2, 16  ;;  %v1967_v22 = vshll.u32 %v13114_v30, 16  ;;  %v13132_v40 = vld [vmem:[#allocation2 + $0x64] sm:$0x1] }
 0x1a3   :  { %11343 = vmatmul.mubr.msk.bf16.gmra.mrb[8].mxu1 %vm371_vm7, %v12214_v55  ;;  %11281 = vmatmul.mubr.msk.bf16.gmra.mrb[20].mxu0 %vm371_vm7, %v10316_v35  ;;  %v1942_v61 = vsel %vm13010_vm13, %v1937_v37, %v1941_v42  ;;  %v1015_v14 = vor.u32 %v1014_v15, %v1011_v20  ;;  %v1960_v57 = vrot.slane %v1958_v17, 4  ;;  %v1972_v33 = vshrl.u32 %v1903_v50, 16  ;;  %16199 = vst [vmem:[#allocation13_spill] sm:$0xff] %v13132_v40  ;;  %v13149_v17 = vld [vmem:[#allocation2 + $0x2c] sm:$0x1] }
 0x1a4   :  { %v1956_v9 = vsel %vm13010_vm13, %v1951_v27, %v1955_v43  ;;  %v1020_v4 = vrot.slane %v1018_v23, 5  ;;  %v1963_v36 = vrot.slane %v1961_v7, 5  ;;  %v1975_v32 = vshll.u32 %v1903_v50, 16  ;;  %16200 = vst [vmem:[#allocation14_spill] sm:$0xff] %v13135_v54  ;;  %v1905_v23 = vld [vmem:[#allocation2 + $0x28] sm:$0xf] }
 0x1a5   :  { %v10393_v52 = vcombine.low %v1942_v61, %v1956_v9  ;;  %v1016_v6 = vrot.slane %v1015_v14, 4  ;;  %v1974_v56 = vrot.slane %v1972_v33, 4  ;;  %v1981_v10 = vshll.u32 %v13120_v41, 16  ;;  %v1907_v61 = vld [vmem:[#allocation2 + $0x30] sm:$0xf] }
 0x1a6   :  { %v1964_v2 = vor.u32 %v1963_v36, %v1960_v57  ;;  %v1977_v55 = vrot.slane %v1975_v32, 5  ;;  %v1023_v8 = vshrl.u32 %v13126_v24, 16  ;;  %v1026_v42 = vshll.u32 %v13126_v24, 16 }
 0x1a7   :  { %11348 = vmatprep.mubr.msk.bf16.mxu1 %vm371_vm7, %v10393_v52  ;;  %v1021_v31 = vsel %vm13010_vm13, %v1016_v6, %v1020_v4  ;;  %v1969_v45 = vrot.slane %v1967_v22, 5  ;;  %v1032_v62 = vshll.u32 %v13132_v40, 16  ;;  %v1037_v20 = vshrl.u32 %v13128_v47, 16  ;;  %v13156_v4 = vld [vmem:[#allocation2 + $0x34] sm:$0x1] }
 0x1a8   :  { %v10317_v50 = vcombine.low %v1007_v12, %v1021_v31  ;;  %v1965_v35 = vrot.slane %v1964_v2, 4  ;;  %v1978_v37 = vor.u32 %v1977_v55, %v1974_v56  ;;  %v1025_v15 = vrot.slane %v1023_v8, 4  ;;  %v13163_v31 = vld [vmem:[#allocation2 + $0x74] sm:$0x1] }
 0x1a9   :  { %v1983_v27 = vrot.slane %v1981_v10, 5  ;;  %v1028_v43 = vrot.slane %v1026_v42, 5  ;;  %v1039_v7 = vrot.slane %v1037_v20, 4  ;;  %v1040_v22 = vshll.u32 %v13128_v47, 16  ;;  %v13161_v10 = vld [vmem:[#allocation2 + $0x70] sm:$0xf] }
 0x1aa   :  { %11284 = vmatprep.mubr.msk.bf16.mxu0 %vm371_vm7, %v10317_v50  ;;  %v1970_v14 = vsel %vm13010_vm13, %v1965_v35, %v1969_v45  ;;  %v1979_v57 = vrot.slane %v1978_v37, 4  ;;  %v1046_v19 = vshll.u32 %v13135_v54, 16  ;;  %v1986_v1 = vshrl.u32 %v1905_v23, 16  ;;  %16201 = vst [vmem:[#allocation15_spill] sm:$0xff] %v13163_v31  ;;  %v13168_v45 = vld [vmem:[%s16133_s4 + $0x18] sm:$0xf] }
 0x1ab   :  { %v1029_v12 = vor.u32 %v1028_v43, %v1025_v15  ;;  %v1034_v33 = vrot.slane %v1032_v62, 5  ;;  %v1042_v9 = vrot.slane %v1040_v22, 5  ;;  %v1989_v36 = vshll.u32 %v1905_v23, 16  ;;  %v13171_v35 = vld [vmem:[#allocation2 + $0x78] sm:$0xf] }
 0x1ac   :  { %v1984_v32 = vsel %vm13010_vm13, %v1979_v57, %v1983_v27  ;;  %v1988_v52 = vrot.slane %v1986_v1, 4  ;;  %v1995_v6 = vshll.u32 %v13149_v17, 16  ;;  %v2000_v56 = vshrl.u32 %v1907_v61, 16 }
 0x1ad   :  { %v10394_v2 = vcombine.low %v1970_v14, %v1984_v32  ;;  %v1030_v55 = vrot.slane %v1029_v12, 4  ;;  %v1043_v8 = vor.u32 %v1042_v9, %v1039_v7  ;;  %v1991_v42 = vrot.slane %v1989_v36, 5  ;;  %v13178_v14 = vld [vmem:[#allocation2 + $0x7c] sm:$0x1]  ;;  %v1909_v9 = vld [vmem:[#allocation2 + $0x38] sm:$0xf] }
 0x1ae   :  { %v1048_v62 = vrot.slane %v1046_v19, 5  ;;  %v2002_v20 = vrot.slane %v2000_v56, 4  ;;  %v2003_v23 = vshll.u32 %v1907_v61, 16  ;;  %v2009_v50 = vshll.u32 %v13156_v4, 16  ;;  %16202 = vst [vmem:[#allocation16_spill] sm:$0xff] %v13178_v14 }
 0x1af   :  { %11349 = vmatmul.mubr.msk.bf16.vlgmr.msra.gmra.mrb[12].mxu1 %vm371_vm7, %v10394_v2  ;;  %v1035_v37 = vsel %vm13010_vm13, %v1030_v55, %v1034_v33  ;;  %v1044_v15 = vrot.slane %v1043_v8, 4  ;;  %v1992_v27 = vor.u32 %v1991_v42, %v1988_v52  ;;  %v1051_v43 = vshrl.u32 %v13161_v10, 16  ;;  %v1911_v56 = vld [vmem:[#allocation2 + $0x40] sm:$0xf] }
 0x1b0   :  { %11365 = vmatpush3.bf16.msra.mxu1 %v13017_v60  ;;  %v1997_v7 = vrot.slane %v1995_v6, 5  ;;  %v2005_v22 = vrot.slane %v2003_v23, 5  ;;  %v1054_v61 = vshll.u32 %v13161_v10, 16  ;;  %v1060_v57 = vshll.u32 %v13163_v31, 16  ;;  %v13187_v6 = vld [vmem:[#allocation2 + $0x3c] sm:$0x1] }
 0x1b1   :  { %v1049_v19 = vsel %vm13010_vm13, %v1044_v15, %v1048_v62  ;;  %v1993_v1 = vrot.slane %v1992_v27, 4  ;;  %v1053_v12 = vrot.slane %v1051_v43, 4  ;;  %v1065_v33 = vshrl.u32 %v13171_v35, 16  ;;  %12172 = vmatprep.subr.msk.bf16.mxu1 %vm1155_vm9, %v13168_v45  ;;  %v13194_v27 = vld [vmem:[#allocation2 + $0x44] sm:$0x1] }
 0x1b2   :  { %v10318_v60 = vcombine.low %v1035_v37, %v1049_v19  ;;  %v2006_v36 = vor.u32 %v2005_v22, %v2002_v20  ;;  %v2011_v32 = vrot.slane %v2009_v50, 5  ;;  %v1056_v52 = vrot.slane %v1054_v61, 5  ;;  %v13206_v31 = vld [vmem:[#allocation2 + $0x8c] sm:$0x1] }
 0x1b3   :  { %v1998_v2 = vsel %vm13010_vm13, %v1993_v1, %v1997_v7  ;;  %v1067_v55 = vrot.slane %v1065_v33, 4  ;;  %v1068_v8 = vshll.u32 %v13171_v35, 16  ;;  %v1074_v42 = vshll.u32 %v13178_v14, 16  ;;  %v13199_v33 = vld [vmem:[#allocation2 + $0x80] sm:$0xf]  ;;  %16204 = vst [vmem:[#allocation18_spill] sm:$0xff] %v13206_v31 }
 0x1b4   :  { %11285 = vmatmul.mubr.msk.bf16.gmra.mrb[24].mxu0 %vm371_vm7, %v10318_v60  ;;  %v2007_v62 = vrot.slane %v2006_v36, 4  ;;  %v1057_v23 = vor.u32 %v1056_v52, %v1053_v12  ;;  %v2014_v15 = vshrl.u32 %v1909_v9, 16  ;;  %v2017_v37 = vshll.u32 %v1909_v9, 16  ;;  %v13201_v9 = vld [vmem:[#allocation2 + $0x88] sm:$0xf] }
 0x1b5   :  { %v1062_v20 = vrot.slane %v1060_v57, 5  ;;  %v1070_v50 = vrot.slane %v1068_v8, 5  ;;  %v2023_v43 = vshll.u32 %v13187_v6, 16  ;;  %v2028_v22 = vshrl.u32 %v1911_v56, 16  ;;  %v13203_v57 = vld [vmem:[#allocation2 + $0x84] sm:$0x1] }
 0x1b6   :  { %v2012_v7 = vsel %vm13010_vm13, %v2007_v62, %v2011_v32  ;;  %v1058_v61 = vrot.slane %v1057_v23, 4  ;;  %v2016_v19 = vrot.slane %v2014_v15, 4  ;;  %v2019_v1 = vrot.slane %v2017_v37, 5  ;;  %16203 = vst [vmem:[#allocation17_spill] sm:$0xff] %v13203_v57  ;;  %v1913_v62 = vld [vmem:[#allocation2 + $0x58] sm:$0xf] }
 0x1b7   :  { %v10395_v60 = vcombine.low %v1998_v2, %v2012_v7  ;;  %v1071_v36 = vor.u32 %v1070_v50, %v1067_v55  ;;  %v1076_v12 = vrot.slane %v1074_v42, 5  ;;  %v2025_v52 = vrot.slane %v2023_v43, 5  ;;  %v13215_v50 = vld [vmem:[#allocation2 + $0x5c] sm:$0x1] }
 0x1b8   :  { %v2020_v8 = vor.u32 %v2019_v1, %v2016_v19  ;;  %v2030_v16 = vrot.slane %v2028_v22, 4  ;;  %v2031_v26 = vshll.u32 %v1911_v56, 16  ;;  %v2037_v14 = vshll.u32 %v13194_v27, 16 }
 0x1b9   :  { %11352 = vmatprep.mubr.msk.bf16.mxu1 %vm371_vm7, %v10395_v60  ;;  %v1063_v32 = vsel %vm13010_vm13, %v1058_v61, %v1062_v20  ;;  %v1072_v2 = vrot.slane %v1071_v36, 4  ;;  %v1079_v55 = vshrl.u32 %v13199_v33, 16  ;;  %v1082_v42 = vshll.u32 %v13199_v33, 16  ;;  %v1915_v61 = vld [vmem:[#allocation2 + $0x60] sm:$0xf] }
 0x1ba   :  { %v2021_v23 = vrot.slane %v2020_v8, 4  ;;  %v2033_v15 = vrot.slane %v2031_v26, 5  ;;  %v1088_v37 = vshll.u32 %v13203_v57, 16  ;;  %v1093_v56 = vshrl.u32 %v13201_v9, 16 }
 0x1bb   :  { %v1077_v43 = vsel %vm13010_vm13, %v1072_v2, %v1076_v12  ;;  %v2039_v22 = vrot.slane %v2037_v14, 5  ;;  %v1081_v7 = vrot.slane %v1079_v55, 4  ;;  %v1084_v20 = vrot.slane %v1082_v42, 5  ;;  %v13224_v12 = vld [vmem:[#allocation2 + $0x64] sm:$0x1] }
 0x1bc   :  { %v10319_v19 = vcombine.low %v1063_v32, %v1077_v43  ;;  %v2026_v1 = vsel %vm13010_vm13, %v2021_v23, %v2025_v52  ;;  %v2034_v60 = vor.u32 %v2033_v15, %v2030_v16  ;;  %v1095_v36 = vrot.slane %v1093_v56, 4  ;;  %v1917_v23 = vld [vmem:[#allocation2 + $0x68] sm:$0xf] }
 0x1bd   :  { %v1085_v26 = vor.u32 %v1084_v20, %v1081_v7  ;;  %v1096_v8 = vshll.u32 %v13201_v9, 16  ;;  %v1102_v57 = vshll.u32 %v13206_v31, 16  ;;  %v2042_v54 = vshrl.u32 %v1913_v62, 16  ;;  %v1919_v20 = vld [vmem:[#allocation2 + $0x70] sm:$0xf] }
 0x1be   :  { %11288 = vmatprep.mubr.msk.bf16.mxu0 %vm371_vm7, %v10319_v19  ;;  %v2035_v40 = vrot.slane %v2034_v60, 4  ;;  %v2045_v14 = vshll.u32 %v1913_v62, 16  ;;  %v2051_v2 = vshll.u32 %v13215_v50, 16  ;;  %v2056_v32 = vshrl.u32 %v1915_v61, 16  ;;  %v13229_v62 = vld [vmem:[#allocation2 + $0x6c] sm:$0x1] }
 0x1bf   :  { %v1086_v55 = vrot.slane %v1085_v26, 4  ;;  %v1090_v42 = vrot.slane %v1088_v37, 5  ;;  %v1098_v52 = vrot.slane %v1096_v8, 5  ;;  %v2044_v16 = vrot.slane %v2042_v54, 4 }
 0x1c0   :  { %v2040_v15 = vsel %vm13010_vm13, %v2035_v40, %v2039_v22  ;;  %v1104_v56 = vrot.slane %v1102_v57, 5  ;;  %v2047_v43 = vrot.slane %v2045_v14, 5  ;;  %v2053_v7 = vrot.slane %v2051_v2, 5  ;;  %v13235_v22 = vld [vmem:[#allocation2 + $0x74] sm:$0x1] }
 0x1c1   :  { %v10396_v19 = vcombine.low %v2026_v1, %v2040_v15  ;;  %v1099_v60 = vor.u32 %v1098_v52, %v1095_v36  ;;  %v2058_v31 = vrot.slane %v2056_v32, 4  ;;  %v2059_v28 = vshll.u32 %v1915_v61, 16  ;;  %v1921_v32 = vld [vmem:[#allocation2 + $0x78] sm:$0xf] }
 0x1c2   :  { %v2048_v5 = vor.u32 %v2047_v43, %v2044_v16  ;;  %v2065_v26 = vshll.u32 %v13224_v12, 16  ;;  %v2070_v37 = vshrl.u32 %v1917_v23, 16  ;;  %v2073_v8 = vshll.u32 %v1917_v23, 16  ;;  %v1923_v43 = vld [vmem:[#allocation2 + $0x80] sm:$0xf] }
 0x1c3   :  { %11353 = vmatmul.mubr.msk.bf16.gmra.mrb[0].mxu1 %vm371_vm7, %v10396_v19  ;;  %v1091_v40 = vsel %vm13010_vm13, %v1086_v55, %v1090_v42  ;;  %v1100_v54 = vrot.slane %v1099_v60, 4  ;;  %v2061_v57 = vrot.slane %v2059_v28, 5  ;;  %v2084_v1 = vshrl.u32 %v1919_v20, 16 }
 0x1c4   :  { %v2049_v36 = vrot.slane %v2048_v5, 4  ;;  %v2072_v14 = vrot.slane %v2070_v37, 4  ;;  %v2075_v61 = vrot.slane %v2073_v8, 5  ;;  %v2079_v2 = vshll.u32 %v13229_v62, 16  ;;  %v13243_v37 = vld [vmem:[#allocation2 + $0x7c] sm:$0x1] }
 0x1c5   :  { %v1105_v52 = vsel %vm13010_vm13, %v1100_v54, %v1104_v56  ;;  %v2062_v16 = vor.u32 %v2061_v57, %v2058_v31  ;;  %v2067_v23 = vrot.slane %v2065_v26, 5  ;;  %v2086_v15 = vrot.slane %v2084_v1, 4  ;;  %v13246_v26 = vld [vmem:[#allocation2 + $0x84] sm:$0x1]  ;;  %v1925_v1 = vld [vmem:[#allocation2 + $0x88] sm:$0xf] }
 0x1c6   :  { %v10320_v19 = vcombine.low %v1091_v40, %v1105_v52  ;;  %v2054_v28 = vsel %vm13010_vm13, %v2049_v36, %v2053_v7  ;;  %v2076_v55 = vor.u32 %v2075_v61, %v2072_v14  ;;  %v2087_v42 = vshll.u32 %v1919_v20, 16  ;;  %v1927_v36 = vld [vmem:[#allocation2 + $0x90] sm:$0xf] }
 0x1c7   :  { %v2063_v60 = vrot.slane %v2062_v16, 4  ;;  %v2093_v5 = vshll.u32 %v13235_v22, 16  ;;  %v2098_v8 = vshrl.u32 %v1921_v32, 16  ;;  %v2101_v3 = vshll.u32 %v1921_v32, 16 }
 0x1c8   :  { %11289 = vmatmul.mubr.msk.bf16.gmra.mrb[28].mxu0 %vm371_vm7, %v10320_v19  ;;  %v2077_v56 = vrot.slane %v2076_v55, 4  ;;  %v2089_v31 = vrot.slane %v2087_v42, 5  ;;  %v2112_v54 = vshrl.u32 %v1923_v43, 16  ;;  %v16205_v7 = vcombine.low %v12691_v49, %v12972_v21 }
 0x1c9   :  { %v2068_v40 = vsel %vm13010_vm13, %v2063_v60, %v2067_v23  ;;  %v2100_v20 = vrot.slane %v2098_v8, 4  ;;  %v2103_v57 = vrot.slane %v2101_v3, 5  ;;  %v2081_v61 = vrot.slane %v2079_v2, 5  ;;  %v13258_v23 = vld [vmem:[#allocation2 + $0x8c] sm:$0x1] }
 0x1ca   :  { %11294 = vmatprep.mubr.msk.bf16.mxu0 %vm371_vm7, %v16205_v7  ;;  %v10397_v14 = vcombine.low %v2054_v28, %v2068_v40  ;;  %v2090_v32 = vor.u32 %v2089_v31, %v2086_v15  ;;  %v2107_v52 = vshll.u32 %v13243_v37, 16  ;;  %v2095_v16 = vrot.slane %v2093_v5, 5  ;;  %v13265_v31 = vld [vmem:[#allocation2 + $0x94] sm:$0x1] }
 0x1cb   :  { %v2104_v19 = vor.u32 %v2103_v57, %v2100_v20  ;;  %v2114_v55 = vrot.slane %v2112_v54, 4  ;;  %v2115_v42 = vshll.u32 %v1923_v43, 16  ;;  %v2082_v49 = vsel %vm13010_vm13, %v2077_v56, %v2081_v61 }
 0x1cc   :  { %11356 = vmatprep.mubr.msk.bf16.mxu1 %vm371_vm7, %v10397_v14  ;;  %v2091_v21 = vrot.slane %v2090_v32, 4  ;;  %v2126_v3 = vshrl.u32 %v1925_v1, 16  ;;  %v2129_v60 = vshll.u32 %v1925_v1, 16  ;;  %v2121_v2 = vshll.u32 %v13246_v26, 16  ;;  %v2318_v1 = vld [vmem:[#allocation2 + $0x8] sm:$0xe] }
 0x1cd   :  { %v2105_v8 = vrot.slane %v2104_v19, 4  ;;  %v2117_v28 = vrot.slane %v2115_v42, 5  ;;  %v2140_v15 = vshrl.u32 %v1927_v36, 16  ;;  %v10330_v43 = vcombine.low %v12989_v63, %v13003_v39  ;;  %v2319_v14 = vld [vmem:[#allocation2 + $0x10] sm:$0xe] }
 0x1ce   :  { %v2096_v5 = vsel %vm13010_vm13, %v2091_v21, %v2095_v16  ;;  %v2128_v54 = vrot.slane %v2126_v3, 4  ;;  %v2131_v56 = vrot.slane %v2129_v60, 5  ;;  %v2109_v7 = vrot.slane %v2107_v52, 5 }
 0x1cf   :  { %v10398_v40 = vcombine.low %v2082_v49, %v2096_v5  ;;  %v2118_v20 = vor.u32 %v2117_v28, %v2114_v55  ;;  %v10331_v57 = vcombine.low %v13036_v11, %v13040_v44  ;;  %v2135_v32 = vshll.u32 %v13258_v23, 16  ;;  %v2321_v5 = vld [vmem:[#allocation2 + $0x20] sm:$0xe] }
 0x1d0   :  { %11295 = vmatmul.mubr.msk.bf16.vlgmr.msra.gmra.mrb[16].mxu0 %vm371_vm7, %v10330_v43  ;;  %v2132_v61 = vor.u32 %v2131_v56, %v2128_v54  ;;  %v2142_v16 = vrot.slane %v2140_v15, 4  ;;  %v2143_v19 = vshll.u32 %v1927_v36, 16  ;;  %v2110_v63 = vsel %vm13010_vm13, %v2105_v8, %v2109_v7  ;;  %v2320_v15 = vld [vmem:[#allocation2 + $0x18] sm:$0xe]  ;;  %v2322_v56 = vld [vmem:[#allocation2 + $0x28] sm:$0xe] }
 0x1d1   :  { %11357 = vmatmul.mubr.msk.bf16.gmra.mrb[4].mxu1 %vm371_vm7, %v10398_v40  ;;  %v2119_v39 = vrot.slane %v2118_v20, 4  ;;  %v2123_v52 = vrot.slane %v2121_v2, 5  ;;  %11298 = vmatprep.mubr.msk.bf16.mxu0 %vm371_vm7, %v10331_v57  ;;  %v2149_v55 = vshll.u32 %v13265_v31, 16  ;;  %v10409_v42 = vrot.slane %v2318_v1, 9  ;;  %v12298_v20 = vld [vmem:[#allocation2 + $0x50] sm:$0xf] }
 0x1d2   :  { %v2133_v11 = vrot.slane %v2132_v61, 4  ;;  %v2145_v44 = vrot.slane %v2143_v19, 5  ;;  %v2368_v36 = vrot.slane %v13075_v58, 5  ;;  %v10410_v21 = vrot.slane %v2319_v14, 9  ;;  %v2323_v14 = vld [vmem:[#allocation2 + $0x30] sm:$0xe] }
 0x1d3   :  { %v2124_v49 = vsel %vm13010_vm13, %v2119_v39, %v2123_v52  ;;  %v2372_v3 = vrot.slane %v13095_v38, 5  ;;  %v2137_v8 = vrot.slane %v2135_v32, 5  ;;  %v2151_v58 = vrot.slane %v2149_v55, 5  ;;  %v1420_v55 = vld [vmem:[#allocation2] sm:$0xe] }
 0x1d4   :  { %v10399_v60 = vcombine.low %v2110_v63, %v2124_v49  ;;  %v2146_v28 = vor.u32 %v2145_v44, %v2142_v16  ;;  %v10332_v38 = vcombine.low %v13060_v53, %v13069_v29  ;;  %v2369_v40 = vsel %vm13281_vm0, %v10409_v42, %v2368_v36  ;;  %v2325_v44 = vld [vmem:[#allocation2 + $0x40] sm:$0xe]  ;;  %v2326_v42 = vld [vmem:[#allocation2 + $0x58] sm:$0xe] }
 0x1d5   :  { %v2138_v43 = vsel %vm13010_vm13, %v2133_v11, %v2137_v8  ;;  %v2373_v7 = vsel %vm13281_vm0, %v10410_v21, %v2372_v3  ;;  %v10333_v57 = vcombine.low %v12298_v20, %v13103_v0  ;;  %v10411_v1 = vrot.slane %v2320_v15, 9  ;;  %v2324_v11 = vld [vmem:[#allocation2 + $0x38] sm:$0xe]  ;;  %v2327_v49 = vld [vmem:[#allocation2 + $0x60] sm:$0xe] }
 0x1d6   :  { %11360 = vmatprep.mubr.msk.bf16.mxu1 %vm371_vm7, %v10399_v60  ;;  %v2147_v54 = vrot.slane %v2146_v28, 4  ;;  %v2376_v32 = vrot.slane %v13114_v30, 5  ;;  %v10412_v53 = vrot.slane %v2321_v5, 9  ;;  %v2380_v29 = vrot.slane %v13120_v41, 5  ;;  %v1421_v60 = vld [vmem:[#allocation2 + $0x8] sm:$0xe] }
 0x1d7   :  { %v10413_v19 = vrot.slane %v2322_v56, 9  ;;  %v2384_v63 = vrot.slane %v13149_v17, 5  ;;  %v10425_v39 = vcombine.low %v2369_v40, %v2373_v7  ;;  %v10414_v0 = vrot.slane %v2323_v14, 9  ;;  %v1422_v56 = vld [vmem:[#allocation2 + $0x10] sm:$0xe] }
 0x1d8   :  { %v2152_v61 = vsel %vm13010_vm13, %v2147_v54, %v2151_v58  ;;  %11299 = vmatmul.mubr.msk.bf16.gmra.mrb[20].mxu0 %vm371_vm7, %v10332_v38  ;;  %v2388_v52 = vrot.slane %v13156_v4, 5  ;;  %v2377_v30 = vsel %vm13281_vm0, %v10411_v1, %v2376_v32  ;;  %v2381_v41 = vsel %vm13281_vm0, %v10412_v53, %v2380_v29  ;;  %v13335_v40 = vld [vmem:[%s16133_s4 + $0x1c] sm:$0xf]  ;;  %v1423_v20 = vld [vmem:[#allocation2 + $0x18] sm:$0xe] }
 0x1d9   :  { %v10400_v16 = vcombine.low %v2138_v43, %v2152_v61  ;;  %11302 = vmatprep.mubr.msk.bf16.mxu0 %vm371_vm7, %v10333_v57  ;;  %v10334_v17 = vcombine.low %v13126_v24, %v13128_v47  ;;  %v2385_v4 = vsel %vm13281_vm0, %v10413_v19, %v2384_v63  ;;  %v10335_v36 = vcombine.low %v13161_v10, %v13171_v35  ;;  %v12299_v35 = vld [vmem:[#allocation2 + $0x4] sm:$0x1]  ;;  %v2328_v61 = vld [vmem:[#allocation2 + $0x68] sm:$0xe]  ;;  %v1424_v29 = vld [vmem:[#allocation2 + $0x20] sm:$0xe] }
 0x1da   :  { %v10415_v21 = vrot.slane %v2324_v11, 9  ;;  %v2392_v3 = vrot.slane %v13187_v6, 5  ;;  %v2389_v8 = vsel %vm13281_vm0, %v10414_v0, %v2388_v52  ;;  %v10416_v28 = vrot.slane %v2325_v44, 9  ;;  %v2330_v11 = vld [vmem:[#allocation2 + $0x78] sm:$0xe] }
 0x1db   :  { %11361 = vmatmul.mubr.msk.bf16.gmra.mrb[8].mxu1 %vm371_vm7, %v10400_v16  ;;  %v2396_v15 = vrot.slane %v13194_v27, 5  ;;  %v1585_v24 = vsel %vm1155_vm9, %v13067_v18, 0  ;;  %v10417_v47 = vrot.slane %v2326_v42, 9  ;;  %v2400_v5 = vrot.slane %v13215_v50, 5  ;;  %v12300_v27 = vld [vmem:[%s16133_s4 + $0xc] sm:$0xf] }
 0x1dc   :  { %11366 = vmatprep.mubr.msk.bf16.mxu1 %vm371_vm7, %v10425_v39  ;;  %v10418_v43 = vrot.slane %v2327_v49, 9  ;;  %v2404_v54 = vrot.slane %v13224_v12, 5  ;;  %11311 = vmatpush3.bf16.msra.mxu0 %v1585_v24  ;;  %v10345_v10 = vrot.slane %v1420_v55, 9  ;;  %v1473_v6 = vrot.slane %v12299_v35, 5  ;;  %v1425_v16 = vld [vmem:[#allocation2 + $0x28] sm:$0xe] }
 0x1dd   :  { %v10346_v58 = vrot.slane %v1421_v60, 9  ;;  %v1477_v38 = vrot.slane %v12974_v46, 5  ;;  %12168 = vmatprep.subr.msk.bf16.mxu0 %vm1155_vm9, %v12300_v27  ;;  %v10426_v18 = vcombine.low %v2377_v30, %v2381_v41  ;;  %v2678_v50 = vsel %vm1155_vm9, %v13168_v45, 0  ;;  %v2329_v39 = vld [vmem:[#allocation2 + $0x70] sm:$0xe]  ;;  %v16208_v27 = vld [vmem:[#allocation10_spill] sm:$0xff] }
 0x1de   :  { %v10427_v12 = vcombine.low %v2385_v4, %v2389_v8  ;;  %v2393_v46 = vsel %vm13281_vm0, %v10415_v21, %v2392_v3  ;;  %v2397_v7 = vsel %vm13281_vm0, %v10416_v28, %v2396_v15  ;;  %v2401_v45 = vsel %vm13281_vm0, %v10417_v47, %v2400_v5  ;;  %v72_v60 = vld [vmem:[#allocation2 + $0x48] sm:$0x1]  ;;  %v1427_v28 = vld [vmem:[#allocation2 + $0x38] sm:$0xe]  ;;  %v1428_v24 = vld [vmem:[#allocation2 + $0x50] sm:$0xe] }
 0x1df   :  { %v2405_v57 = vsel %vm13281_vm0, %v10418_v43, %v2404_v54  ;;  %v1474_v1 = vsel %vm13281_vm0, %v10345_v10, %v1473_v6  ;;  %v1478_v14 = vsel %vm13281_vm0, %v10346_v58, %v1477_v38  ;;  %v10347_v32 = vrot.slane %v1422_v56, 9  ;;  %v1429_v47 = vld [vmem:[#allocation2 + $0x58] sm:$0xe]  ;;  %v102_v5 = vld [vmem:[#allocation2 + $0x98] sm:$0x1] }
 0x1e0   :  { %11303 = vmatmul.mubr.msk.bf16.gmra.mrb[24].mxu0 %vm371_vm7, %v10334_v17  ;;  %v1481_v53 = vrot.slane %v13005_v25, 5  ;;  %v10428_v19 = vcombine.low %v2393_v46, %v2397_v7  ;;  %v10336_v63 = vcombine.low %v13199_v33, %v13201_v9  ;;  %v10348_v0 = vrot.slane %v1423_v20, 9  ;;  %v2331_v25 = vld [vmem:[#allocation2 + $0x80] sm:$0xe]  ;;  %v2332_v10 = vld [vmem:[#allocation2 + $0x88] sm:$0xe] }
 0x1e1   :  { %11306 = vmatprep.mubr.msk.bf16.mxu0 %vm371_vm7, %v10335_v36  ;;  %v1485_v52 = vrot.slane %v13014_v48, 5  ;;  %v10429_v44 = vcombine.low %v2401_v45, %v2405_v57  ;;  %v10361_v55 = vcombine.low %v1474_v1, %v1478_v14  ;;  %v10419_v30 = vrot.slane %v2328_v61, 9  ;;  %v2333_v35 = vld [vmem:[#allocation2 + $0x90] sm:$0xe]  ;;  %v13390_v46 = vld [vmem:[%s16132_s3] sm:$0x3] }
 0x1e2   :  { %v2408_v41 = vrot.slane %v13229_v62, 5  ;;  %v10349_v17 = vrot.slane %v1424_v29, 9  ;;  %v1489_v42 = vrot.slane %v13042_v51, 5  ;;  %v10350_v49 = vrot.slane %v1425_v16, 9  ;;  %v12301_v45 = vld [vmem:[#allocation2 + $0x54] sm:$0x1] }
 0x1e3   :  { %11367 = vmatmul.mubr.msk.bf16.vlgmr.msra.gmra.mrb[12].mxu1 %vm371_vm7, %v10426_v18  ;;  %v1493_v4 = vrot.slane %v13044_v59, 5  ;;  %v10420_v33 = vrot.slane %v2329_v39, 9  ;;  %v2412_v48 = vrot.slane %v13235_v22, 5  ;;  %v1482_v9 = vsel %vm13281_vm0, %v10347_v32, %v1481_v53  ;;  %v1426_v59 = vld [vmem:[#allocation2 + $0x30] sm:$0xe]  ;;  %v16211_v53 = vld [vmem:[#allocation7_spill] sm:$0xff] }
 0x1e4   :  { %11383 = vmatpush3.bf16.msra.mxu1 %v2678_v50  ;;  %11370 = vmatprep.mubr.msk.bf16.mxu1 %vm371_vm7, %v10427_v12  ;;  %v10421_v36 = vrot.slane %v2330_v11, 9  ;;  %v1486_v62 = vsel %vm13281_vm0, %v10348_v0, %v1485_v52  ;;  %v2416_v21 = vrot.slane %v13243_v37, 5  ;;  %v10422_v3 = vrot.slane %v2331_v25, 9  ;;  %v16209_v12 = vld [vmem:[#allocation11_spill] sm:$0xff]  ;;  %v16210_v1 = vld [vmem:[#allocation12_spill] sm:$0xff] }
 0x1e5   :  { %12173 = vmatprep.subr.msk.bf16.mxu1 %vm1155_vm9, %v13335_v40  ;;  %v2420_v51 = vrot.slane %v13246_v26, 5  ;;  %v1490_v22 = vsel %vm13281_vm0, %v10349_v17, %v1489_v42  ;;  %v1494_v8 = vsel %vm13281_vm0, %v10350_v49, %v1493_v4  ;;  %v2409_v15 = vsel %vm13281_vm0, %v10419_v30, %v2408_v41  ;;  %v1430_v11 = vld [vmem:[#allocation2 + $0x60] sm:$0xe]  ;;  %v1433_v30 = vld [vmem:[#allocation2 + $0x78] sm:$0xe] }
 0x1e6   :  { %v2413_v37 = vsel %vm13281_vm0, %v10420_v33, %v2412_v48  ;;  %v10362_v26 = vcombine.low %v1482_v9, %v1486_v62  ;;  %v2417_v43 = vsel %vm13281_vm0, %v10421_v36, %v2416_v21  ;;  %v10351_v6 = vrot.slane %v1426_v59, 9  ;;  %v16212_v4 = vld [vmem:[#allocation13_spill] sm:$0xff]  ;;  %v16213_v9 = vld [vmem:[#allocation14_spill] sm:$0xff]  ;;  %v16214_v21 = vld [vmem:[#allocation15_spill] sm:$0xff] }
 0x1e7   :  { %v2421_v54 = vsel %vm13281_vm0, %v10422_v3, %v2420_v51  ;;  %v73_v58 = vsel %vm12425_vm4, 0, %v72_v60  ;;  %v10363_v38 = vcombine.low %v1490_v22, %v1494_v8  ;;  %v1497_v18 = vrot.slane %v16208_v27, 5  ;;  %v16215_v59 = vld [vmem:[#allocation16_spill] sm:$0xff] }
 0x1e8   :  { %11307 = vmatmul.mubr.msk.bf16.gmra.mrb[28].mxu0 %vm371_vm7, %v10336_v63  ;;  %v10352_v50 = vrot.slane %v1427_v28, 9  ;;  %v1501_v56 = vrot.slane %v16209_v12, 5  ;;  %74 = vst [vmem:[#allocation2 + $0x48] sm:$0x1] %v73_v58  ;;  %v10353_v7 = vrot.slane %v1428_v24, 9  ;;  %v1505_v20 = vrot.slane %v12301_v45, 5 }
 0x1e9   :  { %11312 = vmatprep.mubr.msk.bf16.mxu0 %vm371_vm7, %v10361_v55  ;;  %v10354_v57 = vrot.slane %v1429_v47, 9  ;;  %v1509_v14 = vrot.slane %v16210_v1, 5  ;;  %v10430_v61 = vcombine.low %v2409_v15, %v2413_v37  ;;  %v10423_v32 = vrot.slane %v2332_v10, 9  ;;  %v1432_v55 = vld [vmem:[#allocation2 + $0x70] sm:$0xe]  ;;  %v16217_v58 = vld [vmem:[#allocation17_spill] sm:$0xff] }
 0x1ea   :  { %v103_v29 = vsel %vm12425_vm4, 0, %v102_v5  ;;  %v10431_v16 = vcombine.low %v2417_v43, %v2421_v54  ;;  %v10424_v63 = vrot.slane %v2333_v35, 9  ;;  %v2428_v39 = vrot.slane %v13265_v31, 5  ;;  %v12222_v8 = vld [vmem:[#allocation2 + $0x10] ss:$8 sps:$4 sm:$0xff]  }
 0x1eb   :  { %11371 = vmatmul.mubr.msk.bf16.gmra.mrb[0].mxu1 %vm371_vm7, %v10428_v19  ;;  %v2424_v19 = vrot.slane %v13258_v23, 5  ;;  %104 = vst [vmem:[#allocation2 + $0x98] sm:$0x1] %v103_v29  ;;  %v1498_v0 = vsel %vm13281_vm0, %v10351_v6, %v1497_v18  ;;  %v1502_v52 = vsel %vm13281_vm0, %v10352_v50, %v1501_v56  ;;  %v1506_v23 = vsel %vm13281_vm0, %v10353_v7, %v1505_v20  ;;  %v1434_v37 = vld [vmem:[#allocation2 + $0x80] sm:$0xe] }
 0x1ec   :  { %11374 = vmatprep.mubr.msk.bf16.mxu1 %vm371_vm7, %v10429_v44  ;;  %v1510_v31 = vsel %vm13281_vm0, %v10354_v57, %v1509_v14  ;;  %v1431_v44 = vld [vmem:[#allocation2 + $0x68] sm:$0xe]  ;;  %v2429_v25 = vsel %vm13281_vm0, %v10424_v63, %v2428_v39  ;;  %v10364_v17 = vcombine.low %v1498_v0, %v1502_v52  ;;  %v10355_v42 = vrot.slane %v1430_v11, 9  ;;  %v16218_v18 = vld [vmem:[#allocation18_spill] sm:$0xff]  ;;  %v2793_v7 = vld [vmem:[#allocation2 + $0x10] sm:$0xf] }
 0x1ed   :  { %v2425_v41 = vsel %vm13281_vm0, %v10423_v32, %v2424_v19  ;;  %v10365_v49 = vcombine.low %v1506_v23, %v1510_v31  ;;  %v1513_v33 = vrot.slane %v16212_v4, 5  ;;  %v10356_v48 = vrot.slane %v1431_v44, 9  ;;  %v1435_v5 = vld [vmem:[#allocation2 + $0x88] sm:$0xe]  ;;  %v2795_v45 = vld [vmem:[#allocation2 + $0x18] sm:$0xf] }
 0x1ee   :  { %v1517_v36 = vrot.slane %v16213_v9, 5  ;;  %v10357_v62 = vrot.slane %v1432_v55, 9  ;;  %v1521_v3 = vrot.slane %v16214_v21, 5  ;;  %v10358_v51 = vrot.slane %v1433_v30, 9  ;;  %v12223_v12 = vld [vmem:[#allocation2 + $0x20] ss:$8 sps:$4 sm:$0xff]  }
 0x1ef   :  { %v1525_v60 = vrot.slane %v16215_v59, 5  ;;  %v10432_v22 = vcombine.low %v2425_v41, %v2429_v25  ;;  %v1514_v28 = vsel %vm13281_vm0, %v10355_v42, %v1513_v33  ;;  %v10359_v54 = vrot.slane %v1434_v37, 9  ;;  %v12224_v20 = vld [vmem:[#allocation2 + $0x30] ss:$8 sps:$4 sm:$0xff]   ;;  %v13443_v57 = vld [vmem:[%s16133_s4 + $0x20] sm:$0xf] }
 0x1f0   :  { %11313 = vmatmul.mubr.msk.bf16.vlgmr.msra.gmra.mrb[16].mxu0 %vm371_vm7, %v10362_v26  ;;  %v1518_v15 = vsel %vm13281_vm0, %v10356_v48, %v1517_v36  ;;  %v134_v26 = vld [vmem:[#allocation2 + $0x4c] sm:$0x1]  ;;  %v1522_v24 = vsel %vm13281_vm0, %v10357_v62, %v1521_v3  ;;  %v10360_v27 = vrot.slane %v1435_v5, 9  ;;  %v1533_v50 = vrot.slane %v16218_v18, 5  ;;  %v2799_v19 = vld [vmem:[#allocation2 + $0x28] sm:$0xf] }
 0x1f1   :  { %11316 = vmatprep.mubr.msk.bf16.mxu0 %vm371_vm7, %v10363_v38  ;;  %11329 = vmatpush3.bf16.msra.mxu0 %v16211_v53  ;;  %v1526_v47 = vsel %vm13281_vm0, %v10358_v51, %v1525_v60  ;;  %v10366_v43 = vcombine.low %v1514_v28, %v1518_v15  ;;  %v135_v35 = vsel %vm12451_vm6, 0, %v134_v26  ;;  %v1529_v38 = vrot.slane %v16217_v58, 5  ;;  %v12227_v63 = vld [vmem:[#allocation2 + $0x8] ss:$8 sps:$4 sm:$0xff]   ;;  %v13453_v39 = vld [vmem:[#allocation2 + $0x14] sm:$0x1] }
 0x1f2   :  { %12175 = vmatprep.subr.msk.bf16.mxu0 %vm268_vm1, %v13390_v46  ;;  %v10367_v6 = vcombine.low %v1522_v24, %v1526_v47  ;;  %136 = vst [vmem:[#allocation2 + $0x4c] sm:$0x1] %v135_v35  ;;  %v3099_v56 = vsel %vm1155_vm9, %v13335_v40, 0  ;;  %v1534_v14 = vsel %vm13281_vm0, %v10360_v27, %v1533_v50  ;;  %v2826_v40 = vshrl.u32 %v2793_v7, 16  ;;  %v13455_v0 = vld [vmem:[#allocation2 + $0x1c] sm:$0x1] }
 0x1f3   :  { %11375 = vmatmul.mubr.msk.bf16.gmra.mrb[4].mxu1 %vm371_vm7, %v10430_v61  ;;  %v1530_v1 = vsel %vm13281_vm0, %v10359_v54, %v1529_v38  ;;  %v2829_v61 = vshll.u32 %v2793_v7, 16  ;;  %v2840_v32 = vshrl.u32 %v2795_v45, 16  ;;  %v2843_v53 = vshll.u32 %v2795_v45, 16  ;;  %v13458_v44 = vld [vmem:[#allocation2 + $0x24] sm:$0x1] }
 0x1f4   :  { %11378 = vmatprep.mubr.msk.bf16.mxu1 %vm371_vm7, %v10431_v16  ;;  %v10368_v29 = vcombine.low %v1530_v1, %v1534_v14  ;;  %v2797_v16 = vld [vmem:[#allocation2 + $0x20] sm:$0xf]  ;;  %v2828_v52 = vrot.slane %v2826_v40, 4  ;;  %v2868_v25 = vshrl.u32 %v2799_v19, 16  ;;  %v3727_v4 = vsel %vm268_vm1, %v13390_v46, 0 }
 0x1f5   :  { %v2831_v11 = vrot.slane %v2829_v61, 5  ;;  %v2842_v23 = vrot.slane %v2840_v32, 4  ;;  %v2845_v31 = vrot.slane %v2843_v53, 5  ;;  %v12225_v55 = vld [vmem:[#allocation2 + $0x40] ss:$8 sps:$4 sm:$0xff]   ;;  %v2854_v30 = vshrl.u32 %v2797_v16, 16 }
 0x1f6   :  { %v2857_v41 = vshll.u32 %v2797_v16, 16  ;;  %v12226_v42 = vld [vmem:[#allocation2 + $0x60] ss:$8 sps:$4 sm:$0xff]   ;;  %v2835_v48 = vshll.u32 %v13453_v39, 16  ;;  %v2803_v9 = vld [vmem:[#allocation2 + $0x38] sm:$0xf] }
 0x1f7   :  { %v12232_v33 = vld [vmem:[%s16130_s1] sm:$0xff]   ;;  %v2832_v62 = vor.u32 %v2831_v11, %v2828_v52  ;;  %v2846_v21 = vor.u32 %v2845_v31, %v2842_v23  ;;  %v2849_v3 = vshll.u32 %v13455_v0, 16  ;;  %v2863_v51 = vshll.u32 %v13458_v44, 16  ;;  %v13471_v60 = vld [vmem:[#allocation2 + $0x2c] sm:$0x1]  ;;  %v12234_v31 = vld [vmem:[%s16130_s1 + $0x10] sm:$0xff]  }
 0x1f8   :  { %11317 = vmatmul.mubr.msk.bf16.gmra.mrb[20].mxu0 %vm371_vm7, %v10364_v17  ;;  %v2871_v17 = vshll.u32 %v2799_v19, 16  ;;  %v12229_v36 = vld [vmem:[#allocation2 + $0x18] ss:$8 sps:$4 sm:$0xff]   ;;  %v2856_v46 = vrot.slane %v2854_v30, 4  ;;  %v2896_v26 = vshrl.u32 %v2803_v9, 16  ;;  %v2899_v24 = vshll.u32 %v2803_v9, 16 }
 0x1f9   :  { %11320 = vmatprep.mubr.msk.bf16.mxu0 %vm371_vm7, %v10365_v49  ;;  %v2801_v49 = vld [vmem:[#allocation2 + $0x30] sm:$0xf]  ;;  %v2805_v59 = vld [vmem:[#allocation2 + $0x40] sm:$0xf]  ;;  %v164_v47 = vld [vmem:[#allocation2 + $0x9c] sm:$0x1] }
 0x1fa   :  { %v2873_v28 = vrot.slane %v2871_v17, 5  ;;  %v2882_v15 = vshrl.u32 %v2801_v49, 16  ;;  %v2885_v37 = vshll.u32 %v2801_v49, 16  ;;  %v12228_v5 = vld [vmem:[#allocation2 + $0x70] ss:$8 sps:$4 sm:$0xff]   ;;  %v2910_v54 = vshrl.u32 %v2805_v59, 16 }
 0x1fb   :  { %11379 = vmatmul.mubr.msk.bf16.gmra.mrb[8].mxu1 %vm371_vm7, %v10432_v22  ;;  %v2859_v22 = vrot.slane %v2857_v41, 5  ;;  %v2913_v35 = vshll.u32 %v2805_v59, 16  ;;  %v2833_v58 = vrot.slane %v2832_v62, 4  ;;  %v2847_v38 = vrot.slane %v2846_v21, 4  ;;  %v2807_v50 = vld [vmem:[#allocation2 + $0x48] sm:$0xf] }
 0x1fc   :  { %11384 = vmatprep.mubr.msk.bf16.mxu1 %vm371_vm7, %v12222_v8  ;;  %v2870_v8 = vrot.slane %v2868_v25, 4  ;;  %v2851_v27 = vrot.slane %v2849_v3, 5  ;;  %v13474_v18 = vrot.slane %v2863_v51, 5  ;;  %v2877_v7 = vshll.u32 %v13471_v60, 16  ;;  %v13478_v45 = vld [vmem:[#allocation2 + $0x34] sm:$0x1] }
 0x1fd   :  { %v165_v1 = vsel %vm12451_vm6, 0, %v164_v47  ;;  %v2884_v14 = vrot.slane %v2882_v15, 4  ;;  %v2887_v40 = vrot.slane %v2885_v37, 5  ;;  %v2898_v61 = vrot.slane %v2896_v26, 4  ;;  %v2811_v53 = vld [vmem:[#allocation2 + $0x68] sm:$0xf] }
 0x1fe   :  { %v2901_v32 = vrot.slane %v2899_v24, 5  ;;  %166 = vst [vmem:[#allocation2 + $0x9c] sm:$0x1] %v165_v1  ;;  %v2912_v16 = vrot.slane %v2910_v54, 4  ;;  %v2915_v19 = vrot.slane %v2913_v35, 5  ;;  %v2927_v52 = vshll.u32 %v2807_v50, 16 }
 0x1ff   :  { %v2852_v11 = vsel %vm13010_vm13, %v2847_v38, %v2851_v27  ;;  %v12233_v23 = vld [vmem:[%s16130_s1 + $0x8] sm:$0xff]   ;;  %v2891_v25 = vshll.u32 %v13478_v45, 16  ;;  %v13497_v17 = vld [vmem:[#allocation2 + $0x44] sm:$0x1]  ;;  %v2955_v49 = vshll.u32 %v2811_v53, 16 }
 0x200   :  { %11321 = vmatmul.mubr.msk.bf16.gmra.mrb[24].mxu0 %vm371_vm7, %v10366_v43  ;;  %v2837_v43 = vrot.slane %v2835_v48, 5  ;;  %v2888_v48 = vor.u32 %v2887_v40, %v2884_v14  ;;  %v2902_v62 = vor.u32 %v2901_v32, %v2898_v61  ;;  %v2916_v21 = vor.u32 %v2915_v19, %v2912_v16  ;;  %v13506_v59 = vld [vmem:[#allocation2 + $0x6c] sm:$0x1]  ;;  %v12231_v37 = vld [vmem:[#allocation2 + $0x90] ss:$8 sps:$4 sm:$0xff]   ;;  %v12236_v61 = vld [vmem:[%s16130_s1 + $0x20] sm:$0xff]  }
 0x201   :  { %11324 = vmatprep.mubr.msk.bf16.mxu0 %vm371_vm7, %v10367_v6  ;;  %v12230_v6 = vld [vmem:[#allocation2 + $0x80] ss:$8 sps:$4 sm:$0xff]   ;;  %v2929_v51 = vrot.slane %v2927_v52, 5  ;;  %v2893_v24 = vrot.slane %v2891_v25, 5  ;;  %v13517_v27 = vld [vmem:[#allocation2 + $0x4c] sm:$0x1] }
 0x202   :  { %v2838_v10 = vsel %vm13010_vm13, %v2833_v58, %v2837_v43  ;;  %v2889_v54 = vrot.slane %v2888_v48, 4  ;;  %v2817_v58 = vld [vmem:[#allocation2 + $0x80] sm:$0xf]  ;;  %v2903_v38 = vrot.slane %v2902_v62, 4  ;;  %v2961_v1 = vshll.u32 %v13506_v59, 16 }
 0x203   :  { %11385 = vmatmul.mubr.msk.bf16.vlgmr.msra.gmra.mrb[12].mxu1 %vm371_vm7, %v12223_v12  ;;  %v2860_v12 = vor.u32 %v2859_v22, %v2856_v46  ;;  %v2813_v46 = vld [vmem:[#allocation2 + $0x70] sm:$0xf]  ;;  %v10457_v22 = vcombine.low %v2838_v10, %v2852_v11  ;;  %v2819_v40 = vld [vmem:[#allocation2 + $0x88] sm:$0xf]  ;;  %v2994_v52 = vshrl.u32 %v2817_v58, 16  ;;  %v2997_v10 = vshll.u32 %v2817_v58, 16 }
 0x204   :  { %11401 = vmatpush3.bf16.msra.mxu1 %v3099_v56  ;;  %11388 = vmatprep.mubr.msk.bf16.mxu1 %vm371_vm7, %v12224_v20  ;;  %v2874_v56 = vor.u32 %v2873_v28, %v2870_v8  ;;  %v2809_v20 = vld [vmem:[#allocation2 + $0x60] sm:$0xf]  ;;  %v2879_v8 = vrot.slane %v2877_v7, 5  ;;  %v2933_v7 = vshll.u32 %v13517_v27, 16  ;;  %v2966_v14 = vshrl.u32 %v2813_v46, 16 }
 0x205   :  { %12174 = vmatprep.subr.msk.bf16.mxu1 %vm1155_vm9, %v13443_v57  ;;  %v2941_v30 = vshll.u32 %v2809_v20, 16  ;;  %v2861_v41 = vrot.slane %v2860_v12, 4  ;;  %v2894_v11 = vsel %vm13010_vm13, %v2889_v54, %v2893_v24  ;;  %v12237_v24 = vld [vmem:[%s16130_s1 + $0x28] sm:$0xff]   ;;  %v13559_v58 = vld [vmem:[#allocation2 + $0x84] sm:$0x1] }
 0x207   :  { %v2943_v15 = vrot.slane %v2941_v30, 5  ;;  %v2866_v26 = vsel %vm13010_vm13, %v2861_v41, %v13474_v18  ;;  %v2935_v41 = vrot.slane %v2933_v7, 5 }
 0x208   :  { %11325 = vmatmul.mubr.msk.bf16.gmra.mrb[28].mxu0 %vm371_vm7, %v10368_v29  ;;  %v13483_v29 = vld [vmem:[#allocation2 + $0x3c] sm:$0x1] }
 0x209   :  { %11330 = vmatprep.mubr.msk.bf16.mxu0 %vm371_vm7, %v12227_v63  ;;  %v2924_v63 = vshrl.u32 %v2807_v50, 16  ;;  %v2905_v9 = vshll.u32 %v13483_v29, 16  ;;  %v13519_v50 = vrot.slane %v2916_v21, 4 }
 0x20b   :  { %11389 = vmatmul.mubr.msk.bf16.gmra.mrb[0].mxu1 %vm371_vm7, %v12225_v55  ;;  %v2938_v55 = vshrl.u32 %v2809_v20, 16  ;;  %v2926_v3 = vrot.slane %v2924_v63, 4  ;;  %v2907_v35 = vrot.slane %v2905_v9, 5 }
 0x20c   :  { %11392 = vmatprep.mubr.msk.bf16.mxu1 %vm371_vm7, %v12226_v42  ;;  %v2952_v42 = vshrl.u32 %v2811_v53, 16  ;;  %v2969_v53 = vshll.u32 %v2813_v46, 16  ;;  %v2821_v46 = vld [vmem:[#allocation2 + $0x90] sm:$0xf] }
 0x20d   :  { %v2940_v28 = vrot.slane %v2938_v55, 4  ;;  %v2930_v18 = vor.u32 %v2929_v51, %v2926_v3  ;;  %v3011_v55 = vshll.u32 %v2819_v40, 16  ;;  %v2963_v51 = vrot.slane %v2961_v1, 5 }
 0x20e   :  { %v2954_v47 = vrot.slane %v2952_v42, 4  ;;  %v2968_v42 = vrot.slane %v2966_v14, 4 }
 0x20f   :  { %v2944_v20 = vor.u32 %v2943_v15, %v2940_v28  ;;  %v2931_v30 = vrot.slane %v2930_v18, 4  ;;  %v3013_v15 = vrot.slane %v3011_v55, 5  ;;  %v3025_v18 = vshll.u32 %v2821_v46, 16 }
 0x210   :  { %11331 = vmatmul.mubr.msk.bf16.vlgmr.msra.gmra.mrb[16].mxu0 %vm371_vm7, %v12229_v36  ;;  %v13504_v36 = vld [vmem:[#allocation2 + $0x64] sm:$0x1] }
 0x211   :  { %11437 = vmatpush3.bf16.msra.mxu0 %v3727_v4  ;;  %11438 = vmatprep.mubr.msk.bf16.mxu0 %vm3701_vm2, %v12232_v33  ;;  %v2875_v4 = vrot.slane %v2874_v56, 4  ;;  %v13501_v33 = vsel %vm1155_vm9, %v13443_v57, 0  ;;  %v2815_v57 = vld [vmem:[#allocation2 + $0x78] sm:$0xf]  ;;  %v2947_v12 = vshll.u32 %v13504_v36, 16  ;;  %v2945_v25 = vrot.slane %v2944_v20, 4 }
 0x212   :  { %v12235_v56 = vld [vmem:[%s16130_s1 + $0x18] sm:$0xff]   ;;  %v2980_v16 = vshrl.u32 %v2815_v57, 16  ;;  %v2983_v19 = vshll.u32 %v2815_v57, 16 }
 0x213   :  { %11393 = vmatmul.mubr.msk.bf16.gmra.mrb[4].mxu1 %vm371_vm7, %v12228_v5  ;;  %v2957_v5 = vrot.slane %v2955_v49, 5  ;;  %v2880_v43 = vsel %vm13010_vm13, %v2875_v4, %v2879_v8  ;;  %v2971_v4 = vrot.slane %v2969_v53, 5  ;;  %v2949_v3 = vrot.slane %v2947_v12, 5  ;;  %v2823_v57 = vld [vmem:[#allocation2 + $0x98] sm:$0xf] }
 0x214   :  { %11396 = vmatprep.mubr.msk.bf16.mxu1 %vm371_vm7, %v12230_v6  ;;  %v2919_v6 = vshll.u32 %v13497_v17, 16  ;;  %v10458_v63 = vcombine.low %v2866_v26, %v2880_v43  ;;  %v2982_v48 = vrot.slane %v2980_v16, 4  ;;  %v2985_v9 = vrot.slane %v2983_v19, 5  ;;  %v13554_v43 = vld [vmem:[#allocation2 + $0x7c] sm:$0x1] }
 0x215   :  { %v2958_v32 = vor.u32 %v2957_v5, %v2954_v47  ;;  %v2999_v8 = vrot.slane %v2997_v10, 5  ;;  %v2936_v26 = vsel %vm13010_vm13, %v2931_v30, %v2935_v41  ;;  %v13548_v47 = vld [vmem:[#allocation2 + $0x74] sm:$0x1]  ;;  %v2950_v5 = vsel %vm13010_vm13, %v2945_v25, %v2949_v3  ;;  %v12239_v41 = vld [vmem:[%s16130_s1 + $0x38] sm:$0xff]  }
 0x216   :  { %v2921_v21 = vrot.slane %v2919_v6, 5  ;;  %v2972_v54 = vor.u32 %v2971_v4, %v2968_v42  ;;  %v12238_v6 = vld [vmem:[%s16130_s1 + $0x30] sm:$0xff]   ;;  %v3036_v12 = vshrl.u32 %v2823_v57, 16  ;;  %v2975_v7 = vshll.u32 %v13548_v47, 16 }
 0x217   :  { %v2959_v49 = vrot.slane %v2958_v32, 4  ;;  %v3003_v16 = vshll.u32 %v13559_v58, 16  ;;  %v13576_v4 = vld [vmem:[#allocation2 + $0x94] sm:$0x1] }
 0x218   :  { %11439 = vmatmul.mubr.msk.bf16.vlgmr.msra.gmra.mrb[32].mxu0 %vm3701_vm2, %v12233_v23  ;;  %v2908_v23 = vsel %vm13010_vm13, %v2903_v38, %v2907_v35  ;;  %v2986_v35 = vor.u32 %v2985_v9, %v2982_v48  ;;  %v13561_v38 = vld [vmem:[#allocation2 + $0x8c] sm:$0x1]  ;;  %v2973_v32 = vrot.slane %v2972_v54, 4  ;;  %v3038_v10 = vrot.slane %v3036_v12, 4  ;;  %v13578_v48 = vld [vmem:[#allocation2 + $0x9c] sm:$0x1] }
 0x219   :  { %11442 = vmatprep.mubr.msk.bf16.mxu0 %vm3701_vm2, %v12234_v31  ;;  %v3008_v31 = vshrl.u32 %v2819_v40, 16  ;;  %v10459_v62 = vcombine.low %v2894_v11, %v2908_v23  ;;  %v3017_v19 = vshll.u32 %v13561_v38, 16  ;;  %v2977_v23 = vrot.slane %v2975_v7, 5  ;;  %v3216_v12 = vld [vmem:[#allocation2 + $0x20] sm:$0xe] }
 0x21a   :  { %v2987_v53 = vrot.slane %v2986_v35, 4  ;;  %v3005_v42 = vrot.slane %v3003_v16, 5  ;;  %v3045_v3 = vshll.u32 %v13578_v48, 16  ;;  %v3268_v35 = vrot.slane %v13455_v0, 5 }
 0x21b   :  { %11397 = vmatmul.mubr.msk.bf16.gmra.mrb[8].mxu1 %vm371_vm7, %v12231_v37  ;;  %v3010_v28 = vrot.slane %v3008_v31, 4  ;;  %v2922_v37 = vsel %vm13010_vm13, %v13519_v50, %v2921_v21  ;;  %v3022_v50 = vshrl.u32 %v2821_v46, 16  ;;  %v2978_v25 = vsel %vm13010_vm13, %v2973_v32, %v2977_v23 }
 0x21c   :  { %11402 = vmatprep.mubr.msk.bf16.mxu1 %vm371_vm7, %v10457_v22  ;;  %v2996_v22 = vrot.slane %v2994_v52, 4  ;;  %v10460_v14 = vcombine.low %v2922_v37, %v2936_v26  ;;  %v3027_v52 = vrot.slane %v3025_v18, 5 }
 0x21d   :  { %v3014_v1 = vor.u32 %v3013_v15, %v3010_v28  ;;  %v3215_v28 = vld [vmem:[#allocation2 + $0x18] sm:$0xe] }
 0x21e   :  { %v3000_v20 = vor.u32 %v2999_v8, %v2996_v22  ;;  %v3031_v22 = vshll.u32 %v13576_v4, 16  ;;  %v3214_v8 = vld [vmem:[#allocation2 + $0x10] sm:$0xe]  ;;  %v10474_v54 = vrot.slane %v3215_v28, 9  ;;  %v3227_v28 = vld [vmem:[#allocation2 + $0x88] sm:$0xe] }
 0x21f   :  { %v3015_v55 = vrot.slane %v3014_v1, 4  ;;  %v3219_v1 = vld [vmem:[#allocation2 + $0x38] sm:$0xe] }
 0x220   :  { %11443 = vmatmul.mubr.msk.bf16.gmra.mrb[36].mxu0 %vm3701_vm2, %v12235_v56  ;;  %v3039_v56 = vshll.u32 %v2823_v57, 16  ;;  %v3001_v31 = vrot.slane %v3000_v20, 4  ;;  %v3269_v7 = vsel %vm13281_vm0, %v10474_v54, %v3268_v35  ;;  %v3218_v20 = vld [vmem:[#allocation2 + $0x30] sm:$0xe]  ;;  %v10486_v54 = vrot.slane %v3227_v28, 9 }
 0x221   :  { %11446 = vmatprep.mubr.msk.bf16.mxu0 %vm3701_vm2, %v12236_v61  ;;  %v2989_v61 = vshll.u32 %v13554_v43, 16  ;;  %v10477_v16 = vrot.slane %v3218_v20, 9  ;;  %v3316_v35 = vrot.slane %v13561_v38, 5  ;;  %v3320_v38 = vrot.slane %v13576_v4, 5 }
 0x222   :  { %v3041_v11 = vrot.slane %v3039_v56, 5  ;;  %v3324_v20 = vrot.slane %v13578_v48, 5 }
 0x223   :  { %11403 = vmatmul.mubr.msk.bf16.vlgmr.msra.gmra.mrb[12].mxu1 %vm371_vm7, %v10458_v63  ;;  %v3024_v63 = vrot.slane %v3022_v50, 4  ;;  %v2991_v30 = vrot.slane %v2989_v61, 5  ;;  %v3272_v61 = vrot.slane %v13458_v44, 5  ;;  %v3220_v44 = vld [vmem:[#allocation2 + $0x40] sm:$0xe] }
 0x224   :  { %11419 = vmatpush3.bf16.msra.mxu1 %v13501_v33  ;;  %11406 = vmatprep.mubr.msk.bf16.mxu1 %vm371_vm7, %v10459_v62  ;;  %v2964_v33 = vsel %vm13010_vm13, %v2959_v49, %v2963_v51  ;;  %v3019_v49 = vrot.slane %v3017_v19, 5  ;;  %v3042_v21 = vor.u32 %v3041_v11, %v3038_v10  ;;  %v3006_v51 = vsel %vm13010_vm13, %v3001_v31, %v3005_v42  ;;  %v3221_v31 = vld [vmem:[#allocation2 + $0x48] sm:$0xe] }
 0x225   :  { %v10461_v40 = vcombine.low %v2950_v5, %v2964_v33  ;;  %v2992_v9 = vsel %vm13010_vm13, %v2987_v53, %v2991_v30  ;;  %v3028_v62 = vor.u32 %v3027_v52, %v3024_v63  ;;  %v10473_v5 = vrot.slane %v3214_v8, 9  ;;  %v3225_v8 = vld [vmem:[#allocation2 + $0x78] sm:$0xe] }
 0x226   :  { %v3020_v46 = vsel %vm13010_vm13, %v3015_v55, %v3019_v49  ;;  %v10462_v15 = vcombine.low %v2978_v25, %v2992_v9  ;;  %v3043_v26 = vrot.slane %v3042_v21, 4  ;;  %v3264_v33 = vrot.slane %v13453_v39, 5  ;;  %v3217_v39 = vld [vmem:[#allocation2 + $0x28] sm:$0xe] }
 0x227   :  { %v10463_v57 = vcombine.low %v3006_v51, %v3020_v46  ;;  %v3029_v37 = vrot.slane %v3028_v62, 4  ;;  %v10476_v32 = vrot.slane %v3217_v39, 9  ;;  %v3276_v53 = vrot.slane %v13471_v60, 5  ;;  %v3223_v55 = vld [vmem:[#allocation2 + $0x68] sm:$0xe] }
 0x228   :  { %11447 = vmatmul.mubr.msk.bf16.gmra.mrb[40].mxu0 %vm3701_vm2, %v12237_v24  ;;  %v3047_v24 = vrot.slane %v3045_v3, 5  ;;  %v3265_v56 = vsel %vm13281_vm0, %v10473_v5, %v3264_v33  ;;  %v3280_v19 = vrot.slane %v13478_v45, 5  ;;  %v10478_v63 = vrot.slane %v3219_v1, 9  ;;  %v3222_v45 = vld [vmem:[#allocation2 + $0x60] sm:$0xe] }
 0x229   :  { %11450 = vmatprep.mubr.msk.bf16.mxu0 %vm3701_vm2, %v12238_v6  ;;  %v3033_v6 = vrot.slane %v3031_v22, 5  ;;  %v3284_v52 = vrot.slane %v13483_v29, 5  ;;  %v3277_v11 = vsel %vm13281_vm0, %v10476_v32, %v3276_v53  ;;  %v10479_v29 = vrot.slane %v3220_v44, 9 }
 0x22a   :  { %v3048_v18 = vsel %vm13010_vm13, %v3043_v26, %v3047_v24  ;;  %v3281_v60 = vsel %vm13281_vm0, %v10477_v16, %v3280_v19  ;;  %v3288_v25 = vrot.slane %v13497_v17, 5  ;;  %v10480_v42 = vrot.slane %v3221_v31, 9  ;;  %v3224_v17 = vld [vmem:[#allocation2 + $0x70] sm:$0xe] }
 0x22b   :  { %11407 = vmatmul.mubr.msk.bf16.gmra.mrb[0].mxu1 %vm371_vm7, %v10460_v14  ;;  %v3034_v50 = vsel %vm13010_vm13, %v3029_v37, %v3033_v6  ;;  %v10475_v14 = vrot.slane %v3216_v12, 9  ;;  %v3285_v23 = vsel %vm13281_vm0, %v10478_v63, %v3284_v52  ;;  %v3292_v49 = vrot.slane %v13517_v27, 5  ;;  %v3229_v12 = vld [vmem:[#allocation2 + $0x98] sm:$0xe] }
 0x22c   :  { %11410 = vmatprep.mubr.msk.bf16.mxu1 %vm371_vm7, %v10461_v40  ;;  %v10464_v0 = vcombine.low %v3034_v50, %v3048_v18  ;;  %v10489_v40 = vcombine.low %v3265_v56, %v3269_v7  ;;  %v10481_v9 = vrot.slane %v3222_v45, 9  ;;  %v3296_v62 = vrot.slane %v13504_v36, 5  ;;  %v3226_v36 = vld [vmem:[#allocation2 + $0x80] sm:$0xe] }
 0x22d   :  { %v3273_v10 = vsel %vm13281_vm0, %v10475_v14, %v3272_v61  ;;  %v10482_v21 = vrot.slane %v3223_v55, 9  ;;  %v3300_v3 = vrot.slane %v13506_v59, 5  ;;  %v3289_v51 = vsel %vm13281_vm0, %v10479_v29, %v3288_v25 }
 0x22e   :  { %v10490_v30 = vcombine.low %v3273_v10, %v3277_v11  ;;  %v3293_v46 = vsel %vm13281_vm0, %v10480_v42, %v3292_v49  ;;  %v3297_v27 = vsel %vm13281_vm0, %v10481_v9, %v3296_v62  ;;  %v10483_v59 = vrot.slane %v3224_v17, 9 }
 0x22f   :  { %v3301_v22 = vsel %vm13281_vm0, %v10482_v21, %v3300_v3  ;;  %v3304_v37 = vrot.slane %v13548_v47, 5  ;;  %v10484_v26 = vrot.slane %v3225_v8, 9  ;;  %v3308_v24 = vrot.slane %v13554_v43, 5  ;;  %v3228_v47 = vld [vmem:[#allocation2 + $0x90] sm:$0xe] }
 0x230   :  { %11451 = vmatmul.mubr.msk.bf16.gmra.mrb[44].mxu0 %vm3701_vm2, %v12239_v41  ;;  %v10491_v41 = vcombine.low %v3281_v60, %v3285_v23  ;;  %v10485_v5 = vrot.slane %v3226_v36, 9  ;;  %v3312_v33 = vrot.slane %v13559_v58, 5  ;;  %v3317_v18 = vsel %vm13281_vm0, %v10486_v54, %v3316_v35 }
 0x231   :  { %v3305_v6 = vsel %vm13281_vm0, %v10483_v59, %v3304_v37  ;;  %v3309_v50 = vsel %vm13281_vm0, %v10484_v26, %v3308_v24  ;;  %v10487_v56 = vrot.slane %v3228_v47, 9  ;;  %v10488_v39 = vrot.slane %v3229_v12, 9 }
 0x232   :  { %v3313_v43 = vsel %vm13281_vm0, %v10485_v5, %v3312_v33  ;;  %v10494_v58 = vcombine.low %v3305_v6, %v3309_v50 }
 0x233   :  { %11411 = vmatmul.mubr.msk.bf16.gmra.mrb[4].mxu1 %vm371_vm7, %v10462_v15  ;;  %v10492_v15 = vcombine.low %v3289_v51, %v3293_v46  ;;  %v10495_v7 = vcombine.low %v3313_v43, %v3317_v18  ;;  %v3321_v1 = vsel %vm13281_vm0, %v10487_v56, %v3320_v38 }
 0x234   :  { %11414 = vmatprep.mubr.msk.bf16.mxu1 %vm371_vm7, %v10463_v57  ;;  %v10493_v57 = vcombine.low %v3297_v27, %v3301_v22 }
 0x23b   :  { %11415 = vmatmul.mubr.msk.bf16.gmra.mrb[8].mxu1 %vm371_vm7, %v10464_v0  ;;  %v3325_v0 = vsel %vm13281_vm0, %v10488_v39, %v3324_v20 }
 0x23c   :  { %11420 = vmatprep.mubr.msk.bf16.mxu1 %vm371_vm7, %v10489_v40  ;;  %v10496_v14 = vcombine.low %v3321_v1, %v3325_v0 }
 0x243   :  { %11421 = vmatmul.mubr.msk.bf16.vlgmr.msra.gmra.mrb[12].mxu1 %vm371_vm7, %v10490_v30 }
 0x244   :  { %11424 = vmatprep.mubr.msk.bf16.mxu1 %vm371_vm7, %v10491_v41 }
 0x24b   :  { %11425 = vmatmul.mubr.msk.bf16.gmra.mrb[0].mxu1 %vm371_vm7, %v10492_v15 }
 0x24c   :  { %11428 = vmatprep.mubr.msk.bf16.mxu1 %vm371_vm7, %v10493_v57 }
 0x253   :  { %11429 = vmatmul.mubr.msk.bf16.gmra.mrb[4].mxu1 %vm371_vm7, %v10494_v58 }
 0x254   :  { %11432 = vmatprep.mubr.msk.bf16.mxu1 %vm371_vm7, %v10495_v7 }
 0x25b   :  { %11433 = vmatmul.mubr.msk.bf16.gmra.mrb[8].mxu1 %vm371_vm7, %v10496_v14 }
 0x2cb   :  { %v13652_v40 = vpop.f32.mrb[20].mxu0 }
 0x2cc   :  { %v13654_v61 = vpop.f32.mrb[21].mxu0 }
 0x2cd   :  { %v13656_v4 = vpop.f32.mrb[22].mxu0 }
 0x2ce   :  { %v13658_v48 = vpop.f32.mrb[23].mxu0 }
 0x2d3   :  { %v13660_v32 = vpop.f32.mrb[24].mxu0 }
 0x2d4   :  { %v13662_v53 = vpop.f32.mrb[25].mxu0 }
 0x2d5   :  { %v13664_v16 = vpop.f32.mrb[26].mxu0 }
 0x2d6   :  { %v13666_v19 = vpop.f32.mrb[27].mxu0 }
 0x2db   :  { %v13668_v63 = vpop.f32.mrb[28].mxu0 }
 0x2dc   :  { %v13670_v52 = vpop.f32.mrb[29].mxu0 }
 0x2dd   :  { %v13672_v10 = vpop.f32.mrb[30].mxu0 }
 0x2de   :  { %v13674_v11 = vpop.f32.mrb[31].mxu0 }
 0x2e3   :  { %v11332_v44 = vpop.f32.mrb[16].mxu0 }
 0x2e4   :  { %v1818_v60 = vpop.f32.mrb[17].mxu0 }
 0x2e5   :  { %v11333_v23 = vpop.f32.mrb[18].mxu0 }
 0x2e6   :  { %v1821_v31 = vpop.f32.mrb[19].mxu0 }
 0x2eb   :  { %v13676_v45 = vpop.f32.mrb[32].mxu0 }
 0x2ec   :  { %v3763_v55 = vpop.f32.mrb[33].mxu0  ;;  %v3831_v25 = vsel %vm371_vm7, %v13676_v45, 0.0 }
 0x2ed   :  { %v3828_v30 = vsel %vm371_vm7, %v3763_v55, 0.0  ;;  %v11441_v29 = vpop.f32.mrb[34].mxu0 }
 0x2ee   :  { %v3766_v41 = vpop.f32.mrb[35].mxu0  ;;  %v3833_v9 = vsel %vm371_vm7, %v11441_v29, 0.0 }
 0x2ef   :  { %v3829_v42 = vsel %vm371_vm7, %v3766_v41, 0.0 }
 0x2f0   :  { %v3830_v49 = vadd.f32 %v3829_v42, %v3828_v30 }
 0x2f2   :  { %v3832_v62 = vadd.f32 %v3831_v25, %v3830_v49 }
 0x2f3   :  { %v11444_v21 = vpop.f32.mrb[36].mxu0 }
 0x2f4   :  { %v3779_v3 = vpop.f32.mrb[37].mxu0  ;;  %v3834_v51 = vadd.f32 %v3833_v9, %v3832_v62  ;;  %v3839_v8 = vsel %vm371_vm7, %v11444_v21, 0.0 }
 0x2f5   :  { %v3835_v46 = vsel %vm371_vm7, %v3779_v3, 0.0  ;;  %v11445_v17 = vpop.f32.mrb[38].mxu0 }
 0x2f6   :  { %v3836_v27 = vadd.f32 %v3835_v46, %v3834_v51  ;;  %v3782_v22 = vpop.f32.mrb[39].mxu0  ;;  %v3841_v15 = vsel %vm371_vm7, %v11445_v17, 0.0 }
 0x2f7   :  { %v3837_v36 = vsel %vm371_vm7, %v3782_v22, 0.0 }
 0x2f8   :  { %v3838_v28 = vadd.f32 %v3837_v36, %v3836_v27 }
 0x2fa   :  { %v3840_v59 = vadd.f32 %v3839_v8, %v3838_v28 }
 0x2fb   :  { %v11448_v57 = vpop.f32.mrb[40].mxu0 }
 0x2fc   :  { %v3795_v37 = vpop.f32.mrb[41].mxu0  ;;  %v3842_v26 = vadd.f32 %v3841_v15, %v3840_v59  ;;  %v3847_v35 = vsel %vm371_vm7, %v11448_v57, 0.0 }
 0x2fd   :  { %v3843_v24 = vsel %vm371_vm7, %v3795_v37, 0.0  ;;  %v11449_v5 = vpop.f32.mrb[42].mxu0 }
 0x2fe   :  { %v3844_v33 = vadd.f32 %v3843_v24, %v3842_v26  ;;  %v3798_v54 = vpop.f32.mrb[43].mxu0  ;;  %v3849_v47 = vsel %vm371_vm7, %v11449_v5, 0.0 }
 0x2ff   :  { %v3845_v6 = vsel %vm371_vm7, %v3798_v54, 0.0 }
 0x300   :  { %v3846_v50 = vadd.f32 %v3845_v6, %v3844_v33 }
 0x302   :  { %v3848_v43 = vadd.f32 %v3847_v35, %v3846_v50 }
 0x303   :  { %v11452_v18 = vpop.f32.mrb[44].mxu0 }
 0x304   :  { %v3811_v12 = vpop.f32.mrb[45].mxu0  ;;  %v3850_v58 = vadd.f32 %v3849_v47, %v3848_v43  ;;  %v3855_v20 = vsel %vm371_vm7, %v11452_v18, 0.0 }
 0x305   :  { %v3851_v56 = vsel %vm371_vm7, %v3811_v12, 0.0  ;;  %v11453_v7 = vpop.f32.mrb[46].mxu0 }
 0x306   :  { %v3852_v38 = vadd.f32 %v3851_v56, %v3850_v58  ;;  %v3814_v39 = vpop.f32.mrb[47].mxu0  ;;  %v3857_v14 = vsel %vm371_vm7, %v11453_v7, 0.0 }
 0x307   :  { %v3853_v1 = vsel %vm371_vm7, %v3814_v39, 0.0 }
 0x308   :  { %v3854_v0 = vadd.f32 %v3853_v1, %v3852_v38 }
 0x30a   :  { %v3856_v30 = vadd.f32 %v3855_v20, %v3854_v0 }
 0x30c   :  { %v3858_v25 = vadd.f32 %v3857_v14, %v3856_v30 }
 0x30e   :  { %v3859_v42 = vrot.slane %v3858_v25, 4 }
 0x310   :  { %v3860_v49 = vadd.f32 %v3859_v42, %v3858_v25 }
 0x312   :  { %v3861_v9 = vrot.slane %v3860_v49, 2 }
 0x314   :  { %v3862_v62 = vadd.f32 %v3861_v9, %v3860_v49 }
 0x316   :  { %v3863_v51 = vrot.slane %v3862_v62, 1  ;;  %v11422_v46 = vpop.f32.mrb[12].mxu1 }
 0x317   :  { %v13695_v27 = vadd.f32 %v11422_v46, %v11332_v44  ;;  %v3412_v8 = vpop.f32.mrb[13].mxu1 }
 0x318   :  { %v3864_v36 = vadd.f32 %v3863_v51, %v3862_v62  ;;  %v13697_v28 = vadd.f32 %v3412_v8, %v1818_v60  ;;  %v11423_v15 = vpop.f32.mrb[14].mxu1 }
 0x319   :  { %v13699_v59 = vadd.f32 %v11423_v15, %v11333_v23  ;;  %v3415_v26 = vpop.f32.mrb[15].mxu1  ;;  %v3496_v30 = vsel %vm371_vm7, %v13695_v27, 0.0 }
 0x31a   :  { %v3865_v24 = vmul.f32 0.0078125, %v3864_v36  ;;  %v13701_v33 = vadd.f32 %v3415_v26, %v1821_v31  ;;  %v3493_v25 = vsel %vm371_vm7, %v13697_v28, 0.0 }
 0x31c   :  { %v13703_v35 = vsub.f32 %v3763_v55, %v3865_v24  ;;  %v13705_v6 = vsub.f32 %v3766_v41, %v3865_v24  ;;  %v13708_v50 = vsub.f32 %v13676_v45, %v3865_v24  ;;  %v13710_v44 = vsub.f32 %v11441_v29, %v3865_v24 }
 0x31d   :  { %v13712_v47 = vsub.f32 %v3779_v3, %v3865_v24  ;;  %v13714_v60 = vsub.f32 %v3782_v22, %v3865_v24  ;;  %v13716_v43 = vsub.f32 %v11444_v21, %v3865_v24  ;;  %v13718_v23 = vsub.f32 %v11445_v17, %v3865_v24 }
 0x31e   :  { %v13720_v58 = vsub.f32 %v3795_v37, %v3865_v24  ;;  %v13722_v31 = vsub.f32 %v3798_v54, %v3865_v24  ;;  %v13724_v55 = vsub.f32 %v11448_v57, %v3865_v24  ;;  %v13726_v41 = vsub.f32 %v11449_v5, %v3865_v24  ;;  %v11426_v45 = vpop.f32.mrb[0].mxu1 }
 0x31f   :  { %v13728_v56 = vsub.f32 %v3811_v12, %v3865_v24  ;;  %v13730_v29 = vsub.f32 %v3814_v39, %v3865_v24  ;;  %v13732_v3 = vsub.f32 %v11452_v18, %v3865_v24  ;;  %v13734_v22 = vsub.f32 %v11453_v7, %v3865_v24  ;;  %v3428_v21 = vpop.f32.mrb[1].mxu1 }
 0x320   :  { %v3882_v17 = vmul.f32 %v13703_v35, %v13703_v35  ;;  %v3883_v37 = vmul.f32 %v13705_v6, %v13705_v6  ;;  %v11427_v57 = vpop.f32.mrb[2].mxu1  ;;  %v3884_v5 = vmul.f32 %v13708_v50, %v13708_v50  ;;  %v3885_v12 = vmul.f32 %v13710_v44, %v13710_v44 }
 0x321   :  { %v3431_v54 = vpop.f32.mrb[3].mxu1  ;;  %v3886_v39 = vmul.f32 %v13712_v47, %v13712_v47  ;;  %v3887_v0 = vmul.f32 %v13714_v60, %v13714_v60  ;;  %v3888_v49 = vmul.f32 %v13716_v43, %v13716_v43  ;;  %v3494_v62 = vsel %vm371_vm7, %v13701_v33, 0.0 }
 0x322   :  { %v3898_v18 = vsel %vm371_vm7, %v3882_v17, 0.0  ;;  %v3899_v7 = vsel %vm371_vm7, %v3883_v37, 0.0  ;;  %v3901_v20 = vsel %vm371_vm7, %v3884_v5, 0.0  ;;  %v3903_v9 = vsel %vm371_vm7, %v3885_v12, 0.0 }
 0x323   :  { %v3900_v38 = vadd.f32 %v3899_v7, %v3898_v18  ;;  %v13761_v51 = vadd.f32 %v11426_v45, %v13652_v40  ;;  %v3495_v36 = vadd.f32 %v3494_v62, %v3493_v25  ;;  %v13764_v15 = vadd.f32 %v3428_v21, %v13654_v61 }
 0x324   :  { %v13767_v26 = vadd.f32 %v11427_v57, %v13656_v4  ;;  %v3905_v17 = vsel %vm371_vm7, %v3886_v39, 0.0  ;;  %v13771_v37 = vadd.f32 %v3431_v54, %v13658_v48  ;;  %v3498_v61 = vsel %vm371_vm7, %v13699_v59, 0.0 }
 0x325   :  { %v3902_v14 = vadd.f32 %v3901_v20, %v3900_v38  ;;  %v3497_v21 = vadd.f32 %v3496_v30, %v3495_v36  ;;  %v3889_v4 = vmul.f32 %v13718_v23, %v13718_v23  ;;  %v3907_v57 = vsel %vm371_vm7, %v3887_v0, 0.0 }
 0x326   :  { %v11430_v1 = vpop.f32.mrb[4].mxu1  ;;  %v3500_v48 = vsel %vm371_vm7, %v13764_v15, 0.0  ;;  %v3890_v18 = vmul.f32 %v13720_v58, %v13720_v58  ;;  %v3909_v7 = vsel %vm371_vm7, %v3888_v49, 0.0  ;;  %v3502_v38 = vsel %vm371_vm7, %v13771_v37, 0.0 }
 0x327   :  { %v3444_v42 = vpop.f32.mrb[5].mxu1  ;;  %v3904_v8 = vadd.f32 %v3903_v9, %v3902_v14  ;;  %v13774_v5 = vadd.f32 %v11430_v1, %v13660_v32  ;;  %v3499_v12 = vadd.f32 %v3498_v61, %v3497_v21  ;;  %v3891_v14 = vmul.f32 %v13722_v31, %v13722_v31 }
 0x328   :  { %v11431_v46 = vpop.f32.mrb[6].mxu1  ;;  %v13777_v40 = vadd.f32 %v3444_v42, %v13662_v53 }
 0x329   :  { %v3447_v24 = vpop.f32.mrb[7].mxu1  ;;  %v3906_v45 = vadd.f32 %v3905_v17, %v3904_v8  ;;  %v13787_v54 = vadd.f32 %v11431_v46, %v13664_v16  ;;  %v3501_v1 = vadd.f32 %v3500_v48, %v3499_v12  ;;  %v3913_v46 = vsel %vm371_vm7, %v3890_v18, 0.0 }
 0x32a   :  { %v13790_v53 = vadd.f32 %v3447_v24, %v13666_v19  ;;  %v3911_v19 = vsel %vm371_vm7, %v3889_v4, 0.0  ;;  %v3504_v8 = vsel %vm371_vm7, %v13761_v51, 0.0  ;;  %v3893_v17 = vmul.f32 %v13726_v41, %v13726_v41 }
 0x32b   :  { %v3908_v32 = vadd.f32 %v3907_v57, %v3906_v45  ;;  %v3503_v49 = vadd.f32 %v3502_v38, %v3501_v1  ;;  %v3506_v45 = vsel %vm371_vm7, %v13767_v26, 0.0  ;;  %v3508_v61 = vsel %vm371_vm7, %v13777_v40, 0.0 }
 0x32c   :  { %v3894_v57 = vmul.f32 %v13728_v56, %v13728_v56  ;;  %v3510_v48 = vsel %vm371_vm7, %v13790_v53, 0.0  ;;  %v3895_v18 = vmul.f32 %v13730_v29, %v13730_v29 }
 0x32d   :  { %v3910_v20 = vadd.f32 %v3909_v7, %v3908_v32  ;;  %v3505_v24 = vadd.f32 %v3504_v8, %v3503_v49  ;;  %v3919_v7 = vsel %vm371_vm7, %v3893_v17, 0.0  ;;  %v3514_v49 = vsel %vm371_vm7, %v13787_v54, 0.0 }
 0x32e   :  { %v11434_v39 = vpop.f32.mrb[8].mxu1  ;;  %v3921_v1 = vsel %vm371_vm7, %v3894_v57, 0.0 }
 0x32f   :  { %v13798_v0 = vadd.f32 %v11434_v39, %v13668_v63  ;;  %v3460_v16 = vpop.f32.mrb[9].mxu1  ;;  %v3912_v42 = vadd.f32 %v3911_v19, %v3910_v20  ;;  %v3892_v63 = vmul.f32 %v13724_v55, %v13724_v55  ;;  %v3507_v4 = vadd.f32 %v3506_v45, %v3505_v24 }
 0x330   :  { %v13804_v30 = vadd.f32 %v3460_v16, %v13670_v52  ;;  %v11435_v25 = vpop.f32.mrb[10].mxu1  ;;  %v3896_v20 = vmul.f32 %v13732_v3, %v13732_v3  ;;  %v3512_v16 = vsel %vm371_vm7, %v13774_v5, 0.0 }
 0x331   :  { %v13807_v9 = vadd.f32 %v11435_v25, %v13672_v10  ;;  %v3463_v62 = vpop.f32.mrb[11].mxu1  ;;  %v3914_v52 = vadd.f32 %v3913_v46, %v3912_v42  ;;  %v3915_v10 = vsel %vm371_vm7, %v3891_v14, 0.0  ;;  %v3509_v12 = vadd.f32 %v3508_v61, %v3507_v4 }
 0x332   :  { %v13815_v36 = vadd.f32 %v3463_v62, %v13674_v11  ;;  %v3917_v11 = vsel %vm371_vm7, %v3892_v63, 0.0  ;;  %v3897_v25 = vmul.f32 %v13734_v22, %v13734_v22  ;;  %v3923_v42 = vsel %vm371_vm7, %v3895_v18, 0.0 }
 0x333   :  { %v3916_v21 = vadd.f32 %v3915_v10, %v3914_v52  ;;  %v3511_v39 = vadd.f32 %v3510_v48, %v3509_v12  ;;  %v3516_v62 = vsel %vm371_vm7, %v13804_v30, 0.0  ;;  %v3925_v8 = vsel %vm371_vm7, %v3896_v20, 0.0 }
 0x334   :  { %v3518_v52 = vsel %vm371_vm7, %v13815_v36, 0.0  ;;  %v3927_v10 = vsel %vm371_vm7, %v3897_v25, 0.0 }
 0x335   :  { %v3918_v32 = vadd.f32 %v3917_v11, %v3916_v21  ;;  %v3513_v19 = vadd.f32 %v3512_v16, %v3511_v39  ;;  %v3520_v21 = vsel %vm371_vm7, %v13798_v0, 0.0  ;;  %v3522_v11 = vsel %vm371_vm7, %v13807_v9, 0.0 }
 0x337   :  { %v3920_v38 = vadd.f32 %v3919_v7, %v3918_v32  ;;  %v3515_v46 = vadd.f32 %v3514_v49, %v3513_v19 }
 0x339   :  { %v3922_v14 = vadd.f32 %v3921_v1, %v3920_v38  ;;  %v3517_v17 = vadd.f32 %v3516_v62, %v3515_v46  ;;  %v4571_v62 = vld [vmem:[%s16134_s5 + $0x4] sm:$0xf] }
 0x33a   :  { %12176 = vmatprep.subr.msk.bf16.mxu0 %vm1155_vm9, %v4571_v62 }
 0x33b   :  { %v3924_v63 = vadd.f32 %v3923_v42, %v3922_v14  ;;  %v3519_v61 = vadd.f32 %v3518_v52, %v3517_v17 }
 0x33d   :  { %v3926_v24 = vadd.f32 %v3925_v8, %v3924_v63  ;;  %v3521_v57 = vadd.f32 %v3520_v21, %v3519_v61  ;;  %v4621_v63 = vsel %vm1155_vm9, %v4571_v62, 0 }
 0x33e   :  { %11455 = vmatpush3.bf16.msra.mxu0 %v4621_v63 }
 0x33f   :  { %v3928_v45 = vadd.f32 %v3927_v10, %v3926_v24  ;;  %v3523_v32 = vadd.f32 %v3522_v11, %v3521_v57 }
 0x341   :  { %v3929_v4 = vrot.slane %v3928_v45, 4  ;;  %v3524_v18 = vrot.slane %v3523_v32, 4 }
 0x343   :  { %v3930_v48 = vadd.f32 %v3929_v4, %v3928_v45  ;;  %v3525_v38 = vadd.f32 %v3524_v18, %v3523_v32  ;;  %v16219_v4 = vld [vmem:[#allocation8_spill] sm:$0xff] }
 0x345   :  { %v3931_v12 = vrot.slane %v3930_v48, 2  ;;  %v3526_v20 = vrot.slane %v3525_v38, 2 }
 0x347   :  { %v3932_v7 = vadd.f32 %v3931_v12, %v3930_v48  ;;  %v3527_v16 = vadd.f32 %v3526_v20, %v3525_v38 }
 0x349   :  { %v3933_v39 = vrot.slane %v3932_v7, 1  ;;  %v3528_v19 = vrot.slane %v3527_v16, 1 }
 0x34b   :  { %v3934_v1 = vadd.f32 %v3933_v39, %v3932_v7  ;;  %v3529_v42 = vadd.f32 %v3528_v19, %v3527_v16 }
 0x34d   :  { %v3935_v14 = vmul.f32 0.0078125, %v3934_v1  ;;  %v3530_v49 = vmul.f32 0.0078125, %v3529_v42 }
 0x34f   :  { %v3936_v25 = vadd.f32 1e-05, %v3935_v14  ;;  %v13858_v46 = vsub.f32 %v13697_v28, %v3530_v49  ;;  %v13861_v8 = vsub.f32 %v13701_v33, %v3530_v49  ;;  %v13864_v52 = vsub.f32 %v13695_v27, %v3530_v49 }
 0x350   :  { %v13867_v24 = vsub.f32 %v13699_v59, %v3530_v49  ;;  %v13870_v17 = vsub.f32 %v13764_v15, %v3530_v49  ;;  %v13873_v10 = vsub.f32 %v13771_v37, %v3530_v49  ;;  %v13876_v45 = vsub.f32 %v13761_v51, %v3530_v49 }
 0x351   :  { %12290 = vrsqrt.f32 %v3936_v25  ;;  %v13879_v28 = vsub.f32 %v13767_v26, %v3530_v49  ;;  %v13882_v33 = vsub.f32 %v13777_v40, %v3530_v49  ;;  %v13885_v27 = vsub.f32 %v13790_v53, %v3530_v49 }
 0x352   :  { %v13888_v59 = vsub.f32 %v13774_v5, %v3530_v49  ;;  %v13891_v15 = vsub.f32 %v13787_v54, %v3530_v49  ;;  %v13894_v37 = vsub.f32 %v13804_v30, %v3530_v49  ;;  %v13897_v51 = vsub.f32 %v13815_v36, %v3530_v49  ;;  %v3826_v5 = vld [vmem:[%s16136_s7 + $0x4] sm:$0x1] }
 0x353   :  { %v13900_v26 = vsub.f32 %v13798_v0, %v3530_v49  ;;  %v13903_v40 = vsub.f32 %v13807_v9, %v3530_v49  ;;  %v3547_v54 = vmul.f32 %v13858_v46, %v13858_v46  ;;  %v3548_v53 = vmul.f32 %v13861_v8, %v13861_v8  ;;  %v13917_v0 = vld [vmem:[%s16134_s5] sm:$0xf] }
 0x354   :  { %v3549_v36 = vmul.f32 %v13864_v52, %v13864_v52  ;;  %12177 = vmatprep.subr.msk.bf16.mxu0 %vm1155_vm9, %v13917_v0  ;;  %v3550_v11 = vmul.f32 %v13867_v24, %v13867_v24  ;;  %v3555_v42 = vmul.f32 %v13882_v33, %v13882_v33  ;;  %v3556_v63 = vmul.f32 %v13885_v27, %v13885_v27 }
 0x355   :  { %v3563_v9 = vsel %vm371_vm7, %v3547_v54, 0.0  ;;  %v3564_v21 = vsel %vm371_vm7, %v3548_v53, 0.0  ;;  %v3557_v53 = vmul.f32 %v13888_v59, %v13888_v59 }
 0x356   :  { %v3565_v12 = vadd.f32 %v3564_v21, %v3563_v9  ;;  %v3566_v18 = vsel %vm371_vm7, %v3549_v36, 0.0  ;;  %v3568_v1 = vsel %vm371_vm7, %v3550_v11, 0.0  ;;  %v3558_v36 = vmul.f32 %v13891_v15, %v13891_v15 }
 0x357   :  { %v3580_v9 = vsel %vm371_vm7, %v3556_v63, 0.0  ;;  %v3559_v11 = vmul.f32 %v13894_v37, %v13894_v37 }
 0x358   :  { %v3567_v20 = vadd.f32 %v3566_v18, %v3565_v12  ;;  %v3582_v12 = vsel %vm371_vm7, %v3557_v53, 0.0 }
 0x35a   :  { %v3569_v16 = vadd.f32 %v3568_v1, %v3567_v20  ;;  %v3560_v20 = vmul.f32 %v13897_v51, %v13897_v51  ;;  %v3561_v1 = vmul.f32 %v13900_v26, %v13900_v26 }
 0x35b   :  { %v12291_v30 = vpop.eup %12290 }
 0x35c   :  { %v3938_v61 = vmul.f32 %v12291_v30, %v3826_v5  ;;  %v3578_v30 = vsel %vm371_vm7, %v3555_v42, 0.0 }
 0x35e   :  { %v13924_v57 = vrot.slane %v3938_v61, %v16219_v4 }
 0x360   :  { %v13930_v48 = vmul.f32 %v13924_v57, %v13703_v35  ;;  %v13934_v32 = vmul.f32 %v13924_v57, %v13710_v44  ;;  %v13939_v7 = vmul.f32 %v13924_v57, %v13712_v47  ;;  %v13943_v38 = vmul.f32 %v13924_v57, %v13714_v60 }
 0x361   :  { %v13947_v39 = vmul.f32 %v13924_v57, %v13716_v43  ;;  %v13951_v35 = vmul.f32 %v13924_v57, %v13718_v23  ;;  %v13955_v44 = vmul.f32 %v13924_v57, %v13720_v58  ;;  %v13959_v47 = vmul.f32 %v13924_v57, %v13722_v31 }
 0x362   :  { %v13963_v60 = vmul.f32 %v13924_v57, %v13724_v55  ;;  %v13967_v43 = vmul.f32 %v13924_v57, %v13726_v41  ;;  %v13971_v23 = vmul.f32 %v13924_v57, %v13728_v56  ;;  %v13975_v58 = vmul.f32 %v13924_v57, %v13730_v29 }
 0x363   :  { %v13979_v31 = vmul.f32 %v13924_v57, %v13732_v3  ;;  %v13983_v55 = vmul.f32 %v13924_v57, %v13734_v22  ;;  %v3551_v41 = vmul.f32 %v13870_v17, %v13870_v17  ;;  %v3552_v56 = vmul.f32 %v13873_v10, %v13873_v10 }
 0x364   :  { %v3553_v29 = vmul.f32 %v13876_v45, %v13876_v45  ;;  %v3554_v22 = vmul.f32 %v13879_v28, %v13879_v28 }
 0x365   :  { %v3570_v3 = vsel %vm371_vm7, %v3551_v41, 0.0  ;;  %v3572_v19 = vsel %vm371_vm7, %v3552_v56, 0.0  ;;  %v3584_v41 = vsel %vm371_vm7, %v3558_v36, 0.0 }
 0x366   :  { %v3571_v14 = vadd.f32 %v3570_v3, %v3569_v16  ;;  %v3574_v49 = vsel %vm371_vm7, %v3553_v29, 0.0  ;;  %v3576_v5 = vsel %vm371_vm7, %v3554_v22, 0.0  ;;  %v3586_v16 = vsel %vm371_vm7, %v3559_v11, 0.0 }
 0x367   :  { %v3562_v3 = vmul.f32 %v13903_v40, %v13903_v40 }
 0x368   :  { %v3573_v25 = vadd.f32 %v3572_v19, %v3571_v14  ;;  %v3588_v14 = vsel %vm371_vm7, %v3560_v20, 0.0  ;;  %v3590_v19 = vsel %vm371_vm7, %v3561_v1, 0.0  ;;  %v3945_v1 = vmul.f32 %v13924_v57, %v13708_v50 }
 0x369   :  { %v3592_v42 = vsel %vm371_vm7, %v3562_v3, 0.0 }
 0x36a   :  { %v3575_v62 = vadd.f32 %v3574_v49, %v3573_v25 }
 0x36c   :  { %v3577_v54 = vadd.f32 %v3576_v5, %v3575_v62 }
 0x36e   :  { %v3579_v61 = vadd.f32 %v3578_v30, %v3577_v54 }
 0x370   :  { %v3581_v21 = vadd.f32 %v3580_v9, %v3579_v61  ;;  %v14022_v9 = vld [vmem:[#allocation2] sm:$0xf] }
 0x371   :  { %v4348_v11 = vshrl.u32 %v14022_v9, 16 }
 0x372   :  { %v3583_v18 = vadd.f32 %v3582_v12, %v3581_v21  ;;  %v14024_v21 = vld [vmem:[#allocation2 + $0x50] sm:$0xf]  ;;  %v4351_v12 = vshll.u32 %v14022_v9, 16 }
 0x373   :  { %v4463_v20 = vshll.u32 %v14024_v21, 16 }
 0x374   :  { %v3585_v56 = vadd.f32 %v3584_v41, %v3583_v18  ;;  %v4460_v18 = vshrl.u32 %v14024_v21, 16  ;;  %v3944_v41 = vmul.f32 %v13924_v57, %v13705_v6  ;;  %v3491_v6 = vld [vmem:[%s16136_s7 + $0x2] sm:$0x1]  ;;  %v14048_v57 = vld [vmem:[#allocation2 + $0x4] sm:$0x1] }
 0x376   :  { %v3587_v29 = vadd.f32 %v3586_v16, %v3585_v56  ;;  %v10522_v56 = vld [vmem:[%s16136_s7 + $0x5] ss:$0 sm:$0xff]  ;;  %v4350_v16 = vrot.slane %v4348_v11, 4  ;;  %v4462_v3 = vrot.slane %v4460_v18, 4 }
 0x377   :  { %v3968_v50 = vadd.f32 %v10522_v56, %v13943_v38  ;;  %v3973_v38 = vadd.f32 %v10522_v56, %v13963_v60  ;;  %v3974_v11 = vadd.f32 %v10522_v56, %v13967_v43  ;;  %v3976_v18 = vadd.f32 %v10522_v56, %v13975_v58 }
 0x378   :  { %v3589_v22 = vadd.f32 %v3588_v14, %v3587_v29  ;;  %v4353_v29 = vrot.slane %v4351_v12, 5  ;;  %v4465_v14 = vrot.slane %v4463_v20, 5  ;;  %v3975_v12 = vadd.f32 %v10522_v56, %v13971_v23 }
 0x379   :  { %v3977_v20 = vadd.f32 %v10522_v56, %v13979_v31  ;;  %v10505_v31 = vld [vmem:[%s16136_s7 + $0x3] ss:$0 sm:$0xff] }
 0x37a   :  { %v3591_v25 = vadd.f32 %v3590_v19, %v3589_v22  ;;  %v14038_v22 = vadd.f32 %v10522_v56, %v13930_v48  ;;  %v14040_v19 = vadd.f32 %v10522_v56, %v3944_v41  ;;  %v4357_v48 = vshll.u32 %v14048_v57, 16 }
 0x37b   :  { %v3978_v41 = vadd.f32 %v10522_v56, %v13983_v55 }
 0x37c   :  { %v3593_v49 = vadd.f32 %v3592_v42, %v3591_v25  ;;  %v3965_v25 = vadd.f32 %v10522_v56, %v3945_v1  ;;  %v3966_v42 = vadd.f32 %v10522_v56, %v13934_v32 }
 0x37e   :  { %v3594_v62 = vrot.slane %v3593_v49, 4 }
 0x380   :  { %v3595_v63 = vadd.f32 %v3594_v62, %v3593_v49  ;;  %v3967_v49 = vadd.f32 %v10522_v56, %v13939_v7  ;;  %v4339_v62 = vld [vmem:[#allocation2 + $0x54] sm:$0x1]  ;;  %v3972_v7 = vadd.f32 %v10522_v56, %v13959_v47 }
 0x382   :  { %v3596_v5 = vrot.slane %v3595_v63, 2 }
 0x384   :  { %v3597_v54 = vadd.f32 %v3596_v5, %v3595_v63  ;;  %v4354_v5 = vor.u32 %v4353_v29, %v4350_v16 }
 0x386   :  { %v3598_v53 = vrot.slane %v3597_v54, 1 }
 0x388   :  { %v3599_v30 = vadd.f32 %v3598_v53, %v3597_v54  ;;  %v4466_v54 = vor.u32 %v4465_v14, %v4462_v3  ;;  %v4469_v53 = vshll.u32 %v4339_v62, 16 }
 0x38a   :  { %v3600_v61 = vmul.f32 0.0078125, %v3599_v30  ;;  %v3969_v30 = vadd.f32 %v10522_v56, %v13947_v39  ;;  %v14066_v1 = vrot.slane %v4466_v54, 4  ;;  %v14068_v47 = vrot.slane %v4469_v53, 5 }
 0x38c   :  { %v3601_v36 = vadd.f32 1e-05, %v3600_v61  ;;  %v3970_v61 = vadd.f32 %v10522_v56, %v13951_v35  ;;  %v14062_v35 = vrot.slane %v4354_v5, 4 }
 0x38e   :  { %12292 = vrsqrt.f32 %v3601_v36  ;;  %v3971_v36 = vadd.f32 %v10522_v56, %v13955_v44  ;;  %v14064_v44 = vrot.slane %v4357_v48, 5 }
 0x398   :  { %v12293_v63 = vpop.eup %12292 }
 0x399   :  { %v3603_v32 = vmul.f32 %v12293_v63, %v3491_v6 }
 0x39b   :  { %v3607_v39 = vrot.slane %v3603_v32, %v16219_v4 }
 0x39d   :  { %v3608_v60 = vmul.f32 %v3607_v39, %v13858_v46  ;;  %v3609_v43 = vmul.f32 %v3607_v39, %v13861_v8  ;;  %v3610_v23 = vmul.f32 %v3607_v39, %v13864_v52  ;;  %v3611_v58 = vmul.f32 %v3607_v39, %v13867_v24 }
 0x39e   :  { %v3612_v55 = vmul.f32 %v3607_v39, %v13870_v17  ;;  %v3613_v56 = vmul.f32 %v3607_v39, %v13873_v10  ;;  %v3614_v16 = vmul.f32 %v3607_v39, %v13876_v45  ;;  %v3615_v29 = vmul.f32 %v3607_v39, %v13879_v28 }
 0x39f   :  { %v3616_v46 = vmul.f32 %v3607_v39, %v13882_v33  ;;  %v3617_v8 = vmul.f32 %v3607_v39, %v13885_v27  ;;  %v3618_v52 = vmul.f32 %v3607_v39, %v13888_v59  ;;  %v3619_v24 = vmul.f32 %v3607_v39, %v13891_v15 }
 0x3a0   :  { %v3620_v3 = vmul.f32 %v3607_v39, %v13894_v37  ;;  %v3621_v14 = vmul.f32 %v3607_v39, %v13897_v51  ;;  %v3622_v17 = vmul.f32 %v3607_v39, %v13900_v26  ;;  %v3623_v10 = vmul.f32 %v3607_v39, %v13903_v40 }
 0x3a1   :  { %v3628_v6 = vadd.f32 %v10505_v31, %v3608_v60  ;;  %v3629_v45 = vadd.f32 %v10505_v31, %v3609_v43  ;;  %v3630_v62 = vadd.f32 %v10505_v31, %v3610_v23  ;;  %v3631_v28 = vadd.f32 %v10505_v31, %v3611_v58 }
 0x3a2   :  { %v3632_v63 = vadd.f32 %v10505_v31, %v3612_v55  ;;  %v3633_v33 = vadd.f32 %v10505_v31, %v3613_v56  ;;  %v3634_v5 = vadd.f32 %v10505_v31, %v3614_v16  ;;  %v3635_v27 = vadd.f32 %v10505_v31, %v3615_v29 }
 0x3a3   :  { %v3636_v48 = vadd.f32 %v10505_v31, %v3616_v46  ;;  %v3637_v59 = vadd.f32 %v10505_v31, %v3617_v8  ;;  %v3638_v54 = vadd.f32 %v10505_v31, %v3618_v52  ;;  %v3639_v15 = vadd.f32 %v10505_v31, %v3619_v24 }
 0x3a4   :  { %v3640_v53 = vadd.f32 %v10505_v31, %v3620_v3  ;;  %v3641_v37 = vadd.f32 %v10505_v31, %v3621_v14  ;;  %v3642_v32 = vadd.f32 %v10505_v31, %v3622_v17  ;;  %v3643_v51 = vadd.f32 %v10505_v31, %v3623_v10 }
 0x3a5   :  { %v3979_v26 = vadd.f32 %v14038_v22, %v3628_v6  ;;  %v3980_v40 = vadd.f32 %v14040_v19, %v3629_v45  ;;  %v3981_v39 = vadd.f32 %v3965_v25, %v3630_v62  ;;  %v3982_v60 = vadd.f32 %v3966_v42, %v3631_v28 }
 0x3a6   :  { %v3983_v43 = vadd.f32 %v3967_v49, %v3632_v63  ;;  %v3984_v23 = vadd.f32 %v3968_v50, %v3633_v33  ;;  %v3985_v58 = vadd.f32 %v3969_v30, %v3634_v5  ;;  %v3986_v55 = vadd.f32 %v3970_v61, %v3635_v27 }
 0x3a7   :  { %v3987_v56 = vadd.f32 %v3971_v36, %v3636_v48  ;;  %v3988_v16 = vadd.f32 %v3972_v7, %v3637_v59  ;;  %v3989_v29 = vadd.f32 %v3973_v38, %v3638_v54  ;;  %v3990_v46 = vadd.f32 %v3974_v11, %v3639_v15 }
 0x3a8   :  { %v3991_v8 = vadd.f32 %v3975_v12, %v3640_v53  ;;  %v3992_v52 = vadd.f32 %v3976_v18, %v3641_v37  ;;  %v3993_v24 = vadd.f32 %v3977_v20, %v3642_v32  ;;  %v3994_v3 = vadd.f32 %v3978_v41, %v3643_v51 }
 0x3a9   :  { %v14091_v14 = vmax.f32 %v3979_v26, 0.0  ;;  %v14093_v31 = vmax.f32 %v3980_v40, 0.0  ;;  %v14095_v22 = vmax.f32 %v3981_v39, 0.0  ;;  %v14097_v19 = vmax.f32 %v3982_v60, 0.0 }
 0x3aa   :  { %v14099_v25 = vmax.f32 %v3983_v43, 0.0  ;;  %v14101_v42 = vmax.f32 %v3984_v23, 0.0  ;;  %v14103_v49 = vmax.f32 %v3985_v58, 0.0  ;;  %v14105_v50 = vmax.f32 %v3986_v55, 0.0 }
 0x3ab   :  { %16220 = vst [vmem:[#allocation10_spill] sm:$0xff] %v14095_v22  ;;  %16221 = vst [vmem:[#allocation11_spill] sm:$0xff] %v14097_v19  ;;  %v14107_v30 = vmax.f32 %v3987_v56, 0.0  ;;  %v14109_v61 = vmax.f32 %v3988_v16, 0.0  ;;  %v14111_v36 = vmax.f32 %v3989_v29, 0.0  ;;  %v14113_v7 = vmax.f32 %v3990_v46, 0.0 }
 0x3ac   :  { %16222 = vst [vmem:[#allocation12_spill] sm:$0xff] %v14099_v25  ;;  %16223 = vst [vmem:[#allocation7_spill] sm:$0xff] %v14101_v42  ;;  %v14115_v38 = vmax.f32 %v3991_v8, 0.0  ;;  %v14117_v11 = vmax.f32 %v3992_v52, 0.0  ;;  %v14119_v12 = vmax.f32 %v3993_v24, 0.0  ;;  %v14121_v18 = vmax.f32 %v3994_v3, 0.0 }
 0x3ad   :  { %16224 = vst [vmem:[#allocation13_spill] sm:$0xff] %v14103_v49  ;;  %16225 = vst [vmem:[#allocation14_spill] sm:$0xff] %v14105_v50  ;;  %v10957_v20 = vpack.c.bf16 %v14091_v14, %v14091_v14  ;;  %v10958_v41 = vpack.c.bf16 %v14093_v31, %v14093_v31  ;;  %v10959_v17 = vpack.c.bf16 %v14095_v22, %v14095_v22  ;;  %v4260_v22 = vld [vmem:[#allocation2 + $0x40] sm:$0xf] }
 0x3ae   :  { %16226 = vst [vmem:[#allocation15_spill] sm:$0xff] %v14107_v30  ;;  %16227 = vst [vmem:[#allocation16_spill] sm:$0xff] %v14109_v61  ;;  %v10960_v10 = vpack.c.bf16 %v14097_v19, %v14097_v19  ;;  %v10961_v6 = vpack.c.bf16 %v14099_v25, %v14099_v25  ;;  %v10962_v45 = vpack.c.bf16 %v14101_v42, %v14101_v42  ;;  %v4239_v42 = vld [vmem:[#allocation2 + $0x24] sm:$0x1]  ;;  %v4251_v25 = vld [vmem:[#allocation2 + $0x34] sm:$0x1] }
 0x3af   :  { %16228 = vst [vmem:[#allocation6_spill] sm:$0xff] %v14111_v36  ;;  %16229 = vst [vmem:[#allocation17_spill] sm:$0xff] %v14113_v7  ;;  %v10963_v62 = vpack.c.bf16 %v14103_v49, %v14103_v49  ;;  %v10964_v28 = vpack.c.bf16 %v14105_v50, %v14105_v50  ;;  %v10965_v63 = vpack.c.bf16 %v14107_v30, %v14107_v30  ;;  %v4060_v53 = vshrl.u32 %v10957_v20, 16  ;;  %v4236_v49 = vld [vmem:[#allocation2 + $0x20] sm:$0xf] }
 0x3b0   :  { %16230 = vst [vmem:[#allocation18_spill] sm:$0xff] %v14115_v38  ;;  %16231 = vst [vmem:[#allocation8_spill] sm:$0xff] %v14117_v11  ;;  %v14143_v33 = vpack.c.bf16 %v14109_v61, %v14109_v61  ;;  %v14147_v5 = vpack.c.bf16 %v14111_v36, %v14111_v36  ;;  %v14151_v27 = vpack.c.bf16 %v14113_v7, %v14113_v7  ;;  %v4063_v37 = vshll.u32 %v10957_v20, 16  ;;  %v4227_v7 = vld [vmem:[#allocation2 + $0x14] sm:$0x1] }
 0x3b1   :  { %16232 = vst [vmem:[#allocation19_spill] sm:$0xff] %v14119_v12  ;;  %16233 = vst [vmem:[#allocation20_spill] sm:$0xff] %v14121_v18  ;;  %v14155_v48 = vpack.c.bf16 %v14115_v38, %v14115_v38  ;;  %v14159_v59 = vpack.c.bf16 %v14117_v11, %v14117_v11  ;;  %v14163_v54 = vpack.c.bf16 %v14119_v12, %v14119_v12  ;;  %v4068_v32 = vshrl.u32 %v10958_v41, 16  ;;  %v4224_v38 = vld [vmem:[#allocation2 + $0x10] sm:$0xf] }
 0x3b2   :  { %v14167_v15 = vpack.c.bf16 %v14121_v18, %v14121_v18  ;;  %v4071_v51 = vshll.u32 %v10958_v41, 16  ;;  %v4076_v26 = vshrl.u32 %v10959_v17, 16  ;;  %v4079_v40 = vshll.u32 %v10959_v17, 16  ;;  %v12302_v61 = vld [vmem:[#allocation2 + $0x8] sm:$0xf] }
 0x3b3   :  { %v4084_v39 = vshrl.u32 %v10960_v10, 16  ;;  %v4087_v60 = vshll.u32 %v10960_v10, 16  ;;  %v14169_v43 = vrot.slane %v4060_v53, 7  ;;  %v14171_v23 = vrot.slane %v4068_v32, 7 }
 0x3b4   :  { %v4092_v58 = vshrl.u32 %v10961_v6, 16  ;;  %v4095_v55 = vshll.u32 %v10961_v6, 16  ;;  %v14173_v56 = vrot.slane %v4076_v26, 7  ;;  %v4100_v29 = vshrl.u32 %v10962_v45, 16 }
 0x3b5   :  { %v14175_v16 = vrot.slane %v4084_v39, 7  ;;  %v4103_v46 = vshll.u32 %v10962_v45, 16  ;;  %v14178_v8 = vor.u32 %v4063_v37, %v14169_v43  ;;  %v14182_v24 = vor.u32 %v4071_v51, %v14171_v23 }
 0x3b6   :  { %v14186_v20 = vor.u32 %v4079_v40, %v14173_v56  ;;  %v14193_v6 = vrot.slane %v4092_v58, 7  ;;  %v14195_v45 = vrot.slane %v4100_v29, 7  ;;  %v4108_v53 = vshrl.u32 %v10963_v62, 16 }
 0x3b7   :  { %v14190_v17 = vor.u32 %v4087_v60, %v14175_v16  ;;  %v4111_v37 = vshll.u32 %v10963_v62, 16  ;;  %v4116_v32 = vshrl.u32 %v10964_v28, 16  ;;  %v4119_v51 = vshll.u32 %v10964_v28, 16 }
 0x3b8   :  { %v4124_v26 = vshrl.u32 %v10965_v63, 16  ;;  %v4127_v39 = vshll.u32 %v10965_v63, 16  ;;  %v14198_v40 = vor.u32 %v4095_v55, %v14193_v6  ;;  %v14202_v60 = vor.u32 %v4103_v46, %v14195_v45 }
 0x3b9   :  { %v14205_v58 = vrot.slane %v4108_v53, 7  ;;  %v14207_v29 = vrot.slane %v4116_v32, 7  ;;  %v4132_v62 = vshrl.u32 %v14143_v33, 16  ;;  %v4135_v28 = vshll.u32 %v14143_v33, 16 }
 0x3ba   :  { %v14209_v3 = vrot.slane %v4124_v26, 7  ;;  %v4140_v63 = vshrl.u32 %v14147_v5, 16  ;;  %v4143_v55 = vshll.u32 %v14147_v5, 16  ;;  %v4148_v41 = vshrl.u32 %v14151_v27, 16 }
 0x3bb   :  { %v14217_v46 = vor.u32 %v4111_v37, %v14205_v58  ;;  %v14221_v32 = vor.u32 %v4119_v51, %v14207_v29  ;;  %v14228_v52 = vrot.slane %v4132_v62, 7  ;;  %v4151_v37 = vshll.u32 %v14151_v27, 16 }
 0x3bc   :  { %v14225_v10 = vor.u32 %v4127_v39, %v14209_v3  ;;  %v14230_v5 = vrot.slane %v4140_v63, 7  ;;  %v14232_v18 = vrot.slane %v4148_v41, 7  ;;  %v4156_v53 = vshrl.u32 %v14155_v48, 16 }
 0x3bd   :  { %v4159_v51 = vshll.u32 %v14155_v48, 16  ;;  %v14238_v12 = vor.u32 %v4135_v28, %v14228_v52  ;;  %v4164_v33 = vshrl.u32 %v14159_v59, 16  ;;  %v4221_v48 = vld [vmem:[#allocation2 + $0xc] sm:$0x1]  ;;  %v4167_v28 = vshll.u32 %v14159_v59, 16 }
 0x3be   :  { %v14242_v26 = vor.u32 %v4143_v55, %v14230_v5  ;;  %v14246_v63 = vor.u32 %v4151_v37, %v14232_v18  ;;  %v14249_v27 = vrot.slane %v4156_v53, 7  ;;  %v4172_v11 = vshrl.u32 %v14163_v54, 16  ;;  %v4230_v37 = vld [vmem:[#allocation2 + $0x18] sm:$0xf] }
 0x3bf   :  { %v4175_v39 = vshll.u32 %v14163_v54, 16  ;;  %v4180_v55 = vshrl.u32 %v14167_v15, 16  ;;  %v14260_v41 = vrot.slane %v4164_v33, 7  ;;  %v4183_v53 = vshll.u32 %v14167_v15, 16  ;;  %v4233_v33 = vld [vmem:[#allocation2 + $0x1c] sm:$0x1] }
 0x3c0   :  { %v14257_v62 = vor.u32 %v4159_v51, %v14249_v27  ;;  %v14263_v36 = vrot.slane %v4172_v11, 7  ;;  %v4219_v30 = vsel %vm12842_vm10, %v14178_v8, %v12302_v61  ;;  %v16235_v50 = vrot.slane %v14169_v43, 4  ;;  %v4242_v8 = vld [vmem:[#allocation2 + $0x28] sm:$0xf]  ;;  %v4272_v11 = vld [vmem:[#allocation2 + $0x60] sm:$0xf] }
 0x3c1   :  { %v14265_v59 = vrot.slane %v4180_v55, 7  ;;  %v14275_v15 = vor.u32 %v4167_v28, %v14260_v41  ;;  %v4225_v55 = vsel %vm12842_vm10, %v14182_v24, %v4224_v38  ;;  %v16236_v61 = vrot.slane %v14171_v23, 4  ;;  %4220 = vst [vmem:[#allocation2 + $0x8] sm:$0xf] %v4219_v30  ;;  %v4254_v23 = vld [vmem:[#allocation2 + $0x38] sm:$0xf] }
 0x3c2   :  { %v4222_v51 = vsel %vm12425_vm4, %v16235_v50, %v4221_v48  ;;  %v4245_v50 = vld [vmem:[#allocation2 + $0x2c] sm:$0x1]  ;;  %v4248_v48 = vld [vmem:[#allocation2 + $0x30] sm:$0xf]  ;;  %v14286_v28 = vor.u32 %v4175_v39, %v14263_v36  ;;  %v4257_v24 = vld [vmem:[#allocation2 + $0x3c] sm:$0x1]  ;;  %v4231_v30 = vsel %vm12842_vm10, %v14186_v20, %v4230_v37  ;;  %v4243_v20 = vsel %vm12842_vm10, %v14198_v40, %v4242_v8 }
 0x3c3   :  { %v4228_v43 = vsel %vm12425_vm4, %v16236_v61, %v4227_v7  ;;  %4223 = vst [vmem:[#allocation2 + $0xc] sm:$0x1] %v4222_v51  ;;  %v14290_v19 = vor.u32 %v4183_v53, %v14265_v59  ;;  %v4263_v7 = vld [vmem:[#allocation2 + $0x44] sm:$0x1]  ;;  %4226 = vst [vmem:[#allocation2 + $0x10] sm:$0xf] %v4225_v55  ;;  %v4237_v53 = vsel %vm12842_vm10, %v14190_v17, %v4236_v49 }
 0x3c4   :  { %4229 = vst [vmem:[#allocation2 + $0x14] sm:$0x1] %v4228_v43  ;;  %v16237_v39 = vrot.slane %v14173_v56, 4  ;;  %v16238_v61 = vrot.slane %v14175_v16, 4  ;;  %v4266_v55 = vld [vmem:[#allocation2 + $0x58] sm:$0xf]  ;;  %v4249_v49 = vsel %vm12842_vm10, %v14202_v60, %v4248_v48 }
 0x3c5   :  { %v4269_v43 = vld [vmem:[#allocation2 + $0x5c] sm:$0x1]  ;;  %v16239_v56 = vrot.slane %v14193_v6, 4  ;;  %v16240_v16 = vrot.slane %v14195_v45, 4  ;;  %v4275_v17 = vld [vmem:[#allocation2 + $0x64] sm:$0x1]  ;;  %v4255_v6 = vsel %vm12842_vm10, %v14217_v46, %v4254_v23 }
 0x3c6   :  { %v4234_v51 = vsel %vm12425_vm4, %v16237_v39, %v4233_v33  ;;  %v4240_v38 = vsel %vm12425_vm4, %v16238_v61, %v4239_v42  ;;  %v4278_v33 = vld [vmem:[#allocation2 + $0x68] sm:$0xf]  ;;  %v4281_v39 = vld [vmem:[#allocation2 + $0x6c] sm:$0x1]  ;;  %4232 = vst [vmem:[#allocation2 + $0x18] sm:$0xf] %v4231_v30 }
 0x3c7   :  { %v4246_v37 = vsel %vm12425_vm4, %v16239_v56, %v4245_v50  ;;  %v4252_v42 = vsel %vm12425_vm4, %v16240_v16, %v4251_v25  ;;  %4235 = vst [vmem:[#allocation2 + $0x1c] sm:$0x1] %v4234_v51  ;;  %4238 = vst [vmem:[#allocation2 + $0x20] sm:$0xf] %v4237_v53  ;;  %v16241_v40 = vrot.slane %v14205_v58, 4  ;;  %v4261_v25 = vsel %vm12842_vm10, %v14221_v32, %v4260_v22 }
 0x3c8   :  { %4241 = vst [vmem:[#allocation2 + $0x24] sm:$0x1] %v4240_v38  ;;  %v16242_v45 = vrot.slane %v14207_v29, 4  ;;  %v4284_v50 = vld [vmem:[#allocation2 + $0x70] sm:$0xf]  ;;  %v4267_v58 = vsel %vm12842_vm10, %v14225_v10, %v4266_v55  ;;  %v16243_v46 = vrot.slane %v14209_v3, 4  ;;  %v4273_v29 = vsel %vm12842_vm10, %v14238_v12, %v4272_v11 }
 0x3c9   :  { %v4258_v60 = vsel %vm12425_vm4, %v16241_v40, %v4257_v24  ;;  %v4287_v48 = vld [vmem:[#allocation2 + $0x74] sm:$0x1]  ;;  %v4290_v38 = vld [vmem:[#allocation2 + $0x78] sm:$0xf]  ;;  %4244 = vst [vmem:[#allocation2 + $0x28] sm:$0xf] %v4243_v20  ;;  %v4279_v3 = vsel %vm12842_vm10, %v14242_v26, %v4278_v33 }
 0x3ca   :  { %v4264_v8 = vsel %vm12425_vm4, %v16242_v45, %v4263_v7  ;;  %4247 = vst [vmem:[#allocation2 + $0x2c] sm:$0x1] %v4246_v37  ;;  %4250 = vst [vmem:[#allocation2 + $0x30] sm:$0xf] %v4249_v49  ;;  %v4270_v22 = vsel %vm12425_vm4, %v16243_v46, %v4269_v43  ;;  %v16244_v32 = vrot.slane %v14228_v52, 4  ;;  %v16245_v10 = vrot.slane %v14230_v5, 4 }
 0x3cb   :  { %4253 = vst [vmem:[#allocation2 + $0x34] sm:$0x1] %v4252_v42  ;;  %v4293_v24 = vld [vmem:[#allocation2 + $0x7c] sm:$0x1]  ;;  %v4296_v7 = vld [vmem:[#allocation2 + $0x80] sm:$0xf]  ;;  %v4285_v52 = vsel %vm12842_vm10, %v14246_v63, %v4284_v50  ;;  %v4291_v26 = vsel %vm12842_vm10, %v14257_v62, %v4290_v38 }
 0x3cc   :  { %v4276_v23 = vsel %vm12425_vm4, %v16244_v32, %v4275_v17  ;;  %v4299_v30 = vld [vmem:[#allocation2 + $0x84] sm:$0x1]  ;;  %4256 = vst [vmem:[#allocation2 + $0x38] sm:$0xf] %v4255_v6  ;;  %4259 = vst [vmem:[#allocation2 + $0x3c] sm:$0x1] %v4258_v60  ;;  %v4282_v12 = vsel %vm12425_vm4, %v16245_v10, %v4281_v39  ;;  %v4360_v39 = vsel %vm13010_vm13, %v14062_v35, %v14064_v44 }
 0x3cd   :  { %4262 = vst [vmem:[#allocation2 + $0x40] sm:$0xf] %v4261_v25  ;;  %4265 = vst [vmem:[#allocation2 + $0x44] sm:$0x1] %v4264_v8  ;;  %v16246_v11 = vrot.slane %v14232_v18, 4  ;;  %v16247_v5 = vrot.slane %v14249_v27, 4  ;;  %v4297_v18 = vsel %vm12842_vm10, %v14275_v15, %v4296_v7 }
 0x3ce   :  { %v4302_v53 = vld [vmem:[#allocation2 + $0x88] sm:$0xf]  ;;  %v4305_v61 = vld [vmem:[#allocation2 + $0x8c] sm:$0x1]  ;;  %v4308_v55 = vld [vmem:[#allocation2 + $0x90] sm:$0xf] }
 0x3cf   :  { %v4288_v51 = vsel %vm12425_vm4, %v16246_v11, %v4287_v48  ;;  %4268 = vst [vmem:[#allocation2 + $0x58] sm:$0xf] %v4267_v58  ;;  %4271 = vst [vmem:[#allocation2 + $0x5c] sm:$0x1] %v4270_v22  ;;  %v4294_v63 = vsel %vm12425_vm4, %v16247_v5, %v4293_v24  ;;  %v16248_v43 = vrot.slane %v14260_v41, 4  ;;  %v4303_v37 = vsel %vm12842_vm10, %v14286_v28, %v4302_v53 }
 0x3d0   :  { %4274 = vst [vmem:[#allocation2 + $0x60] sm:$0xf] %v4273_v29  ;;  %4277 = vst [vmem:[#allocation2 + $0x64] sm:$0x1] %v4276_v23  ;;  %v4311_v56 = vld [vmem:[#allocation2 + $0x94] sm:$0x1]  ;;  %v4309_v49 = vsel %vm12842_vm10, %v14290_v19, %v4308_v55  ;;  %v4472_v24 = vsel %vm13010_vm13, %v14066_v1, %v14068_v47 }
 0x3d1   :  { %v4300_v20 = vsel %vm12425_vm4, %v16248_v43, %v4299_v30  ;;  %4280 = vst [vmem:[#allocation2 + $0x68] sm:$0xf] %v4279_v3  ;;  %4283 = vst [vmem:[#allocation2 + $0x6c] sm:$0x1] %v4282_v12  ;;  %v14377_v62 = vld [vmem:[#allocation2 + $0x8] sm:$0xf] }
 0x3d2   :  { %4286 = vst [vmem:[#allocation2 + $0x70] sm:$0xf] %v4285_v52  ;;  %4289 = vst [vmem:[#allocation2 + $0x74] sm:$0x1] %v4288_v51  ;;  %v14379_v27 = vld [vmem:[#allocation2 + $0xc] sm:$0x1] }
 0x3d3   :  { %4301 = vst [vmem:[#allocation2 + $0x84] sm:$0x1] %v4300_v20  ;;  %v16249_v15 = vrot.slane %v14263_v36, 4  ;;  %v16250_v16 = vrot.slane %v14265_v59, 4  ;;  %4292 = vst [vmem:[#allocation2 + $0x78] sm:$0xf] %v4291_v26 }
 0x3d4   :  { %4295 = vst [vmem:[#allocation2 + $0x7c] sm:$0x1] %v4294_v63  ;;  %4298 = vst [vmem:[#allocation2 + $0x80] sm:$0xf] %v4297_v18  ;;  %v14395_v17 = vld [vmem:[#allocation2 + $0x10] sm:$0xf] }
 0x3d5   :  { %v4306_v41 = vsel %vm12425_vm4, %v16249_v15, %v4305_v61  ;;  %v4312_v42 = vsel %vm12425_vm4, %v16250_v16, %v4311_v56  ;;  %v14397_v28 = vld [vmem:[#allocation2 + $0x14] sm:$0x1]  ;;  %4304 = vst [vmem:[#allocation2 + $0x88] sm:$0xf] %v4303_v37  ;;  %4310 = vst [vmem:[#allocation2 + $0x90] sm:$0xf] %v4309_v49 }
 0x3d6   :  { %4313 = vst [vmem:[#allocation2 + $0x94] sm:$0x1] %v4312_v42  ;;  %4307 = vst [vmem:[#allocation2 + $0x8c] sm:$0x1] %v4306_v41  ;;  %v4362_v36 = vshrl.u32 %v14377_v62, 16  ;;  %v4365_v19 = vshll.u32 %v14377_v62, 16 }
 0x3d7   :  { %v4371_v59 = vshll.u32 %v14379_v27, 16  ;;  %v4376_v33 = vshrl.u32 %v14395_v17, 16  ;;  %v14407_v6 = vld [vmem:[#allocation2 + $0x18] sm:$0xf]  ;;  %v14409_v40 = vld [vmem:[#allocation2 + $0x1c] sm:$0x1] }
 0x3d8   :  { %v4379_v60 = vshll.u32 %v14395_v17, 16  ;;  %v14414_v25 = vsel %vm1155_vm9, %v13917_v0, 0  ;;  %v4364_v45 = vrot.slane %v4362_v36, 4  ;;  %v4367_v8 = vrot.slane %v4365_v19, 5  ;;  %v14417_v38 = vld [vmem:[#allocation2 + $0x20] sm:$0xf] }
 0x3d9   :  { %v4378_v50 = vrot.slane %v4376_v33, 4  ;;  %v4385_v48 = vshll.u32 %v14397_v28, 16  ;;  %v4373_v58 = vrot.slane %v4371_v59, 5  ;;  %v4390_v35 = vshrl.u32 %v14407_v6, 16  ;;  %v14422_v32 = vld [vmem:[#allocation2 + $0x28] sm:$0xf] }
 0x3da   :  { %v4381_v46 = vrot.slane %v4379_v60, 5  ;;  %v4393_v44 = vshll.u32 %v14407_v6, 16  ;;  %v4368_v22 = vor.u32 %v4367_v8, %v4364_v45  ;;  %v4399_v29 = vshll.u32 %v14409_v40, 16  ;;  %v14424_v0 = vld [vmem:[#allocation2 + $0x24] sm:$0x1] }
 0x3db   :  { %v4404_v23 = vshrl.u32 %v14417_v38, 16  ;;  %v4392_v30 = vrot.slane %v4390_v35, 4  ;;  %v14431_v10 = vld [vmem:[#allocation2 + $0x2c] sm:$0x1]  ;;  %v4407_v12 = vshll.u32 %v14417_v38, 16  ;;  %v4387_v11 = vrot.slane %v4385_v48, 5 }
 0x3dc   :  { %v4382_v7 = vor.u32 %v4381_v46, %v4378_v50  ;;  %v4395_v3 = vrot.slane %v4393_v44, 5  ;;  %v4369_v52 = vrot.slane %v4368_v22, 4  ;;  %v4413_v53 = vshll.u32 %v14424_v0, 16  ;;  %v14436_v63 = vld [vmem:[#allocation2 + $0x30] sm:$0xf] }
 0x3dd   :  { %v4406_v51 = vrot.slane %v4404_v23, 4  ;;  %v4409_v26 = vrot.slane %v4407_v12, 5  ;;  %v4418_v5 = vshrl.u32 %v14422_v32, 16  ;;  %v4401_v43 = vrot.slane %v4399_v29, 5  ;;  %v14442_v37 = vld [vmem:[#allocation2 + $0x34] sm:$0x1] }
 0x3de   :  { %v4383_v61 = vrot.slane %v4382_v7, 4  ;;  %v4396_v55 = vor.u32 %v4395_v3, %v4392_v30  ;;  %v4374_v18 = vsel %vm13010_vm13, %v4369_v52, %v4373_v58  ;;  %v4421_v20 = vshll.u32 %v14422_v32, 16  ;;  %v14446_v42 = vld [vmem:[#allocation2 + $0x38] sm:$0xf]  ;;  %v14448_v33 = vld [vmem:[#allocation2 + $0x3c] sm:$0x1] }
 0x3df   :  { %v4427_v56 = vshll.u32 %v14431_v10, 16  ;;  %v10539_v15 = vcombine.low %v4360_v39, %v4374_v18  ;;  %v4410_v16 = vor.u32 %v4409_v26, %v4406_v51  ;;  %v4415_v36 = vrot.slane %v4413_v53, 5  ;;  %v14456_v48 = vld [vmem:[#allocation2 + $0x58] sm:$0xf]  ;;  %v14459_v22 = vld [vmem:[#allocation2 + $0x5c] sm:$0x1] }
 0x3e0   :  { %v4388_v41 = vsel %vm13010_vm13, %v4383_v61, %v4387_v11  ;;  %v4397_v49 = vrot.slane %v4396_v55, 4  ;;  %v4420_v19 = vrot.slane %v4418_v5, 4  ;;  %v4423_v59 = vrot.slane %v4421_v20, 5  ;;  %v14464_v29 = vld [vmem:[%s16134_s5 + $0x8] sm:$0xf] }
 0x3e1   :  { %v4432_v60 = vshrl.u32 %v14436_v63, 16  ;;  %11456 = vmatprep.mubr.msk.bf16.mxu0 %vm371_vm7, %v10539_v15  ;;  %v4411_v39 = vrot.slane %v4410_v16, 4  ;;  %v4435_v8 = vshll.u32 %v14436_v63, 16  ;;  %v4441_v50 = vshll.u32 %v14442_v37, 16  ;;  %v14469_v12 = vld [vmem:[#allocation2 + $0x60] sm:$0xf] }
 0x3e2   :  { %v4402_v45 = vsel %vm13010_vm13, %v4397_v49, %v4401_v43  ;;  %v4424_v46 = vor.u32 %v4423_v59, %v4420_v19  ;;  %v4446_v44 = vshrl.u32 %v14446_v42, 16  ;;  %v4429_v7 = vrot.slane %v4427_v56, 5  ;;  %v14476_v18 = vld [vmem:[#allocation2 + $0x64] sm:$0x1]  ;;  %v14481_v15 = vld [vmem:[#allocation2 + $0x68] sm:$0xf] }
 0x3e3   :  { %v10540_v58 = vcombine.low %v4388_v41, %v4402_v45  ;;  %v4434_v35 = vrot.slane %v4432_v60, 4  ;;  %v4416_v23 = vsel %vm13010_vm13, %v4411_v39, %v4415_v36  ;;  %v4437_v30 = vrot.slane %v4435_v8, 5  ;;  %v14486_v19 = vld [vmem:[#allocation2 + $0x6c] sm:$0x1]  ;;  %v14490_v8 = vld [vmem:[#allocation2 + $0x70] sm:$0xf] }
 0x3e4   :  { %v4449_v3 = vshll.u32 %v14446_v42, 16  ;;  %v4425_v52 = vrot.slane %v4424_v46, 4  ;;  %v4448_v11 = vrot.slane %v4446_v44, 4  ;;  %v4455_v51 = vshll.u32 %v14448_v33, 16 }
 0x3e5   :  { %11457 = vmatmul.mubr.msk.bf16.vlgmr.msra.gmra.mrb[48].mxu0 %vm371_vm7, %v10540_v58  ;;  %v4474_v53 = vshrl.u32 %v14456_v48, 16  ;;  %v4438_v61 = vor.u32 %v4437_v30, %v4434_v35  ;;  %v4443_v55 = vrot.slane %v4441_v50, 5  ;;  %v4477_v5 = vshll.u32 %v14456_v48, 16 }
 0x3e6   :  { %11473 = vmatpush3.bf16.msra.mxu0 %v14414_v25  ;;  %v4451_v26 = vrot.slane %v4449_v3, 5  ;;  %v4430_v43 = vsel %vm13010_vm13, %v4425_v52, %v4429_v7  ;;  %v4483_v56 = vshll.u32 %v14459_v22, 16  ;;  %v4488_v41 = vshrl.u32 %v14469_v12, 16 }
 0x3e7   :  { %v4476_v20 = vrot.slane %v4474_v53, 4  ;;  %12178 = vmatprep.subr.msk.bf16.mxu0 %vm1155_vm9, %v14464_v29  ;;  %v10541_v25 = vcombine.low %v4416_v23, %v4430_v43  ;;  %v4439_v49 = vrot.slane %v4438_v61, 4  ;;  %v4479_v36 = vrot.slane %v4477_v5, 5  ;;  %v14503_v5 = vld [vmem:[#allocation2 + $0x74] sm:$0x1] }
 0x3e8   :  { %v4452_v16 = vor.u32 %v4451_v26, %v4448_v11  ;;  %v4457_v59 = vrot.slane %v4455_v51, 5  ;;  %v4490_v60 = vrot.slane %v4488_v41, 4  ;;  %v4491_v45 = vshll.u32 %v14469_v12, 16  ;;  %v14500_v51 = vld [vmem:[#allocation2 + $0x78] sm:$0xf] }
 0x3e9   :  { %v4497_v39 = vshll.u32 %v14476_v18, 16  ;;  %11460 = vmatprep.mubr.msk.bf16.mxu0 %vm371_vm7, %v10541_v25  ;;  %v4444_v50 = vsel %vm13010_vm13, %v4439_v49, %v4443_v55  ;;  %v4480_v46 = vor.u32 %v4479_v36, %v4476_v20  ;;  %v4502_v35 = vshrl.u32 %v14481_v15, 16  ;;  %v14505_v43 = vld [vmem:[#allocation2 + $0x7c] sm:$0x1]  ;;  %v14510_v49 = vld [vmem:[#allocation2 + $0x80] sm:$0xf] }
 0x3ea   :  { %v4453_v58 = vrot.slane %v4452_v16, 4  ;;  %v4485_v44 = vrot.slane %v4483_v56, 5  ;;  %v4493_v23 = vrot.slane %v4491_v45, 5  ;;  %v4505_v7 = vshll.u32 %v14481_v15, 16 }
 0x3eb   :  { %v4511_v30 = vshll.u32 %v14486_v19, 16  ;;  %v4481_v52 = vrot.slane %v4480_v46, 4  ;;  %v4504_v11 = vrot.slane %v4502_v35, 4  ;;  %v4516_v53 = vshrl.u32 %v14490_v8, 16  ;;  %v14521_v46 = vld [vmem:[#allocation2 + $0x88] sm:$0xf] }
 0x3ec   :  { %v4458_v3 = vsel %vm13010_vm13, %v4453_v58, %v4457_v59  ;;  %v4494_v55 = vor.u32 %v4493_v23, %v4490_v60  ;;  %v4507_v26 = vrot.slane %v4505_v7, 5  ;;  %v4499_v56 = vrot.slane %v4497_v39, 5 }
 0x3ed   :  { %v10542_v61 = vcombine.low %v4444_v50, %v4458_v3  ;;  %v4486_v20 = vsel %vm13010_vm13, %v4481_v52, %v4485_v44  ;;  %v4518_v41 = vrot.slane %v4516_v53, 4  ;;  %v4519_v25 = vshll.u32 %v14490_v8, 16 }
 0x3ee   :  { %v10543_v16 = vcombine.low %v4472_v24, %v4486_v20  ;;  %v4495_v36 = vrot.slane %v4494_v55, 4  ;;  %v4508_v59 = vor.u32 %v4507_v26, %v4504_v11  ;;  %v4530_v60 = vshrl.u32 %v14500_v51, 16  ;;  %v14533_v11 = vld [vmem:[#allocation2 + $0x8c] sm:$0x1] }
 0x3ef   :  { %11461 = vmatmul.mubr.msk.bf16.gmra.mrb[52].mxu0 %vm371_vm7, %v10542_v61  ;;  %v4513_v45 = vrot.slane %v4511_v30, 5  ;;  %v4521_v50 = vrot.slane %v4519_v25, 5  ;;  %v4525_v39 = vshll.u32 %v14503_v5, 16  ;;  %v4533_v58 = vshll.u32 %v14500_v51, 16  ;;  %v14528_v30 = vld [vmem:[#allocation2 + $0x84] sm:$0x1] }
 0x3f0   :  { %11464 = vmatprep.mubr.msk.bf16.mxu0 %vm371_vm7, %v10543_v16  ;;  %v4509_v35 = vrot.slane %v4508_v59, 4  ;;  %v4532_v44 = vrot.slane %v4530_v60, 4  ;;  %v4539_v23 = vshll.u32 %v14505_v43, 16  ;;  %v4544_v1 = vshrl.u32 %v14510_v49, 16 }
 0x3f1   :  { %v4500_v47 = vsel %vm13010_vm13, %v4495_v36, %v4499_v56  ;;  %v4522_v24 = vor.u32 %v4521_v50, %v4518_v41  ;;  %v4535_v7 = vrot.slane %v4533_v58, 5  ;;  %v4547_v3 = vshll.u32 %v14510_v49, 16 }
 0x3f2   :  { %v4514_v52 = vsel %vm13010_vm13, %v4509_v35, %v4513_v45  ;;  %v4546_v53 = vrot.slane %v4544_v1, 4  ;;  %v4558_v61 = vshrl.u32 %v14521_v46, 16  ;;  %v4527_v26 = vrot.slane %v4525_v39, 5 }
 0x3f3   :  { %v4523_v55 = vrot.slane %v4522_v24, 4  ;;  %v4536_v20 = vor.u32 %v4535_v7, %v4532_v44  ;;  %v4549_v25 = vrot.slane %v4547_v3, 5  ;;  %v10544_v16 = vcombine.low %v4500_v47, %v4514_v52 }
 0x3f4   :  { %v4553_v56 = vshll.u32 %v14528_v30, 16  ;;  %v4560_v41 = vrot.slane %v4558_v61, 4  ;;  %v4561_v36 = vshll.u32 %v14521_v46, 16  ;;  %v4541_v45 = vrot.slane %v4539_v23, 5 }
 0x3f5   :  { %v4528_v59 = vsel %vm13010_vm13, %v4523_v55, %v4527_v26  ;;  %v4537_v60 = vrot.slane %v4536_v20, 4  ;;  %v4550_v50 = vor.u32 %v4549_v25, %v4546_v53  ;;  %v4567_v35 = vshll.u32 %v14533_v11, 16  ;;  %v5177_v25 = vld [vmem:[%s16134_s5 + $0xc] sm:$0xf] }
 0x3f6   :  { %v4563_v58 = vrot.slane %v4561_v36, 5  ;;  %v4555_v47 = vrot.slane %v4553_v56, 5  ;;  %v10555_v61 = vcombine.low %v14022_v9, %v14377_v62  ;;  %v10556_v55 = vcombine.low %v14395_v17, %v14407_v6  ;;  %v4884_v17 = vld [vmem:[#allocation2] sm:$0xe]  ;;  %v4885_v6 = vld [vmem:[#allocation2 + $0x8] sm:$0xe] }
 0x3f7   :  { %11465 = vmatmul.mubr.msk.bf16.gmra.mrb[56].mxu0 %vm371_vm7, %v10544_v16  ;;  %v4542_v39 = vsel %vm13010_vm13, %v4537_v60, %v4541_v45  ;;  %v4551_v44 = vrot.slane %v4550_v50, 4  ;;  %v4569_v23 = vrot.slane %v4567_v35, 5  ;;  %v5046_v26 = vsel %vm1155_vm9, %v14464_v29, 0  ;;  %v4888_v56 = vld [vmem:[#allocation2 + $0x20] sm:$0xe] }
 0x3f8   :  { %v10545_v1 = vcombine.low %v4528_v59, %v4542_v39  ;;  %v4564_v24 = vor.u32 %v4563_v58, %v4560_v41  ;;  %v10557_v20 = vcombine.low %v14417_v38, %v14422_v32  ;;  %v10558_v9 = vcombine.low %v14436_v63, %v14446_v42  ;;  %v4891_v39 = vld [vmem:[#allocation2 + $0x38] sm:$0xe] }
 0x3f9   :  { %v4556_v7 = vsel %vm13010_vm13, %v4551_v44, %v4555_v47  ;;  %v10559_v62 = vcombine.low %v14024_v21, %v14456_v48  ;;  %v10560_v38 = vcombine.low %v14469_v12, %v14481_v15  ;;  %v10561_v32 = vcombine.low %v14490_v8, %v14500_v51  ;;  %v4886_v48 = vld [vmem:[#allocation2 + $0x10] sm:$0xe]  ;;  %v4887_v15 = vld [vmem:[#allocation2 + $0x18] sm:$0xe]  ;;  %v4889_v8 = vld [vmem:[#allocation2 + $0x28] sm:$0xe] }
 0x3fa   :  { %11468 = vmatprep.mubr.msk.bf16.mxu0 %vm371_vm7, %v10545_v1  ;;  %v4565_v3 = vrot.slane %v4564_v24, 4  ;;  %v10571_v29 = vrot.slane %v4884_v17, 9  ;;  %v4934_v63 = vrot.slane %v14048_v57, 5  ;;  %v10572_v42 = vrot.slane %v4885_v6, 9  ;;  %v4893_v44 = vld [vmem:[#allocation2 + $0x58] sm:$0xe] }
 0x3fb   :  { %v4938_v21 = vrot.slane %v14379_v27, 5  ;;  %v10562_v51 = vcombine.low %v14510_v49, %v14521_v46  ;;  %v10573_v41 = vrot.slane %v4886_v48, 9  ;;  %v4942_v36 = vrot.slane %v14397_v28, 5  ;;  %v4890_v28 = vld [vmem:[#allocation2 + $0x30] sm:$0xe] }
 0x3fc   :  { %v4570_v52 = vsel %vm13010_vm13, %v4565_v3, %v4569_v23  ;;  %v4935_v16 = vsel %vm13281_vm0, %v10571_v29, %v4934_v63  ;;  %v10574_v27 = vrot.slane %v4887_v15, 9  ;;  %v4946_v59 = vrot.slane %v14409_v40, 5  ;;  %v4895_v17 = vld [vmem:[#allocation2 + $0x68] sm:$0xe]  ;;  %v4897_v6 = vld [vmem:[#allocation2 + $0x78] sm:$0xe] }
 0x3fd   :  { %v10546_v53 = vcombine.low %v4556_v7, %v4570_v52  ;;  %v4939_v12 = vsel %vm13281_vm0, %v10572_v42, %v4938_v21  ;;  %v10575_v60 = vrot.slane %v4888_v56, 9  ;;  %v4950_v45 = vrot.slane %v14424_v0, 5  ;;  %v4892_v0 = vld [vmem:[#allocation2 + $0x50] sm:$0xe] }
 0x3fe   :  { %v10587_v57 = vcombine.low %v4935_v16, %v4939_v12  ;;  %v10576_v50 = vrot.slane %v4889_v8, 9  ;;  %v4954_v58 = vrot.slane %v14431_v10, 5  ;;  %v4943_v49 = vsel %vm13281_vm0, %v10573_v41, %v4942_v36  ;;  %v5614_v52 = vld [vmem:[%s16134_s5 + $0x10] sm:$0xf]  ;;  %v4899_v41 = vld [vmem:[#allocation2 + $0x88] sm:$0xe] }
 0x3ff   :  { %11469 = vmatmul.mubr.msk.bf16.gmra.mrb[60].mxu0 %vm371_vm7, %v10546_v53  ;;  %v4947_v46 = vsel %vm13281_vm0, %v10574_v27, %v4946_v59  ;;  %v4951_v40 = vsel %vm13281_vm0, %v10575_v60, %v4950_v45  ;;  %v5243_v10 = vsel %vm1155_vm9, %v5177_v25, 0  ;;  %v10577_v47 = vrot.slane %v4890_v28, 9 }
 0x400   :  { %11474 = vmatprep.mubr.msk.bf16.mxu0 %vm371_vm7, %v10555_v61  ;;  %v4955_v35 = vsel %vm13281_vm0, %v10576_v50, %v4954_v58  ;;  %v10588_v1 = vcombine.low %v4943_v49, %v4947_v46  ;;  %v4958_v7 = vrot.slane %v14442_v37, 5  ;;  %v10578_v3 = vrot.slane %v4891_v39, 9  ;;  %v12303_v61 = vld [vmem:[#allocation2 + $0x54] sm:$0x1]  ;;  %v12248_v58 = vld [vmem:[#allocation2 + $0x8] ss:$8 sps:$4 sm:$0xff]  }
 0x401   :  { %v10589_v24 = vcombine.low %v4951_v40, %v4955_v35  ;;  %v4962_v23 = vrot.slane %v14448_v33, 5  ;;  %v10579_v53 = vrot.slane %v4892_v0, 9  ;;  %v4974_v63 = vrot.slane %v14476_v18, 5  ;;  %v4898_v18 = vld [vmem:[#allocation2 + $0x80] sm:$0xe] }
 0x402   :  { %v4959_v37 = vsel %vm13281_vm0, %v10577_v47, %v4958_v7  ;;  %v10582_v42 = vrot.slane %v4895_v17, 9  ;;  %v4978_v21 = vrot.slane %v14486_v19, 5  ;;  %v4982_v16 = vrot.slane %v14503_v5, 5  ;;  %v12249_v49 = vld [vmem:[#allocation2 + $0x18] ss:$8 sps:$4 sm:$0xff]  }
 0x403   :  { %v4963_v33 = vsel %vm13281_vm0, %v10578_v3, %v4962_v23  ;;  %v10584_v12 = vrot.slane %v4897_v6, 9  ;;  %v4986_v15 = vrot.slane %v14505_v43, 5  ;;  %v4990_v43 = vrot.slane %v14528_v30, 5  ;;  %v5358_v30 = vld [vmem:[#allocation2 + $0x8] sm:$0xf] }
 0x404   :  { %v4979_v8 = vsel %vm13281_vm0, %v10582_v42, %v4978_v21  ;;  %v10586_v27 = vrot.slane %v4899_v41, 9  ;;  %v4994_v59 = vrot.slane %v14533_v11, 5  ;;  %v5664_v11 = vsel %vm1155_vm9, %v5614_v52, 0  ;;  %v12250_v40 = vld [vmem:[#allocation2 + $0x28] ss:$8 sps:$4 sm:$0xff]  }
 0x405   :  { %v5391_v46 = vshrl.u32 %v5358_v30, 16  ;;  %v5394_v28 = vshll.u32 %v5358_v30, 16  ;;  %v5360_v35 = vld [vmem:[#allocation2 + $0x10] sm:$0xf]  ;;  %v14645_v39 = vld [vmem:[%s16134_s5 + $0x14] sm:$0xf] }
 0x406   :  { %v4995_v45 = vsel %vm13281_vm0, %v10586_v27, %v4994_v59  ;;  %v5362_v0 = vld [vmem:[#allocation2 + $0x18] sm:$0xf]  ;;  %v5405_v47 = vshrl.u32 %v5360_v35, 16  ;;  %v14661_v21 = vld [vmem:[#allocation2 + $0x24] sm:$0x1] }
 0x407   :  { %11475 = vmatmul.mubr.msk.bf16.vlgmr.msra.gmra.mrb[48].mxu0 %vm371_vm7, %v10556_v55  ;;  %v4966_v55 = vrot.slane %v12303_v61, 5  ;;  %v5419_v7 = vshrl.u32 %v5362_v0, 16  ;;  %v5422_v3 = vshll.u32 %v5362_v0, 16  ;;  %v14651_v61 = vld [vmem:[#allocation2 + $0xc] sm:$0x1]  ;;  %v5442_v41 = vshll.u32 %v14661_v21, 16 }
 0x408   :  { %11491 = vmatpush3.bf16.msra.mxu0 %v5046_v26  ;;  %11478 = vmatprep.mubr.msk.bf16.mxu0 %vm371_vm7, %v10557_v20  ;;  %v10580_v26 = vrot.slane %v4893_v44, 9  ;;  %v4970_v20 = vrot.slane %v14459_v22, 5  ;;  %v4896_v22 = vld [vmem:[#allocation2 + $0x70] sm:$0xe]  ;;  %v5364_v44 = vld [vmem:[#allocation2 + $0x20] sm:$0xf] }
 0x409   :  { %12179 = vmatprep.subr.msk.bf16.mxu0 %vm1155_vm9, %v5177_v25  ;;  %v4894_v25 = vld [vmem:[#allocation2 + $0x60] sm:$0xe]  ;;  %v10583_v48 = vrot.slane %v4896_v22, 9  ;;  %v5433_v23 = vshrl.u32 %v5364_v44, 16  ;;  %v5424_v17 = vrot.slane %v5422_v3, 5 }
 0x40a   :  { %v14665_v27 = vld [vmem:[#allocation2 + $0x2c] sm:$0x1]  ;;  %v5370_v59 = vld [vmem:[#allocation2 + $0x38] sm:$0xf]  ;;  %v14670_v0 = vld [vmem:[#allocation2 + $0x34] sm:$0x1] }
 0x40b   :  { %v4983_v19 = vsel %vm13281_vm0, %v10583_v48, %v4982_v16  ;;  %v5435_v22 = vrot.slane %v5433_v23, 4  ;;  %v5374_v30 = vld [vmem:[#allocation2 + $0x58] sm:$0xf] }
 0x40c   :  { %v5503_v3 = vshrl.u32 %v5374_v30, 16  ;;  %v5506_v23 = vshll.u32 %v5374_v30, 16 }
 0x40f   :  { %11479 = vmatmul.mubr.msk.bf16.gmra.mrb[52].mxu0 %vm371_vm7, %v10558_v9  ;;  %v4967_v9 = vsel %vm13281_vm0, %v10579_v53, %v4966_v55  ;;  %v12251_v53 = vld [vmem:[#allocation2 + $0x38] ss:$8 sps:$4 sm:$0xff]   ;;  %v5366_v55 = vld [vmem:[#allocation2 + $0x28] sm:$0xf] }
 0x410   :  { %11482 = vmatprep.mubr.msk.bf16.mxu0 %vm371_vm7, %v10559_v62  ;;  %v4971_v62 = vsel %vm13281_vm0, %v10580_v26, %v4970_v20  ;;  %v12252_v26 = vld [vmem:[#allocation2 + $0x58] ss:$8 sps:$4 sm:$0xff]   ;;  %v14653_v20 = vld [vmem:[#allocation2 + $0x14] sm:$0x1] }
 0x411   :  { %v10591_v29 = vcombine.low %v4967_v9, %v4971_v62  ;;  %v14655_v9 = vld [vmem:[#allocation2 + $0x1c] sm:$0x1]  ;;  %v5421_v62 = vrot.slane %v5419_v7, 4  ;;  %v5414_v42 = vshll.u32 %v14653_v20, 16 }
 0x417   :  { %11483 = vmatmul.mubr.msk.bf16.gmra.mrb[56].mxu0 %vm371_vm7, %v10560_v38  ;;  %v10590_v38 = vcombine.low %v4959_v37, %v4963_v33  ;;  %v5407_v33 = vrot.slane %v5405_v47, 4  ;;  %v14673_v47 = vld [vmem:[#allocation2 + $0x3c] sm:$0x1] }
 0x418   :  { %11486 = vmatprep.mubr.msk.bf16.mxu0 %vm371_vm7, %v10561_v32  ;;  %v10581_v32 = vrot.slane %v4894_v25, 9 }
 0x41a   :  { %v4975_v56 = vsel %vm13281_vm0, %v10581_v32, %v4974_v63  ;;  %v5368_v32 = vld [vmem:[#allocation2 + $0x30] sm:$0xf]  ;;  %v5450_v63 = vshll.u32 %v5366_v55, 16 }
 0x41b   :  { %v10592_v5 = vcombine.low %v4975_v56, %v4979_v8  ;;  %v5461_v8 = vshrl.u32 %v5368_v32, 16 }
 0x41f   :  { %11487 = vmatmul.mubr.msk.bf16.gmra.mrb[60].mxu0 %vm371_vm7, %v10562_v51  ;;  %v4987_v51 = vsel %vm13281_vm0, %v10584_v12, %v4986_v15  ;;  %v5428_v12 = vshll.u32 %v14655_v9, 16  ;;  %v5425_v15 = vor.u32 %v5424_v17, %v5421_v62  ;;  %v5470_v62 = vshll.u32 %v14670_v0, 16 }
 0x420   :  { %11492 = vmatprep.mubr.msk.bf16.mxu0 %vm371_vm7, %v10587_v57  ;;  %v10585_v57 = vrot.slane %v4898_v18, 9  ;;  %v10593_v36 = vcombine.low %v4983_v19, %v4987_v51  ;;  %v5464_v18 = vshll.u32 %v5368_v32, 16  ;;  %v12253_v19 = vld [vmem:[#allocation2 + $0x68] ss:$8 sps:$4 sm:$0xff]   ;;  %v5484_v32 = vshll.u32 %v14673_v47, 16 }
 0x422   :  { %v4991_v60 = vsel %vm13281_vm0, %v10585_v57, %v4990_v43  ;;  %v5452_v57 = vrot.slane %v5450_v63, 5  ;;  %v5416_v43 = vrot.slane %v5414_v42, 5 }
 0x423   :  { %v10594_v50 = vcombine.low %v4991_v60, %v4995_v45 }
 0x427   :  { %11493 = vmatmul.mubr.msk.bf16.vlgmr.msra.gmra.mrb[48].mxu0 %vm371_vm7, %v10588_v1  ;;  %v5393_v1 = vrot.slane %v5391_v46, 4  ;;  %v5463_v46 = vrot.slane %v5461_v8, 4  ;;  %v5378_v8 = vld [vmem:[#allocation2 + $0x68] sm:$0xf] }
 0x428   :  { %11509 = vmatpush3.bf16.msra.mxu0 %v5243_v10  ;;  %11496 = vmatprep.mubr.msk.bf16.mxu0 %vm371_vm7, %v10589_v24  ;;  %v5396_v10 = vrot.slane %v5394_v28, 5  ;;  %v5408_v24 = vshll.u32 %v5360_v35, 16  ;;  %v5466_v28 = vrot.slane %v5464_v18, 5  ;;  %v5444_v35 = vrot.slane %v5442_v41, 5 }
 0x429   :  { %12180 = vmatprep.subr.msk.bf16.mxu0 %vm1155_vm9, %v5614_v52  ;;  %v5436_v52 = vshll.u32 %v5364_v44, 16  ;;  %v5531_v30 = vshrl.u32 %v5378_v8, 16 }
 0x42a   :  { %v5397_v37 = vor.u32 %v5396_v10, %v5393_v1  ;;  %v5410_v25 = vrot.slane %v5408_v24, 5  ;;  %v5475_v1 = vshrl.u32 %v5370_v59, 16  ;;  %v5478_v10 = vshll.u32 %v5370_v59, 16 }
 0x42b   :  { %v5438_v6 = vrot.slane %v5436_v52, 5  ;;  %v5486_v59 = vrot.slane %v5484_v32, 5 }
 0x42c   :  { %v5398_v48 = vrot.slane %v5397_v37, 4  ;;  %v5411_v16 = vor.u32 %v5410_v25, %v5407_v33  ;;  %v5467_v25 = vor.u32 %v5466_v28, %v5463_v46  ;;  %v5534_v28 = vshll.u32 %v5378_v8, 16 }
 0x42d   :  { %v5439_v56 = vor.u32 %v5438_v6, %v5435_v22  ;;  %v14683_v22 = vld [vmem:[#allocation2 + $0x44] sm:$0x1]  ;;  %v5477_v6 = vrot.slane %v5475_v1, 4 }
 0x42e   :  { %v5412_v45 = vrot.slane %v5411_v16, 4  ;;  %v5508_v16 = vrot.slane %v5506_v23, 5  ;;  %v5498_v41 = vshll.u32 %v14683_v22, 16 }
 0x42f   :  { %11497 = vmatmul.mubr.msk.bf16.gmra.mrb[52].mxu0 %vm371_vm7, %v10590_v38  ;;  %v5400_v38 = vshll.u32 %v14651_v61, 16 }
 0x430   :  { %11500 = vmatprep.mubr.msk.bf16.mxu0 %vm371_vm7, %v10591_v29  ;;  %v5447_v29 = vshrl.u32 %v5366_v55, 16  ;;  %v5417_v52 = vsel %vm13010_vm13, %v5412_v45, %v5416_v43  ;;  %v5472_v43 = vrot.slane %v5470_v62, 5  ;;  %v14692_v45 = vld [vmem:[#allocation2 + $0x5c] sm:$0x1]  ;;  %v5500_v1 = vrot.slane %v5498_v41, 5 }
 0x431   :  { %v5402_v51 = vrot.slane %v5400_v38, 5  ;;  %v5480_v38 = vrot.slane %v5478_v10, 5  ;;  %v5512_v10 = vshll.u32 %v14692_v45, 16  ;;  %v14716_v41 = vld [vmem:[#allocation2 + $0x6c] sm:$0x1] }
 0x433   :  { %v5403_v60 = vsel %vm13010_vm13, %v5398_v48, %v5402_v51  ;;  %v5505_v48 = vrot.slane %v5503_v3, 4  ;;  %v5468_v51 = vrot.slane %v5467_v25, 4  ;;  %v5536_v25 = vrot.slane %v5534_v28, 5 }
 0x434   :  { %v10619_v18 = vcombine.low %v5403_v60, %v5417_v52  ;;  %v5481_v60 = vor.u32 %v5480_v38, %v5477_v6  ;;  %v5514_v38 = vrot.slane %v5512_v10, 5 }
 0x437   :  { %11501 = vmatmul.mubr.msk.bf16.gmra.mrb[56].mxu0 %vm371_vm7, %v10592_v5  ;;  %v5449_v5 = vrot.slane %v5447_v29, 4  ;;  %v12255_v29 = vld [vmem:[#allocation2 + $0x88] ss:$8 sps:$4 sm:$0xff]  }
 0x438   :  { %11504 = vmatprep.mubr.msk.bf16.mxu0 %vm371_vm7, %v10593_v36  ;;  %v12254_v36 = vld [vmem:[#allocation2 + $0x78] ss:$8 sps:$4 sm:$0xff]  }
 0x439   :  { %v5453_v44 = vor.u32 %v5452_v57, %v5449_v5  ;;  %v5380_v5 = vld [vmem:[#allocation2 + $0x70] sm:$0xf] }
 0x43b   :  { %v5454_v17 = vrot.slane %v5453_v44, 4  ;;  %v5473_v44 = vsel %vm13010_vm13, %v5468_v51, %v5472_v43  ;;  %v14724_v43 = vld [vmem:[#allocation2 + $0x84] sm:$0x1] }
 0x43c   :  { %v5582_v10 = vshll.u32 %v14724_v43, 16 }
 0x43f   :  { %11505 = vmatmul.mubr.msk.bf16.gmra.mrb[60].mxu0 %vm371_vm7, %v10594_v50  ;;  %v5430_v50 = vrot.slane %v5428_v12, 5 }
 0x440   :  { %11510 = vmatprep.mubr.msk.bf16.mxu0 %vm371_vm7, %v12248_v58  ;;  %v5372_v58 = vld [vmem:[#allocation2 + $0x40] sm:$0xf] }
 0x441   :  { %v5489_v24 = vshrl.u32 %v5372_v58, 16  ;;  %v5492_v7 = vshll.u32 %v5372_v58, 16  ;;  %v5509_v58 = vor.u32 %v5508_v16, %v5505_v48 }
 0x443   :  { %v5491_v63 = vrot.slane %v5489_v24, 4  ;;  %v5494_v42 = vrot.slane %v5492_v7, 5 }
 0x447   :  { %11511 = vmatmul.mubr.msk.bf16.vlgmr.msra.gmra.mrb[48].mxu0 %vm371_vm7, %v12249_v49  ;;  %v5426_v49 = vrot.slane %v5425_v15, 4 }
 0x448   :  { %11527 = vmatpush3.bf16.msra.mxu0 %v5664_v11  ;;  %11514 = vmatprep.mubr.msk.bf16.mxu0 %vm371_vm7, %v12250_v40  ;;  %v5440_v11 = vrot.slane %v5439_v56, 4  ;;  %v5376_v40 = vld [vmem:[#allocation2 + $0x60] sm:$0xf] }
 0x449   :  { %12181 = vmatprep.subr.msk.bf16.mxu0 %vm1155_vm9, %v14645_v39  ;;  %v5517_v55 = vshrl.u32 %v5376_v40, 16  ;;  %v5431_v37 = vsel %vm13010_vm13, %v5426_v49, %v5430_v50  ;;  %v14694_v50 = vld [vmem:[#allocation2 + $0x64] sm:$0x1]  ;;  %v5382_v49 = vld [vmem:[#allocation2 + $0x78] sm:$0xf] }
 0x44a   :  { %v5445_v33 = vsel %vm13010_vm13, %v5440_v11, %v5444_v35  ;;  %v5384_v11 = vld [vmem:[#allocation2 + $0x80] sm:$0xf]  ;;  %v5548_v35 = vshll.u32 %v5380_v5, 16  ;;  %v5526_v24 = vshll.u32 %v14694_v50, 16  ;;  %v5559_v7 = vshrl.u32 %v5382_v49, 16 }
 0x44b   :  { %v5519_v15 = vrot.slane %v5517_v55, 4  ;;  %v10620_v57 = vcombine.low %v5431_v37, %v5445_v33  ;;  %v5562_v3 = vshll.u32 %v5382_v49, 16  ;;  %v5573_v23 = vshrl.u32 %v5384_v11, 16 }
 0x44c   :  { %v5576_v52 = vshll.u32 %v5384_v11, 16  ;;  %v5533_v37 = vrot.slane %v5531_v30, 4  ;;  %v5528_v32 = vrot.slane %v5526_v24, 5 }
 0x44d   :  { %v5564_v48 = vrot.slane %v5562_v3, 5  ;;  %v5575_v16 = vrot.slane %v5573_v23, 4 }
 0x44f   :  { %11515 = vmatmul.mubr.msk.bf16.gmra.mrb[52].mxu0 %vm371_vm7, %v12251_v53  ;;  %v5456_v53 = vshll.u32 %v14665_v27, 16 }
 0x450   :  { %11518 = vmatprep.mubr.msk.bf16.mxu0 %vm371_vm7, %v12252_v26  ;;  %v5520_v26 = vshll.u32 %v5376_v40, 16  ;;  %v5545_v40 = vshrl.u32 %v5380_v5, 16  ;;  %v14718_v5 = vld [vmem:[#allocation2 + $0x74] sm:$0x1] }
 0x451   :  { %v5458_v12 = vrot.slane %v5456_v53, 5  ;;  %v5482_v53 = vrot.slane %v5481_v60, 4  ;;  %v5554_v28 = vshll.u32 %v14718_v5, 16 }
 0x452   :  { %v5522_v56 = vrot.slane %v5520_v26, 5  ;;  %v5510_v26 = vrot.slane %v5509_v58, 4  ;;  %v5547_v62 = vrot.slane %v5545_v40, 4 }
 0x454   :  { %v5523_v46 = vor.u32 %v5522_v56, %v5519_v15  ;;  %v5388_v15 = vld [vmem:[#allocation2 + $0x90] sm:$0xf]  ;;  %v5487_v56 = vsel %vm13010_vm13, %v5482_v53, %v5486_v59 }
 0x455   :  { %v5604_v58 = vshll.u32 %v5388_v15, 16 }
 0x456   :  { %v5524_v33 = vrot.slane %v5523_v46, 4  ;;  %v5540_v46 = vshll.u32 %v14716_v41, 16 }
 0x457   :  { %11519 = vmatmul.mubr.msk.bf16.gmra.mrb[56].mxu0 %vm371_vm7, %v12253_v19  ;;  %v5941_v19 = vsel %vm1155_vm9, %v14645_v39, 0  ;;  %v5495_v39 = vor.u32 %v5494_v42, %v5491_v63  ;;  %v14704_v63 = vld [vmem:[%s16134_s5 + $0x18] sm:$0xf]  ;;  %v5561_v42 = vrot.slane %v5559_v7, 4  ;;  %v5606_v23 = vrot.slane %v5604_v58, 5 }
 0x458   :  { %11522 = vmatprep.mubr.msk.bf16.mxu0 %vm371_vm7, %v12254_v36  ;;  %v5459_v36 = vsel %vm13010_vm13, %v5454_v17, %v5458_v12  ;;  %v5550_v17 = vrot.slane %v5548_v35, 5  ;;  %v5578_v12 = vrot.slane %v5576_v52, 5  ;;  %v5529_v51 = vsel %vm13010_vm13, %v5524_v33, %v5528_v32 }
 0x459   :  { %v5496_v55 = vrot.slane %v5495_v39, 4  ;;  %v10621_v6 = vcombine.low %v5459_v36, %v5473_v44  ;;  %v14720_v36 = vld [vmem:[#allocation2 + $0x7c] sm:$0x1]  ;;  %v5601_v39 = vshrl.u32 %v5388_v15, 16  ;;  %v5565_v30 = vor.u32 %v5564_v48, %v5561_v42  ;;  %v5780_v15 = vld [vmem:[#allocation2 + $0x10] sm:$0xe] }
 0x45a   :  { %v5579_v49 = vor.u32 %v5578_v12, %v5575_v16  ;;  %v5568_v40 = vshll.u32 %v14720_v36, 16  ;;  %v5584_v33 = vrot.slane %v5582_v10, 5  ;;  %v5779_v12 = vld [vmem:[#allocation2 + $0x8] sm:$0xe]  ;;  %v5837_v10 = vrot.slane %v14655_v9, 5 }
 0x45b   :  { %v5501_v8 = vsel %vm13010_vm13, %v5496_v55, %v5500_v1  ;;  %v5603_v3 = vrot.slane %v5601_v39, 4  ;;  %v5566_v52 = vrot.slane %v5565_v30, 4  ;;  %v5542_v55 = vrot.slane %v5540_v46, 5  ;;  %v5785_v9 = vld [vmem:[#allocation2 + $0x38] sm:$0xe] }
 0x45c   :  { %v10622_v11 = vcombine.low %v5487_v56, %v5501_v8  ;;  %v5580_v53 = vrot.slane %v5579_v49, 4 }
 0x45d   :  { %v5607_v32 = vor.u32 %v5606_v23, %v5603_v3  ;;  %v5845_v23 = vrot.slane %v14665_v27, 5  ;;  %v5787_v27 = vld [vmem:[#allocation2 + $0x58] sm:$0xe] }
 0x45e   :  { %v5585_v42 = vsel %vm13010_vm13, %v5580_v53, %v5584_v33  ;;  %v5849_v53 = vrot.slane %v14670_v0, 5  ;;  %v5786_v33 = vld [vmem:[#allocation2 + $0x40] sm:$0xe]  ;;  %v6138_v0 = vsel %vm1155_vm9, %v14704_v63, 0 }
 0x45f   :  { %11523 = vmatmul.mubr.msk.bf16.gmra.mrb[60].mxu0 %vm371_vm7, %v12255_v29  ;;  %v5386_v29 = vld [vmem:[#allocation2 + $0x88] sm:$0xf] }
 0x460   :  { %11528 = vmatprep.mubr.msk.bf16.mxu0 %vm371_vm7, %v10619_v18  ;;  %v5515_v18 = vsel %vm13010_vm13, %v5510_v26, %v5514_v38  ;;  %v5587_v59 = vshrl.u32 %v5386_v29, 16  ;;  %v5590_v60 = vshll.u32 %v5386_v29, 16  ;;  %v5556_v26 = vrot.slane %v5554_v28, 5  ;;  %v5782_v28 = vld [vmem:[#allocation2 + $0x20] sm:$0xe] }
 0x461   :  { %v10623_v35 = vcombine.low %v5515_v18, %v5529_v51  ;;  %v5608_v51 = vrot.slane %v5607_v32, 4 }
 0x462   :  { %v5589_v24 = vrot.slane %v5587_v59, 4  ;;  %v5592_v7 = vrot.slane %v5590_v60, 5  ;;  %v10636_v59 = vrot.slane %v5780_v15, 9  ;;  %v5833_v60 = vrot.slane %v14653_v20, 5  ;;  %v5784_v20 = vld [vmem:[#allocation2 + $0x30] sm:$0xe] }
 0x463   :  { %v5861_v15 = vrot.slane %v14692_v45, 5 }
 0x464   :  { %v5593_v38 = vor.u32 %v5592_v7, %v5589_v24  ;;  %v10638_v24 = vrot.slane %v5782_v28, 9  ;;  %v5841_v7 = vrot.slane %v14661_v21, 5 }
 0x466   :  { %v5594_v18 = vrot.slane %v5593_v38, 4  ;;  %v10641_v38 = vrot.slane %v5785_v9, 9 }
 0x467   :  { %11529 = vmatmul.mubr.msk.bf16.vlgmr.msra.gmra.mrb[48].mxu0 %vm371_vm7, %v10620_v57  ;;  %v5537_v57 = vor.u32 %v5536_v25, %v5533_v37  ;;  %v5570_v37 = vrot.slane %v5568_v40, 5  ;;  %v14732_v25 = vld [vmem:[#allocation2 + $0x8c] sm:$0x1]  ;;  %v5783_v40 = vld [vmem:[#allocation2 + $0x28] sm:$0xe] }
 0x468   :  { %11545 = vmatpush3.bf16.msra.mxu0 %v5941_v19  ;;  %11532 = vmatprep.mubr.msk.bf16.mxu0 %vm371_vm7, %v10621_v6  ;;  %v5551_v19 = vor.u32 %v5550_v17, %v5547_v62  ;;  %v14734_v62 = vld [vmem:[#allocation2 + $0x94] sm:$0x1]  ;;  %v5596_v48 = vshll.u32 %v14732_v25, 16  ;;  %v10639_v3 = vrot.slane %v5783_v40, 9 }
 0x469   :  { %12182 = vmatprep.subr.msk.bf16.mxu0 %vm1155_vm9, %v14704_v63  ;;  %v5538_v44 = vrot.slane %v5537_v57, 4  ;;  %v5571_v29 = vsel %vm13010_vm13, %v5566_v52, %v5570_v37  ;;  %v5610_v16 = vshll.u32 %v14734_v62, 16  ;;  %v10635_v57 = vrot.slane %v5779_v12, 9  ;;  %v5789_v63 = vld [vmem:[#allocation2 + $0x68] sm:$0xe] }
 0x46a   :  { %v5552_v1 = vrot.slane %v5551_v19, 4  ;;  %v10625_v8 = vcombine.low %v5571_v29, %v5585_v42  ;;  %v5829_v19 = vrot.slane %v14651_v61, 5  ;;  %v5598_v39 = vrot.slane %v5596_v48, 5 }
 0x46b   :  { %v5543_v17 = vsel %vm13010_vm13, %v5538_v44, %v5542_v55  ;;  %v5612_v58 = vrot.slane %v5610_v16, 5  ;;  %v5834_v61 = vsel %vm13281_vm0, %v10636_v59, %v5833_v60  ;;  %v10640_v52 = vrot.slane %v5784_v20, 9  ;;  %v6509_v16 = vld [vmem:[%s16134_s5 + $0x1c] sm:$0xf] }
 0x46c   :  { %v5557_v6 = vsel %vm13010_vm13, %v5552_v1, %v5556_v26  ;;  %v5599_v30 = vsel %vm13010_vm13, %v5594_v18, %v5598_v39  ;;  %v5830_v46 = vsel %vm13281_vm0, %v10635_v57, %v5829_v19  ;;  %v5842_v26 = vsel %vm13281_vm0, %v10638_v24, %v5841_v7  ;;  %v5792_v57 = vld [vmem:[#allocation2 + $0x80] sm:$0xe] }
 0x46d   :  { %v10624_v56 = vcombine.low %v5543_v17, %v5557_v6  ;;  %v5613_v49 = vsel %vm13010_vm13, %v5608_v51, %v5612_v58  ;;  %v10651_v1 = vcombine.low %v5830_v46, %v5834_v61  ;;  %v5846_v21 = vsel %vm13281_vm0, %v10639_v3, %v5845_v23  ;;  %v5788_v17 = vld [vmem:[#allocation2 + $0x60] sm:$0xe]  ;;  %v5790_v51 = vld [vmem:[#allocation2 + $0x70] sm:$0xe] }
 0x46e   :  { %v5850_v37 = vsel %vm13281_vm0, %v10640_v52, %v5849_v53  ;;  %v5853_v29 = vrot.slane %v14673_v47, 5  ;;  %v10642_v42 = vrot.slane %v5786_v33, 9  ;;  %v5857_v48 = vrot.slane %v14683_v22, 5  ;;  %v12256_v52 = vld [vmem:[#allocation2 + $0x10] ss:$8 sps:$4 sm:$0xff]  }
 0x46f   :  { %11533 = vmatmul.mubr.msk.bf16.gmra.mrb[52].mxu0 %vm371_vm7, %v10622_v11  ;;  %v5781_v11 = vld [vmem:[#allocation2 + $0x18] sm:$0xe]  ;;  %v10653_v32 = vcombine.low %v5846_v21, %v5850_v37  ;;  %v10643_v12 = vrot.slane %v5787_v27, 9  ;;  %v10645_v59 = vrot.slane %v5789_v63, 9  ;;  %v5869_v39 = vrot.slane %v14716_v41, 5 }
 0x470   :  { %11536 = vmatprep.mubr.msk.bf16.mxu0 %vm371_vm7, %v10623_v35  ;;  %v10626_v35 = vcombine.low %v5599_v30, %v5613_v49  ;;  %v10637_v44 = vrot.slane %v5781_v11, 9  ;;  %v5854_v47 = vsel %vm13281_vm0, %v10641_v38, %v5853_v29  ;;  %v5858_v22 = vsel %vm13281_vm0, %v10642_v42, %v5857_v48  ;;  %v5793_v41 = vld [vmem:[#allocation2 + $0x88] sm:$0xe]  ;;  %v14820_v37 = vld [vmem:[%s16134_s5 + $0x20] sm:$0xf] }
 0x471   :  { %v5862_v18 = vsel %vm13281_vm0, %v10643_v12, %v5861_v15  ;;  %v10654_v19 = vcombine.low %v5854_v47, %v5858_v22  ;;  %v10646_v58 = vrot.slane %v5790_v51, 9  ;;  %v5873_v30 = vrot.slane %v14718_v5, 5  ;;  %v12257_v53 = vld [vmem:[#allocation2 + $0x20] ss:$8 sps:$4 sm:$0xff]   ;;  %v6261_v12 = vld [vmem:[#allocation2 + $0x30] sm:$0xf] }
 0x472   :  { %v5838_v55 = vsel %vm13281_vm0, %v10637_v44, %v5837_v10  ;;  %v5877_v11 = vrot.slane %v14720_v36, 5  ;;  %v10648_v46 = vrot.slane %v5792_v57, 9  ;;  %v5881_v61 = vrot.slane %v14724_v43, 5  ;;  %v6257_v33 = vld [vmem:[#allocation2 + $0x20] sm:$0xf] }
 0x473   :  { %v10652_v6 = vcombine.low %v5838_v55, %v5842_v26  ;;  %v5870_v28 = vsel %vm13281_vm0, %v10645_v59, %v5869_v39  ;;  %v5874_v40 = vsel %vm13281_vm0, %v10646_v58, %v5873_v30  ;;  %v10649_v44 = vrot.slane %v5793_v41, 9  ;;  %v12258_v55 = vld [vmem:[#allocation2 + $0x30] ss:$8 sps:$4 sm:$0xff]   ;;  %v6259_v27 = vld [vmem:[#allocation2 + $0x28] sm:$0xf] }
 0x474   :  { %v5882_v20 = vsel %vm13281_vm0, %v10648_v46, %v5881_v61  ;;  %v10656_v36 = vcombine.low %v5870_v28, %v5874_v40  ;;  %v5885_v43 = vrot.slane %v14732_v25, 5  ;;  %v5889_v24 = vrot.slane %v14734_v62, 5  ;;  %v6253_v25 = vld [vmem:[#allocation2 + $0x10] sm:$0xf]  ;;  %v6255_v26 = vld [vmem:[#allocation2 + $0x18] sm:$0xf] }
 0x475   :  { %v6559_v62 = vsel %vm1155_vm9, %v6509_v16, 0  ;;  %v6286_v9 = vshrl.u32 %v6253_v25, 16  ;;  %v6289_v21 = vshll.u32 %v6253_v25, 16  ;;  %v6317_v29 = vshll.u32 %v6257_v33, 16  ;;  %v12260_v15 = vld [vmem:[#allocation2 + $0x60] ss:$8 sps:$4 sm:$0xff]  }
 0x476   :  { %v5886_v7 = vsel %vm13281_vm0, %v10649_v44, %v5885_v43  ;;  %v6328_v42 = vshrl.u32 %v6259_v27, 16  ;;  %v6331_v48 = vshll.u32 %v6259_v27, 16  ;;  %v14828_v22 = vld [vmem:[#allocation2 + $0x1c] sm:$0x1]  ;;  %v6342_v59 = vshrl.u32 %v6261_v12, 16 }
 0x477   :  { %11537 = vmatmul.mubr.msk.bf16.gmra.mrb[56].mxu0 %vm371_vm7, %v10624_v56  ;;  %v10644_v56 = vrot.slane %v5788_v17, 9  ;;  %v6300_v17 = vshrl.u32 %v6255_v26, 16  ;;  %v6291_v38 = vrot.slane %v6289_v21, 5  ;;  %v6319_v51 = vrot.slane %v6317_v29, 5  ;;  %v14837_v46 = vld [vmem:[#allocation2 + $0x2c] sm:$0x1] }
 0x478   :  { %11540 = vmatprep.mubr.msk.bf16.mxu0 %vm371_vm7, %v10625_v8  ;;  %v5865_v8 = vrot.slane %v14694_v50, 5  ;;  %v5791_v50 = vld [vmem:[#allocation2 + $0x78] sm:$0xe]  ;;  %v6333_v57 = vrot.slane %v6331_v48, 5  ;;  %v6309_v30 = vshll.u32 %v14828_v22, 16 }
 0x479   :  { %v10647_v49 = vrot.slane %v5791_v50, 9  ;;  %v6330_v50 = vrot.slane %v6328_v42, 4  ;;  %v12261_v41 = vld [vmem:[#allocation2 + $0x70] ss:$8 sps:$4 sm:$0xff]   ;;  %v12262_v44 = vld [vmem:[#allocation2 + $0x80] ss:$8 sps:$4 sm:$0xff]  }
 0x47a   :  { %v5866_v45 = vsel %vm13281_vm0, %v10644_v56, %v5865_v8  ;;  %v14826_v56 = vld [vmem:[#allocation2 + $0x14] sm:$0x1]  ;;  %v6302_v8 = vrot.slane %v6300_v17, 4  ;;  %v14845_v21 = vld [vmem:[#allocation2 + $0x3c] sm:$0x1] }
 0x47b   :  { %v10655_v60 = vcombine.low %v5862_v18, %v5866_v45  ;;  %v5878_v5 = vsel %vm13281_vm0, %v10647_v49, %v5877_v11  ;;  %v14830_v18 = vld [vmem:[#allocation2 + $0x24] sm:$0x1]  ;;  %v6295_v39 = vshll.u32 %v14826_v56, 16  ;;  %v14839_v43 = vld [vmem:[#allocation2 + $0x34] sm:$0x1] }
 0x47c   :  { %v6323_v49 = vshll.u32 %v14830_v18, 16  ;;  %v6351_v42 = vshll.u32 %v14839_v43, 16 }
 0x47f   :  { %11541 = vmatmul.mubr.msk.bf16.gmra.mrb[60].mxu0 %vm371_vm7, %v10626_v35  ;;  %v5794_v35 = vld [vmem:[#allocation2 + $0x90] sm:$0xe] }
 0x480   :  { %11546 = vmatprep.mubr.msk.bf16.mxu0 %vm371_vm7, %v10651_v1  ;;  %v10657_v1 = vcombine.low %v5878_v5, %v5882_v20  ;;  %v10650_v10 = vrot.slane %v5794_v35, 9  ;;  %v6334_v5 = vor.u32 %v6333_v57, %v6330_v50  ;;  %v6344_v20 = vrot.slane %v6342_v59, 4  ;;  %v14856_v50 = vld [vmem:[#allocation2 + $0x4c] sm:$0x1]  ;;  %v14858_v59 = vld [vmem:[#allocation2 + $0x44] sm:$0x1] }
 0x482   :  { %v5890_v3 = vsel %vm13281_vm0, %v10650_v10, %v5889_v24  ;;  %v6265_v10 = vld [vmem:[#allocation2 + $0x40] sm:$0xf] }
 0x483   :  { %v10658_v23 = vcombine.low %v5886_v7, %v5890_v3  ;;  %v6311_v7 = vrot.slane %v6309_v30, 5  ;;  %v6325_v3 = vrot.slane %v6323_v49, 5  ;;  %v6370_v27 = vshrl.u32 %v6265_v10, 16 }
 0x484   :  { %v6373_v17 = vshll.u32 %v6265_v10, 16  ;;  %v6353_v49 = vrot.slane %v6351_v42, 5  ;;  %v6379_v10 = vshll.u32 %v14858_v59, 16 }
 0x485   :  { %v6372_v57 = vrot.slane %v6370_v27, 4 }
 0x487   :  { %11547 = vmatmul.mubr.msk.bf16.vlgmr.msra.gmra.mrb[48].mxu0 %vm371_vm7, %v10652_v6  ;;  %v6303_v6 = vshll.u32 %v6255_v26, 16  ;;  %v6271_v26 = vld [vmem:[#allocation2 + $0x68] sm:$0xf] }
 0x488   :  { %11563 = vmatpush3.bf16.msra.mxu0 %v6138_v0  ;;  %11550 = vmatprep.mubr.msk.bf16.mxu0 %vm371_vm7, %v10653_v32  ;;  %v6288_v0 = vrot.slane %v6286_v9, 4  ;;  %v6314_v32 = vshrl.u32 %v6257_v33, 16  ;;  %v6335_v9 = vrot.slane %v6334_v5, 4  ;;  %v6412_v48 = vshrl.u32 %v6271_v26, 16 }
 0x489   :  { %12183 = vmatprep.subr.msk.bf16.mxu0 %vm1155_vm9, %v6509_v16  ;;  %v12259_v16 = vld [vmem:[#allocation2 + $0x40] ss:$8 sps:$4 sm:$0xff]   ;;  %v6305_v47 = vrot.slane %v6303_v6, 5 }
 0x48a   :  { %v6292_v63 = vor.u32 %v6291_v38, %v6288_v0  ;;  %v6316_v45 = vrot.slane %v6314_v32, 4 }
 0x48b   :  { %v6306_v58 = vor.u32 %v6305_v47, %v6302_v8  ;;  %v6365_v47 = vshll.u32 %v14845_v21, 16 }
 0x48c   :  { %v6293_v11 = vrot.slane %v6292_v63, 4  ;;  %v6320_v61 = vor.u32 %v6319_v51, %v6316_v45  ;;  %v12263_v63 = vld [vmem:[#allocation2 + $0x90] ss:$8 sps:$4 sm:$0xff]  }
 0x48d   :  { %v6307_v24 = vrot.slane %v6306_v58, 4 }
 0x48f   :  { %11551 = vmatmul.mubr.msk.bf16.gmra.mrb[52].mxu0 %vm371_vm7, %v10654_v19  ;;  %v6263_v19 = vld [vmem:[#allocation2 + $0x38] sm:$0xf] }
 0x490   :  { %11554 = vmatprep.mubr.msk.bf16.mxu0 %vm371_vm7, %v10655_v60  ;;  %v6345_v60 = vshll.u32 %v6261_v12, 16  ;;  %v6356_v28 = vshrl.u32 %v6263_v19, 16  ;;  %v6359_v40 = vshll.u32 %v6263_v19, 16  ;;  %v6312_v12 = vsel %vm13010_vm13, %v6307_v24, %v6311_v7  ;;  %v14867_v24 = vld [vmem:[#allocation2 + $0x64] sm:$0x1] }
 0x491   :  { %v6375_v19 = vrot.slane %v6373_v17, 5  ;;  %v14869_v7 = vld [vmem:[#allocation2 + $0x6c] sm:$0x1]  ;;  %v6407_v17 = vshll.u32 %v14867_v24, 16 }
 0x492   :  { %v6347_v35 = vrot.slane %v6345_v60, 5 }
 0x494   :  { %v6348_v33 = vor.u32 %v6347_v35, %v6344_v20  ;;  %v6393_v20 = vshll.u32 %v14856_v50, 16  ;;  %v6275_v35 = vld [vmem:[#allocation2 + $0x78] sm:$0xf] }
 0x496   :  { %v6349_v51 = vrot.slane %v6348_v33, 4  ;;  %v6395_v27 = vrot.slane %v6393_v20, 5 }
 0x497   :  { %11555 = vmatmul.mubr.msk.bf16.gmra.mrb[56].mxu0 %vm371_vm7, %v10656_v36  ;;  %v6267_v36 = vld [vmem:[#allocation2 + $0x48] sm:$0xf] }
 0x498   :  { %11558 = vmatprep.mubr.msk.bf16.mxu0 %vm371_vm7, %v10657_v1  ;;  %v6297_v1 = vrot.slane %v6295_v39, 5  ;;  %v6384_v6 = vshrl.u32 %v6267_v36, 16  ;;  %v6387_v0 = vshll.u32 %v6267_v36, 16 }
 0x49a   :  { %v6298_v25 = vsel %vm13010_vm13, %v6293_v11, %v6297_v1  ;;  %v6386_v60 = vrot.slane %v6384_v6, 4  ;;  %v6389_v39 = vrot.slane %v6387_v0, 5  ;;  %v6414_v11 = vrot.slane %v6412_v48, 4 }
 0x49b   :  { %v6367_v1 = vrot.slane %v6365_v47, 5  ;;  %v6421_v6 = vshll.u32 %v14869_v7, 16 }
 0x49f   :  { %11559 = vmatmul.mubr.msk.bf16.gmra.mrb[60].mxu0 %vm371_vm7, %v10658_v23  ;;  %v6337_v23 = vshll.u32 %v14837_v46, 16 }
 0x4a0   :  { %11564 = vmatprep.mubr.msk.bf16.mxu0 %vm371_vm7, %v12256_v52  ;;  %v6269_v52 = vld [vmem:[#allocation2 + $0x60] sm:$0xf] }
 0x4a1   :  { %v6398_v38 = vshrl.u32 %v6269_v52, 16  ;;  %v6401_v32 = vshll.u32 %v6269_v52, 16  ;;  %v6339_v29 = vrot.slane %v6337_v23, 5 }
 0x4a3   :  { %v6340_v45 = vsel %vm13010_vm13, %v6335_v9, %v6339_v29  ;;  %v6400_v58 = vrot.slane %v6398_v38, 4  ;;  %v6403_v30 = vrot.slane %v6401_v32, 5  ;;  %v6443_v9 = vshll.u32 %v6275_v35, 16 }
 0x4a5   :  { %v6404_v23 = vor.u32 %v6403_v30, %v6400_v58 }
 0x4a7   :  { %11565 = vmatmul.mubr.msk.bf16.vlgmr.msra.gmra.mrb[48].mxu0 %vm371_vm7, %v12257_v53  ;;  %v6321_v53 = vrot.slane %v6320_v61, 4 }
 0x4a8   :  { %11581 = vmatpush3.bf16.msra.mxu0 %v6559_v62  ;;  %11568 = vmatprep.mubr.msk.bf16.mxu0 %vm371_vm7, %v12258_v55  ;;  %v6358_v62 = vrot.slane %v6356_v28, 4  ;;  %v6361_v55 = vrot.slane %v6359_v40, 5  ;;  %v6273_v28 = vld [vmem:[#allocation2 + $0x70] sm:$0xf]  ;;  %v10683_v40 = vcombine.low %v6298_v25, %v6312_v12  ;;  %v6277_v25 = vld [vmem:[#allocation2 + $0x80] sm:$0xf] }
 0x4a9   :  { %12184 = vmatprep.subr.msk.bf16.mxu0 %vm1155_vm9, %v14820_v37  ;;  %v6426_v52 = vshrl.u32 %v6273_v28, 16  ;;  %v6454_v0 = vshrl.u32 %v6277_v25, 16  ;;  %v6457_v38 = vshll.u32 %v6277_v25, 16 }
 0x4aa   :  { %v6362_v8 = vor.u32 %v6361_v55, %v6358_v62  ;;  %v6429_v55 = vshll.u32 %v6273_v28, 16 }
 0x4ab   :  { %v6428_v12 = vrot.slane %v6426_v52, 4  ;;  %v6459_v58 = vrot.slane %v6457_v38, 5 }
 0x4ac   :  { %v6363_v5 = vrot.slane %v6362_v8, 4  ;;  %v6431_v8 = vrot.slane %v6429_v55, 5 }
 0x4ae   :  { %v6368_v33 = vsel %vm13010_vm13, %v6363_v5, %v6367_v1  ;;  %v14892_v1 = vld [vmem:[#allocation2 + $0x8c] sm:$0x1] }
 0x4af   :  { %11569 = vmatmul.mubr.msk.bf16.gmra.mrb[52].mxu0 %vm371_vm7, %v12259_v16  ;;  %v6415_v16 = vshll.u32 %v6271_v26, 16  ;;  %v6440_v26 = vshrl.u32 %v6275_v35, 16  ;;  %v14888_v35 = vld [vmem:[#allocation2 + $0x7c] sm:$0x1] }
 0x4b0   :  { %11572 = vmatprep.mubr.msk.bf16.mxu0 %vm371_vm7, %v12260_v15  ;;  %v6326_v15 = vsel %vm13010_vm13, %v6321_v53, %v6325_v3  ;;  %v6390_v3 = vor.u32 %v6389_v39, %v6386_v60  ;;  %v6279_v53 = vld [vmem:[#allocation2 + $0x88] sm:$0xf]  ;;  %v6281_v60 = vld [vmem:[#allocation2 + $0x90] sm:$0xf]  ;;  %v6456_v39 = vrot.slane %v6454_v0, 4  ;;  %v6449_v55 = vshll.u32 %v14888_v35, 16 }
 0x4b1   :  { %v6417_v61 = vrot.slane %v6415_v16, 5  ;;  %v10684_v36 = vcombine.low %v6326_v15, %v6340_v45  ;;  %v6468_v32 = vshrl.u32 %v6279_v53, 16  ;;  %v6471_v29 = vshll.u32 %v6279_v53, 16 }
 0x4b2   :  { %v6391_v48 = vrot.slane %v6390_v3, 4  ;;  %v6405_v16 = vrot.slane %v6404_v23, 4  ;;  %v6442_v47 = vrot.slane %v6440_v26, 4  ;;  %v6460_v25 = vor.u32 %v6459_v58, %v6456_v39 }
 0x4b3   :  { %v6418_v62 = vor.u32 %v6417_v61, %v6414_v11  ;;  %v6470_v30 = vrot.slane %v6468_v32, 4  ;;  %v6283_v11 = vld [vmem:[#allocation2 + $0x98] sm:$0xf] }
 0x4b4   :  { %v6396_v28 = vsel %vm13010_vm13, %v6391_v48, %v6395_v27  ;;  %v6496_v3 = vshrl.u32 %v6283_v11, 16  ;;  %v6499_v23 = vshll.u32 %v6283_v11, 16 }
 0x4b5   :  { %v6419_v15 = vrot.slane %v6418_v62, 4 }
 0x4b6   :  { %v6498_v38 = vrot.slane %v6496_v3, 4  ;;  %v6501_v32 = vrot.slane %v6499_v23, 5 }
 0x4b7   :  { %11573 = vmatmul.mubr.msk.bf16.gmra.mrb[56].mxu0 %vm371_vm7, %v12261_v41  ;;  %v6836_v41 = vsel %vm1155_vm9, %v14820_v37, 0  ;;  %v6376_v37 = vor.u32 %v6375_v19, %v6372_v57  ;;  %v6409_v57 = vrot.slane %v6407_v17, 5  ;;  %v6423_v19 = vrot.slane %v6421_v6, 5 }
 0x4b8   :  { %11576 = vmatprep.mubr.msk.bf16.mxu0 %vm371_vm7, %v12262_v44  ;;  %v6354_v44 = vsel %vm13010_vm13, %v6349_v51, %v6353_v49  ;;  %v6381_v51 = vrot.slane %v6379_v10, 5  ;;  %v6473_v49 = vrot.slane %v6471_v29, 5  ;;  %v6482_v10 = vshrl.u32 %v6281_v60, 16 }
 0x4b9   :  { %v6377_v42 = vrot.slane %v6376_v37, 4  ;;  %v10685_v45 = vcombine.low %v6354_v44, %v6368_v33  ;;  %v6410_v5 = vsel %vm13010_vm13, %v6405_v16, %v6409_v57  ;;  %v6424_v20 = vsel %vm13010_vm13, %v6419_v15, %v6423_v19  ;;  %v14890_v44 = vld [vmem:[#allocation2 + $0x84] sm:$0x1] }
 0x4ba   :  { %v6485_v37 = vshll.u32 %v6281_v60, 16  ;;  %v6474_v53 = vor.u32 %v6473_v49, %v6470_v30  ;;  %v6463_v26 = vshll.u32 %v14890_v44, 16  ;;  %v6477_v17 = vshll.u32 %v14892_v1, 16  ;;  %v6674_v30 = vld [vmem:[#allocation2 + $0x10] sm:$0xe] }
 0x4bb   :  { %v6382_v61 = vsel %vm13010_vm13, %v6377_v42, %v6381_v51  ;;  %v6484_v6 = vrot.slane %v6482_v10, 4  ;;  %v6461_v42 = vrot.slane %v6460_v25, 4  ;;  %v6451_v16 = vrot.slane %v6449_v55, 5  ;;  %v6675_v49 = vld [vmem:[#allocation2 + $0x18] sm:$0xe] }
 0x4bc   :  { %v10686_v62 = vcombine.low %v6382_v61, %v6396_v28  ;;  %v6487_v0 = vrot.slane %v6485_v37, 5  ;;  %v6475_v48 = vrot.slane %v6474_v53, 4  ;;  %v6465_v15 = vrot.slane %v6463_v26, 5  ;;  %v6676_v25 = vld [vmem:[#allocation2 + $0x20] sm:$0xe] }
 0x4bd   :  { %v6502_v57 = vor.u32 %v6501_v32, %v6498_v38  ;;  %v10700_v10 = vrot.slane %v6675_v49, 9  ;;  %v6728_v37 = vrot.slane %v14828_v22, 5  ;;  %v6678_v55 = vld [vmem:[#allocation2 + $0x30] sm:$0xe]  ;;  %v6679_v26 = vld [vmem:[#allocation2 + $0x38] sm:$0xe] }
 0x4be   :  { %v6488_v51 = vor.u32 %v6487_v0, %v6484_v6  ;;  %v6466_v60 = vsel %vm13010_vm13, %v6461_v42, %v6465_v15  ;;  %v6736_v6 = vrot.slane %v14837_v46, 5  ;;  %v10703_v0 = vrot.slane %v6678_v55, 9  ;;  %v6683_v15 = vld [vmem:[#allocation2 + $0x68] sm:$0xe]  ;;  %v6689_v55 = vld [vmem:[#allocation2 + $0x98] sm:$0xe] }
 0x4bf   :  { %11577 = vmatmul.mubr.msk.bf16.gmra.mrb[60].mxu0 %vm371_vm7, %v12263_v63  ;;  %v6445_v63 = vrot.slane %v6443_v9, 5  ;;  %v10687_v9 = vcombine.low %v6410_v5, %v6424_v20  ;;  %v6503_v5 = vrot.slane %v6502_v57, 4  ;;  %v6740_v38 = vrot.slane %v14839_v43, 5  ;;  %v6682_v43 = vld [vmem:[#allocation2 + $0x60] sm:$0xe] }
 0x4c0   :  { %11582 = vmatprep.mubr.msk.bf16.mxu0 %vm371_vm7, %v10683_v40  ;;  %v14882_v40 = vld [vmem:[#allocation2 + $0x74] sm:$0x1]  ;;  %v6489_v28 = vrot.slane %v6488_v51, 4  ;;  %v10704_v32 = vrot.slane %v6679_v26, 9  ;;  %v6748_v51 = vrot.slane %v14858_v59, 5 }
 0x4c1   :  { %v6435_v52 = vshll.u32 %v14882_v40, 16  ;;  %v6741_v46 = vsel %vm13281_vm0, %v10703_v0, %v6740_v38  ;;  %v6684_v59 = vld [vmem:[#allocation2 + $0x70] sm:$0xe] }
 0x4c3   :  { %v6437_v29 = vrot.slane %v6435_v52, 5 }
 0x4c7   :  { %11583 = vmatmul.mubr.msk.bf16.vlgmr.msra.gmra.mrb[48].mxu0 %vm371_vm7, %v10684_v36  ;;  %v6432_v36 = vor.u32 %v6431_v8, %v6428_v12  ;;  %v6479_v8 = vrot.slane %v6477_v17, 5 }
 0x4c8   :  { %11599 = vmatpush3.bf16.msra.mxu0 %v6836_v41  ;;  %11586 = vmatprep.mubr.msk.bf16.mxu0 %vm371_vm7, %v10685_v45  ;;  %v6446_v41 = vor.u32 %v6445_v63, %v6442_v47  ;;  %v14902_v47 = vld [vmem:[#allocation2 + $0x94] sm:$0x1]  ;;  %v14904_v63 = vld [vmem:[#allocation2 + $0x9c] sm:$0x1] }
 0x4c9   :  { %v6433_v33 = vrot.slane %v6432_v36, 4  ;;  %v6505_v19 = vshll.u32 %v14904_v63, 16  ;;  %v6480_v39 = vsel %vm13010_vm13, %v6475_v48, %v6479_v8  ;;  %v6491_v58 = vshll.u32 %v14902_v47, 16 }
 0x4ca   :  { %v6447_v27 = vrot.slane %v6446_v41, 4  ;;  %v10689_v61 = vcombine.low %v6466_v60, %v6480_v39  ;;  %v10699_v36 = vrot.slane %v6674_v30, 9  ;;  %v6724_v41 = vrot.slane %v14826_v56, 5  ;;  %v6677_v56 = vld [vmem:[#allocation2 + $0x28] sm:$0xe] }
 0x4cb   :  { %v6438_v12 = vsel %vm13010_vm13, %v6433_v33, %v6437_v29  ;;  %v6507_v20 = vrot.slane %v6505_v19, 5  ;;  %v6493_v3 = vrot.slane %v6491_v58, 5  ;;  %v10702_v17 = vrot.slane %v6677_v56, 9 }
 0x4cc   :  { %v6452_v45 = vsel %vm13010_vm13, %v6447_v27, %v6451_v16  ;;  %v6725_v53 = vsel %vm13281_vm0, %v10699_v36, %v6724_v41  ;;  %v6732_v27 = vrot.slane %v14830_v18, 5  ;;  %v6744_v29 = vrot.slane %v14845_v21, 5  ;;  %v6680_v18 = vld [vmem:[#allocation2 + $0x40] sm:$0xe] }
 0x4cd   :  { %v10688_v11 = vcombine.low %v6438_v12, %v6452_v45  ;;  %v6494_v23 = vsel %vm13010_vm13, %v6489_v28, %v6493_v3  ;;  %v6508_v52 = vsel %vm13010_vm13, %v6503_v5, %v6507_v20  ;;  %v6737_v48 = vsel %vm13281_vm0, %v10702_v17, %v6736_v6  ;;  %v6681_v12 = vld [vmem:[#allocation2 + $0x48] sm:$0xe]  ;;  %v6685_v28 = vld [vmem:[#allocation2 + $0x78] sm:$0xe] }
 0x4ce   :  { %v10690_v22 = vcombine.low %v6494_v23, %v6508_v52  ;;  %v6745_v16 = vsel %vm13281_vm0, %v10704_v32, %v6744_v29  ;;  %v10705_v21 = vrot.slane %v6680_v18, 9  ;;  %v10706_v57 = vrot.slane %v6681_v12, 9  ;;  %v6687_v5 = vld [vmem:[#allocation2 + $0x88] sm:$0xe] }
 0x4cf   :  { %11587 = vmatmul.mubr.msk.bf16.gmra.mrb[52].mxu0 %vm371_vm7, %v10686_v62  ;;  %v6729_v62 = vsel %vm13281_vm0, %v10700_v10, %v6728_v37  ;;  %v10717_v45 = vcombine.low %v6741_v46, %v6745_v16  ;;  %v6752_v19 = vrot.slane %v14856_v50, 5  ;;  %v10707_v60 = vrot.slane %v6682_v43, 9 }
 0x4d0   :  { %11590 = vmatprep.mubr.msk.bf16.mxu0 %vm371_vm7, %v10687_v9  ;;  %v10701_v9 = vrot.slane %v6676_v25, 9  ;;  %v10715_v33 = vcombine.low %v6725_v53, %v6729_v62  ;;  %v6756_v39 = vrot.slane %v14867_v24, 5  ;;  %v10708_v58 = vrot.slane %v6683_v15, 9  ;;  %v6686_v24 = vld [vmem:[#allocation2 + $0x80] sm:$0xe] }
 0x4d1   :  { %v6760_v30 = vrot.slane %v14869_v7, 5  ;;  %v6749_v49 = vsel %vm13281_vm0, %v10705_v21, %v6748_v51  ;;  %v10709_v7 = vrot.slane %v6684_v59, 9  ;;  %v6764_v41 = vrot.slane %v14882_v40, 5  ;;  %v6688_v40 = vld [vmem:[#allocation2 + $0x90] sm:$0xe] }
 0x4d2   :  { %v6733_v42 = vsel %vm13281_vm0, %v10701_v9, %v6732_v27  ;;  %v6757_v50 = vsel %vm13281_vm0, %v10707_v60, %v6756_v39  ;;  %v10710_v10 = vrot.slane %v6685_v28, 9  ;;  %v6768_v37 = vrot.slane %v14888_v35, 5 }
 0x4d3   :  { %v10716_v8 = vcombine.low %v6733_v42, %v6737_v48  ;;  %v10711_v3 = vrot.slane %v6686_v24, 9  ;;  %v6772_v23 = vrot.slane %v14890_v44, 5  ;;  %v10712_v52 = vrot.slane %v6687_v5, 9 }
 0x4d4   :  { %v6776_v25 = vrot.slane %v14892_v1, 5  ;;  %v6765_v53 = vsel %vm13281_vm0, %v10709_v7, %v6764_v41  ;;  %v6769_v62 = vsel %vm13281_vm0, %v10710_v10, %v6768_v37  ;;  %v10713_v26 = vrot.slane %v6688_v40, 9 }
 0x4d5   :  { %v6773_v35 = vsel %vm13281_vm0, %v10711_v3, %v6772_v23  ;;  %v10720_v44 = vcombine.low %v6765_v53, %v6769_v62  ;;  %v6780_v1 = vrot.slane %v14902_v47, 5  ;;  %v10714_v9 = vrot.slane %v6689_v55, 9 }
 0x4d6   :  { %v6777_v56 = vsel %vm13281_vm0, %v10712_v52, %v6776_v25 }
 0x4d7   :  { %11591 = vmatmul.mubr.msk.bf16.gmra.mrb[56].mxu0 %vm371_vm7, %v10688_v11  ;;  %v6753_v11 = vsel %vm13281_vm0, %v10706_v57, %v6752_v19  ;;  %v6781_v27 = vsel %vm13281_vm0, %v10713_v26, %v6780_v1 }
 0x4d8   :  { %11594 = vmatprep.mubr.msk.bf16.mxu0 %vm371_vm7, %v10689_v61  ;;  %v6761_v61 = vsel %vm13281_vm0, %v10708_v58, %v6760_v30  ;;  %v10718_v20 = vcombine.low %v6749_v49, %v6753_v11 }
 0x4d9   :  { %v10719_v36 = vcombine.low %v6757_v50, %v6761_v61 }
 0x4df   :  { %11595 = vmatmul.mubr.msk.bf16.gmra.mrb[60].mxu0 %vm371_vm7, %v10690_v22  ;;  %v10721_v22 = vcombine.low %v6773_v35, %v6777_v56 }
 0x4e0   :  { %11600 = vmatprep.mubr.msk.bf16.mxu0 %vm371_vm7, %v10715_v33  ;;  %v6784_v33 = vrot.slane %v14904_v63, 5 }
 0x4e2   :  { %v6785_v17 = vsel %vm13281_vm0, %v10714_v9, %v6784_v33 }
 0x4e3   :  { %v10722_v6 = vcombine.low %v6781_v27, %v6785_v17  ;;  %v15001_v17 = vld [vmem:[%s16135_s6] sm:$0xf] }
 0x4e7   :  { %11601 = vmatmul.mubr.msk.bf16.vlgmr.msra.gmra.mrb[48].mxu0 %vm371_vm7, %v10716_v8 }
 0x4e8   :  { %11604 = vmatprep.mubr.msk.bf16.mxu0 %vm371_vm7, %v10717_v45 }
 0x4ef   :  { %11605 = vmatmul.mubr.msk.bf16.gmra.mrb[52].mxu0 %vm371_vm7, %v10718_v20 }
 0x4f0   :  { %11608 = vmatprep.mubr.msk.bf16.mxu0 %vm371_vm7, %v10719_v36 }
 0x4f7   :  { %11609 = vmatmul.mubr.msk.bf16.gmra.mrb[56].mxu0 %vm371_vm7, %v10720_v44  ;;  %v7680_v44 = vld [vmem:[%s16135_s6 + $0x4] sm:$0xf] }
 0x4f8   :  { %11612 = vmatprep.mubr.msk.bf16.mxu0 %vm371_vm7, %v10721_v22  ;;  %12185 = vmatprep.subr.msk.bf16.mxu1 %vm1155_vm9, %v7680_v44  ;;  %v7730_v26 = vsel %vm1155_vm9, %v7680_v44, 0 }
 0x4f9   :  { %11617 = vmatpush3.bf16.msra.mxu1 %v7730_v26 }
 0x4fa   :  { %12186 = vmatprep.subr.msk.bf16.mxu1 %vm1155_vm9, %v15001_v17 }
 0x4ff   :  { %11613 = vmatmul.mubr.msk.bf16.gmra.mrb[60].mxu0 %vm371_vm7, %v10722_v6 }
 0x5ba   :  { %v11602_v0 = vpop.f32.mrb[48].mxu0 }
 0x5bb   :  { %v6872_v38 = vpop.f32.mrb[49].mxu0  ;;  %v6956_v48 = vsel %vm371_vm7, %v11602_v0, 0.0 }
 0x5bc   :  { %v11603_v32 = vpop.f32.mrb[50].mxu0  ;;  %v6953_v29 = vsel %vm371_vm7, %v6872_v38, 0.0 }
 0x5bd   :  { %v6875_v47 = vpop.f32.mrb[51].mxu0  ;;  %v6958_v46 = vsel %vm371_vm7, %v11603_v32, 0.0 }
 0x5be   :  { %v6954_v63 = vsel %vm371_vm7, %v6875_v47, 0.0 }
 0x5bf   :  { %v6955_v42 = vadd.f32 %v6954_v63, %v6953_v29 }
 0x5c1   :  { %v6957_v18 = vadd.f32 %v6956_v48, %v6955_v42 }
 0x5c2   :  { %v11606_v16 = vpop.f32.mrb[52].mxu0 }
 0x5c3   :  { %v6888_v12 = vpop.f32.mrb[53].mxu0  ;;  %v6959_v43 = vadd.f32 %v6958_v46, %v6957_v18  ;;  %v6964_v19 = vsel %vm371_vm7, %v11606_v16, 0.0 }
 0x5c4   :  { %v6960_v15 = vsel %vm371_vm7, %v6888_v12, 0.0  ;;  %v11607_v8 = vpop.f32.mrb[54].mxu0 }
 0x5c5   :  { %v6961_v21 = vadd.f32 %v6960_v15, %v6959_v43  ;;  %v6891_v45 = vpop.f32.mrb[55].mxu0  ;;  %v6966_v39 = vsel %vm371_vm7, %v11607_v8, 0.0 }
 0x5c6   :  { %v6962_v51 = vsel %vm371_vm7, %v6891_v45, 0.0 }
 0x5c7   :  { %v6963_v57 = vadd.f32 %v6962_v51, %v6961_v21 }
 0x5c9   :  { %v6965_v60 = vadd.f32 %v6964_v19, %v6963_v57 }
 0x5ca   :  { %v11610_v58 = vpop.f32.mrb[56].mxu0 }
 0x5cb   :  { %v6904_v30 = vpop.f32.mrb[57].mxu0  ;;  %v6967_v49 = vadd.f32 %v6966_v39, %v6965_v60  ;;  %v6972_v5 = vsel %vm371_vm7, %v11610_v58, 0.0 }
 0x5cc   :  { %v6968_v11 = vsel %vm371_vm7, %v6904_v30, 0.0  ;;  %v11611_v59 = vpop.f32.mrb[58].mxu0 }
 0x5cd   :  { %v6969_v50 = vadd.f32 %v6968_v11, %v6967_v49  ;;  %v6907_v61 = vpop.f32.mrb[59].mxu0  ;;  %v6974_v7 = vsel %vm371_vm7, %v11611_v59, 0.0 }
 0x5ce   :  { %v6970_v28 = vsel %vm371_vm7, %v6907_v61, 0.0 }
 0x5cf   :  { %v6971_v24 = vadd.f32 %v6970_v28, %v6969_v50 }
 0x5d1   :  { %v6973_v20 = vadd.f32 %v6972_v5, %v6971_v24 }
 0x5d2   :  { %v11614_v36 = vpop.f32.mrb[60].mxu0 }
 0x5d3   :  { %v6920_v41 = vpop.f32.mrb[61].mxu0  ;;  %v6975_v10 = vadd.f32 %v6974_v7, %v6973_v20  ;;  %v6980_v62 = vsel %vm371_vm7, %v11614_v36, 0.0 }
 0x5d4   :  { %v6976_v37 = vsel %vm371_vm7, %v6920_v41, 0.0  ;;  %v11615_v3 = vpop.f32.mrb[62].mxu0 }
 0x5d5   :  { %v6977_v23 = vadd.f32 %v6976_v37, %v6975_v10  ;;  %v6923_v52 = vpop.f32.mrb[63].mxu0  ;;  %v6982_v35 = vsel %vm371_vm7, %v11615_v3, 0.0 }
 0x5d6   :  { %v6978_v25 = vsel %vm371_vm7, %v6923_v52, 0.0 }
 0x5d7   :  { %v6979_v53 = vadd.f32 %v6978_v25, %v6977_v23 }
 0x5d9   :  { %v6981_v40 = vadd.f32 %v6980_v62, %v6979_v53 }
 0x5db   :  { %v6983_v56 = vadd.f32 %v6982_v35, %v6981_v40 }
 0x5dd   :  { %v6984_v55 = vrot.slane %v6983_v56, 4 }
 0x5df   :  { %v6985_v22 = vadd.f32 %v6984_v55, %v6983_v56 }
 0x5e1   :  { %v6986_v1 = vrot.slane %v6985_v22, 2 }
 0x5e3   :  { %v6987_v9 = vadd.f32 %v6986_v1, %v6985_v22 }
 0x5e5   :  { %v6988_v33 = vrot.slane %v6987_v9, 1 }
 0x5e7   :  { %v6989_v27 = vadd.f32 %v6988_v33, %v6987_v9 }
 0x5e9   :  { %v6990_v6 = vmul.f32 0.0078125, %v6989_v27 }
 0x5eb   :  { %v15005_v29 = vsub.f32 %v6872_v38, %v6990_v6  ;;  %v15007_v63 = vsub.f32 %v6875_v47, %v6990_v6  ;;  %v15009_v42 = vsub.f32 %v11602_v0, %v6990_v6  ;;  %v15011_v48 = vsub.f32 %v11603_v32, %v6990_v6 }
 0x5ec   :  { %v15013_v18 = vsub.f32 %v6888_v12, %v6990_v6  ;;  %v15015_v46 = vsub.f32 %v6891_v45, %v6990_v6  ;;  %v15017_v43 = vsub.f32 %v11606_v16, %v6990_v6  ;;  %v15019_v15 = vsub.f32 %v11607_v8, %v6990_v6 }
 0x5ed   :  { %v15021_v21 = vsub.f32 %v6904_v30, %v6990_v6  ;;  %v15023_v51 = vsub.f32 %v6907_v61, %v6990_v6  ;;  %v15025_v38 = vsub.f32 %v11610_v58, %v6990_v6  ;;  %v15027_v47 = vsub.f32 %v11611_v59, %v6990_v6 }
 0x5ee   :  { %v15029_v0 = vsub.f32 %v6920_v41, %v6990_v6  ;;  %v15031_v32 = vsub.f32 %v6923_v52, %v6990_v6  ;;  %v15033_v12 = vsub.f32 %v11614_v36, %v6990_v6  ;;  %v15035_v45 = vsub.f32 %v11615_v3, %v6990_v6 }
 0x5ef   :  { %v7007_v16 = vmul.f32 %v15005_v29, %v15005_v29  ;;  %v7008_v8 = vmul.f32 %v15007_v63, %v15007_v63  ;;  %v7009_v57 = vmul.f32 %v15009_v42, %v15009_v42  ;;  %v7010_v19 = vmul.f32 %v15011_v48, %v15011_v48 }
 0x5f0   :  { %v7011_v30 = vmul.f32 %v15013_v18, %v15013_v18  ;;  %v7012_v59 = vmul.f32 %v15015_v46, %v15015_v46  ;;  %v7013_v28 = vmul.f32 %v15017_v43, %v15017_v43  ;;  %v7014_v20 = vmul.f32 %v15019_v15, %v15019_v15 }
 0x5f1   :  { %v7023_v60 = vsel %vm371_vm7, %v7007_v16, 0.0  ;;  %v7024_v39 = vsel %vm371_vm7, %v7008_v8, 0.0  ;;  %v7026_v49 = vsel %vm371_vm7, %v7009_v57, 0.0  ;;  %v7028_v50 = vsel %vm371_vm7, %v7010_v19, 0.0 }
 0x5f2   :  { %v7025_v58 = vadd.f32 %v7024_v39, %v7023_v60  ;;  %v7030_v24 = vsel %vm371_vm7, %v7011_v30, 0.0  ;;  %v7032_v7 = vsel %vm371_vm7, %v7012_v59, 0.0  ;;  %v7015_v41 = vmul.f32 %v15021_v21, %v15021_v21 }
 0x5f3   :  { %v7034_v10 = vsel %vm371_vm7, %v7013_v28, 0.0  ;;  %v7016_v3 = vmul.f32 %v15023_v51, %v15023_v51  ;;  %v7036_v23 = vsel %vm371_vm7, %v7014_v20, 0.0  ;;  %v7017_v25 = vmul.f32 %v15025_v38, %v15025_v38  ;;  %v7431_v20 = vld [vmem:[#allocation2 + $0x50] sm:$0xf] }
 0x5f4   :  { %v7027_v11 = vadd.f32 %v7026_v49, %v7025_v58  ;;  %v7038_v53 = vsel %vm371_vm7, %v7015_v41, 0.0  ;;  %v7018_v40 = vmul.f32 %v15027_v47, %v15027_v47  ;;  %v7019_v55 = vmul.f32 %v15029_v0, %v15029_v0 }
 0x5f5   :  { %v7040_v35 = vsel %vm371_vm7, %v7016_v3, 0.0  ;;  %v7042_v44 = vsel %vm371_vm7, %v7017_v25, 0.0  ;;  %v7020_v22 = vmul.f32 %v15031_v32, %v15031_v32  ;;  %v7021_v33 = vmul.f32 %v15033_v12, %v15033_v12  ;;  %v6951_v25 = vld [vmem:[%s16136_s7 + $0x6] sm:$0x1] }
 0x5f6   :  { %v7029_v61 = vadd.f32 %v7028_v50, %v7027_v11  ;;  %v7044_v1 = vsel %vm371_vm7, %v7018_v40, 0.0  ;;  %v7046_v27 = vsel %vm371_vm7, %v7019_v55, 0.0  ;;  %v7022_v16 = vmul.f32 %v15035_v45, %v15035_v45 }
 0x5f7   :  { %v7048_v8 = vsel %vm371_vm7, %v7020_v22, 0.0  ;;  %v7050_v19 = vsel %vm371_vm7, %v7021_v33, 0.0  ;;  %v7569_v41 = vshrl.u32 %v7431_v20, 16 }
 0x5f8   :  { %v7031_v5 = vadd.f32 %v7030_v24, %v7029_v61  ;;  %v7052_v39 = vsel %vm371_vm7, %v7022_v16, 0.0 }
 0x5fa   :  { %v7033_v36 = vadd.f32 %v7032_v7, %v7031_v5  ;;  %v15085_v5 = vld [vmem:[#allocation2] sm:$0xf] }
 0x5fb   :  { %v7457_v7 = vshrl.u32 %v15085_v5, 16 }
 0x5fc   :  { %v7035_v37 = vadd.f32 %v7034_v10, %v7033_v36  ;;  %v7460_v36 = vshll.u32 %v15085_v5, 16  ;;  %v7572_v10 = vshll.u32 %v7431_v20, 16 }
 0x5fe   :  { %v7037_v52 = vadd.f32 %v7036_v23, %v7035_v37  ;;  %v7459_v37 = vrot.slane %v7457_v7, 4  ;;  %v7462_v3 = vrot.slane %v7460_v36, 5  ;;  %v7571_v23 = vrot.slane %v7569_v41, 4 }
 0x600   :  { %v7039_v62 = vadd.f32 %v7038_v53, %v7037_v52  ;;  %v7574_v52 = vrot.slane %v7572_v10, 5  ;;  %v7440_v53 = vld [vmem:[#allocation2 + $0x4] sm:$0x1] }
 0x602   :  { %v7041_v56 = vadd.f32 %v7040_v35, %v7039_v62  ;;  %v7448_v62 = vld [vmem:[#allocation2 + $0x54] sm:$0x1]  ;;  %v7463_v35 = vor.u32 %v7462_v3, %v7459_v37  ;;  %v7575_v55 = vor.u32 %v7574_v52, %v7571_v23 }
 0x604   :  { %v7043_v26 = vadd.f32 %v7042_v44, %v7041_v56  ;;  %v7466_v56 = vshll.u32 %v7440_v53, 16  ;;  %v7578_v44 = vshll.u32 %v7448_v62, 16  ;;  %v15097_v33 = vrot.slane %v7575_v55, 4 }
 0x606   :  { %v7045_v9 = vadd.f32 %v7044_v1, %v7043_v26  ;;  %v15093_v1 = vrot.slane %v7463_v35, 4 }
 0x608   :  { %v7047_v6 = vadd.f32 %v7046_v27, %v7045_v9  ;;  %v15095_v9 = vrot.slane %v7466_v56, 5  ;;  %v15099_v27 = vrot.slane %v7578_v44, 5 }
 0x60a   :  { %v7049_v57 = vadd.f32 %v7048_v8, %v7047_v6 }
 0x60c   :  { %v7051_v60 = vadd.f32 %v7050_v19, %v7049_v57  ;;  %v10731_v19 = vld [vmem:[%s16136_s7 + $0x7] ss:$0 sm:$0xff] }
 0x60e   :  { %v7053_v58 = vadd.f32 %v7052_v39, %v7051_v60 }
 0x610   :  { %v7054_v30 = vrot.slane %v7053_v58, 4 }
 0x612   :  { %v7055_v49 = vadd.f32 %v7054_v30, %v7053_v58 }
 0x614   :  { %v7056_v11 = vrot.slane %v7055_v49, 2 }
 0x616   :  { %v7057_v59 = vadd.f32 %v7056_v11, %v7055_v49 }
 0x618   :  { %v7058_v50 = vrot.slane %v7057_v59, 1 }
 0x61a   :  { %v7059_v61 = vadd.f32 %v7058_v50, %v7057_v59 }
 0x61c   :  { %v7060_v28 = vmul.f32 0.0078125, %v7059_v61 }
 0x61e   :  { %v7061_v24 = vadd.f32 1e-05, %v7060_v28 }
 0x620   :  { %12294 = vrsqrt.f32 %v7061_v24 }
 0x62a   :  { %v12295_v40 = vpop.eup %12294 }
 0x62b   :  { %v7063_v26 = vmul.f32 %v12295_v40, %v6951_v25 }
 0x62d   :  { %v7067_v22 = vrot.slane %v7063_v26, %v16219_v4 }
 0x62f   :  { %v7068_v6 = vmul.f32 %v7067_v22, %v15005_v29  ;;  %v7069_v16 = vmul.f32 %v7067_v22, %v15007_v63  ;;  %v7070_v8 = vmul.f32 %v7067_v22, %v15009_v42  ;;  %v7071_v57 = vmul.f32 %v7067_v22, %v15011_v48 }
 0x630   :  { %v7072_v60 = vmul.f32 %v7067_v22, %v15013_v18  ;;  %v7073_v39 = vmul.f32 %v7067_v22, %v15015_v46  ;;  %v7074_v58 = vmul.f32 %v7067_v22, %v15017_v43  ;;  %v7075_v30 = vmul.f32 %v7067_v22, %v15019_v15 }
 0x631   :  { %v7076_v29 = vmul.f32 %v7067_v22, %v15021_v21  ;;  %v7077_v63 = vmul.f32 %v7067_v22, %v15023_v51  ;;  %v7078_v42 = vmul.f32 %v7067_v22, %v15025_v38  ;;  %v7079_v48 = vmul.f32 %v7067_v22, %v15027_v47 }
 0x632   :  { %v7080_v49 = vmul.f32 %v7067_v22, %v15029_v0  ;;  %v7081_v11 = vmul.f32 %v7067_v22, %v15031_v32  ;;  %v7082_v18 = vmul.f32 %v7067_v22, %v15033_v12  ;;  %v7083_v46 = vmul.f32 %v7067_v22, %v15035_v45 }
 0x633   :  { %v7088_v59 = vadd.f32 %v10731_v19, %v7068_v6  ;;  %v7089_v43 = vadd.f32 %v10731_v19, %v7069_v16  ;;  %v7090_v50 = vadd.f32 %v10731_v19, %v7070_v8  ;;  %v7091_v15 = vadd.f32 %v10731_v19, %v7071_v57 }
 0x634   :  { %v7092_v61 = vadd.f32 %v10731_v19, %v7072_v60  ;;  %v7093_v21 = vadd.f32 %v10731_v19, %v7073_v39  ;;  %v7094_v28 = vadd.f32 %v10731_v19, %v7074_v58  ;;  %v7095_v51 = vadd.f32 %v10731_v19, %v7075_v30 }
 0x635   :  { %v7096_v24 = vadd.f32 %v10731_v19, %v7076_v29  ;;  %v7097_v38 = vadd.f32 %v10731_v19, %v7077_v63  ;;  %v7098_v20 = vadd.f32 %v10731_v19, %v7078_v42  ;;  %v7099_v47 = vadd.f32 %v10731_v19, %v7079_v48 }
 0x636   :  { %v7100_v7 = vadd.f32 %v10731_v19, %v7080_v49  ;;  %v7101_v0 = vadd.f32 %v10731_v19, %v7081_v11  ;;  %v7102_v36 = vadd.f32 %v10731_v19, %v7082_v18  ;;  %v7103_v32 = vadd.f32 %v10731_v19, %v7083_v46 }
 0x637   :  { %v7104_v41 = vmax.f32 %v7088_v59, 0.0  ;;  %v7105_v12 = vmax.f32 %v7089_v43, 0.0  ;;  %v7106_v10 = vmax.f32 %v7090_v50, 0.0  ;;  %v7107_v45 = vmax.f32 %v7091_v15, 0.0 }
 0x638   :  { %v7108_v37 = vmax.f32 %v7092_v61, 0.0  ;;  %v7109_v3 = vmax.f32 %v7093_v21, 0.0  ;;  %v7110_v23 = vmax.f32 %v7094_v28, 0.0  ;;  %v7111_v52 = vmax.f32 %v7095_v51, 0.0 }
 0x639   :  { %v7112_v25 = vmax.f32 %v7096_v24, 0.0  ;;  %v7113_v53 = vmax.f32 %v7097_v38, 0.0  ;;  %v7114_v62 = vmax.f32 %v7098_v20, 0.0  ;;  %v7115_v40 = vmax.f32 %v7099_v47, 0.0 }
 0x63a   :  { %v7116_v35 = vmax.f32 %v7100_v7, 0.0  ;;  %v7117_v56 = vmax.f32 %v7101_v0, 0.0  ;;  %v7118_v55 = vmax.f32 %v7102_v36, 0.0  ;;  %v7119_v44 = vmax.f32 %v7103_v32, 0.0 }
 0x63b   :  { %v10973_v26 = vpack.c.bf16 %v7104_v41, %v7104_v41  ;;  %v10974_v22 = vpack.c.bf16 %v7105_v12, %v7105_v12  ;;  %v10975_v6 = vpack.c.bf16 %v7106_v10, %v7106_v10  ;;  %v10976_v16 = vpack.c.bf16 %v7107_v45, %v7107_v45 }
 0x63c   :  { %v10977_v8 = vpack.c.bf16 %v7108_v37, %v7108_v37  ;;  %v10978_v57 = vpack.c.bf16 %v7109_v3, %v7109_v3  ;;  %v10979_v19 = vpack.c.bf16 %v7110_v23, %v7110_v23  ;;  %v10980_v60 = vpack.c.bf16 %v7111_v52, %v7111_v52 }
 0x63d   :  { %v10981_v39 = vpack.c.bf16 %v7112_v25, %v7112_v25  ;;  %v15120_v58 = vpack.c.bf16 %v7113_v53, %v7113_v53  ;;  %v15122_v30 = vpack.c.bf16 %v7114_v62, %v7114_v62  ;;  %v15124_v29 = vpack.c.bf16 %v7115_v40, %v7115_v40 }
 0x63e   :  { %v15126_v63 = vpack.c.bf16 %v7116_v35, %v7116_v35  ;;  %v15128_v42 = vpack.c.bf16 %v7117_v56, %v7117_v56  ;;  %v15130_v48 = vpack.c.bf16 %v7118_v55, %v7118_v55  ;;  %v15132_v49 = vpack.c.bf16 %v7119_v44, %v7119_v44  ;;  %v7369_v55 = vld [vmem:[#allocation2 + $0x40] sm:$0xf] }
 0x63f   :  { %v7169_v11 = vshrl.u32 %v10973_v26, 16  ;;  %v7172_v18 = vshll.u32 %v10973_v26, 16  ;;  %v7177_v46 = vshrl.u32 %v10974_v22, 16  ;;  %v7180_v59 = vshll.u32 %v10974_v22, 16 }
 0x640   :  { %v7185_v43 = vshrl.u32 %v10975_v6, 16  ;;  %v7188_v50 = vshll.u32 %v10975_v6, 16  ;;  %v7193_v15 = vshrl.u32 %v10976_v16, 16  ;;  %v7196_v61 = vshll.u32 %v10976_v16, 16 }
 0x641   :  { %v15134_v21 = vrot.slane %v7169_v11, 7  ;;  %v15136_v28 = vrot.slane %v7177_v46, 7  ;;  %v7201_v51 = vshrl.u32 %v10977_v8, 16  ;;  %v7204_v24 = vshll.u32 %v10977_v8, 16 }
 0x642   :  { %v15138_v38 = vrot.slane %v7185_v43, 7  ;;  %v15140_v20 = vrot.slane %v7193_v15, 7  ;;  %v7209_v47 = vshrl.u32 %v10978_v57, 16  ;;  %v7212_v7 = vshll.u32 %v10978_v57, 16 }
 0x643   :  { %v15143_v0 = vor.u32 %v7172_v18, %v15134_v21  ;;  %v7175_v36 = vrot.slane %v15134_v21, 4  ;;  %v15147_v32 = vor.u32 %v7180_v59, %v15136_v28  ;;  %v7183_v41 = vrot.slane %v15136_v28, 4  ;;  %v7345_v59 = vld [vmem:[#allocation2 + $0x20] sm:$0xf]  ;;  %v7348_v18 = vld [vmem:[#allocation2 + $0x24] sm:$0x1] }
 0x644   :  { %v15151_v12 = vor.u32 %v7188_v50, %v15138_v38  ;;  %v7191_v10 = vrot.slane %v15138_v38, 4  ;;  %v15155_v45 = vor.u32 %v7196_v61, %v15140_v20  ;;  %v7199_v37 = vrot.slane %v15140_v20, 4  ;;  %v7363_v28 = vld [vmem:[#allocation2 + $0x38] sm:$0xf] }
 0x645   :  { %v15158_v3 = vrot.slane %v7201_v51, 7  ;;  %v15160_v23 = vrot.slane %v7209_v47, 7  ;;  %v7217_v52 = vshrl.u32 %v10979_v19, 16  ;;  %v7220_v25 = vshll.u32 %v10979_v19, 16 }
 0x646   :  { %v7225_v53 = vshrl.u32 %v10980_v60, 16  ;;  %v7228_v62 = vshll.u32 %v10980_v60, 16  ;;  %v7233_v40 = vshrl.u32 %v10981_v39, 16  ;;  %v7236_v35 = vshll.u32 %v10981_v39, 16 }
 0x647   :  { %v15163_v56 = vor.u32 %v7204_v24, %v15158_v3  ;;  %v15167_v44 = vor.u32 %v7212_v7, %v15160_v23  ;;  %v15170_v22 = vrot.slane %v7217_v52, 7  ;;  %v7241_v8 = vshrl.u32 %v15120_v58, 16 }
 0x648   :  { %v15172_v6 = vrot.slane %v7225_v53, 7  ;;  %v15174_v16 = vrot.slane %v7233_v40, 7  ;;  %v7244_v57 = vshll.u32 %v15120_v58, 16  ;;  %v7249_v19 = vshrl.u32 %v15122_v30, 16  ;;  %v12304_v58 = vld [vmem:[#allocation2 + $0x8] sm:$0xf] }
 0x649   :  { %v7252_v60 = vshll.u32 %v15122_v30, 16  ;;  %v7257_v39 = vshrl.u32 %v15124_v29, 16  ;;  %v15182_v11 = vor.u32 %v7220_v25, %v15170_v22  ;;  %v15193_v50 = vrot.slane %v7241_v8, 7  ;;  %v7336_v25 = vld [vmem:[#allocation2 + $0x14] sm:$0x1] }
 0x64a   :  { %v15186_v46 = vor.u32 %v7228_v62, %v15172_v6  ;;  %v15190_v43 = vor.u32 %v7236_v35, %v15174_v16  ;;  %v15195_v30 = vrot.slane %v7249_v19, 7  ;;  %v7260_v61 = vshll.u32 %v15124_v29, 16 }
 0x64b   :  { %v15197_v15 = vrot.slane %v7257_v39, 7  ;;  %v7265_v51 = vshrl.u32 %v15126_v63, 16  ;;  %v7268_v24 = vshll.u32 %v15126_v63, 16  ;;  %v15203_v47 = vor.u32 %v7244_v57, %v15193_v50  ;;  %v7330_v63 = vld [vmem:[#allocation2 + $0xc] sm:$0x1] }
 0x64c   :  { %v15207_v52 = vor.u32 %v7252_v60, %v15195_v30  ;;  %v7273_v40 = vshrl.u32 %v15128_v42, 16  ;;  %v7276_v35 = vshll.u32 %v15128_v42, 16  ;;  %v7281_v8 = vshrl.u32 %v15130_v48, 16  ;;  %v7333_v60 = vld [vmem:[#allocation2 + $0x10] sm:$0xf] }
 0x64d   :  { %v15211_v53 = vor.u32 %v7260_v61, %v15197_v15  ;;  %v15214_v29 = vrot.slane %v7265_v51, 7  ;;  %v7284_v57 = vshll.u32 %v15130_v48, 16  ;;  %v7289_v19 = vshrl.u32 %v15132_v49, 16  ;;  %v7339_v61 = vld [vmem:[#allocation2 + $0x18] sm:$0xf] }
 0x64e   :  { %v15225_v62 = vrot.slane %v7273_v40, 7  ;;  %v7292_v51 = vshll.u32 %v15132_v49, 16  ;;  %v15228_v7 = vrot.slane %v7281_v8, 7  ;;  %v7328_v48 = vsel %vm12842_vm10, %v15143_v0, %v12304_v58  ;;  %v7342_v40 = vld [vmem:[#allocation2 + $0x1c] sm:$0x1] }
 0x64f   :  { %v15222_v39 = vor.u32 %v7268_v24, %v15214_v29  ;;  %v15230_v42 = vrot.slane %v7289_v19, 7  ;;  %v7331_v24 = vsel %vm12425_vm4, %v7175_v36, %v7330_v63  ;;  %v7334_v19 = vsel %vm12842_vm10, %v15147_v32, %v7333_v60  ;;  %v7351_v0 = vld [vmem:[#allocation2 + $0x28] sm:$0xf]  ;;  %v7354_v36 = vld [vmem:[#allocation2 + $0x2c] sm:$0x1] }
 0x650   :  { %v15240_v49 = vor.u32 %v7276_v35, %v15225_v62  ;;  %v7337_v21 = vsel %vm12425_vm4, %v7183_v41, %v7336_v25  ;;  %v7357_v58 = vld [vmem:[#allocation2 + $0x30] sm:$0xf]  ;;  %v7360_v63 = vld [vmem:[#allocation2 + $0x34] sm:$0x1]  ;;  %7329 = vst [vmem:[#allocation2 + $0x8] sm:$0xf] %v7328_v48  ;;  %v15251_v35 = vor.u32 %v7284_v57, %v15228_v7  ;;  %v7340_v25 = vsel %vm12842_vm10, %v15151_v12, %v7339_v61 }
 0x651   :  { %7332 = vst [vmem:[#allocation2 + $0xc] sm:$0x1] %v7331_v24  ;;  %v7287_v8 = vrot.slane %v15228_v7, 4  ;;  %v15255_v26 = vor.u32 %v7292_v51, %v15230_v42  ;;  %v7295_v32 = vrot.slane %v15230_v42, 4  ;;  %v7366_v60 = vld [vmem:[#allocation2 + $0x3c] sm:$0x1]  ;;  %v7343_v57 = vsel %vm12425_vm4, %v7191_v10, %v7342_v40 }
 0x652   :  { %v7372_v41 = vld [vmem:[#allocation2 + $0x44] sm:$0x1]  ;;  %7335 = vst [vmem:[#allocation2 + $0x10] sm:$0xf] %v7334_v19  ;;  %7338 = vst [vmem:[#allocation2 + $0x14] sm:$0x1] %v7337_v21  ;;  %v7346_v51 = vsel %vm12842_vm10, %v15155_v45, %v7345_v59  ;;  %v7349_v48 = vsel %vm12425_vm4, %v7199_v37, %v7348_v18  ;;  %v7352_v12 = vsel %vm12842_vm10, %v15163_v56, %v7351_v0 }
 0x653   :  { %v7375_v24 = vld [vmem:[#allocation2 + $0x58] sm:$0xf]  ;;  %v7378_v19 = vld [vmem:[#allocation2 + $0x5c] sm:$0x1]  ;;  %v7381_v21 = vld [vmem:[#allocation2 + $0x60] sm:$0xf]  ;;  %v7358_v45 = vsel %vm12842_vm10, %v15167_v44, %v7357_v58  ;;  %v7469_v42 = vsel %vm13010_vm13, %v15093_v1, %v15095_v9 }
 0x654   :  { %v16251_v38 = vrot.slane %v15158_v3, 4  ;;  %v16252_v20 = vrot.slane %v15160_v23, 4  ;;  %v7384_v18 = vld [vmem:[#allocation2 + $0x64] sm:$0x1]  ;;  %v7387_v59 = vld [vmem:[#allocation2 + $0x68] sm:$0xf]  ;;  %v7364_v3 = vsel %vm12842_vm10, %v15182_v11, %v7363_v28  ;;  %v7370_v23 = vsel %vm12842_vm10, %v15186_v46, %v7369_v55 }
 0x655   :  { %v7390_v61 = vld [vmem:[#allocation2 + $0x6c] sm:$0x1]  ;;  %7341 = vst [vmem:[#allocation2 + $0x18] sm:$0xf] %v7340_v25  ;;  %7344 = vst [vmem:[#allocation2 + $0x1c] sm:$0x1] %v7343_v57 }
 0x656   :  { %v7355_v10 = vsel %vm12425_vm4, %v16251_v38, %v7354_v36  ;;  %v7361_v37 = vsel %vm12425_vm4, %v16252_v20, %v7360_v63  ;;  %7347 = vst [vmem:[#allocation2 + $0x20] sm:$0xf] %v7346_v51  ;;  %7350 = vst [vmem:[#allocation2 + $0x24] sm:$0x1] %v7349_v48  ;;  %v16253_v56 = vrot.slane %v15170_v22, 4  ;;  %v16254_v40 = vrot.slane %v15172_v6, 4 }
 0x657   :  { %v7393_v36 = vld [vmem:[#allocation2 + $0x70] sm:$0xf]  ;;  %v7396_v58 = vld [vmem:[#allocation2 + $0x74] sm:$0x1]  ;;  %v7399_v63 = vld [vmem:[#allocation2 + $0x78] sm:$0xf]  ;;  %v7376_v22 = vsel %vm12842_vm10, %v15190_v43, %v7375_v24  ;;  %v7382_v6 = vsel %vm12842_vm10, %v15203_v47, %v7381_v21 }
 0x658   :  { %v7367_v44 = vsel %vm12425_vm4, %v16253_v56, %v7366_v60  ;;  %v7373_v0 = vsel %vm12425_vm4, %v16254_v40, %v7372_v41  ;;  %7353 = vst [vmem:[#allocation2 + $0x28] sm:$0xf] %v7352_v12  ;;  %7356 = vst [vmem:[#allocation2 + $0x2c] sm:$0x1] %v7355_v10  ;;  %v16255_v11 = vrot.slane %v15174_v16, 4  ;;  %v16256_v46 = vrot.slane %v15193_v50, 4 }
 0x659   :  { %7359 = vst [vmem:[#allocation2 + $0x30] sm:$0xf] %v7358_v45  ;;  %7362 = vst [vmem:[#allocation2 + $0x34] sm:$0x1] %v7361_v37  ;;  %v7402_v60 = vld [vmem:[#allocation2 + $0x7c] sm:$0x1]  ;;  %v7388_v16 = vsel %vm12842_vm10, %v15207_v52, %v7387_v59  ;;  %v7394_v50 = vsel %vm12842_vm10, %v15211_v53, %v7393_v36 }
 0x65a   :  { %v7379_v55 = vsel %vm12425_vm4, %v16255_v11, %v7378_v19  ;;  %v7385_v28 = vsel %vm12425_vm4, %v16256_v46, %v7384_v18  ;;  %v7405_v41 = vld [vmem:[#allocation2 + $0x80] sm:$0xf]  ;;  %v7408_v25 = vld [vmem:[#allocation2 + $0x84] sm:$0x1]  ;;  %7365 = vst [vmem:[#allocation2 + $0x38] sm:$0xf] %v7364_v3 }
 0x65b   :  { %7368 = vst [vmem:[#allocation2 + $0x3c] sm:$0x1] %v7367_v44  ;;  %7371 = vst [vmem:[#allocation2 + $0x40] sm:$0xf] %v7370_v23  ;;  %v16257_v43 = vrot.slane %v15195_v30, 4  ;;  %v16258_v57 = vrot.slane %v15197_v15, 4  ;;  %v7400_v30 = vsel %vm12842_vm10, %v15222_v39, %v7399_v63  ;;  %v7406_v15 = vsel %vm12842_vm10, %v15240_v49, %v7405_v41 }
 0x65c   :  { %7374 = vst [vmem:[#allocation2 + $0x44] sm:$0x1] %v7373_v0  ;;  %v7411_v48 = vld [vmem:[#allocation2 + $0x88] sm:$0xf]  ;;  %v7414_v24 = vld [vmem:[#allocation2 + $0x8c] sm:$0x1] }
 0x65d   :  { %v7391_v47 = vsel %vm12425_vm4, %v16257_v43, %v7390_v61  ;;  %v7397_v51 = vsel %vm12425_vm4, %v16258_v57, %v7396_v58  ;;  %v7417_v19 = vld [vmem:[#allocation2 + $0x90] sm:$0xf]  ;;  %7377 = vst [vmem:[#allocation2 + $0x58] sm:$0xf] %v7376_v22  ;;  %7380 = vst [vmem:[#allocation2 + $0x5c] sm:$0x1] %v7379_v55  ;;  %v7412_v10 = vsel %vm12842_vm10, %v15251_v35, %v7411_v48 }
 0x65e   :  { %7383 = vst [vmem:[#allocation2 + $0x60] sm:$0xf] %v7382_v6  ;;  %7386 = vst [vmem:[#allocation2 + $0x64] sm:$0x1] %v7385_v28  ;;  %v16259_v52 = vrot.slane %v15214_v29, 4  ;;  %v16260_v21 = vrot.slane %v15225_v62, 4  ;;  %v7415_v62 = vsel %vm12425_vm4, %v7287_v8, %v7414_v24  ;;  %v7418_v49 = vsel %vm12842_vm10, %v15255_v26, %v7417_v19 }
 0x65f   :  { %v7420_v38 = vld [vmem:[#allocation2 + $0x94] sm:$0x1]  ;;  %7389 = vst [vmem:[#allocation2 + $0x68] sm:$0xf] %v7388_v16  ;;  %7392 = vst [vmem:[#allocation2 + $0x6c] sm:$0x1] %v7391_v47  ;;  %v7581_v22 = vsel %vm13010_vm13, %v15097_v33, %v15099_v27 }
 0x660   :  { %v7403_v53 = vsel %vm12425_vm4, %v16259_v52, %v7402_v60  ;;  %v7409_v12 = vsel %vm12425_vm4, %v16260_v21, %v7408_v25  ;;  %7395 = vst [vmem:[#allocation2 + $0x70] sm:$0xf] %v7394_v50  ;;  %7398 = vst [vmem:[#allocation2 + $0x74] sm:$0x1] %v7397_v51  ;;  %v15342_v39 = vld [vmem:[#allocation2 + $0x8] sm:$0xf]  ;;  %v7421_v45 = vsel %vm12425_vm4, %v7295_v32, %v7420_v38 }
 0x661   :  { %v15344_v29 = vld [vmem:[#allocation2 + $0xc] sm:$0x1]  ;;  %7401 = vst [vmem:[#allocation2 + $0x78] sm:$0xf] %v7400_v30  ;;  %7404 = vst [vmem:[#allocation2 + $0x7c] sm:$0x1] %v7403_v53 }
 0x662   :  { %7407 = vst [vmem:[#allocation2 + $0x80] sm:$0xf] %v7406_v15  ;;  %7410 = vst [vmem:[#allocation2 + $0x84] sm:$0x1] %v7409_v12  ;;  %v15360_v20 = vld [vmem:[#allocation2 + $0x10] sm:$0xf] }
 0x663   :  { %v15362_v35 = vld [vmem:[#allocation2 + $0x14] sm:$0x1]  ;;  %7413 = vst [vmem:[#allocation2 + $0x88] sm:$0xf] %v7412_v10  ;;  %7416 = vst [vmem:[#allocation2 + $0x8c] sm:$0x1] %v7415_v62 }
 0x664   :  { %7419 = vst [vmem:[#allocation2 + $0x90] sm:$0xf] %v7418_v49  ;;  %7422 = vst [vmem:[#allocation2 + $0x94] sm:$0x1] %v7421_v45  ;;  %v7471_v54 = vshrl.u32 %v15342_v39, 16  ;;  %v7474_v26 = vshll.u32 %v15342_v39, 16 }
 0x665   :  { %v7480_v7 = vshll.u32 %v15344_v29, 16  ;;  %v7485_v13 = vshrl.u32 %v15360_v20, 16  ;;  %v15372_v8 = vld [vmem:[#allocation2 + $0x18] sm:$0xf]  ;;  %v15374_v32 = vld [vmem:[#allocation2 + $0x1c] sm:$0x1] }
 0x666   :  { %v7488_v37 = vshll.u32 %v15360_v20, 16  ;;  %v15379_v18 = vsel %vm1155_vm9, %v15001_v17, 0  ;;  %v7473_v59 = vrot.slane %v7471_v54, 4  ;;  %v7476_v61 = vrot.slane %v7474_v26, 5  ;;  %v15382_v44 = vld [vmem:[#allocation2 + $0x20] sm:$0xf] }
 0x667   :  { %v7487_v3 = vrot.slane %v7485_v13, 4  ;;  %v7494_v56 = vshll.u32 %v15362_v35, 16  ;;  %v7482_v23 = vrot.slane %v7480_v7, 5  ;;  %v7499_v1 = vshrl.u32 %v15372_v8, 16  ;;  %v15387_v58 = vld [vmem:[#allocation2 + $0x28] sm:$0xf] }
 0x668   :  { %v7490_v40 = vrot.slane %v7488_v37, 5  ;;  %v7502_v9 = vshll.u32 %v15372_v8, 16  ;;  %v7477_v0 = vor.u32 %v7476_v61, %v7473_v59  ;;  %v7508_v36 = vshll.u32 %v15374_v32, 16  ;;  %v15389_v17 = vld [vmem:[#allocation2 + $0x24] sm:$0x1] }
 0x669   :  { %v7513_v63 = vshrl.u32 %v15382_v44, 16  ;;  %v7501_v55 = vrot.slane %v7499_v1, 4  ;;  %v15396_v46 = vld [vmem:[#allocation2 + $0x2c] sm:$0x1]  ;;  %v7516_v28 = vshll.u32 %v15382_v44, 16  ;;  %v7496_v41 = vrot.slane %v7494_v56, 5 }
 0x66a   :  { %v7491_v11 = vor.u32 %v7490_v40, %v7487_v3  ;;  %v7504_v6 = vrot.slane %v7502_v9, 5  ;;  %v7478_v60 = vrot.slane %v7477_v0, 4  ;;  %v7522_v16 = vshll.u32 %v15389_v17, 16  ;;  %v15401_v51 = vld [vmem:[#allocation2 + $0x30] sm:$0xf] }
 0x66b   :  { %v7515_v25 = vrot.slane %v7513_v63, 4  ;;  %v7518_v50 = vrot.slane %v7516_v28, 5  ;;  %v7527_v57 = vshrl.u32 %v15387_v58, 16  ;;  %v7510_v24 = vrot.slane %v7508_v36, 5  ;;  %v15407_v52 = vld [vmem:[#allocation2 + $0x34] sm:$0x1] }
 0x66c   :  { %v7492_v43 = vrot.slane %v7491_v11, 4  ;;  %v7505_v47 = vor.u32 %v7504_v6, %v7501_v55  ;;  %v7483_v48 = vsel %vm13010_vm13, %v7478_v60, %v7482_v23  ;;  %v7530_v19 = vshll.u32 %v15387_v58, 16  ;;  %v15411_v38 = vld [vmem:[#allocation2 + $0x38] sm:$0xf]  ;;  %v15413_v45 = vld [vmem:[#allocation2 + $0x3c] sm:$0x1] }
 0x66d   :  { %v7536_v30 = vshll.u32 %v15396_v46, 16  ;;  %v10748_v53 = vcombine.low %v7469_v42, %v7483_v48  ;;  %v7519_v12 = vor.u32 %v7518_v50, %v7515_v25  ;;  %v7524_v10 = vrot.slane %v7522_v16, 5  ;;  %v15421_v37 = vld [vmem:[#allocation2 + $0x58] sm:$0xf]  ;;  %v15424_v23 = vld [vmem:[#allocation2 + $0x5c] sm:$0x1] }
 0x66e   :  { %v7497_v15 = vsel %vm13010_vm13, %v7492_v43, %v7496_v41  ;;  %v7506_v21 = vrot.slane %v7505_v47, 4  ;;  %v7529_v62 = vrot.slane %v7527_v57, 4  ;;  %v7532_v49 = vrot.slane %v7530_v19, 5  ;;  %v15429_v40 = vld [vmem:[%s16135_s6 + $0x8] sm:$0xf] }
 0x66f   :  { %v7541_v54 = vshrl.u32 %v15401_v51, 16  ;;  %11618 = vmatprep.mubr.msk.bf16.mxu1 %vm371_vm7, %v10748_v53  ;;  %v7520_v7 = vrot.slane %v7519_v12, 4  ;;  %v7544_v13 = vshll.u32 %v15401_v51, 16  ;;  %v7550_v42 = vshll.u32 %v15407_v52, 16  ;;  %v15434_v63 = vld [vmem:[#allocation2 + $0x60] sm:$0xf] }
 0x670   :  { %v7511_v26 = vsel %vm13010_vm13, %v7506_v21, %v7510_v24  ;;  %v7533_v61 = vor.u32 %v7532_v49, %v7529_v62  ;;  %v7555_v56 = vshrl.u32 %v15411_v38, 16  ;;  %v7538_v9 = vrot.slane %v7536_v30, 5  ;;  %v15444_v57 = vld [vmem:[#allocation2 + $0x68] sm:$0xf]  ;;  %v15449_v53 = vld [vmem:[#allocation2 + $0x64] sm:$0x1] }
 0x671   :  { %v10749_v59 = vcombine.low %v7497_v15, %v7511_v26  ;;  %v7543_v3 = vrot.slane %v7541_v54, 4  ;;  %v7525_v1 = vsel %vm13010_vm13, %v7520_v7, %v7524_v10  ;;  %v7546_v0 = vrot.slane %v7544_v13, 5  ;;  %v15451_v15 = vld [vmem:[#allocation2 + $0x6c] sm:$0x1]  ;;  %v15454_v49 = vld [vmem:[#allocation2 + $0x70] sm:$0xf] }
 0x672   :  { %v7558_v36 = vshll.u32 %v15411_v38, 16  ;;  %v7534_v11 = vrot.slane %v7533_v61, 4  ;;  %v7557_v55 = vrot.slane %v7555_v56, 4  ;;  %v7564_v6 = vshll.u32 %v15413_v45, 16  ;;  %v15463_v56 = vld [vmem:[#allocation2 + $0x74] sm:$0x1] }
 0x673   :  { %11619 = vmatmul.mubr.msk.bf16.vlgmr.msra.gmra.mrb[16].mxu1 %vm371_vm7, %v10749_v59  ;;  %v7583_v28 = vshrl.u32 %v15421_v37, 16  ;;  %v7547_v60 = vor.u32 %v7546_v0, %v7543_v3  ;;  %v7586_v25 = vshll.u32 %v15421_v37, 16  ;;  %v7592_v16 = vshll.u32 %v15424_v23, 16 }
 0x674   :  { %11635 = vmatpush3.bf16.msra.mxu1 %v15379_v18  ;;  %v7560_v41 = vrot.slane %v7558_v36, 5  ;;  %v7539_v43 = vsel %vm13010_vm13, %v7534_v11, %v7538_v9  ;;  %v7552_v47 = vrot.slane %v7550_v42, 5  ;;  %v7597_v48 = vshrl.u32 %v15434_v63, 16  ;;  %v15467_v36 = vld [vmem:[#allocation2 + $0x78] sm:$0xf] }
 0x675   :  { %v7585_v50 = vrot.slane %v7583_v28, 4  ;;  %12187 = vmatprep.subr.msk.bf16.mxu1 %vm1155_vm9, %v15429_v40  ;;  %v10750_v24 = vcombine.low %v7525_v1, %v7539_v43  ;;  %v7548_v18 = vrot.slane %v7547_v60, 4  ;;  %v7588_v30 = vrot.slane %v7586_v25, 5  ;;  %v15470_v60 = vld [vmem:[#allocation2 + $0x7c] sm:$0x1] }
 0x676   :  { %v7561_v19 = vor.u32 %v7560_v41, %v7557_v55  ;;  %v7566_v21 = vrot.slane %v7564_v6, 5  ;;  %v7594_v12 = vrot.slane %v7592_v16, 5  ;;  %v7599_v10 = vrot.slane %v7597_v48, 4 }
 0x677   :  { %v7600_v62 = vshll.u32 %v15434_v63, 16  ;;  %11622 = vmatprep.mubr.msk.bf16.mxu1 %vm371_vm7, %v10750_v24  ;;  %v7553_v54 = vsel %vm13010_vm13, %v7548_v18, %v7552_v47  ;;  %v7589_v7 = vor.u32 %v7588_v30, %v7585_v50  ;;  %v7611_v13 = vshrl.u32 %v15444_v57, 16  ;;  %v15476_v47 = vld [vmem:[#allocation2 + $0x80] sm:$0xf] }
 0x678   :  { %v7562_v26 = vrot.slane %v7561_v19, 4  ;;  %v7606_v59 = vshll.u32 %v15449_v53, 16  ;;  %v7614_v61 = vshll.u32 %v15444_v57, 16  ;;  %v7620_v3 = vshll.u32 %v15451_v15, 16 }
 0x679   :  { %v7602_v42 = vrot.slane %v7600_v62, 5  ;;  %v7590_v9 = vrot.slane %v7589_v7, 4  ;;  %v7613_v0 = vrot.slane %v7611_v13, 4  ;;  %v7625_v11 = vshrl.u32 %v15454_v49, 16  ;;  %v15490_v7 = vld [vmem:[#allocation2 + $0x84] sm:$0x1] }
 0x67a   :  { %v7567_v1 = vsel %vm13010_vm13, %v7562_v26, %v7566_v21  ;;  %v7616_v28 = vrot.slane %v7614_v61, 5  ;;  %v7628_v16 = vshll.u32 %v15454_v49, 16  ;;  %v7634_v43 = vshll.u32 %v15463_v56, 16 }
 0x67b   :  { %v10751_v55 = vcombine.low %v7553_v54, %v7567_v1  ;;  %v7603_v6 = vor.u32 %v7602_v42, %v7599_v10  ;;  %v7595_v41 = vsel %vm13010_vm13, %v7590_v9, %v7594_v12  ;;  %v7627_v25 = vrot.slane %v7625_v11, 4  ;;  %v15486_v10 = vld [vmem:[#allocation2 + $0x88] sm:$0xf] }
 0x67c   :  { %v10752_v50 = vcombine.low %v7581_v22, %v7595_v41  ;;  %v7617_v24 = vor.u32 %v7616_v28, %v7613_v0  ;;  %v7639_v18 = vshrl.u32 %v15467_v36, 16  ;;  %v7608_v19 = vrot.slane %v7606_v59, 5 }
 0x67d   :  { %11623 = vmatmul.mubr.msk.bf16.gmra.mrb[20].mxu1 %vm371_vm7, %v10751_v55  ;;  %v7604_v48 = vrot.slane %v7603_v6, 4  ;;  %v7622_v30 = vrot.slane %v7620_v3, 5  ;;  %v7630_v21 = vrot.slane %v7628_v16, 5  ;;  %v7642_v12 = vshll.u32 %v15467_v36, 16  ;;  %v15498_v3 = vld [vmem:[#allocation2 + $0x8c] sm:$0x1] }
 0x67e   :  { %11626 = vmatprep.mubr.msk.bf16.mxu1 %vm371_vm7, %v10752_v50  ;;  %v7618_v62 = vrot.slane %v7617_v24, 4  ;;  %v7641_v54 = vrot.slane %v7639_v18, 4  ;;  %v7648_v26 = vshll.u32 %v15470_v60, 16  ;;  %v7653_v33 = vshrl.u32 %v15476_v47, 16  ;;  %v7995_v50 = vld [vmem:[#allocation2 + $0x10] sm:$0xe] }
 0x67f   :  { %v7609_v27 = vsel %vm13010_vm13, %v7604_v48, %v7608_v19  ;;  %v7631_v22 = vor.u32 %v7630_v21, %v7627_v25  ;;  %v7644_v13 = vrot.slane %v7642_v12, 5  ;;  %v7656_v42 = vshll.u32 %v15476_v47, 16  ;;  %v7996_v19 = vld [vmem:[#allocation2 + $0x18] sm:$0xe] }
 0x680   :  { %v7623_v59 = vsel %vm13010_vm13, %v7618_v62, %v7622_v30  ;;  %v7636_v61 = vrot.slane %v7634_v43, 5  ;;  %v7655_v1 = vrot.slane %v7653_v33, 4  ;;  %v7667_v9 = vshrl.u32 %v15486_v10, 16 }
 0x681   :  { %v7632_v0 = vrot.slane %v7631_v22, 4  ;;  %v7645_v11 = vor.u32 %v7644_v13, %v7641_v54  ;;  %v7658_v55 = vrot.slane %v7656_v42, 5  ;;  %v7662_v6 = vshll.u32 %v15490_v7, 16  ;;  %v7997_v54 = vld [vmem:[#allocation2 + $0x20] sm:$0xe] }
 0x682   :  { %v10753_v28 = vcombine.low %v7609_v27, %v7623_v59  ;;  %v7650_v41 = vrot.slane %v7648_v26, 5  ;;  %v7669_v25 = vrot.slane %v7667_v9, 4  ;;  %v7670_v16 = vshll.u32 %v15486_v10, 16  ;;  %v7998_v27 = vld [vmem:[#allocation2 + $0x28] sm:$0xe] }
 0x683   :  { %v7637_v48 = vsel %vm13010_vm13, %v7632_v0, %v7636_v61  ;;  %v7646_v43 = vrot.slane %v7645_v11, 4  ;;  %v7659_v24 = vor.u32 %v7658_v55, %v7655_v1  ;;  %v7676_v18 = vshll.u32 %v15498_v3, 16  ;;  %v7999_v22 = vld [vmem:[#allocation2 + $0x30] sm:$0xe] }
 0x684   :  { %v7672_v30 = vrot.slane %v7670_v16, 5  ;;  %v7664_v62 = vrot.slane %v7662_v6, 5  ;;  %v10782_v59 = vrot.slane %v7995_v50, 9  ;;  %v8051_v61 = vrot.slane %v15362_v35, 5  ;;  %v8003_v50 = vld [vmem:[#allocation2 + $0x60] sm:$0xe] }
 0x685   :  { %11627 = vmatmul.mubr.msk.bf16.gmra.mrb[24].mxu1 %vm371_vm7, %v10753_v28  ;;  %v7651_v21 = vsel %vm13010_vm13, %v7646_v43, %v7650_v41  ;;  %v7660_v12 = vrot.slane %v7659_v24, 4  ;;  %v7678_v42 = vrot.slane %v7676_v18, 5  ;;  %v10783_v9 = vrot.slane %v7996_v19, 9  ;;  %v8000_v41 = vld [vmem:[#allocation2 + $0x38] sm:$0xe] }
 0x686   :  { %v10754_v26 = vcombine.low %v7637_v48, %v7651_v21  ;;  %v7673_v33 = vor.u32 %v7672_v30, %v7669_v25  ;;  %v8055_v0 = vrot.slane %v15374_v32, 5  ;;  %v10784_v11 = vrot.slane %v7997_v54, 9  ;;  %v8005_v21 = vld [vmem:[#allocation2 + $0x70] sm:$0xe]  ;;  %v8006_v54 = vld [vmem:[#allocation2 + $0x78] sm:$0xe] }
 0x687   :  { %v7665_v13 = vsel %vm13010_vm13, %v7660_v12, %v7664_v62  ;;  %v15516_v55 = vsel %vm13281_vm0, %v10782_v59, %v8051_v61  ;;  %v8059_v6 = vrot.slane %v15389_v17, 5  ;;  %v10785_v28 = vrot.slane %v7998_v27, 9  ;;  %v8007_v27 = vld [vmem:[#allocation2 + $0x80] sm:$0xe]  ;;  %v8008_v61 = vld [vmem:[#allocation2 + $0x88] sm:$0xe] }
 0x688   :  { %11630 = vmatprep.mubr.msk.bf16.mxu1 %vm371_vm7, %v10754_v26  ;;  %v7674_v1 = vrot.slane %v7673_v33, 4  ;;  %v10764_v35 = vcombine.low %v15085_v5, %v15342_v39  ;;  %v15525_v16 = vsel %vm13281_vm0, %v10783_v9, %v8055_v0  ;;  %v8063_v32 = vrot.slane %v15396_v46, 5  ;;  %v8004_v46 = vld [vmem:[#allocation2 + $0x68] sm:$0xe] }
 0x689   :  { %v10797_v43 = vcombine.low %v15516_v55, %v15525_v16  ;;  %v15532_v17 = vsel %vm13281_vm0, %v10784_v11, %v8059_v6  ;;  %v10786_v24 = vrot.slane %v7999_v22, 9  ;;  %v8067_v5 = vrot.slane %v15407_v52, 5 }
 0x68a   :  { %v7679_v25 = vsel %vm13010_vm13, %v7674_v1, %v7678_v42  ;;  %v15536_v18 = vsel %vm13281_vm0, %v10785_v28, %v8063_v32  ;;  %v10787_v39 = vrot.slane %v8000_v41, 9  ;;  %v8071_v19 = vrot.slane %v15413_v45, 5 }
 0x68b   :  { %v10755_v48 = vcombine.low %v7665_v13, %v7679_v25  ;;  %v10798_v30 = vcombine.low %v15532_v17, %v15536_v18  ;;  %v15546_v12 = vsel %vm13281_vm0, %v10786_v24, %v8067_v5  ;;  %v10790_v52 = vrot.slane %v8003_v50, 9  ;;  %v7993_v50 = vld [vmem:[#allocation2] sm:$0xe] }
 0x68c   :  { %v15550_v62 = vsel %vm13281_vm0, %v10787_v39, %v8071_v19  ;;  %v8083_v26 = vrot.slane %v15449_v53, 5  ;;  %v10791_v33 = vrot.slane %v8004_v46, 9  ;;  %v8155_v22 = vsel %vm1155_vm9, %v15429_v40, 0  ;;  %v12306_v19 = vld [vmem:[#allocation2 + $0x4] sm:$0x1] }
 0x68d   :  { %11631 = vmatmul.mubr.msk.bf16.gmra.mrb[28].mxu1 %vm371_vm7, %v10755_v48  ;;  %v10799_v45 = vcombine.low %v15546_v12, %v15550_v62  ;;  %v8087_v13 = vrot.slane %v15451_v15, 5  ;;  %v10792_v42 = vrot.slane %v8005_v21, 9  ;;  %v8091_v59 = vrot.slane %v15463_v56, 5  ;;  %v7994_v48 = vld [vmem:[#allocation2 + $0x8] sm:$0xe] }
 0x68e   :  { %11636 = vmatprep.mubr.msk.bf16.mxu1 %vm371_vm7, %v10764_v35  ;;  %v10765_v1 = vcombine.low %v15360_v20, %v15372_v8  ;;  %v8084_v9 = vsel %vm13281_vm0, %v10790_v52, %v8083_v26  ;;  %v10793_v0 = vrot.slane %v8006_v54, 9  ;;  %v8095_v53 = vrot.slane %v15470_v60, 5  ;;  %v8286_v60 = vld [vmem:[%s16135_s6 + $0xc] sm:$0xf]  ;;  %v8723_v52 = vld [vmem:[%s16135_s6 + $0x10] sm:$0xf] }
 0x68f   :  { %v8088_v11 = vsel %vm13281_vm0, %v10791_v33, %v8087_v13  ;;  %v8092_v40 = vsel %vm13281_vm0, %v10792_v42, %v8091_v59  ;;  %v10794_v15 = vrot.slane %v8007_v27, 9  ;;  %v8099_v6 = vrot.slane %v15490_v7, 5  ;;  %v12273_v17 = vld [vmem:[#allocation2 + $0x18] ss:$8 sps:$4 sm:$0xff]   ;;  %v9000_v12 = vld [vmem:[%s16135_s6 + $0x14] sm:$0xf] }
 0x690   :  { %v10801_v56 = vcombine.low %v8084_v9, %v8088_v11  ;;  %v8096_v28 = vsel %vm13281_vm0, %v10793_v0, %v8095_v53  ;;  %v10795_v20 = vrot.slane %v8008_v61, 9  ;;  %v8103_v8 = vrot.slane %v15498_v3, 5  ;;  %v8471_v62 = vld [vmem:[#allocation2 + $0x18] sm:$0xf]  ;;  %v8473_v42 = vld [vmem:[#allocation2 + $0x20] sm:$0xf] }
 0x691   :  { %v10766_v41 = vcombine.low %v15382_v44, %v15387_v58  ;;  %v10802_v25 = vcombine.low %v8092_v40, %v8096_v28  ;;  %v8100_v35 = vsel %vm13281_vm0, %v10794_v15, %v8099_v6  ;;  %v10767_v44 = vcombine.low %v15401_v51, %v15411_v38  ;;  %v12305_v58 = vld [vmem:[#allocation2 + $0x50] sm:$0xf]  ;;  %v12275_v15 = vld [vmem:[#allocation2 + $0x38] ss:$8 sps:$4 sm:$0xff]   ;;  %v15638_v6 = vld [vmem:[#allocation2 + $0xc] sm:$0x1] }
 0x692   :  { %v8104_v7 = vsel %vm13281_vm0, %v10795_v20, %v8103_v8  ;;  %v10768_v32 = vcombine.low %v12305_v58, %v15421_v37  ;;  %v10769_v24 = vcombine.low %v15434_v63, %v15444_v57  ;;  %v10770_v5 = vcombine.low %v15454_v49, %v15467_v36  ;;  %v8001_v49 = vld [vmem:[#allocation2 + $0x50] sm:$0xe]  ;;  %v8002_v36 = vld [vmem:[#allocation2 + $0x58] sm:$0xe]  ;;  %v15642_v8 = vld [vmem:[#allocation2 + $0x1c] sm:$0x1] }
 0x693   :  { %v10803_v3 = vcombine.low %v8100_v35, %v8104_v7  ;;  %v10780_v39 = vrot.slane %v7993_v50, 9  ;;  %v8043_v51 = vrot.slane %v12306_v19, 5  ;;  %v10781_v38 = vrot.slane %v7994_v48, 9  ;;  %v15644_v35 = vld [vmem:[#allocation2 + $0x24] sm:$0x1] }
 0x694   :  { %v8047_v37 = vrot.slane %v15344_v29, 5  ;;  %v10771_v63 = vcombine.low %v15476_v47, %v15486_v10  ;;  %v8352_v29 = vsel %vm1155_vm9, %v8286_v60, 0  ;;  %v10788_v54 = vrot.slane %v8001_v49, 9  ;;  %v12307_v47 = vld [vmem:[#allocation2 + $0x54] sm:$0x1] }
 0x695   :  { %11637 = vmatmul.mubr.msk.bf16.vlgmr.msra.gmra.mrb[16].mxu1 %vm371_vm7, %v10765_v1  ;;  %v8044_v46 = vsel %vm13281_vm0, %v10780_v39, %v8043_v51  ;;  %v8075_v10 = vrot.slane %v12307_v47, 5  ;;  %v10789_v26 = vrot.slane %v8002_v36, 9  ;;  %v8079_v33 = vrot.slane %v15424_v23, 5  ;;  %v12272_v23 = vld [vmem:[#allocation2 + $0x8] ss:$8 sps:$4 sm:$0xff]  }
 0x696   :  { %11653 = vmatpush3.bf16.msra.mxu1 %v8155_v22  ;;  %11640 = vmatprep.mubr.msk.bf16.mxu1 %vm371_vm7, %v10766_v41  ;;  %v8048_v21 = vsel %vm13281_vm0, %v10781_v38, %v8047_v37  ;;  %v8773_v18 = vsel %vm1155_vm9, %v8723_v52, 0  ;;  %v8469_v22 = vld [vmem:[#allocation2 + $0x10] sm:$0xf]  ;;  %v8528_v1 = vshrl.u32 %v8471_v62, 16  ;;  %v8531_v9 = vshll.u32 %v8471_v62, 16 }
 0x697   :  { %12188 = vmatprep.subr.msk.bf16.mxu1 %vm1155_vm9, %v8286_v60  ;;  %v10796_v57 = vcombine.low %v8044_v46, %v8048_v21  ;;  %v8076_v27 = vsel %vm13281_vm0, %v10788_v54, %v8075_v10  ;;  %v8080_v55 = vsel %vm13281_vm0, %v10789_v26, %v8079_v33  ;;  %v8514_v59 = vshrl.u32 %v8469_v22, 16  ;;  %v8475_v7 = vld [vmem:[#allocation2 + $0x28] sm:$0xf]  ;;  %v8477_v50 = vld [vmem:[#allocation2 + $0x30] sm:$0xf] }
 0x698   :  { %v10800_v16 = vcombine.low %v8076_v27, %v8080_v55  ;;  %v8517_v61 = vshll.u32 %v8469_v22, 16  ;;  %v8542_v11 = vshrl.u32 %v8473_v42, 16  ;;  %v8545_v40 = vshll.u32 %v8473_v42, 16  ;;  %v12277_v21 = vld [vmem:[#allocation2 + $0x68] ss:$8 sps:$4 sm:$0xff]  }
 0x699   :  { %v8516_v28 = vrot.slane %v8514_v59, 4  ;;  %v8530_v41 = vrot.slane %v8528_v1, 4  ;;  %v8533_v60 = vrot.slane %v8531_v9, 5  ;;  %v8551_v19 = vshll.u32 %v15644_v35, 16  ;;  %v12278_v36 = vld [vmem:[#allocation2 + $0x78] ss:$8 sps:$4 sm:$0xff]  }
 0x69a   :  { %v8519_v20 = vrot.slane %v8517_v61, 5  ;;  %v8544_v58 = vrot.slane %v8542_v11, 4  ;;  %v8556_v51 = vshrl.u32 %v8475_v7, 16  ;;  %v8559_v38 = vshll.u32 %v8475_v7, 16  ;;  %v15652_v54 = vld [vmem:[#allocation2 + $0x2c] sm:$0x1] }
 0x69b   :  { %v8534_v39 = vor.u32 %v8533_v60, %v8530_v41  ;;  %v8570_v37 = vshrl.u32 %v8477_v50, 16  ;;  %v8573_v46 = vshll.u32 %v8477_v50, 16  ;;  %v8479_v47 = vld [vmem:[#allocation2 + $0x38] sm:$0xf]  ;;  %v8481_v10 = vld [vmem:[#allocation2 + $0x40] sm:$0xf] }
 0x69c   :  { %v8553_v27 = vrot.slane %v8551_v19, 5  ;;  %v15655_v55 = vsel %vm1155_vm9, %v9000_v12, 0  ;;  %v8587_v42 = vshll.u32 %v8479_v47, 16  ;;  %v8598_v59 = vshrl.u32 %v8481_v10, 16  ;;  %v12279_v60 = vld [vmem:[#allocation2 + $0x88] ss:$8 sps:$4 sm:$0xff]  }
 0x69d   :  { %11641 = vmatmul.mubr.msk.bf16.gmra.mrb[20].mxu1 %vm371_vm7, %v10767_v44  ;;  %v8509_v44 = vshll.u32 %v15638_v6, 16  ;;  %v8535_v33 = vrot.slane %v8534_v39, 4  ;;  %v8601_v61 = vshll.u32 %v8481_v10, 16 }
 0x69e   :  { %11644 = vmatprep.mubr.msk.bf16.mxu1 %vm371_vm7, %v10768_v32  ;;  %v8547_v32 = vrot.slane %v8545_v40, 5 }
 0x69f   :  { %v8603_v50 = vrot.slane %v8601_v61, 5 }
 0x6a0   :  { %v8548_v49 = vor.u32 %v8547_v32, %v8544_v58  ;;  %v15674_v58 = vld [vmem:[#allocation2 + $0x44] sm:$0x1]  ;;  %v8600_v32 = vrot.slane %v8598_v59, 4 }
 0x6a2   :  { %v8549_v62 = vrot.slane %v8548_v49, 4  ;;  %v8604_v10 = vor.u32 %v8603_v50, %v8600_v32 }
 0x6a5   :  { %11645 = vmatmul.mubr.msk.bf16.gmra.mrb[24].mxu1 %vm371_vm7, %v10769_v24  ;;  %v8537_v24 = vshll.u32 %v15642_v8, 16 }
 0x6a6   :  { %11648 = vmatprep.mubr.msk.bf16.mxu1 %vm371_vm7, %v10770_v5  ;;  %v8520_v5 = vor.u32 %v8519_v20, %v8516_v28 }
 0x6a8   :  { %v8521_v26 = vrot.slane %v8520_v5, 4  ;;  %v15676_v5 = vld [vmem:[#allocation2 + $0x5c] sm:$0x1] }
 0x6ad   :  { %11649 = vmatmul.mubr.msk.bf16.gmra.mrb[28].mxu1 %vm371_vm7, %v10771_v63 }
 0x6ae   :  { %11654 = vmatprep.mubr.msk.bf16.mxu1 %vm371_vm7, %v10796_v57  ;;  %v8511_v57 = vrot.slane %v8509_v44, 5 }
 0x6b5   :  { %11655 = vmatmul.mubr.msk.bf16.vlgmr.msra.gmra.mrb[16].mxu1 %vm371_vm7, %v10797_v43  ;;  %v8467_v43 = vld [vmem:[#allocation2 + $0x8] sm:$0xf] }
 0x6b6   :  { %11671 = vmatpush3.bf16.msra.mxu1 %v8352_v29  ;;  %11658 = vmatprep.mubr.msk.bf16.mxu1 %vm371_vm7, %v10798_v30  ;;  %v12274_v30 = vld [vmem:[#allocation2 + $0x28] ss:$8 sps:$4 sm:$0xff]   ;;  %v8503_v13 = vshll.u32 %v8467_v43, 16 }
 0x6b7   :  { %12189 = vmatprep.subr.msk.bf16.mxu1 %vm1155_vm9, %v8723_v52  ;;  %v8539_v52 = vrot.slane %v8537_v24, 5 }
 0x6b8   :  { %v8505_v53 = vrot.slane %v8503_v13, 5  ;;  %v8584_v13 = vshrl.u32 %v8479_v47, 16 }
 0x6ba   :  { %v8586_v7 = vrot.slane %v8584_v13, 4 }
 0x6bd   :  { %11659 = vmatmul.mubr.msk.bf16.gmra.mrb[20].mxu1 %vm371_vm7, %v10799_v45  ;;  %v8500_v45 = vshrl.u32 %v8467_v43, 16  ;;  %v8561_v43 = vrot.slane %v8559_v38, 5 }
 0x6be   :  { %11662 = vmatprep.mubr.msk.bf16.mxu1 %vm371_vm7, %v10800_v16  ;;  %v8483_v16 = vld [vmem:[#allocation2 + $0x58] sm:$0xf] }
 0x6bf   :  { %v8502_v0 = vrot.slane %v8500_v45, 4  ;;  %v15660_v45 = vld [vmem:[#allocation2 + $0x34] sm:$0x1]  ;;  %v8612_v1 = vshrl.u32 %v8483_v16, 16  ;;  %v8615_v9 = vshll.u32 %v8483_v16, 16 }
 0x6c0   :  { %v8579_v41 = vshll.u32 %v15660_v45, 16  ;;  %v8493_v16 = vld [vmem:[#allocation2 + $0x80] sm:$0xf] }
 0x6c1   :  { %v8617_v24 = vrot.slane %v8615_v9, 5  ;;  %v8682_v61 = vshrl.u32 %v8493_v16, 16 }
 0x6c2   :  { %v8581_v49 = vrot.slane %v8579_v41, 5  ;;  %v8495_v41 = vld [vmem:[#allocation2 + $0x88] sm:$0xf] }
 0x6c5   :  { %11663 = vmatmul.mubr.msk.bf16.gmra.mrb[24].mxu1 %vm371_vm7, %v10801_v56  ;;  %v15640_v56 = vld [vmem:[#allocation2 + $0x14] sm:$0x1] }
 0x6c6   :  { %11666 = vmatprep.mubr.msk.bf16.mxu1 %vm371_vm7, %v10802_v25  ;;  %v12276_v25 = vld [vmem:[#allocation2 + $0x58] ss:$8 sps:$4 sm:$0xff]   ;;  %v8523_v48 = vshll.u32 %v15640_v56, 16 }
 0x6c8   :  { %v8525_v29 = vrot.slane %v8523_v48, 5  ;;  %v8614_v48 = vrot.slane %v8612_v1, 4  ;;  %v8685_v1 = vshll.u32 %v8493_v16, 16 }
 0x6cd   :  { %11667 = vmatmul.mubr.msk.bf16.gmra.mrb[28].mxu1 %vm371_vm7, %v10803_v3  ;;  %v8506_v3 = vor.u32 %v8505_v53, %v8502_v0  ;;  %v8526_v0 = vsel %vm13010_vm13, %v8521_v26, %v8525_v29  ;;  %v8565_v53 = vshll.u32 %v15652_v54, 16  ;;  %v8607_v29 = vshll.u32 %v15674_v58, 16 }
 0x6ce   :  { %11672 = vmatprep.mubr.msk.bf16.mxu1 %vm371_vm7, %v12272_v23  ;;  %v8558_v23 = vrot.slane %v8556_v51, 4  ;;  %v8487_v51 = vld [vmem:[#allocation2 + $0x68] sm:$0xf]  ;;  %v8618_v26 = vor.u32 %v8617_v24, %v8614_v48  ;;  %v8684_v48 = vrot.slane %v8682_v61, 4  ;;  %v8687_v24 = vrot.slane %v8685_v1, 5 }
 0x6cf   :  { %v8507_v63 = vrot.slane %v8506_v3, 4  ;;  %v8589_v3 = vrot.slane %v8587_v42, 5 }
 0x6d0   :  { %v8562_v28 = vor.u32 %v8561_v43, %v8558_v23  ;;  %v8643_v43 = vshll.u32 %v8487_v51, 16 }
 0x6d1   :  { %v8512_v22 = vsel %vm13010_vm13, %v8507_v63, %v8511_v57  ;;  %v8489_v63 = vld [vmem:[#allocation2 + $0x70] sm:$0xf]  ;;  %v8590_v47 = vor.u32 %v8589_v3, %v8586_v7 }
 0x6d2   :  { %v10828_v38 = vcombine.low %v8512_v22, %v8526_v0  ;;  %v8605_v0 = vrot.slane %v8604_v10, 4 }
 0x6d3   :  { %v8591_v9 = vrot.slane %v8590_v47, 4 }
 0x6d5   :  { %11673 = vmatmul.mubr.msk.bf16.vlgmr.msra.gmra.mrb[16].mxu1 %vm371_vm7, %v12273_v17  ;;  %v8572_v17 = vrot.slane %v8570_v37, 4  ;;  %v8563_v37 = vrot.slane %v8562_v28, 4 }
 0x6d6   :  { %11689 = vmatpush3.bf16.msra.mxu1 %v8773_v18  ;;  %11676 = vmatprep.mubr.msk.bf16.mxu1 %vm371_vm7, %v12274_v30  ;;  %v8575_v18 = vrot.slane %v8573_v46, 5  ;;  %v8485_v30 = vld [vmem:[#allocation2 + $0x60] sm:$0xf]  ;;  %v8567_v46 = vrot.slane %v8565_v53, 5  ;;  %v8619_v53 = vrot.slane %v8618_v26, 4 }
 0x6d7   :  { %12190 = vmatprep.subr.msk.bf16.mxu1 %vm1155_vm9, %v9000_v12  ;;  %v15663_v12 = vld [vmem:[#allocation2 + $0x3c] sm:$0x1]  ;;  %v8626_v11 = vshrl.u32 %v8485_v30, 16  ;;  %v8629_v40 = vshll.u32 %v8485_v30, 16 }
 0x6d8   :  { %v8576_v20 = vor.u32 %v8575_v18, %v8572_v17  ;;  %v8593_v44 = vshll.u32 %v15663_v12, 16  ;;  %v8654_v17 = vshrl.u32 %v8489_v63, 16  ;;  %v8657_v18 = vshll.u32 %v8489_v63, 16 }
 0x6d9   :  { %v8628_v39 = vrot.slane %v8626_v11, 4  ;;  %v8631_v19 = vrot.slane %v8629_v40, 5  ;;  %v8568_v30 = vsel %vm13010_vm13, %v8563_v37, %v8567_v46  ;;  %v15705_v46 = vld [vmem:[#allocation2 + $0x6c] sm:$0x1] }
 0x6da   :  { %v8656_v28 = vrot.slane %v8654_v17, 4  ;;  %v8649_v16 = vshll.u32 %v15705_v46, 16 }
 0x6db   :  { %v8632_v23 = vor.u32 %v8631_v19, %v8628_v39  ;;  %v8497_v39 = vld [vmem:[#allocation2 + $0x90] sm:$0xf] }
 0x6dc   :  { %v8710_v47 = vshrl.u32 %v8497_v39, 16  ;;  %v8713_v10 = vshll.u32 %v8497_v39, 16 }
 0x6dd   :  { %11677 = vmatmul.mubr.msk.bf16.gmra.mrb[20].mxu1 %vm371_vm7, %v12275_v15  ;;  %v8540_v15 = vsel %vm13010_vm13, %v8535_v33, %v8539_v52  ;;  %v15680_v52 = vld [vmem:[#allocation2 + $0x64] sm:$0x1]  ;;  %v8640_v33 = vshrl.u32 %v8487_v51, 16  ;;  %v8633_v40 = vrot.slane %v8632_v23, 4 }
 0x6de   :  { %11680 = vmatprep.mubr.msk.bf16.mxu1 %vm371_vm7, %v12276_v25  ;;  %v8554_v25 = vsel %vm13010_vm13, %v8549_v62, %v8553_v27  ;;  %v8491_v27 = vld [vmem:[#allocation2 + $0x78] sm:$0xf]  ;;  %v8621_v62 = vshll.u32 %v15676_v5, 16  ;;  %v8635_v13 = vshll.u32 %v15680_v52, 16 }
 0x6df   :  { %v10829_v57 = vcombine.low %v8540_v15, %v8554_v25  ;;  %v8668_v42 = vshrl.u32 %v8491_v27, 16  ;;  %v8671_v59 = vshll.u32 %v8491_v27, 16  ;;  %v8642_v11 = vrot.slane %v8640_v33, 4 }
 0x6e0   :  { %v8645_v15 = vrot.slane %v8643_v43, 5  ;;  %v8609_v25 = vrot.slane %v8607_v29, 5  ;;  %v8623_v7 = vrot.slane %v8621_v62, 5  ;;  %v8637_v3 = vrot.slane %v8635_v13, 5 }
 0x6e1   :  { %v8670_v32 = vrot.slane %v8668_v42, 4  ;;  %v8673_v50 = vrot.slane %v8671_v59, 5  ;;  %v8699_v29 = vshll.u32 %v8495_v41, 16  ;;  %v8688_v33 = vor.u32 %v8687_v24, %v8684_v48  ;;  %v8889_v48 = vld [vmem:[#allocation2 + $0x10] sm:$0xe] }
 0x6e2   :  { %v8610_v51 = vsel %vm13010_vm13, %v8605_v0, %v8609_v25  ;;  %v8638_v37 = vsel %vm13010_vm13, %v8633_v40, %v8637_v3  ;;  %v8646_v63 = vor.u32 %v8645_v15, %v8642_v11  ;;  %v8712_v42 = vrot.slane %v8710_v47, 4  ;;  %v15721_v40 = vld [vmem:[#allocation2 + $0x8c] sm:$0x1]  ;;  %v15723_v15 = vld [vmem:[#allocation2 + $0x94] sm:$0x1] }
 0x6e3   :  { %v8674_v26 = vor.u32 %v8673_v50, %v8670_v32  ;;  %v8701_v13 = vrot.slane %v8699_v29, 5  ;;  %v8715_v59 = vrot.slane %v8713_v10, 5  ;;  %v8689_v1 = vrot.slane %v8688_v33, 4  ;;  %v8888_v50 = vld [vmem:[#allocation2 + $0x8] sm:$0xe] }
 0x6e4   :  { %v8705_v3 = vshll.u32 %v15721_v40, 16  ;;  %v8719_v32 = vshll.u32 %v15723_v15, 16 }
 0x6e5   :  { %11681 = vmatmul.mubr.msk.bf16.gmra.mrb[24].mxu1 %vm371_vm7, %v12277_v21  ;;  %v8577_v21 = vrot.slane %v8576_v20, 4  ;;  %v8659_v20 = vrot.slane %v8657_v18, 5  ;;  %v8647_v18 = vrot.slane %v8646_v63, 4  ;;  %v8675_v61 = vrot.slane %v8674_v26, 4  ;;  %v8890_v26 = vld [vmem:[#allocation2 + $0x18] sm:$0xe] }
 0x6e6   :  { %11684 = vmatprep.mubr.msk.bf16.mxu1 %vm371_vm7, %v12278_v36  ;;  %v8595_v36 = vrot.slane %v8593_v44, 5  ;;  %v15692_v44 = vld [vmem:[%s16135_s6 + $0x18] sm:$0xf]  ;;  %v10845_v63 = vrot.slane %v8889_v48, 9  ;;  %v8721_v29 = vrot.slane %v8719_v32, 5  ;;  %v8970_v32 = vrot.slane %v15676_v5, 5 }
 0x6e7   :  { %v8582_v22 = vsel %vm13010_vm13, %v8577_v21, %v8581_v49  ;;  %v15707_v21 = vld [vmem:[#allocation2 + $0x74] sm:$0x1]  ;;  %v15713_v49 = vld [vmem:[#allocation2 + $0x84] sm:$0x1]  ;;  %v8974_v48 = vrot.slane %v15680_v52, 5 }
 0x6e8   :  { %v8596_v19 = vsel %vm13010_vm13, %v8591_v9, %v8595_v36  ;;  %v8696_v36 = vshrl.u32 %v8495_v41, 16  ;;  %v8663_v23 = vshll.u32 %v15707_v21, 16  ;;  %v8651_v9 = vrot.slane %v8649_v16, 5  ;;  %v8892_v16 = vld [vmem:[#allocation2 + $0x28] sm:$0xe] }
 0x6e9   :  { %v10831_v27 = vcombine.low %v8596_v19, %v8610_v51  ;;  %v8900_v52 = vld [vmem:[#allocation2 + $0x78] sm:$0xe] }
 0x6ea   :  { %v8698_v62 = vrot.slane %v8696_v36, 4  ;;  %v8665_v0 = vrot.slane %v8663_v23, 5  ;;  %v8707_v36 = vrot.slane %v8705_v3, 5 }
 0x6ec   :  { %v8702_v41 = vor.u32 %v8701_v13, %v8698_v62  ;;  %v10848_v62 = vrot.slane %v8892_v16, 9  ;;  %v8954_v13 = vrot.slane %v15652_v54, 5  ;;  %v8896_v54 = vld [vmem:[#allocation2 + $0x58] sm:$0xe]  ;;  %v8903_v16 = vld [vmem:[#allocation2 + $0x90] sm:$0xe] }
 0x6ed   :  { %11685 = vmatmul.mubr.msk.bf16.gmra.mrb[28].mxu1 %vm371_vm7, %v12279_v60  ;;  %v10830_v60 = vcombine.low %v8568_v30, %v8582_v22  ;;  %v8691_v22 = vshll.u32 %v15713_v49, 16  ;;  %v10852_v3 = vrot.slane %v8896_v54, 9 }
 0x6ee   :  { %11690 = vmatprep.mubr.msk.bf16.mxu1 %vm371_vm7, %v10828_v38  ;;  %v8624_v38 = vsel %vm13010_vm13, %v8619_v53, %v8623_v7  ;;  %v8703_v19 = vrot.slane %v8702_v41, 4  ;;  %v8962_v41 = vrot.slane %v15663_v12, 5 }
 0x6ef   :  { %v10832_v17 = vcombine.low %v8624_v38, %v8638_v37  ;;  %v8693_v11 = vrot.slane %v8691_v22, 5  ;;  %v10844_v38 = vrot.slane %v8888_v50, 9  ;;  %v8938_v37 = vrot.slane %v15638_v6, 5 }
 0x6f0   :  { %v8708_v47 = vsel %vm13010_vm13, %v8703_v19, %v8707_v36  ;;  %v8950_v22 = vrot.slane %v15644_v35, 5  ;;  %v8955_v35 = vsel %vm13281_vm0, %v10848_v62, %v8954_v13  ;;  %v8901_v19 = vld [vmem:[#allocation2 + $0x80] sm:$0xe]  ;;  %v8982_v36 = vrot.slane %v15707_v21, 5  ;;  %v12280_v62 = vld [vmem:[#allocation2 + $0x10] ss:$8 sps:$4 sm:$0xff]  }
 0x6f1   :  { %v8694_v7 = vsel %vm13010_vm13, %v8689_v1, %v8693_v11  ;;  %v8939_v33 = vsel %vm13281_vm0, %v10844_v38, %v8938_v37 }
 0x6f5   :  { %11691 = vmatmul.mubr.msk.bf16.vlgmr.msra.gmra.mrb[16].mxu1 %vm371_vm7, %v10829_v57  ;;  %v15709_v57 = vld [vmem:[#allocation2 + $0x7c] sm:$0x1] }
 0x6f6   :  { %11707 = vmatpush3.bf16.msra.mxu1 %v15655_v55  ;;  %11694 = vmatprep.mubr.msk.bf16.mxu1 %vm371_vm7, %v10830_v60  ;;  %v8660_v55 = vor.u32 %v8659_v20, %v8656_v28  ;;  %v8677_v43 = vshll.u32 %v15709_v57, 16  ;;  %v8652_v28 = vsel %vm13010_vm13, %v8647_v18, %v8651_v9  ;;  %v8716_v60 = vor.u32 %v8715_v59, %v8712_v42 }
 0x6f7   :  { %12191 = vmatprep.subr.msk.bf16.mxu1 %vm1155_vm9, %v15692_v44  ;;  %v8946_v18 = vrot.slane %v15642_v8, 5  ;;  %v8958_v59 = vrot.slane %v15660_v45, 5  ;;  %v8894_v8 = vld [vmem:[#allocation2 + $0x38] sm:$0xe]  ;;  %v9247_v45 = vsel %vm1155_vm9, %v15692_v44, 0 }
 0x6f8   :  { %v8661_v30 = vrot.slane %v8660_v55, 4  ;;  %v8679_v53 = vrot.slane %v8677_v43, 5  ;;  %v8717_v51 = vrot.slane %v8716_v60, 4  ;;  %v8942_v55 = vrot.slane %v15640_v56, 5  ;;  %v8893_v56 = vld [vmem:[#allocation2 + $0x30] sm:$0xe] }
 0x6f9   :  { %v10846_v43 = vrot.slane %v8890_v26, 9  ;;  %v10849_v42 = vrot.slane %v8893_v56, 9  ;;  %v8898_v44 = vld [vmem:[#allocation2 + $0x68] sm:$0xe]  ;;  %v8990_v26 = vrot.slane %v15713_v49, 5  ;;  %v8994_v49 = vrot.slane %v15721_v40, 5 }
 0x6fa   :  { %v8666_v20 = vsel %vm13010_vm13, %v8661_v30, %v8665_v0  ;;  %v8680_v25 = vsel %vm13010_vm13, %v8675_v61, %v8679_v53  ;;  %v8722_v10 = vsel %vm13010_vm13, %v8717_v51, %v8721_v29  ;;  %v8943_v6 = vsel %vm13281_vm0, %v10845_v63, %v8942_v55  ;;  %v8895_v0 = vld [vmem:[#allocation2 + $0x40] sm:$0xe] }
 0x6fb   :  { %v10833_v24 = vcombine.low %v8652_v28, %v8666_v20  ;;  %v10834_v39 = vcombine.low %v8680_v25, %v8694_v7  ;;  %v10835_v23 = vcombine.low %v8708_v47, %v8722_v10  ;;  %v8947_v61 = vsel %vm13281_vm0, %v10846_v43, %v8946_v18  ;;  %v8897_v53 = vld [vmem:[#allocation2 + $0x60] sm:$0xe]  ;;  %v9618_v7 = vld [vmem:[%s16135_s6 + $0x1c] sm:$0xf] }
 0x6fc   :  { %v8959_v9 = vsel %vm13281_vm0, %v10849_v42, %v8958_v59  ;;  %v10850_v28 = vrot.slane %v8894_v8, 9  ;;  %v10851_v60 = vrot.slane %v8895_v0, 9  ;;  %v8966_v25 = vrot.slane %v15674_v58, 5  ;;  %v12281_v40 = vld [vmem:[#allocation2 + $0x20] ss:$8 sps:$4 sm:$0xff]  }
 0x6fd   :  { %11695 = vmatmul.mubr.msk.bf16.gmra.mrb[20].mxu1 %vm371_vm7, %v10831_v27  ;;  %v8891_v27 = vld [vmem:[#allocation2 + $0x20] sm:$0xe]  ;;  %v10862_v20 = vcombine.low %v8955_v35, %v8959_v9  ;;  %v10853_v50 = vrot.slane %v8897_v53, 9  ;;  %v10854_v38 = vrot.slane %v8898_v44, 9  ;;  %v8978_v63 = vrot.slane %v15705_v46, 5 }
 0x6fe   :  { %11698 = vmatprep.mubr.msk.bf16.mxu1 %vm371_vm7, %v10832_v17  ;;  %v10860_v17 = vcombine.low %v8939_v33, %v8943_v6  ;;  %v10847_v30 = vrot.slane %v8891_v27, 9  ;;  %v8963_v12 = vsel %vm13281_vm0, %v10850_v28, %v8962_v41  ;;  %v8967_v58 = vsel %vm13281_vm0, %v10851_v60, %v8966_v25  ;;  %v8902_v46 = vld [vmem:[#allocation2 + $0x88] sm:$0xe]  ;;  %v9362_v42 = vld [vmem:[#allocation2 + $0x10] sm:$0xf] }
 0x6ff   :  { %v8975_v5 = vsel %vm13281_vm0, %v10853_v50, %v8974_v48  ;;  %v10863_v51 = vcombine.low %v8963_v12, %v8967_v58  ;;  %v10856_v29 = vrot.slane %v8900_v52, 9  ;;  %v8986_v47 = vrot.slane %v15709_v57, 5  ;;  %v15809_v59 = vld [vmem:[%s16135_s6 + $0x20] sm:$0xf]  ;;  %v9368_v8 = vld [vmem:[#allocation2 + $0x28] sm:$0xf] }
 0x700   :  { %v8951_v1 = vsel %vm13281_vm0, %v10847_v30, %v8950_v22  ;;  %v10857_v10 = vrot.slane %v8901_v19, 9  ;;  %v8979_v33 = vsel %vm13281_vm0, %v10854_v38, %v8978_v63  ;;  %v10858_v56 = vrot.slane %v8902_v46, 9  ;;  %v12284_v41 = vld [vmem:[#allocation2 + $0x60] ss:$8 sps:$4 sm:$0xff]   ;;  %v15815_v60 = vld [vmem:[#allocation2 + $0x14] sm:$0x1] }
 0x701   :  { %v10861_v11 = vcombine.low %v8947_v61, %v8951_v1  ;;  %v8987_v21 = vsel %vm13281_vm0, %v10856_v29, %v8986_v47  ;;  %v10859_v43 = vrot.slane %v8903_v16, 9  ;;  %v9668_v13 = vsel %vm1155_vm9, %v9618_v7, 0  ;;  %v9364_v61 = vld [vmem:[#allocation2 + $0x18] sm:$0xf]  ;;  %v9366_v1 = vld [vmem:[#allocation2 + $0x20] sm:$0xf] }
 0x702   :  { %v8991_v27 = vsel %vm13281_vm0, %v10857_v10, %v8990_v26  ;;  %v8995_v18 = vsel %vm13281_vm0, %v10858_v56, %v8994_v49  ;;  %v9395_v35 = vshrl.u32 %v9362_v42, 16  ;;  %v9398_v9 = vshll.u32 %v9362_v42, 16  ;;  %v9370_v25 = vld [vmem:[#allocation2 + $0x30] sm:$0xf]  ;;  %v15819_v50 = vld [vmem:[#allocation2 + $0x24] sm:$0x1] }
 0x703   :  { %v9409_v0 = vshrl.u32 %v9364_v61, 16  ;;  %v9412_v54 = vshll.u32 %v9364_v61, 16  ;;  %v9423_v53 = vshrl.u32 %v9366_v1, 16  ;;  %v9437_v28 = vshrl.u32 %v9368_v8, 16  ;;  %v15821_v58 = vld [vmem:[#allocation2 + $0x2c] sm:$0x1] }
 0x704   :  { %v9372_v52 = vld [vmem:[#allocation2 + $0x38] sm:$0xf]  ;;  %v9451_v19 = vshrl.u32 %v9370_v25, 16  ;;  %v9446_v29 = vshll.u32 %v15821_v58, 16  ;;  %v9374_v56 = vld [vmem:[#allocation2 + $0x40] sm:$0xf] }
 0x705   :  { %11699 = vmatmul.mubr.msk.bf16.gmra.mrb[24].mxu1 %vm371_vm7, %v10833_v24  ;;  %v8971_v24 = vsel %vm13281_vm0, %v10852_v3, %v8970_v32  ;;  %v9397_v3 = vrot.slane %v9395_v35, 4  ;;  %v9400_v32 = vrot.slane %v9398_v9, 5  ;;  %v9411_v48 = vrot.slane %v9409_v0, 4  ;;  %v12285_v16 = vld [vmem:[#allocation2 + $0x70] ss:$8 sps:$4 sm:$0xff]  }
 0x706   :  { %11702 = vmatprep.mubr.msk.bf16.mxu1 %vm371_vm7, %v10834_v39  ;;  %v8899_v39 = vld [vmem:[#allocation2 + $0x70] sm:$0xe]  ;;  %v10864_v37 = vcombine.low %v8971_v24, %v8975_v5  ;;  %v9414_v12 = vrot.slane %v9412_v54, 5  ;;  %v9425_v44 = vrot.slane %v9423_v53, 4  ;;  %v9439_v5 = vrot.slane %v9437_v28, 4 }
 0x707   :  { %v10855_v55 = vrot.slane %v8899_v39, 9  ;;  %v9401_v38 = vor.u32 %v9400_v32, %v9397_v3  ;;  %v9465_v47 = vshrl.u32 %v9372_v52, 16  ;;  %v9468_v10 = vshll.u32 %v9372_v52, 16  ;;  %v12287_v32 = vld [vmem:[#allocation2 + $0x90] ss:$8 sps:$4 sm:$0xff]  }
 0x708   :  { %v9453_v46 = vrot.slane %v9451_v19, 4  ;;  %v9448_v61 = vrot.slane %v9446_v29, 5  ;;  %v9479_v35 = vshrl.u32 %v9374_v56, 16  ;;  %v9482_v9 = vshll.u32 %v9374_v56, 16  ;;  %v9382_v29 = vld [vmem:[#allocation2 + $0x70] sm:$0xf] }
 0x709   :  { %v8983_v6 = vsel %vm13281_vm0, %v10855_v55, %v8982_v36  ;;  %v9432_v55 = vshll.u32 %v15819_v50, 16  ;;  %v9415_v36 = vor.u32 %v9414_v12, %v9411_v48  ;;  %v15856_v56 = vld [vmem:[#allocation2 + $0x64] sm:$0x1] }
 0x70a   :  { %v10865_v57 = vcombine.low %v8979_v33, %v8983_v6  ;;  %v15829_v6 = vld [vmem:[#allocation2 + $0x34] sm:$0x1]  ;;  %v9481_v52 = vrot.slane %v9479_v35, 4  ;;  %v9484_v19 = vrot.slane %v9482_v9, 5 }
 0x70d   :  { %11703 = vmatmul.mubr.msk.bf16.gmra.mrb[28].mxu1 %vm371_vm7, %v10835_v23  ;;  %v10866_v23 = vcombine.low %v8987_v21, %v8991_v27  ;;  %v9376_v27 = vld [vmem:[#allocation2 + $0x48] sm:$0xf] }
 0x70e   :  { %11708 = vmatprep.mubr.msk.bf16.mxu1 %vm371_vm7, %v10860_v17  ;;  %v8998_v17 = vrot.slane %v15723_v15, 5  ;;  %v12282_v15 = vld [vmem:[#allocation2 + $0x30] ss:$8 sps:$4 sm:$0xff]   ;;  %v9493_v0 = vshrl.u32 %v9376_v27, 16  ;;  %v9496_v54 = vshll.u32 %v9376_v27, 16 }
 0x710   :  { %v8999_v30 = vsel %vm13281_vm0, %v10859_v43, %v8998_v17  ;;  %v9434_v17 = vrot.slane %v9432_v55, 5 }
 0x711   :  { %v10867_v22 = vcombine.low %v8995_v18, %v8999_v30  ;;  %v9378_v18 = vld [vmem:[#allocation2 + $0x60] sm:$0xf]  ;;  %v9416_v30 = vrot.slane %v9415_v36, 4 }
 0x712   :  { %v9507_v53 = vshrl.u32 %v9378_v18, 16 }
 0x715   :  { %11709 = vmatmul.mubr.msk.bf16.vlgmr.msra.gmra.mrb[16].mxu1 %vm371_vm7, %v10861_v11  ;;  %v9426_v11 = vshll.u32 %v9366_v1, 16 }
 0x716   :  { %11725 = vmatpush3.bf16.msra.mxu1 %v9247_v45  ;;  %11712 = vmatprep.mubr.msk.bf16.mxu1 %vm371_vm7, %v10862_v20  ;;  %v12283_v45 = vld [vmem:[#allocation2 + $0x40] ss:$8 sps:$4 sm:$0xff]   ;;  %v9440_v20 = vshll.u32 %v9368_v8, 16  ;;  %v15834_v8 = vld [vmem:[#allocation2 + $0x3c] sm:$0x1] }
 0x717   :  { %12192 = vmatprep.subr.msk.bf16.mxu1 %vm1155_vm9, %v9618_v7  ;;  %v15817_v7 = vld [vmem:[#allocation2 + $0x1c] sm:$0x1]  ;;  %v9428_v24 = vrot.slane %v9426_v11, 5  ;;  %v9510_v11 = vshll.u32 %v9378_v18, 16  ;;  %v9386_v18 = vld [vmem:[#allocation2 + $0x80] sm:$0xf] }
 0x718   :  { %v9442_v39 = vrot.slane %v9440_v20, 5  ;;  %v9418_v63 = vshll.u32 %v15817_v7, 16  ;;  %v9563_v35 = vshrl.u32 %v9386_v18, 16  ;;  %v9566_v9 = vshll.u32 %v9386_v18, 16 }
 0x719   :  { %v9429_v26 = vor.u32 %v9428_v24, %v9425_v44  ;;  %v9474_v24 = vshll.u32 %v15834_v8, 16 }
 0x71a   :  { %v9443_v33 = vor.u32 %v9442_v39, %v9439_v5  ;;  %v9420_v43 = vrot.slane %v9418_v63, 5  ;;  %v15845_v5 = vld [vmem:[#allocation2 + $0x4c] sm:$0x1]  ;;  %v15847_v39 = vld [vmem:[#allocation2 + $0x44] sm:$0x1]  ;;  %v9512_v63 = vrot.slane %v9510_v11, 5 }
 0x71c   :  { %v9444_v42 = vrot.slane %v9443_v33, 4  ;;  %v9502_v33 = vshll.u32 %v15845_v5, 16 }
 0x71d   :  { %11713 = vmatmul.mubr.msk.bf16.gmra.mrb[20].mxu1 %vm371_vm7, %v10863_v51  ;;  %v9454_v51 = vshll.u32 %v9370_v25, 16 }
 0x71e   :  { %11716 = vmatprep.mubr.msk.bf16.mxu1 %vm371_vm7, %v10864_v37  ;;  %v9404_v37 = vshll.u32 %v15815_v60, 16  ;;  %v9449_v12 = vsel %vm13010_vm13, %v9444_v42, %v9448_v61  ;;  %v9504_v42 = vrot.slane %v9502_v33, 5  ;;  %v9516_v61 = vshll.u32 %v15856_v56, 16  ;;  %v15877_v33 = vld [vmem:[#allocation2 + $0x7c] sm:$0x1] }
 0x71f   :  { %v9456_v21 = vrot.slane %v9454_v51, 5  ;;  %v9495_v51 = vrot.slane %v9493_v0, 4 }
 0x720   :  { %v9406_v49 = vrot.slane %v9404_v37, 5  ;;  %v9509_v37 = vrot.slane %v9507_v53, 4 }
 0x721   :  { %v9457_v1 = vor.u32 %v9456_v21, %v9453_v46  ;;  %v9384_v46 = vld [vmem:[#allocation2 + $0x78] sm:$0xf] }
 0x723   :  { %v9458_v44 = vrot.slane %v9457_v1, 4 }
 0x725   :  { %11717 = vmatmul.mubr.msk.bf16.gmra.mrb[24].mxu1 %vm371_vm7, %v10865_v57  ;;  %v12286_v57 = vld [vmem:[#allocation2 + $0x80] ss:$8 sps:$4 sm:$0xff]  }
 0x726   :  { %11720 = vmatprep.mubr.msk.bf16.mxu1 %vm371_vm7, %v10866_v23  ;;  %v9402_v23 = vrot.slane %v9401_v38, 4  ;;  %v9498_v38 = vrot.slane %v9496_v54, 5 }
 0x728   :  { %v9407_v20 = vsel %vm13010_vm13, %v9402_v23, %v9406_v49  ;;  %v15858_v23 = vld [vmem:[#allocation2 + $0x6c] sm:$0x1]  ;;  %v9499_v49 = vor.u32 %v9498_v38, %v9495_v51 }
 0x729   :  { %v9530_v1 = vshll.u32 %v15858_v23, 16 }
 0x72a   :  { %v9500_v11 = vrot.slane %v9499_v49, 4 }
 0x72d   :  { %11721 = vmatmul.mubr.msk.bf16.gmra.mrb[28].mxu1 %vm371_vm7, %v10867_v22  ;;  %v9460_v22 = vshll.u32 %v15829_v6, 16 }
 0x72e   :  { %11726 = vmatprep.mubr.msk.bf16.mxu1 %vm371_vm7, %v12280_v62  ;;  %v9467_v62 = vrot.slane %v9465_v47, 4 }
 0x72f   :  { %v9462_v25 = vrot.slane %v9460_v22, 5  ;;  %v9513_v22 = vor.u32 %v9512_v63, %v9509_v37  ;;  %v9392_v37 = vld [vmem:[#allocation2 + $0x98] sm:$0xf] }
 0x731   :  { %v9463_v27 = vsel %vm13010_vm13, %v9458_v44, %v9462_v25  ;;  %v9532_v44 = vrot.slane %v9530_v1, 5 }
 0x735   :  { %11727 = vmatmul.mubr.msk.bf16.vlgmr.msra.gmra.mrb[16].mxu1 %vm371_vm7, %v12281_v40  ;;  %v9470_v40 = vrot.slane %v9468_v10, 5  ;;  %v9945_v10 = vsel %vm1155_vm9, %v15809_v59, 0 }
 0x736   :  { %11743 = vmatpush3.bf16.msra.mxu1 %v9668_v13  ;;  %11730 = vmatprep.mubr.msk.bf16.mxu1 %vm371_vm7, %v12282_v15  ;;  %v9380_v13 = vld [vmem:[#allocation2 + $0x68] sm:$0xf]  ;;  %v9430_v15 = vrot.slane %v9429_v26, 4 }
 0x737   :  { %12193 = vmatprep.subr.msk.bf16.mxu1 %vm1155_vm9, %v15809_v59  ;;  %v9524_v28 = vshll.u32 %v9380_v13, 16  ;;  %v9471_v3 = vor.u32 %v9470_v40, %v9467_v62  ;;  %v9485_v59 = vor.u32 %v9484_v19, %v9481_v52  ;;  %v9549_v40 = vshrl.u32 %v9384_v46, 16 }
 0x738   :  { %v9435_v48 = vsel %vm13010_vm13, %v9430_v15, %v9434_v17  ;;  %v9538_v17 = vshll.u32 %v9382_v29, 16  ;;  %v9565_v52 = vrot.slane %v9563_v35, 4  ;;  %v9568_v19 = vrot.slane %v9566_v9, 5 }
 0x739   :  { %v9526_v36 = vrot.slane %v9524_v28, 5  ;;  %v9472_v26 = vrot.slane %v9471_v3, 4  ;;  %v10893_v21 = vcombine.low %v9435_v48, %v9449_v12  ;;  %v9486_v53 = vrot.slane %v9485_v59, 4 }
 0x73a   :  { %v9540_v28 = vrot.slane %v9538_v17, 5  ;;  %v9551_v25 = vrot.slane %v9549_v40, 4  ;;  %v9518_v12 = vrot.slane %v9516_v61, 5  ;;  %v9608_v59 = vshll.u32 %v9392_v37, 16 }
 0x73c   :  { %v9610_v35 = vrot.slane %v9608_v59, 5  ;;  %v9785_v59 = vld [vmem:[#allocation2 + $0x20] sm:$0xe] }
 0x73d   :  { %11731 = vmatmul.mubr.msk.bf16.gmra.mrb[20].mxu1 %vm371_vm7, %v12283_v45  ;;  %v9521_v45 = vshrl.u32 %v9380_v13, 16  ;;  %v9552_v13 = vshll.u32 %v9384_v46, 16  ;;  %v15879_v46 = vld [vmem:[#allocation2 + $0x84] sm:$0x1] }
 0x73e   :  { %11734 = vmatprep.mubr.msk.bf16.mxu1 %vm371_vm7, %v12284_v41  ;;  %v9421_v41 = vsel %vm13010_vm13, %v9416_v30, %v9420_v43  ;;  %v9535_v43 = vshrl.u32 %v9382_v29, 16  ;;  %v9388_v30 = vld [vmem:[#allocation2 + $0x88] sm:$0xf]  ;;  %v9505_v29 = vsel %vm13010_vm13, %v9500_v11, %v9504_v42 }
 0x73f   :  { %v9523_v55 = vrot.slane %v9521_v45, 4  ;;  %v10892_v47 = vcombine.low %v9407_v20, %v9421_v41  ;;  %v9577_v0 = vshrl.u32 %v9388_v30, 16  ;;  %v9580_v54 = vshll.u32 %v9388_v30, 16 }
 0x740   :  { %v9537_v45 = vrot.slane %v9535_v43, 4  ;;  %v9514_v20 = vrot.slane %v9513_v22, 4  ;;  %v9554_v3 = vrot.slane %v9552_v13, 5  ;;  %v9569_v43 = vor.u32 %v9568_v19, %v9565_v52  ;;  %v9783_v52 = vld [vmem:[#allocation2 + $0x10] sm:$0xe] }
 0x741   :  { %v9527_v62 = vor.u32 %v9526_v36, %v9523_v55  ;;  %v9579_v51 = vrot.slane %v9577_v0, 4  ;;  %v9582_v38 = vrot.slane %v9580_v54, 5  ;;  %v15869_v55 = vld [vmem:[#allocation2 + $0x74] sm:$0x1]  ;;  %v9558_v22 = vshll.u32 %v15877_v33, 16 }
 0x742   :  { %v9541_v36 = vor.u32 %v9540_v28, %v9537_v45  ;;  %v9544_v49 = vshll.u32 %v15869_v55, 16  ;;  %v9572_v13 = vshll.u32 %v15879_v46, 16  ;;  %v9570_v0 = vrot.slane %v9569_v43, 4  ;;  %v9784_v19 = vld [vmem:[#allocation2 + $0x18] sm:$0xe] }
 0x743   :  { %v9528_v41 = vrot.slane %v9527_v62, 4  ;;  %v9583_v17 = vor.u32 %v9582_v38, %v9579_v51 }
 0x744   :  { %v9542_v30 = vrot.slane %v9541_v36, 4  ;;  %v9546_v9 = vrot.slane %v9544_v49, 5  ;;  %v9574_v45 = vrot.slane %v9572_v13, 5  ;;  %v9845_v13 = vrot.slane %v15821_v58, 5 }
 0x745   :  { %11735 = vmatmul.mubr.msk.bf16.gmra.mrb[24].mxu1 %vm371_vm7, %v12285_v16  ;;  %v9476_v16 = vrot.slane %v9474_v24, 5  ;;  %v9390_v24 = vld [vmem:[#allocation2 + $0x90] sm:$0xf]  ;;  %v9584_v54 = vrot.slane %v9583_v17, 4 }
 0x746   :  { %11738 = vmatprep.mubr.msk.bf16.mxu1 %vm371_vm7, %v12286_v57  ;;  %v9488_v57 = vshll.u32 %v15847_v39, 16  ;;  %v9547_v11 = vsel %vm13010_vm13, %v9542_v30, %v9546_v9  ;;  %v9787_v17 = vld [vmem:[#allocation2 + $0x30] sm:$0xe]  ;;  %v10910_v30 = vrot.slane %v9785_v59, 9 }
 0x747   :  { %v9477_v15 = vsel %vm13010_vm13, %v9472_v26, %v9476_v16  ;;  %v9533_v26 = vsel %vm13010_vm13, %v9528_v41, %v9532_v44  ;;  %v9594_v16 = vshll.u32 %v9390_v24, 16  ;;  %v15893_v41 = vld [vmem:[#allocation2 + $0x9c] sm:$0x1]  ;;  %v10912_v34 = vrot.slane %v9787_v17, 9 }
 0x748   :  { %v9490_v48 = vrot.slane %v9488_v57, 5  ;;  %v9605_v57 = vshrl.u32 %v9392_v37, 16 }
 0x749   :  { %v9596_v61 = vrot.slane %v9594_v16, 5 }
 0x74a   :  { %v9491_v63 = vsel %vm13010_vm13, %v9486_v53, %v9490_v48  ;;  %v9607_v1 = vrot.slane %v9605_v57, 4  ;;  %v9560_v53 = vrot.slane %v9558_v22, 5  ;;  %v9614_v48 = vshll.u32 %v15893_v41, 16 }
 0x74b   :  { %v10895_v18 = vcombine.low %v9491_v63, %v9505_v29  ;;  %v10908_v29 = vrot.slane %v9783_v52, 9 }
 0x74c   :  { %v9616_v36 = vrot.slane %v9614_v48, 5 }
 0x74d   :  { %11739 = vmatmul.mubr.msk.bf16.gmra.mrb[28].mxu1 %vm371_vm7, %v12287_v32  ;;  %v10894_v32 = vcombine.low %v9463_v27, %v9477_v15  ;;  %v9591_v27 = vshrl.u32 %v9390_v24, 16 }
 0x74e   :  { %11744 = vmatprep.mubr.msk.bf16.mxu1 %vm371_vm7, %v10892_v47  ;;  %v9519_v47 = vsel %vm13010_vm13, %v9514_v20, %v9518_v12  ;;  %v15891_v20 = vld [vmem:[#allocation2 + $0x94] sm:$0x1]  ;;  %v9575_v12 = vsel %vm13010_vm13, %v9570_v0, %v9574_v45  ;;  %v9790_v0 = vld [vmem:[#allocation2 + $0x48] sm:$0xe]  ;;  %v9857_v45 = vrot.slane %v15847_v39, 5 }
 0x74f   :  { %v10896_v62 = vcombine.low %v9519_v47, %v9533_v26  ;;  %v9593_v42 = vrot.slane %v9591_v27, 4  ;;  %v9600_v24 = vshll.u32 %v15891_v20, 16  ;;  %v9833_v47 = vrot.slane %v15815_v60, 5  ;;  %v9786_v60 = vld [vmem:[#allocation2 + $0x28] sm:$0xe] }
 0x750   :  { %v10909_v26 = vrot.slane %v9784_v19, 9  ;;  %v9793_v39 = vld [vmem:[#allocation2 + $0x70] sm:$0xe]  ;;  %v9794_v19 = vld [vmem:[#allocation2 + $0x78] sm:$0xe] }
 0x751   :  { %v9602_v27 = vrot.slane %v9600_v24, 5  ;;  %v9834_v49 = vsel %vm13281_vm0, %v10908_v29, %v9833_v47  ;;  %v9877_v29 = vrot.slane %v15877_v33, 5 }
 0x755   :  { %11745 = vmatmul.mubr.msk.bf16.vlgmr.msra.gmra.mrb[16].mxu1 %vm371_vm7, %v10893_v21  ;;  %v15881_v21 = vld [vmem:[#allocation2 + $0x8c] sm:$0x1] }
 0x756   :  { %11761 = vmatpush3.bf16.msra.mxu1 %v9945_v10  ;;  %11748 = vmatprep.mubr.msk.bf16.mxu1 %vm371_vm7, %v10894_v32  ;;  %v9555_v10 = vor.u32 %v9554_v3, %v9551_v25  ;;  %v9586_v15 = vshll.u32 %v15881_v21, 16  ;;  %v9597_v3 = vor.u32 %v9596_v61, %v9593_v42  ;;  %v9611_v32 = vor.u32 %v9610_v35, %v9607_v1 }
 0x757   :  { %v9853_v61 = vrot.slane %v15834_v8, 5 }
 0x758   :  { %v9556_v40 = vrot.slane %v9555_v10, 4  ;;  %v9588_v28 = vrot.slane %v9586_v15, 5  ;;  %v9598_v37 = vrot.slane %v9597_v3, 4  ;;  %v9612_v63 = vrot.slane %v9611_v32, 4 }
 0x759   :  { %v9837_v10 = vrot.slane %v15817_v7, 5  ;;  %v9849_v15 = vrot.slane %v15829_v6, 5  ;;  %v9791_v6 = vld [vmem:[#allocation2 + $0x60] sm:$0xe]  ;;  %v9865_v32 = vrot.slane %v15856_v56, 5 }
 0x75a   :  { %v9561_v25 = vsel %vm13010_vm13, %v9556_v40, %v9560_v53  ;;  %v9589_v44 = vsel %vm13010_vm13, %v9584_v54, %v9588_v28  ;;  %v9603_v16 = vsel %vm13010_vm13, %v9598_v37, %v9602_v27  ;;  %v9617_v57 = vsel %vm13010_vm13, %v9612_v63, %v9616_v36  ;;  %v9792_v54 = vld [vmem:[#allocation2 + $0x68] sm:$0xe]  ;;  %v9795_v56 = vld [vmem:[#allocation2 + $0x80] sm:$0xe] }
 0x75b   :  { %v10897_v51 = vcombine.low %v9547_v11, %v9561_v25  ;;  %v10898_v38 = vcombine.low %v9575_v12, %v9589_v44  ;;  %v9838_v43 = vsel %vm13281_vm0, %v10909_v26, %v9837_v10  ;;  %v10899_v7 = vcombine.low %v9603_v16, %v9617_v57 }
 0x75c   :  { %v10924_v22 = vcombine.low %v9834_v49, %v9838_v43  ;;  %v10911_v40 = vrot.slane %v9786_v60, 9  ;;  %v9850_v58 = vsel %vm13281_vm0, %v10912_v34, %v9849_v15  ;;  %v10915_v28 = vrot.slane %v9790_v0, 9  ;;  %v9798_v49 = vld [vmem:[#allocation2 + $0x98] sm:$0xe] }
 0x75d   :  { %11749 = vmatmul.mubr.msk.bf16.gmra.mrb[20].mxu1 %vm371_vm7, %v10895_v18  ;;  %v9788_v18 = vld [vmem:[#allocation2 + $0x38] sm:$0xe]  ;;  %v9861_v25 = vrot.slane %v15845_v5, 5  ;;  %v10916_v3 = vrot.slane %v9791_v6, 9  ;;  %v10917_v48 = vrot.slane %v9792_v54, 9  ;;  %v9869_v12 = vrot.slane %v15858_v23, 5 }
 0x75e   :  { %11752 = vmatprep.mubr.msk.bf16.mxu1 %vm371_vm7, %v10896_v62  ;;  %v9841_v62 = vrot.slane %v15819_v50, 5  ;;  %v10913_v42 = vrot.slane %v9788_v18, 9  ;;  %v9846_v35 = vsel %vm13281_vm0, %v10911_v40, %v9845_v13  ;;  %v9789_v50 = vld [vmem:[#allocation2 + $0x40] sm:$0xe]  ;;  %v10918_v23 = vrot.slane %v9793_v39, 9 }
 0x75f   :  { %v10914_v8 = vrot.slane %v9789_v50, 9  ;;  %v9862_v24 = vsel %vm13281_vm0, %v10915_v28, %v9861_v25  ;;  %v9866_v5 = vsel %vm13281_vm0, %v10916_v3, %v9865_v32  ;;  %v9870_v52 = vsel %vm13281_vm0, %v10917_v48, %v9869_v12 }
 0x760   :  { %v9842_v1 = vsel %vm13281_vm0, %v10910_v30, %v9841_v62  ;;  %v9854_v9 = vsel %vm13281_vm0, %v10913_v42, %v9853_v61  ;;  %v10928_v37 = vcombine.low %v9866_v5, %v9870_v52  ;;  %v9873_v63 = vrot.slane %v15869_v55, 5  ;;  %v9797_v55 = vld [vmem:[#allocation2 + $0x90] sm:$0xe] }
 0x761   :  { %v10925_v53 = vcombine.low %v9842_v1, %v9846_v35  ;;  %v10926_v11 = vcombine.low %v9850_v58, %v9854_v9  ;;  %v9858_v44 = vsel %vm13281_vm0, %v10914_v8, %v9857_v45  ;;  %v10919_v36 = vrot.slane %v9794_v19, 9 }
 0x762   :  { %v10920_v47 = vrot.slane %v9795_v56, 9  ;;  %v9881_v26 = vrot.slane %v15879_v46, 5  ;;  %v9885_v27 = vrot.slane %v15881_v21, 5  ;;  %v9874_v16 = vsel %vm13281_vm0, %v10918_v23, %v9873_v63 }
 0x763   :  { %v9878_v57 = vsel %vm13281_vm0, %v10919_v36, %v9877_v29  ;;  %v10922_v43 = vrot.slane %v9797_v55, 9  ;;  %v9889_v21 = vrot.slane %v15891_v20, 5  ;;  %v10923_v17 = vrot.slane %v9798_v49, 9 }
 0x764   :  { %v9882_v33 = vsel %vm13281_vm0, %v10920_v47, %v9881_v26  ;;  %v10929_v46 = vcombine.low %v9874_v16, %v9878_v57  ;;  %v9893_v18 = vrot.slane %v15893_v41, 5 }
 0x765   :  { %11753 = vmatmul.mubr.msk.bf16.gmra.mrb[24].mxu1 %vm371_vm7, %v10897_v51  ;;  %v9796_v51 = vld [vmem:[#allocation2 + $0x88] sm:$0xe] }
 0x766   :  { %11756 = vmatprep.mubr.msk.bf16.mxu1 %vm371_vm7, %v10898_v38  ;;  %v10927_v38 = vcombine.low %v9858_v44, %v9862_v24  ;;  %v10921_v10 = vrot.slane %v9796_v51, 9  ;;  %v9894_v30 = vsel %vm13281_vm0, %v10923_v17, %v9893_v18 }
 0x768   :  { %v9886_v59 = vsel %vm13281_vm0, %v10921_v10, %v9885_v27 }
 0x769   :  { %v10930_v60 = vcombine.low %v9882_v33, %v9886_v59 }
 0x76d   :  { %11757 = vmatmul.mubr.msk.bf16.gmra.mrb[28].mxu1 %vm371_vm7, %v10899_v7  ;;  %v9890_v7 = vsel %vm13281_vm0, %v10922_v43, %v9889_v21 }
 0x76e   :  { %11762 = vmatprep.mubr.msk.bf16.mxu1 %vm371_vm7, %v10924_v22  ;;  %v10931_v22 = vcombine.low %v9890_v7, %v9894_v30 }
 0x775   :  { %11763 = vmatmul.mubr.msk.bf16.vlgmr.msra.gmra.mrb[16].mxu1 %vm371_vm7, %v10925_v53 }
 0x776   :  { %11766 = vmatprep.mubr.msk.bf16.mxu1 %vm371_vm7, %v10926_v11 }
 0x77d   :  { %11767 = vmatmul.mubr.msk.bf16.gmra.mrb[20].mxu1 %vm371_vm7, %v10927_v38 }
 0x77e   :  { %11770 = vmatprep.mubr.msk.bf16.mxu1 %vm371_vm7, %v10928_v37 }
 0x785   :  { %11771 = vmatmul.mubr.msk.bf16.gmra.mrb[24].mxu1 %vm371_vm7, %v10929_v46 }
 0x786   :  { %11774 = vmatprep.mubr.msk.bf16.mxu1 %vm371_vm7, %v10930_v60 }
 0x78d   :  { %11775 = vmatmul.mubr.msk.bf16.gmra.mrb[28].mxu1 %vm371_vm7, %v10931_v22 }
 0x848   :  { %v11764_v62 = vpop.f32.mrb[16].mxu1 }
 0x849   :  { %v9981_v40 = vpop.f32.mrb[17].mxu1  ;;  %v10065_v42 = vsel %vm371_vm7, %v11764_v62, 0.0 }
 0x84a   :  { %v11765_v13 = vpop.f32.mrb[18].mxu1  ;;  %v10062_v34 = vsel %vm371_vm7, %v9981_v40, 0.0 }
 0x84b   :  { %v9984_v20 = vpop.f32.mrb[19].mxu1  ;;  %v10067_v1 = vsel %vm371_vm7, %v11765_v13, 0.0 }
 0x84c   :  { %v10063_v41 = vsel %vm371_vm7, %v9984_v20, 0.0 }
 0x84d   :  { %v10064_v15 = vadd.f32 %v10063_v41, %v10062_v34 }
 0x84f   :  { %v10066_v61 = vadd.f32 %v10065_v42, %v10064_v15 }
 0x850   :  { %v11768_v35 = vpop.f32.mrb[20].mxu1 }
 0x851   :  { %v9997_v2 = vpop.f32.mrb[21].mxu1  ;;  %v10068_v50 = vadd.f32 %v10067_v1, %v10066_v61  ;;  %v10073_v8 = vsel %vm371_vm7, %v11768_v35, 0.0 }
 0x852   :  { %v10069_v58 = vsel %vm371_vm7, %v9997_v2, 0.0  ;;  %v11769_v9 = vpop.f32.mrb[22].mxu1 }
 0x853   :  { %v10070_v0 = vadd.f32 %v10069_v58, %v10068_v50  ;;  %v10000_v6 = vpop.f32.mrb[23].mxu1  ;;  %v10075_v45 = vsel %vm371_vm7, %v11769_v9, 0.0 }
 0x854   :  { %v10071_v54 = vsel %vm371_vm7, %v10000_v6, 0.0 }
 0x855   :  { %v10072_v53 = vadd.f32 %v10071_v54, %v10070_v0 }
 0x857   :  { %v10074_v11 = vadd.f32 %v10073_v8, %v10072_v53 }
 0x858   :  { %v11772_v28 = vpop.f32.mrb[24].mxu1 }
 0x859   :  { %v10013_v25 = vpop.f32.mrb[25].mxu1  ;;  %v10076_v3 = vadd.f32 %v10075_v45, %v10074_v11  ;;  %v10081_v5 = vsel %vm371_vm7, %v11772_v28, 0.0 }
 0x85a   :  { %v10077_v32 = vsel %vm371_vm7, %v10013_v25, 0.0  ;;  %v11773_v48 = vpop.f32.mrb[26].mxu1 }
 0x85b   :  { %v10078_v12 = vadd.f32 %v10077_v32, %v10076_v3  ;;  %v10016_v44 = vpop.f32.mrb[27].mxu1  ;;  %v10083_v19 = vsel %vm371_vm7, %v11773_v48, 0.0 }
 0x85c   :  { %v10079_v24 = vsel %vm371_vm7, %v10016_v44, 0.0 }
 0x85d   :  { %v10080_v39 = vadd.f32 %v10079_v24, %v10078_v12 }
 0x85f   :  { %v10082_v52 = vadd.f32 %v10081_v5, %v10080_v39 }
 0x860   :  { %v11776_v56 = vpop.f32.mrb[28].mxu1 }
 0x861   :  { %v10029_v51 = vpop.f32.mrb[29].mxu1  ;;  %v10084_v38 = vadd.f32 %v10083_v19, %v10082_v52  ;;  %v10089_v26 = vsel %vm371_vm7, %v11776_v56, 0.0 }
 0x862   :  { %v10085_v23 = vsel %vm371_vm7, %v10029_v51, 0.0  ;;  %v11777_v37 = vpop.f32.mrb[30].mxu1 }
 0x863   :  { %v10086_v63 = vadd.f32 %v10085_v23, %v10084_v38  ;;  %v10032_v36 = vpop.f32.mrb[31].mxu1  ;;  %v10091_v27 = vsel %vm371_vm7, %v11777_v37, 0.0 }
 0x864   :  { %v10087_v29 = vsel %vm371_vm7, %v10032_v36, 0.0 }
 0x865   :  { %v10088_v47 = vadd.f32 %v10087_v29, %v10086_v63 }
 0x867   :  { %v10090_v10 = vadd.f32 %v10089_v26, %v10088_v47 }
 0x869   :  { %v10092_v16 = vadd.f32 %v10091_v27, %v10090_v10 }
 0x86b   :  { %v10093_v57 = vrot.slane %v10092_v16, 4 }
 0x86d   :  { %v10094_v55 = vadd.f32 %v10093_v57, %v10092_v16 }
 0x86f   :  { %v10095_v33 = vrot.slane %v10094_v55, 2 }
 0x871   :  { %v10096_v59 = vadd.f32 %v10095_v33, %v10094_v55 }
 0x873   :  { %v10097_v49 = vrot.slane %v10096_v59, 1 }
 0x875   :  { %v10098_v46 = vadd.f32 %v10097_v49, %v10096_v59 }
 0x877   :  { %v10099_v43 = vmul.f32 0.0078125, %v10098_v46 }
 0x879   :  { %v15982_v60 = vsub.f32 %v9981_v40, %v10099_v43  ;;  %v15984_v21 = vsub.f32 %v9984_v20, %v10099_v43  ;;  %v15986_v17 = vsub.f32 %v11764_v62, %v10099_v43  ;;  %v15988_v18 = vsub.f32 %v11765_v13, %v10099_v43 }
 0x87a   :  { %v15990_v7 = vsub.f32 %v9997_v2, %v10099_v43  ;;  %v15992_v30 = vsub.f32 %v10000_v6, %v10099_v43  ;;  %v15994_v22 = vsub.f32 %v11768_v35, %v10099_v43  ;;  %v15996_v34 = vsub.f32 %v11769_v9, %v10099_v43 }
 0x87b   :  { %v15998_v41 = vsub.f32 %v10013_v25, %v10099_v43  ;;  %v16000_v15 = vsub.f32 %v10016_v44, %v10099_v43  ;;  %v16002_v40 = vsub.f32 %v11772_v28, %v10099_v43  ;;  %v16004_v20 = vsub.f32 %v11773_v48, %v10099_v43 }
 0x87c   :  { %v16006_v62 = vsub.f32 %v10029_v51, %v10099_v43  ;;  %v16008_v13 = vsub.f32 %v10032_v36, %v10099_v43  ;;  %v16010_v42 = vsub.f32 %v11776_v56, %v10099_v43  ;;  %v16012_v61 = vsub.f32 %v11777_v37, %v10099_v43 }
 0x87d   :  { %v10116_v1 = vmul.f32 %v15982_v60, %v15982_v60  ;;  %v10117_v35 = vmul.f32 %v15984_v21, %v15984_v21  ;;  %v10118_v2 = vmul.f32 %v15986_v17, %v15986_v17  ;;  %v10119_v50 = vmul.f32 %v15988_v18, %v15988_v18 }
 0x87e   :  { %v10120_v6 = vmul.f32 %v15990_v7, %v15990_v7  ;;  %v10121_v8 = vmul.f32 %v15992_v30, %v15992_v30  ;;  %v10122_v28 = vmul.f32 %v15994_v22, %v15994_v22  ;;  %v10123_v32 = vmul.f32 %v15996_v34, %v15996_v34 }
 0x87f   :  { %v10132_v58 = vsel %vm371_vm7, %v10116_v1, 0.0  ;;  %v10133_v9 = vsel %vm371_vm7, %v10117_v35, 0.0  ;;  %v10135_v54 = vsel %vm371_vm7, %v10118_v2, 0.0  ;;  %v10137_v11 = vsel %vm371_vm7, %v10119_v50, 0.0 }
 0x880   :  { %v10134_v0 = vadd.f32 %v10133_v9, %v10132_v58  ;;  %v10139_v25 = vsel %vm371_vm7, %v10120_v6, 0.0  ;;  %v10141_v48 = vsel %vm371_vm7, %v10121_v8, 0.0  ;;  %v10124_v44 = vmul.f32 %v15998_v41, %v15998_v41  ;;  %v10060_v8 = vld [vmem:[%s16136_s7 + $0x8] sm:$0x1] }
 0x881   :  { %v10143_v24 = vsel %vm371_vm7, %v10122_v28, 0.0  ;;  %v10125_v5 = vmul.f32 %v16000_v15, %v16000_v15  ;;  %v10145_v52 = vsel %vm371_vm7, %v10123_v32, 0.0  ;;  %v10126_v56 = vmul.f32 %v16002_v40, %v16002_v40 }
 0x882   :  { %v10136_v53 = vadd.f32 %v10135_v54, %v10134_v0  ;;  %v10147_v51 = vsel %vm371_vm7, %v10124_v44, 0.0  ;;  %v10127_v23 = vmul.f32 %v16004_v20, %v16004_v20  ;;  %v10128_v36 = vmul.f32 %v16006_v62, %v16006_v62 }
 0x883   :  { %v10149_v37 = vsel %vm371_vm7, %v10125_v5, 0.0  ;;  %v10151_v29 = vsel %vm371_vm7, %v10126_v56, 0.0  ;;  %v10129_v26 = vmul.f32 %v16008_v13, %v16008_v13  ;;  %v10130_v16 = vmul.f32 %v16010_v42, %v16010_v42 }
 0x884   :  { %v10138_v45 = vadd.f32 %v10137_v11, %v10136_v53  ;;  %v10153_v10 = vsel %vm371_vm7, %v10127_v23, 0.0  ;;  %v10155_v57 = vsel %vm371_vm7, %v10128_v36, 0.0  ;;  %v10131_v33 = vmul.f32 %v16012_v61, %v16012_v61 }
 0x885   :  { %v10157_v59 = vsel %vm371_vm7, %v10129_v26, 0.0  ;;  %v10159_v46 = vsel %vm371_vm7, %v10130_v16, 0.0  ;;  %v16262_v26 = vld [vmem:[#allocation11_spill] sm:$0xff] }
 0x886   :  { %v10140_v3 = vadd.f32 %v10139_v25, %v10138_v45  ;;  %v10161_v1 = vsel %vm371_vm7, %v10131_v33, 0.0  ;;  %v16265_v33 = vld [vmem:[#allocation13_spill] sm:$0xff] }
 0x888   :  { %v10142_v12 = vadd.f32 %v10141_v48, %v10140_v3 }
 0x88a   :  { %v10144_v39 = vadd.f32 %v10143_v24, %v10142_v12  ;;  %v10940_v12 = vld [vmem:[%s16136_s7 + $0x9] ss:$0 sm:$0xff]  ;;  %s12333_s7 = smov [#allocation3]  }
 0x88b   :  { %s10266_s15 = sshll.u32 %s12333_s7, 4  ;;  %s10267_s15 = int_to_ptr.vmem [resolvable:$true] %s10266_s15 }
 0x88c   :  { %v10146_v19 = vadd.f32 %v10145_v52, %v10144_v39  ;;  %s12308_s2 = scalar_lea.vmem %s10267_s15, 2048  ;;  %p12313_p1 = scmp.lt.s32.totalorder %s10267_s15, %s10267_s15 }
 0x88d   :  { %p12309_p0 = scmp.ne.s32.totalorder %s10267_s15, %s12308_s2  ;;  %p12314_p2 = scmp.lt.s32.totalorder %s12308_s2, %s12308_s2 }
 0x88e   :  { %v10148_v38 = vadd.f32 %v10147_v51, %v10146_v19 }
 0x88f   :  { %p12315_p3 = por %p12314_p2, %p12313_p1 }
 0x890   :  { %v10150_v63 = vadd.f32 %v10149_v37, %v10148_v38 }
 0x891   :  { %p12316_p4 = pnand %p12315_p3, %p12309_p0 }
 0x892   :  { %v10152_v47 = vadd.f32 %v10151_v29, %v10150_v63  ;;  %v16261_v29 = vld [vmem:[#allocation10_spill] sm:$0xff] }
 0x894   :  { %v10154_v27 = vadd.f32 %v10153_v10, %v10152_v47 }
 0x896   :  { %v10156_v55 = vadd.f32 %v10155_v57, %v10154_v27  ;;  %v16263_v27 = vld [vmem:[#allocation12_spill] sm:$0xff]  ;;  %v16264_v57 = vld [vmem:[#allocation7_spill] sm:$0xff] }
 0x898   :  { %v10158_v49 = vadd.f32 %v10157_v59, %v10156_v55 }
 0x89a   :  { %v10160_v43 = vadd.f32 %v10159_v46, %v10158_v49  ;;  %v16266_v49 = vld [vmem:[#allocation14_spill] sm:$0xff] }
 0x89c   :  { %v10162_v35 = vadd.f32 %v10161_v1, %v10160_v43  ;;  %v16267_v43 = vld [vmem:[#allocation15_spill] sm:$0xff] }
 0x89e   :  { %v10163_v2 = vrot.slane %v10162_v35, 4 }
 0x8a0   :  { %v10164_v50 = vadd.f32 %v10163_v2, %v10162_v35  ;;  %v16268_v35 = vld [vmem:[#allocation16_spill] sm:$0xff] }
 0x8a2   :  { %v10165_v58 = vrot.slane %v10164_v50, 2 }
 0x8a4   :  { %v10166_v9 = vadd.f32 %v10165_v58, %v10164_v50  ;;  %v16269_v50 = vld [vmem:[#allocation6_spill] sm:$0xff]  ;;  %v16270_v58 = vld [vmem:[#allocation17_spill] sm:$0xff] }
 0x8a6   :  { %v10167_v0 = vrot.slane %v10166_v9, 1 }
 0x8a8   :  { %v10168_v6 = vadd.f32 %v10167_v0, %v10166_v9  ;;  %v16271_v9 = vld [vmem:[#allocation18_spill] sm:$0xff] }
 0x8aa   :  { %v10169_v54 = vmul.f32 0.0078125, %v10168_v6  ;;  %v16272_v6 = vld [vmem:[#allocation8_spill] sm:$0xff] }
 0x8ac   :  { %v10170_v53 = vadd.f32 1e-05, %v10169_v54 }
 0x8ae   :  { %12296 = vrsqrt.f32 %v10170_v53  ;;  %v16273_v53 = vld [vmem:[#allocation19_spill] sm:$0xff] }
 0x8b8   :  { %v12297_v11 = vpop.eup %12296 }
 0x8b9   :  { %v10172_v45 = vmul.f32 %v12297_v11, %v10060_v8  ;;  %v16274_v11 = vld [vmem:[#allocation20_spill] sm:$0xff] }
 0x8bb   :  { %v10176_v28 = vrot.slane %v10172_v45, %v16219_v4 }
 0x8bd   :  { %v10177_v25 = vmul.f32 %v10176_v28, %v15982_v60  ;;  %v10178_v3 = vmul.f32 %v10176_v28, %v15984_v21  ;;  %v10179_v32 = vmul.f32 %v10176_v28, %v15986_v17  ;;  %v10180_v48 = vmul.f32 %v10176_v28, %v15988_v18 }
 0x8be   :  { %v10181_v44 = vmul.f32 %v10176_v28, %v15990_v7  ;;  %v10182_v24 = vmul.f32 %v10176_v28, %v15992_v30  ;;  %v10183_v39 = vmul.f32 %v10176_v28, %v15994_v22  ;;  %v10184_v4 = vmul.f32 %v10176_v28, %v15996_v34 }
 0x8bf   :  { %v10185_v60 = vmul.f32 %v10176_v28, %v15998_v41  ;;  %v10186_v21 = vmul.f32 %v10176_v28, %v16000_v15  ;;  %v10187_v17 = vmul.f32 %v10176_v28, %v16002_v40  ;;  %v10188_v18 = vmul.f32 %v10176_v28, %v16004_v20 }
 0x8c0   :  { %v10189_v5 = vmul.f32 %v10176_v28, %v16006_v62  ;;  %v10190_v52 = vmul.f32 %v10176_v28, %v16008_v13  ;;  %v10191_v7 = vmul.f32 %v10176_v28, %v16010_v42  ;;  %v10192_v30 = vmul.f32 %v10176_v28, %v16012_v61 }
 0x8c1   :  { %v10197_v19 = vadd.f32 %v10940_v12, %v10177_v25  ;;  %v10198_v22 = vadd.f32 %v10940_v12, %v10178_v3  ;;  %v10199_v56 = vadd.f32 %v10940_v12, %v10179_v32  ;;  %v10200_v34 = vadd.f32 %v10940_v12, %v10180_v48 }
 0x8c2   :  { %v10201_v51 = vadd.f32 %v10940_v12, %v10181_v44  ;;  %v10202_v41 = vadd.f32 %v10940_v12, %v10182_v24  ;;  %v10203_v38 = vadd.f32 %v10940_v12, %v10183_v39  ;;  %v10204_v15 = vadd.f32 %v10940_v12, %v10184_v4 }
 0x8c3   :  { %v10205_v23 = vadd.f32 %v10940_v12, %v10185_v60  ;;  %v10206_v40 = vadd.f32 %v10940_v12, %v10186_v21  ;;  %v10207_v37 = vadd.f32 %v10940_v12, %v10187_v17  ;;  %v10208_v20 = vadd.f32 %v10940_v12, %v10188_v18 }
 0x8c4   :  { %v10209_v63 = vadd.f32 %v10940_v12, %v10189_v5  ;;  %v10210_v62 = vadd.f32 %v10940_v12, %v10190_v52  ;;  %v10211_v36 = vadd.f32 %v10940_v12, %v10191_v7  ;;  %v10212_v13 = vadd.f32 %v10940_v12, %v10192_v30 }
 0x8c5   :  { %v10213_v42 = vadd.f32 %v10197_v19, %v14091_v14  ;;  %v10214_v61 = vadd.f32 %v10198_v22, %v14093_v31  ;;  %v10215_v47 = vadd.f32 %v10199_v56, %v16261_v29  ;;  %v10216_v10 = vadd.f32 %v10200_v34, %v16262_v26 }
 0x8c6   :  { %v10217_v16 = vadd.f32 %v10201_v51, %v16263_v27  ;;  %v10218_v55 = vadd.f32 %v10202_v41, %v16264_v57  ;;  %v10219_v59 = vadd.f32 %v10203_v38, %v16265_v33  ;;  %v10220_v46 = vadd.f32 %v10204_v15, %v16266_v49 }
 0x8c7   :  { %v10221_v1 = vadd.f32 %v10205_v23, %v16267_v43  ;;  %v10222_v2 = vadd.f32 %v10206_v40, %v16268_v35  ;;  %v10223_v14 = vadd.f32 %v10207_v37, %v16269_v50  ;;  %v10224_v31 = vadd.f32 %v10208_v20, %v16270_v58 }
 0x8c8   :  { %v10225_v0 = vadd.f32 %v10209_v63, %v16271_v9  ;;  %v10226_v54 = vadd.f32 %v10210_v62, %v16272_v6  ;;  %v10227_v8 = vadd.f32 %v10211_v36, %v16273_v53  ;;  %v10228_v45 = vadd.f32 %v10212_v13, %v16274_v11 }
 0x8c9   :  { %v10229_v28 = vmax.f32 %v10213_v42, 0.0  ;;  %v10230_v25 = vmax.f32 %v10214_v61, 0.0  ;;  %v10231_v3 = vmax.f32 %v10215_v47, 0.0  ;;  %v10232_v32 = vmax.f32 %v10216_v10, 0.0 }
 0x8ca   :  { %v10233_v48 = vmax.f32 %v10217_v16, 0.0  ;;  %v10234_v12 = vmax.f32 %v10218_v55, 0.0  ;;  %v10235_v44 = vmax.f32 %v10219_v59, 0.0  ;;  %v10236_v24 = vmax.f32 %v10220_v46, 0.0 }
 0x8cb   :  { %v10237_v39 = vmax.f32 %v10221_v1, 0.0  ;;  %v10238_v4 = vmax.f32 %v10222_v2, 0.0  ;;  %v10239_v60 = vmax.f32 %v10223_v14, 0.0  ;;  %v10240_v21 = vmax.f32 %v10224_v31, 0.0  ;;  %10245 = vst.msk [vmem:[#allocation3] sm:$0xff] %vm371_vm7, %v10229_v28  ;;  %10246 = vst.msk [vmem:[#allocation3 + $0x8] sm:$0xff] %vm371_vm7, %v10230_v25 }
 0x8cc   :  { %10247 = vst.msk [vmem:[#allocation3 + $0x10] sm:$0xff] %vm371_vm7, %v10231_v3  ;;  %10248 = vst.msk [vmem:[#allocation3 + $0x18] sm:$0xff] %vm371_vm7, %v10232_v32  ;;  %v10241_v17 = vmax.f32 %v10225_v0, 0.0  ;;  %v10242_v18 = vmax.f32 %v10226_v54, 0.0  ;;  %v10243_v5 = vmax.f32 %v10227_v8, 0.0  ;;  %v10244_v52 = vmax.f32 %v10228_v45, 0.0 }
 0x8cd   :  { %10249 = vst.msk [vmem:[#allocation3 + $0x20] sm:$0xff] %vm371_vm7, %v10233_v48  ;;  %10250 = vst.msk [vmem:[#allocation3 + $0x28] sm:$0xff] %vm371_vm7, %v10234_v12 }
 0x8ce   :  { %10251 = vst.msk [vmem:[#allocation3 + $0x30] sm:$0xff] %vm371_vm7, %v10235_v44  ;;  %10252 = vst.msk [vmem:[#allocation3 + $0x38] sm:$0xff] %vm371_vm7, %v10236_v24 }
 0x8cf   :  { %10253 = vst.msk [vmem:[#allocation3 + $0x40] sm:$0xff] %vm371_vm7, %v10237_v39  ;;  %10254 = vst.msk [vmem:[#allocation3 + $0x48] sm:$0xff] %vm371_vm7, %v10238_v4 }
 0x8d0   :  { %10255 = vst.msk [vmem:[#allocation3 + $0x50] sm:$0xff] %vm371_vm7, %v10239_v60  ;;  %10256 = vst.msk [vmem:[#allocation3 + $0x58] sm:$0xff] %vm371_vm7, %v10240_v21 }
 0x8d1   :  { %10257 = vst.msk [vmem:[#allocation3 + $0x60] sm:$0xff] %vm371_vm7, %v10241_v17  ;;  %10258 = vst.msk [vmem:[#allocation3 + $0x68] sm:$0xff] %vm371_vm7, %v10242_v18 }
 0x8d2   :  { %10259 = vst.msk [vmem:[#allocation3 + $0x70] sm:$0xff] %vm371_vm7, %v10243_v5  ;;  %10260 = vst.msk [vmem:[#allocation3 + $0x78] sm:$0xff] %vm371_vm7, %v10244_v52 }
 0x8d3   :  { %12319 = shalt.err (!%p12316_p4)
}
 0x8d4   :  { %s12320_s17 = scalar_lea.hbm %s16137_s8, 2048 }
 0x8d5   :  { %p12321_p5 = scmp.ne.s32.totalorder %s16137_s8, %s12320_s17  ;;  %p12324_p6 = scmp.lt.u32.totalorder %s12320_s17, %s16137_s8 }
 0x8d7   :  { %p12326_p7 = pnand %p12324_p6, %p12321_p5 }
 0x8d9   :  { %12329 = shalt.err (!%p12326_p7)
}
 0x8da   :  { %s12334_s21 = smov 128   ;;  %s12335_s22 = smov 8  }
 0x8db   :  { %10272 = dma.vmem_to_hbm [thread:$0]  %s10267_s15, 2048, %s16137_s8, [#allocation4], %s12334_s21, %s12334_s21, %s12335_s22  }
 0x8dc   :  { %12330 = dma.done.wait [#allocation4], 2048  }
 0x8dd   :  { %12331 = vsyncadd [#allocation4], 4294965248 }
 0x8de   :  { %10276 = vsyncpa [#allocation4], 1 }

</bundles_post_ra>
